<compile_context>
chip_gen: v5e
topology: v5e:2x2
jax: 0.10.0
libtpu: 0.0.40
codegen_flags: <defaults>
</compile_context>

<pallas_src>
import jax
import jax.numpy as jnp
from jax import lax
from jax.experimental import pallas as pl
from jax.experimental.pallas import tpu as pltpu

BN_EPS = 1e-5
LANE = 128
SUBLANE = 8
TM_DEFAULT = 256                      # rows per M tile (multiple of 8)
VMEM_LIMIT = 32 * 1024 * 1024         # explicit, safe on v5e/v6e/v7x


def _round_up(x, m):
    return (x + m - 1) // m * m


# ----------------------------------------------------------------------------
# Pallas kernels
# ----------------------------------------------------------------------------
def _make_stats_kernel(has_bias, m_real, m_pad, tm):
    """BN pass 1: accumulate per-channel sum / sum-of-squares of
    y = patches @ W (+ bias) across the whole (tiled) M sweep, then finalize
    to (scale, shift) = (gamma*rsqrt(var+eps), beta - mean*scale).
    The (2, Cp) output block index is constant -> stays VMEM-resident across
    the grid and is written back to HBM once at the end."""
    inv_m = 1.0 / float(m_real)
    need_mask = m_pad > m_real

    def kernel(*refs):
        idx = 0
        p_ref = refs[idx]; idx += 1          # (TM, Kp) bf16 patches tile
        w_ref = refs[idx]; idx += 1          # (Kp, Cp) bf16 weights
        if has_bias:
            b_ref = refs[idx]; idx += 1      # (1, Cp) f32
        g_ref = refs[idx]; idx += 1          # (1, Cp) gamma
        be_ref = refs[idx]; idx += 1         # (1, Cp) beta
        s_ref = refs[idx]                    # (2, Cp) out: row0=scale, row1=shift

        mi = pl.program_id(0)

        y = jnp.dot(p_ref[...], w_ref[...], preferred_element_type=jnp.float32)
        if has_bias:
            y = y + b_ref[...]
        if need_mask:
            # zero out rows beyond the real M so they don't pollute the stats
            rows = mi * tm + lax.broadcasted_iota(jnp.int32, y.shape, 0)
            y = jnp.where(rows < m_real, y, 0.0)

        @pl.when(mi == 0)
        def _():
            s_ref[...] = jnp.zeros_like(s_ref)

        # single-pass sum / sum-of-squares (no mean-then-var second pass)
        s_ref[0:1, :] = s_ref[0:1, :] + jnp.sum(y, axis=0, keepdims=True)
        s_ref[1:2, :] = s_ref[1:2, :] + jnp.sum(y * y, axis=0, keepdims=True)

        @pl.when(mi == pl.num_programs(0) - 1)
        def _():
            mean = s_ref[0:1, :] * inv_m
            var = s_ref[1:2, :] * inv_m - mean * mean      # biased variance
            inv_std = lax.rsqrt(var + BN_EPS)
            scale = g_ref[...] * inv_std
            shift = be_ref[...] - mean * scale
            s_ref[0:1, :] = scale
            s_ref[1:2, :] = shift

    return kernel


def _make_apply_kernel(has_bias, has_bn, has_residual, act):
    """Fused matmul (+bias) (+BN scale/shift) (+residual) (+activation)."""
    def kernel(*refs):
        idx = 0
        p_ref = refs[idx]; idx += 1          # (TM, Kp) bf16
        w_ref = refs[idx]; idx += 1          # (Kp, Cp) bf16
        if has_bias:
            b_ref = refs[idx]; idx += 1      # (1, Cp)  f32
        if has_bn:
            s_ref = refs[idx]; idx += 1      # (2, Cp)  f32 scale/shift
        if has_residual:
            r_ref = refs[idx]; idx += 1      # (TM, Cp) f32
        o_ref = refs[idx]                    # (TM, Cp) f32

        y = jnp.dot(p_ref[...], w_ref[...], preferred_element_type=jnp.float32)
        if has_bias:
            y = y + b_ref[...]
        if has_bn:
            st = s_ref[...]
            y = y * st[0:1, :] + st[1:2, :]
        if has_residual:
            y = y + r_ref[...]
        if act == "relu":
            y = jnp.maximum(y, 0.0)
        elif act == "sigmoid":
            y = jax.nn.sigmoid(y)
        o_ref[...] = y.astype(o_ref.dtype)

    return kernel


# ----------------------------------------------------------------------------
# One conv layer = (optional stats pass) + apply pass, both M-tiled
# ----------------------------------------------------------------------------
def fused_conv_layer(patches, w_mat, *, bias=None, gamma=None, beta=None,
                     residual=None, act="none", tm=TM_DEFAULT):
    M, K = patches.shape
    Cout = w_mat.shape[1]
    has_bias = bias is not None
    has_bn = gamma is not None
    has_res = residual is not None

    Kp = _round_up(K, LANE)
    Cp = _round_up(Cout, LANE)
    if M <= tm:
        TM = _round_up(M, SUBLANE)
        Mp = TM
    else:
        TM = tm
        Mp = _round_up(M, TM)
    n_tiles = Mp // TM

    # bf16 MXU operands, zero-padded to lane/sublane aligned shapes
    p = jnp.pad(patches.astype(jnp.bfloat16), ((0, Mp - M), (0, Kp - K)))
    w = jnp.pad(w_mat.astype(jnp.bfloat16), ((0, Kp - K), (0, Cp - Cout)))

    def row(v):  # (Cout,) -> (1, Cp) f32, zero-padded columns
        return jnp.pad(v.astype(jnp.float32).reshape(1, Cout),
                       ((0, 0), (0, Cp - Cout)))

    p_spec = pl.BlockSpec((TM, Kp), lambda i: (i, 0))
    w_spec = pl.BlockSpec((Kp, Cp), lambda i: (0, 0))
    row_spec = pl.BlockSpec((1, Cp), lambda i: (0, 0))
    mc_spec = pl.BlockSpec((TM, Cp), lambda i: (i, 0))
    stats_spec = pl.BlockSpec((2, Cp), lambda i: (0, 0))

    stats = None
    if has_bn:
        ops = [p, w]
        specs = [p_spec, w_spec]
        if has_bias:
            ops.append(row(bias)); specs.append(row_spec)
        ops += [row(gamma), row(beta)]
        specs += [row_spec, row_spec]
        stats = pl.pallas_call(
            _make_stats_kernel(has_bias, M, Mp, TM),
            out_shape=jax.ShapeDtypeStruct((2, Cp), jnp.float32),
            grid=(n_tiles,),
            in_specs=specs,
            out_specs=stats_spec,
            compiler_params=pltpu.CompilerParams(
                dimension_semantics=("arbitrary",),
                vmem_limit_bytes=VMEM_LIMIT),
        )(*ops)

    ops = [p, w]
    specs = [p_spec, w_spec]
    if has_bias:
        ops.append(row(bias)); specs.append(row_spec)
    if has_bn:
        ops.append(stats); specs.append(stats_spec)
    if has_res:
        r = jnp.pad(residual.astype(jnp.float32), ((0, Mp - M), (0, Cp - Cout)))
        ops.append(r); specs.append(mc_spec)

    out = pl.pallas_call(
        _make_apply_kernel(has_bias, has_bn, has_res, act),
        out_shape=jax.ShapeDtypeStruct((Mp, Cp), jnp.float32),
        grid=(n_tiles,),
        in_specs=specs,
        out_specs=mc_spec,
        compiler_params=pltpu.CompilerParams(
            dimension_semantics=("parallel",),
            vmem_limit_bytes=VMEM_LIMIT),
    )(*ops)
    return out[:M, :Cout]


# ----------------------------------------------------------------------------
# JAX glue: padding / im2col / dilation (reshapes & slices only)
# ----------------------------------------------------------------------------
def im2col(x, kh, kw, stride):
    # x: (N, H, W, C), already padded
    N, H, W, C = x.shape
    Ho = (H - kh) // stride + 1
    Wo = (W - kw) // stride + 1
    cols = []
    for i in range(kh):
        for j in range(kw):
            cols.append(x[:, i:i + stride * Ho:stride, j:j + stride * Wo:stride, :])
    patches = jnp.concatenate(cols, axis=-1)          # (N, Ho, Wo, kh*kw*C)
    return patches.reshape(N * Ho * Wo, kh * kw * C), (N, Ho, Wo)


def conv2d(x, w, *, stride=1, padding=0, pad_mode="zero", bias=None,
           gamma=None, beta=None, residual=None, act="none"):
    # x: NHWC;  w: PyTorch layout (Cout, Cin, kh, kw)
    Cout, Cin, kh, kw = w.shape
    if padding > 0:
        mode = "reflect" if pad_mode == "reflect" else "constant"
        x = jnp.pad(x, ((0, 0), (padding, padding), (padding, padding), (0, 0)),
                    mode=mode)
    # cast before patch extraction so the inflated patches matrix is bf16
    patches, (N, Ho, Wo) = im2col(x.astype(jnp.bfloat16), kh, kw, stride)
    # match im2col ordering (kh, kw, cin)
    w_mat = jnp.transpose(w, (2, 3, 1, 0)).reshape(kh * kw * Cin, Cout)
    res_flat = residual.reshape(-1, Cout) if residual is not None else None
    out = fused_conv_layer(patches, w_mat, bias=bias, gamma=gamma, beta=beta,
                           residual=res_flat, act=act)
    return out.reshape(N, Ho, Wo, Cout)


def conv_transpose2d(x, w, *, stride=2, padding=1, output_padding=1,
                     gamma=None, beta=None, act="relu"):
    # x: NHWC;  w: PyTorch ConvTranspose2d layout (Cin, Cout, kh, kw), bias=False
    Cin, Cout, kh, kw = w.shape
    N, H, W, C = x.shape
    xb = x.astype(jnp.bfloat16)
    # zero-dilate input by stride
    Hd = (H - 1) * stride + 1
    Wd = (W - 1) * stride + 1
    xd = jnp.zeros((N, Hd, Wd, C), jnp.bfloat16).at[:, ::stride, ::stride, :].set(xb)
    # equivalent zero padding: (k-1-p) top/left, (k-1-p+output_padding) bottom/right
    p0 = kh - 1 - padding
    p1 = kh - 1 - padding + output_padding
    xd = jnp.pad(xd, ((0, 0), (p0, p1), (p0, p1), (0, 0)))
    # equivalent conv weight: flip spatially, swap in/out channel axes
    w_conv = jnp.transpose(w[:, :, ::-1, ::-1], (2, 3, 0, 1)).reshape(kh * kw * Cin, Cout)
    patches, (N, Ho, Wo) = im2col(xd, kh, kw, 1)
    out = fused_conv_layer(patches, w_conv, gamma=gamma, beta=beta, act=act)
    return out.reshape(N, Ho, Wo, Cout)


# ----------------------------------------------------------------------------
# Parameters (deterministic, shapes from the PyTorch __init__)
# ----------------------------------------------------------------------------
def init_params(key, input_nc, output_nc, fm, n_blocks):
    params = {}
    keys = iter(jax.random.split(key, 256))

    def nrm(shape, scale=0.05):
        return scale * jax.random.normal(next(keys), shape, jnp.float32)

    params["conv0_w"] = nrm((fm, input_nc, 7, 7))
    params["bn0_g"] = jnp.ones((fm,), jnp.float32)
    params["bn0_b"] = jnp.zeros((fm,), jnp.float32)

    for i in range(2):
        cin, cout = fm * 2 ** i, fm * 2 ** (i + 1)
        params[f"down{i}_w"] = nrm((cout, cin, 3, 3))
        params[f"down{i}_b"] = nrm((cout,))
        params[f"down{i}_bng"] = jnp.ones((cout,), jnp.float32)
        params[f"down{i}_bnb"] = jnp.zeros((cout,), jnp.float32)

    c = fm * 4
    for i in range(n_blocks):
        params[f"blk{i}_c1w"] = nrm((c, c, 3, 3))
        params[f"blk{i}_bn1g"] = jnp.ones((c,), jnp.float32)
        params[f"blk{i}_bn1b"] = jnp.zeros((c,), jnp.float32)
        params[f"blk{i}_c2w"] = nrm((c, c, 3, 3))
        params[f"blk{i}_bn2g"] = jnp.ones((c,), jnp.float32)
        params[f"blk{i}_bn2b"] = jnp.zeros((c,), jnp.float32)

    for i in range(2):
        cin, cout = fm * 2 ** (2 - i), fm * 2 ** (1 - i)
        params[f"up{i}_w"] = nrm((cin, cout, 3, 3))
        params[f"up{i}_bng"] = jnp.ones((cout,), jnp.float32)
        params[f"up{i}_bnb"] = jnp.zeros((cout,), jnp.float32)

    params["convf_w"] = nrm((output_nc, fm, 7, 7))
    return params


# ----------------------------------------------------------------------------
# Full ResNet forward (matches nn.Sequential order of the PyTorch module)
# ----------------------------------------------------------------------------
def resnet_forward(x_nchw, params, *, n_blocks):
    x = jnp.transpose(x_nchw, (0, 2, 3, 1)).astype(jnp.float32)  # NCHW -> NHWC

    # ReflectionPad2d(3) + Conv2d(7x7, no bias) + BN + ReLU
    x = conv2d(x, params["conv0_w"], stride=1, padding=3, pad_mode="reflect",
               gamma=params["bn0_g"], beta=params["bn0_b"], act="relu")

    # 2x downsampling: Conv2d(3x3, stride 2, pad 1, bias) + BN + ReLU
    for i in range(2):
        x = conv2d(x, params[f"down{i}_w"], stride=2, padding=1,
                   bias=params[f"down{i}_b"],
                   gamma=params[f"down{i}_bng"], beta=params[f"down{i}_bnb"],
                   act="relu")

    # ResNet blocks (ReLU after the residual add, as in the reference module)
    for i in range(n_blocks):
        res = x
        h = conv2d(x, params[f"blk{i}_c1w"], stride=1, padding=1,
                   gamma=params[f"blk{i}_bn1g"], beta=params[f"blk{i}_bn1b"],
                   act="relu")
        x = conv2d(h, params[f"blk{i}_c2w"], stride=1, padding=1,
                   gamma=params[f"blk{i}_bn2g"], beta=params[f"blk{i}_bn2b"],
                   residual=res, act="relu")

    # 2x upsampling: ConvTranspose2d(3x3, s=2, p=1, op=1, no bias) + BN + ReLU
    for i in range(2):
        x = conv_transpose2d(x, params[f"up{i}_w"],
                             stride=2, padding=1, output_padding=1,
                             gamma=params[f"up{i}_bng"], beta=params[f"up{i}_bnb"],
                             act="relu")

    # ReflectionPad2d(3) + Conv2d(7x7, no bias) + Sigmoid
    x = conv2d(x, params["convf_w"], stride=1, padding=3, pad_mode="reflect",
               act="sigmoid")

    return jnp.transpose(x, (0, 3, 1, 2))  # NHWC -> NCHW


# ----------------------------------------------------------------------------
if __name__ == "__main__":
    key = jax.random.PRNGKey(0)
    kx, kp = jax.random.split(key)

    # small shapes consistent with the module
    N, input_nc, output_nc, fm, n_blocks, S = 2, 4, 3, 8, 2, 16

    x = jax.random.normal(kx, (N, input_nc, S, S), jnp.float32)
    params = init_params(kp, input_nc, output_nc, fm, n_blocks)

    fwd = jax.jit(lambda xx, pp: resnet_forward(xx, pp, n_blocks=n_blocks))
    y = fwd(x, params)
    y = jax.block_until_ready(y)

    assert y.shape == (N, output_nc, S, S), y.shape
    assert bool(jnp.all(jnp.isfinite(y)))
    assert bool(jnp.all((y >= 0.0) & (y <= 1.0)))  # sigmoid output range
    print("KERNEL_OK")
</pallas_src>

<mosaic_0001>
module attributes {stable_mosaic.version = 11 : i64} {
  func.func @kernel(%arg0: i32, %arg1: memref<256x256xbf16, #tpu.memory_space<vmem>>, %arg2: memref<256x128xbf16, #tpu.memory_space<vmem>>, %arg3: memref<2x128xf32, #tpu.memory_space<vmem>>, %arg4: memref<256x128xf32, #tpu.memory_space<vmem>>) attributes {dimension_semantics = [#tpu.dimension_semantics<parallel>], iteration_bounds = array<i64: 2>, scalar_prefetch = 0 : i64, scratch_operands = 0 : i64, tpu.core_type = #tpu.core_type<tc>, window_params = [{transform_indices = @transform_0, window_bounds = array<i64: 256, 256>}, {pipeline_mode = #tpu.pipeline_mode<synchronous>, transform_indices = @transform_1, window_bounds = array<i64: 256, 128>}, {pipeline_mode = #tpu.pipeline_mode<synchronous>, transform_indices = @transform_2, window_bounds = array<i64: 2, 128>}, {transform_indices = @transform_3, window_bounds = array<i64: 256, 128>}]} {
    %c0 = arith.constant 0 : index
    %c0_0 = arith.constant 0 : index
    %0 = vector.load %arg1[%c0, %c0_0] : memref<256x256xbf16, #tpu.memory_space<vmem>>, vector<256x256xbf16>
    %c0_1 = arith.constant 0 : index
    %c0_2 = arith.constant 0 : index
    %1 = vector.load %arg2[%c0_1, %c0_2] : memref<256x128xbf16, #tpu.memory_space<vmem>>, vector<256x128xbf16>
    %cst = arith.constant dense<0.000000e+00> : vector<256x128xf32>
    %2 = tpu.matmul %0, %1, %cst {dimension_numbers = #tpu.dot_dimension_numbers<[1], [0], [0], [1], [0, 0, 1, 1], [], []>} : vector<256x256xbf16>, vector<256x128xbf16>, vector<256x128xf32> -> vector<256x128xf32>
    %c0_3 = arith.constant 0 : index
    %c0_4 = arith.constant 0 : index
    %3 = vector.load %arg3[%c0_3, %c0_4] : memref<2x128xf32, #tpu.memory_space<vmem>>, vector<2x128xf32>
    %4 = vector.extract_strided_slice %3 {offsets = [0, 0], sizes = [1, 128], strides = [1, 1]} : vector<2x128xf32> to vector<1x128xf32>
    %5 = vector.broadcast %4 : vector<1x128xf32> to vector<256x128xf32>
    %6 = arith.mulf %2, %5 : vector<256x128xf32>
    %7 = vector.extract_strided_slice %3 {offsets = [1, 0], sizes = [1, 128], strides = [1, 1]} : vector<2x128xf32> to vector<1x128xf32>
    %8 = vector.broadcast %7 : vector<1x128xf32> to vector<256x128xf32>
    %9 = arith.addf %6, %8 : vector<256x128xf32>
    %cst_5 = arith.constant 0.000000e+00 : f32
    %10 = vector.broadcast %cst_5 : f32 to vector<256x128xf32>
    %11 = arith.maximumf %9, %10 : vector<256x128xf32>
    %c0_6 = arith.constant 0 : index
    %c0_7 = arith.constant 0 : index
    %12 = vector.load %arg4[%c0_6, %c0_7] : memref<256x128xf32, #tpu.memory_space<vmem>>, vector<256x128xf32>
    tpu.vector_store %arg4[%c0_6, %c0_7], %11 {strides = array<i32>} : memref<256x128xf32, #tpu.memory_space<vmem>>, vector<256x128xf32>,
    return
  }
  func.func @transform_0(%arg0: i32) -> (i32, i32) {
    %c0_i32 = arith.constant 0 : i32
    %c0_i32_0 = arith.constant 0 : i32
    return %arg0, %c0_i32 : i32, i32
  }
  func.func @transform_1(%arg0: i32) -> (i32, i32) {
    %c0_i32 = arith.constant 0 : i32
    %c0_i32_0 = arith.constant 0 : i32
    %c0_i32_1 = arith.constant 0 : i32
    return %c0_i32, %c0_i32_0 : i32, i32
  }
  func.func @transform_2(%arg0: i32) -> (i32, i32) {
    %c0_i32 = arith.constant 0 : i32
    %c0_i32_0 = arith.constant 0 : i32
    %c0_i32_1 = arith.constant 0 : i32
    return %c0_i32, %c0_i32_0 : i32, i32
  }
  func.func @transform_3(%arg0: i32) -> (i32, i32) {
    %c0_i32 = arith.constant 0 : i32
    %c0_i32_0 = arith.constant 0 : i32
    return %arg0, %c0_i32 : i32, i32
  }
}

module attributes {stable_mosaic.version = 11 : i64} {
  func.func @kernel(%arg0: i32, %arg1: memref<256x256xbf16, #tpu.memory_space<vmem>>, %arg2: memref<256x128xbf16, #tpu.memory_space<vmem>>, %arg3: memref<1x128xf32, #tpu.memory_space<vmem>>, %arg4: memref<1x128xf32, #tpu.memory_space<vmem>>, %arg5: memref<2x128xf32, #tpu.memory_space<vmem>>) attributes {dimension_semantics = [#tpu.dimension_semantics<arbitrary>], iteration_bounds = array<i64: 2>, scalar_prefetch = 0 : i64, scratch_operands = 0 : i64, tpu.core_type = #tpu.core_type<tc>, window_params = [{transform_indices = @transform_0, window_bounds = array<i64: 256, 256>}, {pipeline_mode = #tpu.pipeline_mode<synchronous>, transform_indices = @transform_1, window_bounds = array<i64: 256, 128>}, {pipeline_mode = #tpu.pipeline_mode<synchronous>, transform_indices = @transform_2, window_bounds = array<i64: 1, 128>}, {pipeline_mode = #tpu.pipeline_mode<synchronous>, transform_indices = @transform_3, window_bounds = array<i64: 1, 128>}, {pipeline_mode = #tpu.pipeline_mode<synchronous>, transform_indices = @transform_4, window_bounds = array<i64: 2, 128>}]} {
    %c0 = arith.constant 0 : index
    %c0_0 = arith.constant 0 : index
    %0 = vector.load %arg1[%c0, %c0_0] : memref<256x256xbf16, #tpu.memory_space<vmem>>, vector<256x256xbf16>
    %c0_1 = arith.constant 0 : index
    %c0_2 = arith.constant 0 : index
    %1 = vector.load %arg2[%c0_1, %c0_2] : memref<256x128xbf16, #tpu.memory_space<vmem>>, vector<256x128xbf16>
    %cst = arith.constant dense<0.000000e+00> : vector<256x128xf32>
    %2 = tpu.matmul %0, %1, %cst {dimension_numbers = #tpu.dot_dimension_numbers<[1], [0], [0], [1], [0, 0, 1, 1], [], []>} : vector<256x256xbf16>, vector<256x128xbf16>, vector<256x128xf32> -> vector<256x128xf32>
    %c0_i32 = arith.constant 0 : i32
    %3 = arith.cmpi eq, %arg0, %c0_i32 : i32
    %4 = arith.extui %3 : i1 to i32
    %c0_i32_3 = arith.constant 0 : i32
    %5 = arith.cmpi ne, %4, %c0_i32_3 : i32
    scf.if %5 {
      %cst_14 = arith.constant 0.000000e+00 : f32
      %20 = vector.broadcast %cst_14 : f32 to vector<2x128xf32>
      %c0_15 = arith.constant 0 : index
      %c0_16 = arith.constant 0 : index
      %21 = vector.load %arg5[%c0_15, %c0_16] : memref<2x128xf32, #tpu.memory_space<vmem>>, vector<2x128xf32>
      tpu.vector_store %arg5[%c0_15, %c0_16], %20 {strides = array<i32>} : memref<2x128xf32, #tpu.memory_space<vmem>>, vector<2x128xf32>,
    } else {
    }
    %c0_4 = arith.constant 0 : index
    %c0_5 = arith.constant 0 : index
    %6 = vector.load %arg5[%c0_4, %c0_5] : memref<2x128xf32, #tpu.memory_space<vmem>>, vector<1x128xf32>
    %cst_6 = arith.constant dense<0.000000e+00> : vector<128xf32>
    %7 = vector.multi_reduction <add>, %2, %cst_6 [0] : vector<256x128xf32> to vector<128xf32>
    %8 = vector.shape_cast %7 : vector<128xf32> to vector<1x128xf32>
    %9 = arith.addf %6, %8 : vector<1x128xf32>
    %c0_7 = arith.constant 0 : index
    %c0_8 = arith.constant 0 : index
    %10 = vector.load %arg5[%c0_7, %c0_8] : memref<2x128xf32, #tpu.memory_space<vmem>>, vector<1x128xf32>
    tpu.vector_store %arg5[%c0_7, %c0_8], %9 {strides = array<i32>} : memref<2x128xf32, #tpu.memory_space<vmem>>, vector<1x128xf32>,
    %c1 = arith.constant 1 : index
    %c0_9 = arith.constant 0 : index
    %11 = vector.load %arg5[%c1, %c0_9] : memref<2x128xf32, #tpu.memory_space<vmem>>, vector<1x128xf32>
    %12 = arith.mulf %2, %2 : vector<256x128xf32>
    %cst_10 = arith.constant dense<0.000000e+00> : vector<128xf32>
    %13 = vector.multi_reduction <add>, %12, %cst_10 [0] : vector<256x128xf32> to vector<128xf32>
    %14 = vector.shape_cast %13 : vector<128xf32> to vector<1x128xf32>
    %15 = arith.addf %11, %14 : vector<1x128xf32>
    %c1_11 = arith.constant 1 : index
    %c0_12 = arith.constant 0 : index
    %16 = vector.load %arg5[%c1_11, %c0_12] : memref<2x128xf32, #tpu.memory_space<vmem>>, vector<1x128xf32>
    tpu.vector_store %arg5[%c1_11, %c0_12], %15 {strides = array<i32>} : memref<2x128xf32, #tpu.memory_space<vmem>>, vector<1x128xf32>,
    %c1_i32 = arith.constant 1 : i32
    %17 = arith.cmpi eq, %arg0, %c1_i32 : i32
    %18 = arith.extui %17 : i1 to i32
    %c0_i32_13 = arith.constant 0 : i32
    %19 = arith.cmpi ne, %18, %c0_i32_13 : i32
    scf.if %19 {
      %c0_14 = arith.constant 0 : index
      %c0_15 = arith.constant 0 : index
      %20 = vector.load %arg5[%c0_14, %c0_15] : memref<2x128xf32, #tpu.memory_space<vmem>>, vector<1x128xf32>
      %cst_16 = arith.constant 0.001953125 : f32
      %21 = vector.broadcast %cst_16 : f32 to vector<1x128xf32>
      %22 = arith.mulf %20, %21 : vector<1x128xf32>
      %c1_17 = arith.constant 1 : index
      %c0_18 = arith.constant 0 : index
      %23 = vector.load %arg5[%c1_17, %c0_18] : memref<2x128xf32, #tpu.memory_space<vmem>>, vector<1x128xf32>
      %cst_19 = arith.constant 0.001953125 : f32
      %24 = vector.broadcast %cst_19 : f32 to vector<1x128xf32>
      %25 = arith.mulf %23, %24 : vector<1x128xf32>
      %26 = arith.mulf %22, %22 : vector<1x128xf32>
      %27 = arith.subf %25, %26 : vector<1x128xf32>
      %cst_20 = arith.constant 9.99999974E-6 : f32
      %28 = vector.broadcast %cst_20 : f32 to vector<1x128xf32>
      %29 = arith.addf %27, %28 : vector<1x128xf32>
      %30 = math.rsqrt %29 : vector<1x128xf32>
      %c0_21 = arith.constant 0 : index
      %c0_22 = arith.constant 0 : index
      %31 = vector.load %arg3[%c0_21, %c0_22] : memref<1x128xf32, #tpu.memory_space<vmem>>, vector<1x128xf32>
      %32 = arith.mulf %31, %30 : vector<1x128xf32>
      %c0_23 = arith.constant 0 : index
      %c0_24 = arith.constant 0 : index
      %33 = vector.load %arg4[%c0_23, %c0_24] : memref<1x128xf32, #tpu.memory_space<vmem>>, vector<1x128xf32>
      %34 = arith.mulf %22, %32 : vector<1x128xf32>
      %35 = arith.subf %33, %34 : vector<1x128xf32>
      %c0_25 = arith.constant 0 : index
      %c0_26 = arith.constant 0 : index
      %36 = vector.load %arg5[%c0_25, %c0_26] : memref<2x128xf32, #tpu.memory_space<vmem>>, vector<1x128xf32>
      tpu.vector_store %arg5[%c0_25, %c0_26], %32 {strides = array<i32>} : memref<2x128xf32, #tpu.memory_space<vmem>>, vector<1x128xf32>,
      %c1_27 = arith.constant 1 : index
      %c0_28 = arith.constant 0 : index
      %37 = vector.load %arg5[%c1_27, %c0_28] : memref<2x128xf32, #tpu.memory_space<vmem>>, vector<1x128xf32>
      tpu.vector_store %arg5[%c1_27, %c0_28], %35 {strides = array<i32>} : memref<2x128xf32, #tpu.memory_space<vmem>>, vector<1x128xf32>,
    } else {
    }
    return
  }
  func.func @transform_0(%arg0: i32) -> (i32, i32) {
    %c0_i32 = arith.constant 0 : i32
    %c0_i32_0 = arith.constant 0 : i32
    return %arg0, %c0_i32 : i32, i32
  }
  func.func @transform_1(%arg0: i32) -> (i32, i32) {
    %c0_i32 = arith.constant 0 : i32
    %c0_i32_0 = arith.constant 0 : i32
    %c0_i32_1 = arith.constant 0 : i32
    return %c0_i32, %c0_i32_0 : i32, i32
  }
  func.func @transform_2(%arg0: i32) -> (i32, i32) {
    %c0_i32 = arith.constant 0 : i32
    %c0_i32_0 = arith.constant 0 : i32
    %c0_i32_1 = arith.constant 0 : i32
    return %c0_i32, %c0_i32_0 : i32, i32
  }
  func.func @transform_3(%arg0: i32) -> (i32, i32) {
    %c0_i32 = arith.constant 0 : i32
    %c0_i32_0 = arith.constant 0 : i32
    %c0_i32_1 = arith.constant 0 : i32
    return %c0_i32, %c0_i32_0 : i32, i32
  }
  func.func @transform_4(%arg0: i32) -> (i32, i32) {
    %c0_i32 = arith.constant 0 : i32
    %c0_i32_0 = arith.constant 0 : i32
    %c0_i32_1 = arith.constant 0 : i32
    return %c0_i32, %c0_i32_0 : i32, i32
  }
}

module attributes {stable_mosaic.version = 11 : i64} {
  func.func @kernel(%arg0: i32, %arg1: memref<128x128xbf16, #tpu.memory_space<vmem>>, %arg2: memref<128x128xbf16, #tpu.memory_space<vmem>>, %arg3: memref<1x128xf32, #tpu.memory_space<vmem>>, %arg4: memref<1x128xf32, #tpu.memory_space<vmem>>, %arg5: memref<1x128xf32, #tpu.memory_space<vmem>>, %arg6: memref<2x128xf32, #tpu.memory_space<vmem>>) attributes {dimension_semantics = [#tpu.dimension_semantics<arbitrary>], iteration_bounds = array<i64: 1>, scalar_prefetch = 0 : i64, scratch_operands = 0 : i64, tpu.core_type = #tpu.core_type<tc>, window_params = [{transform_indices = @transform_0, window_bounds = array<i64: 128, 128>}, {pipeline_mode = #tpu.pipeline_mode<synchronous>, transform_indices = @transform_1, window_bounds = array<i64: 128, 128>}, {pipeline_mode = #tpu.pipeline_mode<synchronous>, transform_indices = @transform_2, window_bounds = array<i64: 1, 128>}, {pipeline_mode = #tpu.pipeline_mode<synchronous>, transform_indices = @transform_3, window_bounds = array<i64: 1, 128>}, {pipeline_mode = #tpu.pipeline_mode<synchronous>, transform_indices = @transform_4, window_bounds = array<i64: 1, 128>}, {pipeline_mode = #tpu.pipeline_mode<synchronous>, transform_indices = @transform_5, window_bounds = array<i64: 2, 128>}]} {
    %c0 = arith.constant 0 : index
    %c0_0 = arith.constant 0 : index
    %0 = vector.load %arg1[%c0, %c0_0] : memref<128x128xbf16, #tpu.memory_space<vmem>>, vector<128x128xbf16>
    %c0_1 = arith.constant 0 : index
    %c0_2 = arith.constant 0 : index
    %1 = vector.load %arg2[%c0_1, %c0_2] : memref<128x128xbf16, #tpu.memory_space<vmem>>, vector<128x128xbf16>
    %cst = arith.constant dense<0.000000e+00> : vector<128x128xf32>
    %2 = tpu.matmul %0, %1, %cst {dimension_numbers = #tpu.dot_dimension_numbers<[1], [0], [0], [1], [0, 0, 1, 1], [], []>} : vector<128x128xbf16>, vector<128x128xbf16>, vector<128x128xf32> -> vector<128x128xf32>
    %c0_3 = arith.constant 0 : index
    %c0_4 = arith.constant 0 : index
    %3 = vector.load %arg3[%c0_3, %c0_4] : memref<1x128xf32, #tpu.memory_space<vmem>>, vector<1x128xf32>
    %4 = vector.broadcast %3 : vector<1x128xf32> to vector<128x128xf32>
    %5 = arith.addf %2, %4 : vector<128x128xf32>
    %c0_i32 = arith.constant 0 : i32
    %6 = arith.cmpi eq, %arg0, %c0_i32 : i32
    %7 = arith.extui %6 : i1 to i32
    %c0_i32_5 = arith.constant 0 : i32
    %8 = arith.cmpi ne, %7, %c0_i32_5 : i32
    scf.if %8 {
      %cst_17 = arith.constant 0.000000e+00 : f32
      %23 = vector.broadcast %cst_17 : f32 to vector<2x128xf32>
      %c0_18 = arith.constant 0 : index
      %c0_19 = arith.constant 0 : index
      %24 = vector.load %arg6[%c0_18, %c0_19] : memref<2x128xf32, #tpu.memory_space<vmem>>, vector<2x128xf32>
      tpu.vector_store %arg6[%c0_18, %c0_19], %23 {strides = array<i32>} : memref<2x128xf32, #tpu.memory_space<vmem>>, vector<2x128xf32>,
    } else {
    }
    %c0_6 = arith.constant 0 : index
    %c0_7 = arith.constant 0 : index
    %9 = vector.load %arg6[%c0_6, %c0_7] : memref<2x128xf32, #tpu.memory_space<vmem>>, vector<1x128xf32>
    %cst_8 = arith.constant dense<0.000000e+00> : vector<128xf32>
    %10 = vector.multi_reduction <add>, %5, %cst_8 [0] : vector<128x128xf32> to vector<128xf32>
    %11 = vector.shape_cast %10 : vector<128xf32> to vector<1x128xf32>
    %12 = arith.addf %9, %11 : vector<1x128xf32>
    %c0_9 = arith.constant 0 : index
    %c0_10 = arith.constant 0 : index
    %13 = vector.load %arg6[%c0_9, %c0_10] : memref<2x128xf32, #tpu.memory_space<vmem>>, vector<1x128xf32>
    tpu.vector_store %arg6[%c0_9, %c0_10], %12 {strides = array<i32>} : memref<2x128xf32, #tpu.memory_space<vmem>>, vector<1x128xf32>,
    %c1 = arith.constant 1 : index
    %c0_11 = arith.constant 0 : index
    %14 = vector.load %arg6[%c1, %c0_11] : memref<2x128xf32, #tpu.memory_space<vmem>>, vector<1x128xf32>
    %15 = arith.mulf %5, %5 : vector<128x128xf32>
    %cst_12 = arith.constant dense<0.000000e+00> : vector<128xf32>
    %16 = vector.multi_reduction <add>, %15, %cst_12 [0] : vector<128x128xf32> to vector<128xf32>
    %17 = vector.shape_cast %16 : vector<128xf32> to vector<1x128xf32>
    %18 = arith.addf %14, %17 : vector<1x128xf32>
    %c1_13 = arith.constant 1 : index
    %c0_14 = arith.constant 0 : index
    %19 = vector.load %arg6[%c1_13, %c0_14] : memref<2x128xf32, #tpu.memory_space<vmem>>, vector<1x128xf32>
    tpu.vector_store %arg6[%c1_13, %c0_14], %18 {strides = array<i32>} : memref<2x128xf32, #tpu.memory_space<vmem>>, vector<1x128xf32>,
    %c0_i32_15 = arith.constant 0 : i32
    %20 = arith.cmpi eq, %arg0, %c0_i32_15 : i32
    %21 = arith.extui %20 : i1 to i32
    %c0_i32_16 = arith.constant 0 : i32
    %22 = arith.cmpi ne, %21, %c0_i32_16 : i32
    scf.if %22 {
      %c0_17 = arith.constant 0 : index
      %c0_18 = arith.constant 0 : index
      %23 = vector.load %arg6[%c0_17, %c0_18] : memref<2x128xf32, #tpu.memory_space<vmem>>, vector<1x128xf32>
      %cst_19 = arith.constant 7.812500e-03 : f32
      %24 = vector.broadcast %cst_19 : f32 to vector<1x128xf32>
      %25 = arith.mulf %23, %24 : vector<1x128xf32>
      %c1_20 = arith.constant 1 : index
      %c0_21 = arith.constant 0 : index
      %26 = vector.load %arg6[%c1_20, %c0_21] : memref<2x128xf32, #tpu.memory_space<vmem>>, vector<1x128xf32>
      %cst_22 = arith.constant 7.812500e-03 : f32
      %27 = vector.broadcast %cst_22 : f32 to vector<1x128xf32>
      %28 = arith.mulf %26, %27 : vector<1x128xf32>
      %29 = arith.mulf %25, %25 : vector<1x128xf32>
      %30 = arith.subf %28, %29 : vector<1x128xf32>
      %cst_23 = arith.constant 9.99999974E-6 : f32
      %31 = vector.broadcast %cst_23 : f32 to vector<1x128xf32>
      %32 = arith.addf %30, %31 : vector<1x128xf32>
      %33 = math.rsqrt %32 : vector<1x128xf32>
      %c0_24 = arith.constant 0 : index
      %c0_25 = arith.constant 0 : index
      %34 = vector.load %arg4[%c0_24, %c0_25] : memref<1x128xf32, #tpu.memory_space<vmem>>, vector<1x128xf32>
      %35 = arith.mulf %34, %33 : vector<1x128xf32>
      %c0_26 = arith.constant 0 : index
      %c0_27 = arith.constant 0 : index
      %36 = vector.load %arg5[%c0_26, %c0_27] : memref<1x128xf32, #tpu.memory_space<vmem>>, vector<1x128xf32>
      %37 = arith.mulf %25, %35 : vector<1x128xf32>
      %38 = arith.subf %36, %37 : vector<1x128xf32>
      %c0_28 = arith.constant 0 : index
      %c0_29 = arith.constant 0 : index
      %39 = vector.load %arg6[%c0_28, %c0_29] : memref<2x128xf32, #tpu.memory_space<vmem>>, vector<1x128xf32>
      tpu.vector_store %arg6[%c0_28, %c0_29], %35 {strides = array<i32>} : memref<2x128xf32, #tpu.memory_space<vmem>>, vector<1x128xf32>,
      %c1_30 = arith.constant 1 : index
      %c0_31 = arith.constant 0 : index
      %40 = vector.load %arg6[%c1_30, %c0_31] : memref<2x128xf32, #tpu.memory_space<vmem>>, vector<1x128xf32>
      tpu.vector_store %arg6[%c1_30, %c0_31], %38 {strides = array<i32>} : memref<2x128xf32, #tpu.memory_space<vmem>>, vector<1x128xf32>,
    } else {
    }
    return
  }
  func.func @transform_0(%arg0: i32) -> (i32, i32) {
    %c0_i32 = arith.constant 0 : i32
    %c0_i32_0 = arith.constant 0 : i32
    return %arg0, %c0_i32 : i32, i32
  }
  func.func @transform_1(%arg0: i32) -> (i32, i32) {
    %c0_i32 = arith.constant 0 : i32
    %c0_i32_0 = arith.constant 0 : i32
    %c0_i32_1 = arith.constant 0 : i32
    return %c0_i32, %c0_i32_0 : i32, i32
  }
  func.func @transform_2(%arg0: i32) -> (i32, i32) {
    %c0_i32 = arith.constant 0 : i32
    %c0_i32_0 = arith.constant 0 : i32
    %c0_i32_1 = arith.constant 0 : i32
    return %c0_i32, %c0_i32_0 : i32, i32
  }
  func.func @transform_3(%arg0: i32) -> (i32, i32) {
    %c0_i32 = arith.constant 0 : i32
    %c0_i32_0 = arith.constant 0 : i32
    %c0_i32_1 = arith.constant 0 : i32
    return %c0_i32, %c0_i32_0 : i32, i32
  }
  func.func @transform_4(%arg0: i32) -> (i32, i32) {
    %c0_i32 = arith.constant 0 : i32
    %c0_i32_0 = arith.constant 0 : i32
    %c0_i32_1 = arith.constant 0 : i32
    return %c0_i32, %c0_i32_0 : i32, i32
  }
  func.func @transform_5(%arg0: i32) -> (i32, i32) {
    %c0_i32 = arith.constant 0 : i32
    %c0_i32_0 = arith.constant 0 : i32
    %c0_i32_1 = arith.constant 0 : i32
    return %c0_i32, %c0_i32_0 : i32, i32
  }
}

module attributes {stable_mosaic.version = 11 : i64} {
  func.func @kernel(%arg0: i32, %arg1: memref<128x128xbf16, #tpu.memory_space<vmem>>, %arg2: memref<128x128xbf16, #tpu.memory_space<vmem>>, %arg3: memref<1x128xf32, #tpu.memory_space<vmem>>, %arg4: memref<2x128xf32, #tpu.memory_space<vmem>>, %arg5: memref<128x128xf32, #tpu.memory_space<vmem>>) attributes {dimension_semantics = [#tpu.dimension_semantics<parallel>], iteration_bounds = array<i64: 1>, scalar_prefetch = 0 : i64, scratch_operands = 0 : i64, tpu.core_type = #tpu.core_type<tc>, window_params = [{transform_indices = @transform_0, window_bounds = array<i64: 128, 128>}, {pipeline_mode = #tpu.pipeline_mode<synchronous>, transform_indices = @transform_1, window_bounds = array<i64: 128, 128>}, {pipeline_mode = #tpu.pipeline_mode<synchronous>, transform_indices = @transform_2, window_bounds = array<i64: 1, 128>}, {pipeline_mode = #tpu.pipeline_mode<synchronous>, transform_indices = @transform_3, window_bounds = array<i64: 2, 128>}, {transform_indices = @transform_4, window_bounds = array<i64: 128, 128>}]} {
    %c0 = arith.constant 0 : index
    %c0_0 = arith.constant 0 : index
    %0 = vector.load %arg1[%c0, %c0_0] : memref<128x128xbf16, #tpu.memory_space<vmem>>, vector<128x128xbf16>
    %c0_1 = arith.constant 0 : index
    %c0_2 = arith.constant 0 : index
    %1 = vector.load %arg2[%c0_1, %c0_2] : memref<128x128xbf16, #tpu.memory_space<vmem>>, vector<128x128xbf16>
    %cst = arith.constant dense<0.000000e+00> : vector<128x128xf32>
    %2 = tpu.matmul %0, %1, %cst {dimension_numbers = #tpu.dot_dimension_numbers<[1], [0], [0], [1], [0, 0, 1, 1], [], []>} : vector<128x128xbf16>, vector<128x128xbf16>, vector<128x128xf32> -> vector<128x128xf32>
    %c0_3 = arith.constant 0 : index
    %c0_4 = arith.constant 0 : index
    %3 = vector.load %arg3[%c0_3, %c0_4] : memref<1x128xf32, #tpu.memory_space<vmem>>, vector<1x128xf32>
    %4 = vector.broadcast %3 : vector<1x128xf32> to vector<128x128xf32>
    %5 = arith.addf %2, %4 : vector<128x128xf32>
    %c0_5 = arith.constant 0 : index
    %c0_6 = arith.constant 0 : index
    %6 = vector.load %arg4[%c0_5, %c0_6] : memref<2x128xf32, #tpu.memory_space<vmem>>, vector<2x128xf32>
    %7 = vector.extract_strided_slice %6 {offsets = [0, 0], sizes = [1, 128], strides = [1, 1]} : vector<2x128xf32> to vector<1x128xf32>
    %8 = vector.broadcast %7 : vector<1x128xf32> to vector<128x128xf32>
    %9 = arith.mulf %5, %8 : vector<128x128xf32>
    %10 = vector.extract_strided_slice %6 {offsets = [1, 0], sizes = [1, 128], strides = [1, 1]} : vector<2x128xf32> to vector<1x128xf32>
    %11 = vector.broadcast %10 : vector<1x128xf32> to vector<128x128xf32>
    %12 = arith.addf %9, %11 : vector<128x128xf32>
    %cst_7 = arith.constant 0.000000e+00 : f32
    %13 = vector.broadcast %cst_7 : f32 to vector<128x128xf32>
    %14 = arith.maximumf %12, %13 : vector<128x128xf32>
    %c0_8 = arith.constant 0 : index
    %c0_9 = arith.constant 0 : index
    %15 = vector.load %arg5[%c0_8, %c0_9] : memref<128x128xf32, #tpu.memory_space<vmem>>, vector<128x128xf32>
    tpu.vector_store %arg5[%c0_8, %c0_9], %14 {strides = array<i32>} : memref<128x128xf32, #tpu.memory_space<vmem>>, vector<128x128xf32>,
    return
  }
  func.func @transform_0(%arg0: i32) -> (i32, i32) {
    %c0_i32 = arith.constant 0 : i32
    %c0_i32_0 = arith.constant 0 : i32
    return %arg0, %c0_i32 : i32, i32
  }
  func.func @transform_1(%arg0: i32) -> (i32, i32) {
    %c0_i32 = arith.constant 0 : i32
    %c0_i32_0 = arith.constant 0 : i32
    %c0_i32_1 = arith.constant 0 : i32
    return %c0_i32, %c0_i32_0 : i32, i32
  }
  func.func @transform_2(%arg0: i32) -> (i32, i32) {
    %c0_i32 = arith.constant 0 : i32
    %c0_i32_0 = arith.constant 0 : i32
    %c0_i32_1 = arith.constant 0 : i32
    return %c0_i32, %c0_i32_0 : i32, i32
  }
  func.func @transform_3(%arg0: i32) -> (i32, i32) {
    %c0_i32 = arith.constant 0 : i32
    %c0_i32_0 = arith.constant 0 : i32
    %c0_i32_1 = arith.constant 0 : i32
    return %c0_i32, %c0_i32_0 : i32, i32
  }
  func.func @transform_4(%arg0: i32) -> (i32, i32) {
    %c0_i32 = arith.constant 0 : i32
    %c0_i32_0 = arith.constant 0 : i32
    return %arg0, %c0_i32 : i32, i32
  }
}

module attributes {stable_mosaic.version = 11 : i64} {
  func.func @kernel(%arg0: i32, %arg1: memref<32x256xbf16, #tpu.memory_space<vmem>>, %arg2: memref<256x128xbf16, #tpu.memory_space<vmem>>, %arg3: memref<1x128xf32, #tpu.memory_space<vmem>>, %arg4: memref<1x128xf32, #tpu.memory_space<vmem>>, %arg5: memref<1x128xf32, #tpu.memory_space<vmem>>, %arg6: memref<2x128xf32, #tpu.memory_space<vmem>>) attributes {dimension_semantics = [#tpu.dimension_semantics<arbitrary>], iteration_bounds = array<i64: 1>, scalar_prefetch = 0 : i64, scratch_operands = 0 : i64, tpu.core_type = #tpu.core_type<tc>, window_params = [{transform_indices = @transform_0, window_bounds = array<i64: 32, 256>}, {pipeline_mode = #tpu.pipeline_mode<synchronous>, transform_indices = @transform_1, window_bounds = array<i64: 256, 128>}, {pipeline_mode = #tpu.pipeline_mode<synchronous>, transform_indices = @transform_2, window_bounds = array<i64: 1, 128>}, {pipeline_mode = #tpu.pipeline_mode<synchronous>, transform_indices = @transform_3, window_bounds = array<i64: 1, 128>}, {pipeline_mode = #tpu.pipeline_mode<synchronous>, transform_indices = @transform_4, window_bounds = array<i64: 1, 128>}, {pipeline_mode = #tpu.pipeline_mode<synchronous>, transform_indices = @transform_5, window_bounds = array<i64: 2, 128>}]} {
    %c0 = arith.constant 0 : index
    %c0_0 = arith.constant 0 : index
    %0 = vector.load %arg1[%c0, %c0_0] : memref<32x256xbf16, #tpu.memory_space<vmem>>, vector<32x256xbf16>
    %c0_1 = arith.constant 0 : index
    %c0_2 = arith.constant 0 : index
    %1 = vector.load %arg2[%c0_1, %c0_2] : memref<256x128xbf16, #tpu.memory_space<vmem>>, vector<256x128xbf16>
    %cst = arith.constant dense<0.000000e+00> : vector<32x128xf32>
    %2 = tpu.matmul %0, %1, %cst {dimension_numbers = #tpu.dot_dimension_numbers<[1], [0], [0], [1], [0, 0, 1, 1], [], []>} : vector<32x256xbf16>, vector<256x128xbf16>, vector<32x128xf32> -> vector<32x128xf32>
    %c0_3 = arith.constant 0 : index
    %c0_4 = arith.constant 0 : index
    %3 = vector.load %arg3[%c0_3, %c0_4] : memref<1x128xf32, #tpu.memory_space<vmem>>, vector<1x128xf32>
    %4 = vector.broadcast %3 : vector<1x128xf32> to vector<32x128xf32>
    %5 = arith.addf %2, %4 : vector<32x128xf32>
    %c0_i32 = arith.constant 0 : i32
    %6 = arith.cmpi eq, %arg0, %c0_i32 : i32
    %7 = arith.extui %6 : i1 to i32
    %c0_i32_5 = arith.constant 0 : i32
    %8 = arith.cmpi ne, %7, %c0_i32_5 : i32
    scf.if %8 {
      %cst_17 = arith.constant 0.000000e+00 : f32
      %23 = vector.broadcast %cst_17 : f32 to vector<2x128xf32>
      %c0_18 = arith.constant 0 : index
      %c0_19 = arith.constant 0 : index
      %24 = vector.load %arg6[%c0_18, %c0_19] : memref<2x128xf32, #tpu.memory_space<vmem>>, vector<2x128xf32>
      tpu.vector_store %arg6[%c0_18, %c0_19], %23 {strides = array<i32>} : memref<2x128xf32, #tpu.memory_space<vmem>>, vector<2x128xf32>,
    } else {
    }
    %c0_6 = arith.constant 0 : index
    %c0_7 = arith.constant 0 : index
    %9 = vector.load %arg6[%c0_6, %c0_7] : memref<2x128xf32, #tpu.memory_space<vmem>>, vector<1x128xf32>
    %cst_8 = arith.constant dense<0.000000e+00> : vector<128xf32>
    %10 = vector.multi_reduction <add>, %5, %cst_8 [0] : vector<32x128xf32> to vector<128xf32>
    %11 = vector.shape_cast %10 : vector<128xf32> to vector<1x128xf32>
    %12 = arith.addf %9, %11 : vector<1x128xf32>
    %c0_9 = arith.constant 0 : index
    %c0_10 = arith.constant 0 : index
    %13 = vector.load %arg6[%c0_9, %c0_10] : memref<2x128xf32, #tpu.memory_space<vmem>>, vector<1x128xf32>
    tpu.vector_store %arg6[%c0_9, %c0_10], %12 {strides = array<i32>} : memref<2x128xf32, #tpu.memory_space<vmem>>, vector<1x128xf32>,
    %c1 = arith.constant 1 : index
    %c0_11 = arith.constant 0 : index
    %14 = vector.load %arg6[%c1, %c0_11] : memref<2x128xf32, #tpu.memory_space<vmem>>, vector<1x128xf32>
    %15 = arith.mulf %5, %5 : vector<32x128xf32>
    %cst_12 = arith.constant dense<0.000000e+00> : vector<128xf32>
    %16 = vector.multi_reduction <add>, %15, %cst_12 [0] : vector<32x128xf32> to vector<128xf32>
    %17 = vector.shape_cast %16 : vector<128xf32> to vector<1x128xf32>
    %18 = arith.addf %14, %17 : vector<1x128xf32>
    %c1_13 = arith.constant 1 : index
    %c0_14 = arith.constant 0 : index
    %19 = vector.load %arg6[%c1_13, %c0_14] : memref<2x128xf32, #tpu.memory_space<vmem>>, vector<1x128xf32>
    tpu.vector_store %arg6[%c1_13, %c0_14], %18 {strides = array<i32>} : memref<2x128xf32, #tpu.memory_space<vmem>>, vector<1x128xf32>,
    %c0_i32_15 = arith.constant 0 : i32
    %20 = arith.cmpi eq, %arg0, %c0_i32_15 : i32
    %21 = arith.extui %20 : i1 to i32
    %c0_i32_16 = arith.constant 0 : i32
    %22 = arith.cmpi ne, %21, %c0_i32_16 : i32
    scf.if %22 {
      %c0_17 = arith.constant 0 : index
      %c0_18 = arith.constant 0 : index
      %23 = vector.load %arg6[%c0_17, %c0_18] : memref<2x128xf32, #tpu.memory_space<vmem>>, vector<1x128xf32>
      %cst_19 = arith.constant 3.125000e-02 : f32
      %24 = vector.broadcast %cst_19 : f32 to vector<1x128xf32>
      %25 = arith.mulf %23, %24 : vector<1x128xf32>
      %c1_20 = arith.constant 1 : index
      %c0_21 = arith.constant 0 : index
      %26 = vector.load %arg6[%c1_20, %c0_21] : memref<2x128xf32, #tpu.memory_space<vmem>>, vector<1x128xf32>
      %cst_22 = arith.constant 3.125000e-02 : f32
      %27 = vector.broadcast %cst_22 : f32 to vector<1x128xf32>
      %28 = arith.mulf %26, %27 : vector<1x128xf32>
      %29 = arith.mulf %25, %25 : vector<1x128xf32>
      %30 = arith.subf %28, %29 : vector<1x128xf32>
      %cst_23 = arith.constant 9.99999974E-6 : f32
      %31 = vector.broadcast %cst_23 : f32 to vector<1x128xf32>
      %32 = arith.addf %30, %31 : vector<1x128xf32>
      %33 = math.rsqrt %32 : vector<1x128xf32>
      %c0_24 = arith.constant 0 : index
      %c0_25 = arith.constant 0 : index
      %34 = vector.load %arg4[%c0_24, %c0_25] : memref<1x128xf32, #tpu.memory_space<vmem>>, vector<1x128xf32>
      %35 = arith.mulf %34, %33 : vector<1x128xf32>
      %c0_26 = arith.constant 0 : index
      %c0_27 = arith.constant 0 : index
      %36 = vector.load %arg5[%c0_26, %c0_27] : memref<1x128xf32, #tpu.memory_space<vmem>>, vector<1x128xf32>
      %37 = arith.mulf %25, %35 : vector<1x128xf32>
      %38 = arith.subf %36, %37 : vector<1x128xf32>
      %c0_28 = arith.constant 0 : index
      %c0_29 = arith.constant 0 : index
      %39 = vector.load %arg6[%c0_28, %c0_29] : memref<2x128xf32, #tpu.memory_space<vmem>>, vector<1x128xf32>
      tpu.vector_store %arg6[%c0_28, %c0_29], %35 {strides = array<i32>} : memref<2x128xf32, #tpu.memory_space<vmem>>, vector<1x128xf32>,
      %c1_30 = arith.constant 1 : index
      %c0_31 = arith.constant 0 : index
      %40 = vector.load %arg6[%c1_30, %c0_31] : memref<2x128xf32, #tpu.memory_space<vmem>>, vector<1x128xf32>
      tpu.vector_store %arg6[%c1_30, %c0_31], %38 {strides = array<i32>} : memref<2x128xf32, #tpu.memory_space<vmem>>, vector<1x128xf32>,
    } else {
    }
    return
  }
  func.func @transform_0(%arg0: i32) -> (i32, i32) {
    %c0_i32 = arith.constant 0 : i32
    %c0_i32_0 = arith.constant 0 : i32
    return %arg0, %c0_i32 : i32, i32
  }
  func.func @transform_1(%arg0: i32) -> (i32, i32) {
    %c0_i32 = arith.constant 0 : i32
    %c0_i32_0 = arith.constant 0 : i32
    %c0_i32_1 = arith.constant 0 : i32
    return %c0_i32, %c0_i32_0 : i32, i32
  }
  func.func @transform_2(%arg0: i32) -> (i32, i32) {
    %c0_i32 = arith.constant 0 : i32
    %c0_i32_0 = arith.constant 0 : i32
    %c0_i32_1 = arith.constant 0 : i32
    return %c0_i32, %c0_i32_0 : i32, i32
  }
  func.func @transform_3(%arg0: i32) -> (i32, i32) {
    %c0_i32 = arith.constant 0 : i32
    %c0_i32_0 = arith.constant 0 : i32
    %c0_i32_1 = arith.constant 0 : i32
    return %c0_i32, %c0_i32_0 : i32, i32
  }
  func.func @transform_4(%arg0: i32) -> (i32, i32) {
    %c0_i32 = arith.constant 0 : i32
    %c0_i32_0 = arith.constant 0 : i32
    %c0_i32_1 = arith.constant 0 : i32
    return %c0_i32, %c0_i32_0 : i32, i32
  }
  func.func @transform_5(%arg0: i32) -> (i32, i32) {
    %c0_i32 = arith.constant 0 : i32
    %c0_i32_0 = arith.constant 0 : i32
    %c0_i32_1 = arith.constant 0 : i32
    return %c0_i32, %c0_i32_0 : i32, i32
  }
}

module attributes {stable_mosaic.version = 11 : i64} {
  func.func @kernel(%arg0: i32, %arg1: memref<32x256xbf16, #tpu.memory_space<vmem>>, %arg2: memref<256x128xbf16, #tpu.memory_space<vmem>>, %arg3: memref<1x128xf32, #tpu.memory_space<vmem>>, %arg4: memref<2x128xf32, #tpu.memory_space<vmem>>, %arg5: memref<32x128xf32, #tpu.memory_space<vmem>>) attributes {dimension_semantics = [#tpu.dimension_semantics<parallel>], iteration_bounds = array<i64: 1>, scalar_prefetch = 0 : i64, scratch_operands = 0 : i64, tpu.core_type = #tpu.core_type<tc>, window_params = [{transform_indices = @transform_0, window_bounds = array<i64: 32, 256>}, {pipeline_mode = #tpu.pipeline_mode<synchronous>, transform_indices = @transform_1, window_bounds = array<i64: 256, 128>}, {pipeline_mode = #tpu.pipeline_mode<synchronous>, transform_indices = @transform_2, window_bounds = array<i64: 1, 128>}, {pipeline_mode = #tpu.pipeline_mode<synchronous>, transform_indices = @transform_3, window_bounds = array<i64: 2, 128>}, {transform_indices = @transform_4, window_bounds = array<i64: 32, 128>}]} {
    %c0 = arith.constant 0 : index
    %c0_0 = arith.constant 0 : index
    %0 = vector.load %arg1[%c0, %c0_0] : memref<32x256xbf16, #tpu.memory_space<vmem>>, vector<32x256xbf16>
    %c0_1 = arith.constant 0 : index
    %c0_2 = arith.constant 0 : index
    %1 = vector.load %arg2[%c0_1, %c0_2] : memref<256x128xbf16, #tpu.memory_space<vmem>>, vector<256x128xbf16>
    %cst = arith.constant dense<0.000000e+00> : vector<32x128xf32>
    %2 = tpu.matmul %0, %1, %cst {dimension_numbers = #tpu.dot_dimension_numbers<[1], [0], [0], [1], [0, 0, 1, 1], [], []>} : vector<32x256xbf16>, vector<256x128xbf16>, vector<32x128xf32> -> vector<32x128xf32>
    %c0_3 = arith.constant 0 : index
    %c0_4 = arith.constant 0 : index
    %3 = vector.load %arg3[%c0_3, %c0_4] : memref<1x128xf32, #tpu.memory_space<vmem>>, vector<1x128xf32>
    %4 = vector.broadcast %3 : vector<1x128xf32> to vector<32x128xf32>
    %5 = arith.addf %2, %4 : vector<32x128xf32>
    %c0_5 = arith.constant 0 : index
    %c0_6 = arith.constant 0 : index
    %6 = vector.load %arg4[%c0_5, %c0_6] : memref<2x128xf32, #tpu.memory_space<vmem>>, vector<2x128xf32>
    %7 = vector.extract_strided_slice %6 {offsets = [0, 0], sizes = [1, 128], strides = [1, 1]} : vector<2x128xf32> to vector<1x128xf32>
    %8 = vector.broadcast %7 : vector<1x128xf32> to vector<32x128xf32>
    %9 = arith.mulf %5, %8 : vector<32x128xf32>
    %10 = vector.extract_strided_slice %6 {offsets = [1, 0], sizes = [1, 128], strides = [1, 1]} : vector<2x128xf32> to vector<1x128xf32>
    %11 = vector.broadcast %10 : vector<1x128xf32> to vector<32x128xf32>
    %12 = arith.addf %9, %11 : vector<32x128xf32>
    %cst_7 = arith.constant 0.000000e+00 : f32
    %13 = vector.broadcast %cst_7 : f32 to vector<32x128xf32>
    %14 = arith.maximumf %12, %13 : vector<32x128xf32>
    %c0_8 = arith.constant 0 : index
    %c0_9 = arith.constant 0 : index
    %15 = vector.load %arg5[%c0_8, %c0_9] : memref<32x128xf32, #tpu.memory_space<vmem>>, vector<32x128xf32>
    tpu.vector_store %arg5[%c0_8, %c0_9], %14 {strides = array<i32>} : memref<32x128xf32, #tpu.memory_space<vmem>>, vector<32x128xf32>,
    return
  }
  func.func @transform_0(%arg0: i32) -> (i32, i32) {
    %c0_i32 = arith.constant 0 : i32
    %c0_i32_0 = arith.constant 0 : i32
    return %arg0, %c0_i32 : i32, i32
  }
  func.func @transform_1(%arg0: i32) -> (i32, i32) {
    %c0_i32 = arith.constant 0 : i32
    %c0_i32_0 = arith.constant 0 : i32
    %c0_i32_1 = arith.constant 0 : i32
    return %c0_i32, %c0_i32_0 : i32, i32
  }
  func.func @transform_2(%arg0: i32) -> (i32, i32) {
    %c0_i32 = arith.constant 0 : i32
    %c0_i32_0 = arith.constant 0 : i32
    %c0_i32_1 = arith.constant 0 : i32
    return %c0_i32, %c0_i32_0 : i32, i32
  }
  func.func @transform_3(%arg0: i32) -> (i32, i32) {
    %c0_i32 = arith.constant 0 : i32
    %c0_i32_0 = arith.constant 0 : i32
    %c0_i32_1 = arith.constant 0 : i32
    return %c0_i32, %c0_i32_0 : i32, i32
  }
  func.func @transform_4(%arg0: i32) -> (i32, i32) {
    %c0_i32 = arith.constant 0 : i32
    %c0_i32_0 = arith.constant 0 : i32
    return %arg0, %c0_i32 : i32, i32
  }
}

module attributes {stable_mosaic.version = 11 : i64} {
  func.func @kernel(%arg0: i32, %arg1: memref<32x384xbf16, #tpu.memory_space<vmem>>, %arg2: memref<384x128xbf16, #tpu.memory_space<vmem>>, %arg3: memref<1x128xf32, #tpu.memory_space<vmem>>, %arg4: memref<1x128xf32, #tpu.memory_space<vmem>>, %arg5: memref<2x128xf32, #tpu.memory_space<vmem>>) attributes {dimension_semantics = [#tpu.dimension_semantics<arbitrary>], iteration_bounds = array<i64: 1>, scalar_prefetch = 0 : i64, scratch_operands = 0 : i64, tpu.core_type = #tpu.core_type<tc>, window_params = [{transform_indices = @transform_0, window_bounds = array<i64: 32, 384>}, {pipeline_mode = #tpu.pipeline_mode<synchronous>, transform_indices = @transform_1, window_bounds = array<i64: 384, 128>}, {pipeline_mode = #tpu.pipeline_mode<synchronous>, transform_indices = @transform_2, window_bounds = array<i64: 1, 128>}, {pipeline_mode = #tpu.pipeline_mode<synchronous>, transform_indices = @transform_3, window_bounds = array<i64: 1, 128>}, {pipeline_mode = #tpu.pipeline_mode<synchronous>, transform_indices = @transform_4, window_bounds = array<i64: 2, 128>}]} {
    %c0 = arith.constant 0 : index
    %c0_0 = arith.constant 0 : index
    %0 = vector.load %arg1[%c0, %c0_0] : memref<32x384xbf16, #tpu.memory_space<vmem>>, vector<32x384xbf16>
    %c0_1 = arith.constant 0 : index
    %c0_2 = arith.constant 0 : index
    %1 = vector.load %arg2[%c0_1, %c0_2] : memref<384x128xbf16, #tpu.memory_space<vmem>>, vector<384x128xbf16>
    %cst = arith.constant dense<0.000000e+00> : vector<32x128xf32>
    %2 = tpu.matmul %0, %1, %cst {dimension_numbers = #tpu.dot_dimension_numbers<[1], [0], [0], [1], [0, 0, 1, 1], [], []>} : vector<32x384xbf16>, vector<384x128xbf16>, vector<32x128xf32> -> vector<32x128xf32>
    %c0_i32 = arith.constant 0 : i32
    %3 = arith.cmpi eq, %arg0, %c0_i32 : i32
    %4 = arith.extui %3 : i1 to i32
    %c0_i32_3 = arith.constant 0 : i32
    %5 = arith.cmpi ne, %4, %c0_i32_3 : i32
    scf.if %5 {
      %cst_15 = arith.constant 0.000000e+00 : f32
      %20 = vector.broadcast %cst_15 : f32 to vector<2x128xf32>
      %c0_16 = arith.constant 0 : index
      %c0_17 = arith.constant 0 : index
      %21 = vector.load %arg5[%c0_16, %c0_17] : memref<2x128xf32, #tpu.memory_space<vmem>>, vector<2x128xf32>
      tpu.vector_store %arg5[%c0_16, %c0_17], %20 {strides = array<i32>} : memref<2x128xf32, #tpu.memory_space<vmem>>, vector<2x128xf32>,
    } else {
    }
    %c0_4 = arith.constant 0 : index
    %c0_5 = arith.constant 0 : index
    %6 = vector.load %arg5[%c0_4, %c0_5] : memref<2x128xf32, #tpu.memory_space<vmem>>, vector<1x128xf32>
    %cst_6 = arith.constant dense<0.000000e+00> : vector<128xf32>
    %7 = vector.multi_reduction <add>, %2, %cst_6 [0] : vector<32x128xf32> to vector<128xf32>
    %8 = vector.shape_cast %7 : vector<128xf32> to vector<1x128xf32>
    %9 = arith.addf %6, %8 : vector<1x128xf32>
    %c0_7 = arith.constant 0 : index
    %c0_8 = arith.constant 0 : index
    %10 = vector.load %arg5[%c0_7, %c0_8] : memref<2x128xf32, #tpu.memory_space<vmem>>, vector<1x128xf32>
    tpu.vector_store %arg5[%c0_7, %c0_8], %9 {strides = array<i32>} : memref<2x128xf32, #tpu.memory_space<vmem>>, vector<1x128xf32>,
    %c1 = arith.constant 1 : index
    %c0_9 = arith.constant 0 : index
    %11 = vector.load %arg5[%c1, %c0_9] : memref<2x128xf32, #tpu.memory_space<vmem>>, vector<1x128xf32>
    %12 = arith.mulf %2, %2 : vector<32x128xf32>
    %cst_10 = arith.constant dense<0.000000e+00> : vector<128xf32>
    %13 = vector.multi_reduction <add>, %12, %cst_10 [0] : vector<32x128xf32> to vector<128xf32>
    %14 = vector.shape_cast %13 : vector<128xf32> to vector<1x128xf32>
    %15 = arith.addf %11, %14 : vector<1x128xf32>
    %c1_11 = arith.constant 1 : index
    %c0_12 = arith.constant 0 : index
    %16 = vector.load %arg5[%c1_11, %c0_12] : memref<2x128xf32, #tpu.memory_space<vmem>>, vector<1x128xf32>
    tpu.vector_store %arg5[%c1_11, %c0_12], %15 {strides = array<i32>} : memref<2x128xf32, #tpu.memory_space<vmem>>, vector<1x128xf32>,
    %c0_i32_13 = arith.constant 0 : i32
    %17 = arith.cmpi eq, %arg0, %c0_i32_13 : i32
    %18 = arith.extui %17 : i1 to i32
    %c0_i32_14 = arith.constant 0 : i32
    %19 = arith.cmpi ne, %18, %c0_i32_14 : i32
    scf.if %19 {
      %c0_15 = arith.constant 0 : index
      %c0_16 = arith.constant 0 : index
      %20 = vector.load %arg5[%c0_15, %c0_16] : memref<2x128xf32, #tpu.memory_space<vmem>>, vector<1x128xf32>
      %cst_17 = arith.constant 3.125000e-02 : f32
      %21 = vector.broadcast %cst_17 : f32 to vector<1x128xf32>
      %22 = arith.mulf %20, %21 : vector<1x128xf32>
      %c1_18 = arith.constant 1 : index
      %c0_19 = arith.constant 0 : index
      %23 = vector.load %arg5[%c1_18, %c0_19] : memref<2x128xf32, #tpu.memory_space<vmem>>, vector<1x128xf32>
      %cst_20 = arith.constant 3.125000e-02 : f32
      %24 = vector.broadcast %cst_20 : f32 to vector<1x128xf32>
      %25 = arith.mulf %23, %24 : vector<1x128xf32>
      %26 = arith.mulf %22, %22 : vector<1x128xf32>
      %27 = arith.subf %25, %26 : vector<1x128xf32>
      %cst_21 = arith.constant 9.99999974E-6 : f32
      %28 = vector.broadcast %cst_21 : f32 to vector<1x128xf32>
      %29 = arith.addf %27, %28 : vector<1x128xf32>
      %30 = math.rsqrt %29 : vector<1x128xf32>
      %c0_22 = arith.constant 0 : index
      %c0_23 = arith.constant 0 : index
      %31 = vector.load %arg3[%c0_22, %c0_23] : memref<1x128xf32, #tpu.memory_space<vmem>>, vector<1x128xf32>
      %32 = arith.mulf %31, %30 : vector<1x128xf32>
      %c0_24 = arith.constant 0 : index
      %c0_25 = arith.constant 0 : index
      %33 = vector.load %arg4[%c0_24, %c0_25] : memref<1x128xf32, #tpu.memory_space<vmem>>, vector<1x128xf32>
      %34 = arith.mulf %22, %32 : vector<1x128xf32>
      %35 = arith.subf %33, %34 : vector<1x128xf32>
      %c0_26 = arith.constant 0 : index
      %c0_27 = arith.constant 0 : index
      %36 = vector.load %arg5[%c0_26, %c0_27] : memref<2x128xf32, #tpu.memory_space<vmem>>, vector<1x128xf32>
      tpu.vector_store %arg5[%c0_26, %c0_27], %32 {strides = array<i32>} : memref<2x128xf32, #tpu.memory_space<vmem>>, vector<1x128xf32>,
      %c1_28 = arith.constant 1 : index
      %c0_29 = arith.constant 0 : index
      %37 = vector.load %arg5[%c1_28, %c0_29] : memref<2x128xf32, #tpu.memory_space<vmem>>, vector<1x128xf32>
      tpu.vector_store %arg5[%c1_28, %c0_29], %35 {strides = array<i32>} : memref<2x128xf32, #tpu.memory_space<vmem>>, vector<1x128xf32>,
    } else {
    }
    return
  }
  func.func @transform_0(%arg0: i32) -> (i32, i32) {
    %c0_i32 = arith.constant 0 : i32
    %c0_i32_0 = arith.constant 0 : i32
    return %arg0, %c0_i32 : i32, i32
  }
  func.func @transform_1(%arg0: i32) -> (i32, i32) {
    %c0_i32 = arith.constant 0 : i32
    %c0_i32_0 = arith.constant 0 : i32
    %c0_i32_1 = arith.constant 0 : i32
    return %c0_i32, %c0_i32_0 : i32, i32
  }
  func.func @transform_2(%arg0: i32) -> (i32, i32) {
    %c0_i32 = arith.constant 0 : i32
    %c0_i32_0 = arith.constant 0 : i32
    %c0_i32_1 = arith.constant 0 : i32
    return %c0_i32, %c0_i32_0 : i32, i32
  }
  func.func @transform_3(%arg0: i32) -> (i32, i32) {
    %c0_i32 = arith.constant 0 : i32
    %c0_i32_0 = arith.constant 0 : i32
    %c0_i32_1 = arith.constant 0 : i32
    return %c0_i32, %c0_i32_0 : i32, i32
  }
  func.func @transform_4(%arg0: i32) -> (i32, i32) {
    %c0_i32 = arith.constant 0 : i32
    %c0_i32_0 = arith.constant 0 : i32
    %c0_i32_1 = arith.constant 0 : i32
    return %c0_i32, %c0_i32_0 : i32, i32
  }
}

module attributes {stable_mosaic.version = 11 : i64} {
  func.func @kernel(%arg0: i32, %arg1: memref<32x384xbf16, #tpu.memory_space<vmem>>, %arg2: memref<384x128xbf16, #tpu.memory_space<vmem>>, %arg3: memref<2x128xf32, #tpu.memory_space<vmem>>, %arg4: memref<32x128xf32, #tpu.memory_space<vmem>>) attributes {dimension_semantics = [#tpu.dimension_semantics<parallel>], iteration_bounds = array<i64: 1>, scalar_prefetch = 0 : i64, scratch_operands = 0 : i64, tpu.core_type = #tpu.core_type<tc>, window_params = [{transform_indices = @transform_0, window_bounds = array<i64: 32, 384>}, {pipeline_mode = #tpu.pipeline_mode<synchronous>, transform_indices = @transform_1, window_bounds = array<i64: 384, 128>}, {pipeline_mode = #tpu.pipeline_mode<synchronous>, transform_indices = @transform_2, window_bounds = array<i64: 2, 128>}, {transform_indices = @transform_3, window_bounds = array<i64: 32, 128>}]} {
    %c0 = arith.constant 0 : index
    %c0_0 = arith.constant 0 : index
    %0 = vector.load %arg1[%c0, %c0_0] : memref<32x384xbf16, #tpu.memory_space<vmem>>, vector<32x384xbf16>
    %c0_1 = arith.constant 0 : index
    %c0_2 = arith.constant 0 : index
    %1 = vector.load %arg2[%c0_1, %c0_2] : memref<384x128xbf16, #tpu.memory_space<vmem>>, vector<384x128xbf16>
    %cst = arith.constant dense<0.000000e+00> : vector<32x128xf32>
    %2 = tpu.matmul %0, %1, %cst {dimension_numbers = #tpu.dot_dimension_numbers<[1], [0], [0], [1], [0, 0, 1, 1], [], []>} : vector<32x384xbf16>, vector<384x128xbf16>, vector<32x128xf32> -> vector<32x128xf32>
    %c0_3 = arith.constant 0 : index
    %c0_4 = arith.constant 0 : index
    %3 = vector.load %arg3[%c0_3, %c0_4] : memref<2x128xf32, #tpu.memory_space<vmem>>, vector<2x128xf32>
    %4 = vector.extract_strided_slice %3 {offsets = [0, 0], sizes = [1, 128], strides = [1, 1]} : vector<2x128xf32> to vector<1x128xf32>
    %5 = vector.broadcast %4 : vector<1x128xf32> to vector<32x128xf32>
    %6 = arith.mulf %2, %5 : vector<32x128xf32>
    %7 = vector.extract_strided_slice %3 {offsets = [1, 0], sizes = [1, 128], strides = [1, 1]} : vector<2x128xf32> to vector<1x128xf32>
    %8 = vector.broadcast %7 : vector<1x128xf32> to vector<32x128xf32>
    %9 = arith.addf %6, %8 : vector<32x128xf32>
    %cst_5 = arith.constant 0.000000e+00 : f32
    %10 = vector.broadcast %cst_5 : f32 to vector<32x128xf32>
    %11 = arith.maximumf %9, %10 : vector<32x128xf32>
    %c0_6 = arith.constant 0 : index
    %c0_7 = arith.constant 0 : index
    %12 = vector.load %arg4[%c0_6, %c0_7] : memref<32x128xf32, #tpu.memory_space<vmem>>, vector<32x128xf32>
    tpu.vector_store %arg4[%c0_6, %c0_7], %11 {strides = array<i32>} : memref<32x128xf32, #tpu.memory_space<vmem>>, vector<32x128xf32>,
    return
  }
  func.func @transform_0(%arg0: i32) -> (i32, i32) {
    %c0_i32 = arith.constant 0 : i32
    %c0_i32_0 = arith.constant 0 : i32
    return %arg0, %c0_i32 : i32, i32
  }
  func.func @transform_1(%arg0: i32) -> (i32, i32) {
    %c0_i32 = arith.constant 0 : i32
    %c0_i32_0 = arith.constant 0 : i32
    %c0_i32_1 = arith.constant 0 : i32
    return %c0_i32, %c0_i32_0 : i32, i32
  }
  func.func @transform_2(%arg0: i32) -> (i32, i32) {
    %c0_i32 = arith.constant 0 : i32
    %c0_i32_0 = arith.constant 0 : i32
    %c0_i32_1 = arith.constant 0 : i32
    return %c0_i32, %c0_i32_0 : i32, i32
  }
  func.func @transform_3(%arg0: i32) -> (i32, i32) {
    %c0_i32 = arith.constant 0 : i32
    %c0_i32_0 = arith.constant 0 : i32
    return %arg0, %c0_i32 : i32, i32
  }
}

module attributes {stable_mosaic.version = 11 : i64} {
  func.func @kernel(%arg0: i32, %arg1: memref<32x384xbf16, #tpu.memory_space<vmem>>, %arg2: memref<384x128xbf16, #tpu.memory_space<vmem>>, %arg3: memref<2x128xf32, #tpu.memory_space<vmem>>, %arg4: memref<32x128xf32, #tpu.memory_space<vmem>>, %arg5: memref<32x128xf32, #tpu.memory_space<vmem>>) attributes {dimension_semantics = [#tpu.dimension_semantics<parallel>], iteration_bounds = array<i64: 1>, scalar_prefetch = 0 : i64, scratch_operands = 0 : i64, tpu.core_type = #tpu.core_type<tc>, window_params = [{transform_indices = @transform_0, window_bounds = array<i64: 32, 384>}, {pipeline_mode = #tpu.pipeline_mode<synchronous>, transform_indices = @transform_1, window_bounds = array<i64: 384, 128>}, {pipeline_mode = #tpu.pipeline_mode<synchronous>, transform_indices = @transform_2, window_bounds = array<i64: 2, 128>}, {transform_indices = @transform_3, window_bounds = array<i64: 32, 128>}, {transform_indices = @transform_4, window_bounds = array<i64: 32, 128>}]} {
    %c0 = arith.constant 0 : index
    %c0_0 = arith.constant 0 : index
    %0 = vector.load %arg1[%c0, %c0_0] : memref<32x384xbf16, #tpu.memory_space<vmem>>, vector<32x384xbf16>
    %c0_1 = arith.constant 0 : index
    %c0_2 = arith.constant 0 : index
    %1 = vector.load %arg2[%c0_1, %c0_2] : memref<384x128xbf16, #tpu.memory_space<vmem>>, vector<384x128xbf16>
    %cst = arith.constant dense<0.000000e+00> : vector<32x128xf32>
    %2 = tpu.matmul %0, %1, %cst {dimension_numbers = #tpu.dot_dimension_numbers<[1], [0], [0], [1], [0, 0, 1, 1], [], []>} : vector<32x384xbf16>, vector<384x128xbf16>, vector<32x128xf32> -> vector<32x128xf32>
    %c0_3 = arith.constant 0 : index
    %c0_4 = arith.constant 0 : index
    %3 = vector.load %arg3[%c0_3, %c0_4] : memref<2x128xf32, #tpu.memory_space<vmem>>, vector<2x128xf32>
    %4 = vector.extract_strided_slice %3 {offsets = [0, 0], sizes = [1, 128], strides = [1, 1]} : vector<2x128xf32> to vector<1x128xf32>
    %5 = vector.broadcast %4 : vector<1x128xf32> to vector<32x128xf32>
    %6 = arith.mulf %2, %5 : vector<32x128xf32>
    %7 = vector.extract_strided_slice %3 {offsets = [1, 0], sizes = [1, 128], strides = [1, 1]} : vector<2x128xf32> to vector<1x128xf32>
    %8 = vector.broadcast %7 : vector<1x128xf32> to vector<32x128xf32>
    %9 = arith.addf %6, %8 : vector<32x128xf32>
    %c0_5 = arith.constant 0 : index
    %c0_6 = arith.constant 0 : index
    %10 = vector.load %arg4[%c0_5, %c0_6] : memref<32x128xf32, #tpu.memory_space<vmem>>, vector<32x128xf32>
    %11 = arith.addf %9, %10 : vector<32x128xf32>
    %cst_7 = arith.constant 0.000000e+00 : f32
    %12 = vector.broadcast %cst_7 : f32 to vector<32x128xf32>
    %13 = arith.maximumf %11, %12 : vector<32x128xf32>
    %c0_8 = arith.constant 0 : index
    %c0_9 = arith.constant 0 : index
    %14 = vector.load %arg5[%c0_8, %c0_9] : memref<32x128xf32, #tpu.memory_space<vmem>>, vector<32x128xf32>
    tpu.vector_store %arg5[%c0_8, %c0_9], %13 {strides = array<i32>} : memref<32x128xf32, #tpu.memory_space<vmem>>, vector<32x128xf32>,
    return
  }
  func.func @transform_0(%arg0: i32) -> (i32, i32) {
    %c0_i32 = arith.constant 0 : i32
    %c0_i32_0 = arith.constant 0 : i32
    return %arg0, %c0_i32 : i32, i32
  }
  func.func @transform_1(%arg0: i32) -> (i32, i32) {
    %c0_i32 = arith.constant 0 : i32
    %c0_i32_0 = arith.constant 0 : i32
    %c0_i32_1 = arith.constant 0 : i32
    return %c0_i32, %c0_i32_0 : i32, i32
  }
  func.func @transform_2(%arg0: i32) -> (i32, i32) {
    %c0_i32 = arith.constant 0 : i32
    %c0_i32_0 = arith.constant 0 : i32
    %c0_i32_1 = arith.constant 0 : i32
    return %c0_i32, %c0_i32_0 : i32, i32
  }
  func.func @transform_3(%arg0: i32) -> (i32, i32) {
    %c0_i32 = arith.constant 0 : i32
    %c0_i32_0 = arith.constant 0 : i32
    return %arg0, %c0_i32 : i32, i32
  }
  func.func @transform_4(%arg0: i32) -> (i32, i32) {
    %c0_i32 = arith.constant 0 : i32
    %c0_i32_0 = arith.constant 0 : i32
    return %arg0, %c0_i32 : i32, i32
  }
}

module attributes {stable_mosaic.version = 11 : i64} {
  func.func @kernel(%arg0: i32, %arg1: memref<128x384xbf16, #tpu.memory_space<vmem>>, %arg2: memref<384x128xbf16, #tpu.memory_space<vmem>>, %arg3: memref<1x128xf32, #tpu.memory_space<vmem>>, %arg4: memref<1x128xf32, #tpu.memory_space<vmem>>, %arg5: memref<2x128xf32, #tpu.memory_space<vmem>>) attributes {dimension_semantics = [#tpu.dimension_semantics<arbitrary>], iteration_bounds = array<i64: 1>, scalar_prefetch = 0 : i64, scratch_operands = 0 : i64, tpu.core_type = #tpu.core_type<tc>, window_params = [{transform_indices = @transform_0, window_bounds = array<i64: 128, 384>}, {pipeline_mode = #tpu.pipeline_mode<synchronous>, transform_indices = @transform_1, window_bounds = array<i64: 384, 128>}, {pipeline_mode = #tpu.pipeline_mode<synchronous>, transform_indices = @transform_2, window_bounds = array<i64: 1, 128>}, {pipeline_mode = #tpu.pipeline_mode<synchronous>, transform_indices = @transform_3, window_bounds = array<i64: 1, 128>}, {pipeline_mode = #tpu.pipeline_mode<synchronous>, transform_indices = @transform_4, window_bounds = array<i64: 2, 128>}]} {
    %c0 = arith.constant 0 : index
    %c0_0 = arith.constant 0 : index
    %0 = vector.load %arg1[%c0, %c0_0] : memref<128x384xbf16, #tpu.memory_space<vmem>>, vector<128x384xbf16>
    %c0_1 = arith.constant 0 : index
    %c0_2 = arith.constant 0 : index
    %1 = vector.load %arg2[%c0_1, %c0_2] : memref<384x128xbf16, #tpu.memory_space<vmem>>, vector<384x128xbf16>
    %cst = arith.constant dense<0.000000e+00> : vector<128x128xf32>
    %2 = tpu.matmul %0, %1, %cst {dimension_numbers = #tpu.dot_dimension_numbers<[1], [0], [0], [1], [0, 0, 1, 1], [], []>} : vector<128x384xbf16>, vector<384x128xbf16>, vector<128x128xf32> -> vector<128x128xf32>
    %c0_i32 = arith.constant 0 : i32
    %3 = arith.cmpi eq, %arg0, %c0_i32 : i32
    %4 = arith.extui %3 : i1 to i32
    %c0_i32_3 = arith.constant 0 : i32
    %5 = arith.cmpi ne, %4, %c0_i32_3 : i32
    scf.if %5 {
      %cst_15 = arith.constant 0.000000e+00 : f32
      %20 = vector.broadcast %cst_15 : f32 to vector<2x128xf32>
      %c0_16 = arith.constant 0 : index
      %c0_17 = arith.constant 0 : index
      %21 = vector.load %arg5[%c0_16, %c0_17] : memref<2x128xf32, #tpu.memory_space<vmem>>, vector<2x128xf32>
      tpu.vector_store %arg5[%c0_16, %c0_17], %20 {strides = array<i32>} : memref<2x128xf32, #tpu.memory_space<vmem>>, vector<2x128xf32>,
    } else {
    }
    %c0_4 = arith.constant 0 : index
    %c0_5 = arith.constant 0 : index
    %6 = vector.load %arg5[%c0_4, %c0_5] : memref<2x128xf32, #tpu.memory_space<vmem>>, vector<1x128xf32>
    %cst_6 = arith.constant dense<0.000000e+00> : vector<128xf32>
    %7 = vector.multi_reduction <add>, %2, %cst_6 [0] : vector<128x128xf32> to vector<128xf32>
    %8 = vector.shape_cast %7 : vector<128xf32> to vector<1x128xf32>
    %9 = arith.addf %6, %8 : vector<1x128xf32>
    %c0_7 = arith.constant 0 : index
    %c0_8 = arith.constant 0 : index
    %10 = vector.load %arg5[%c0_7, %c0_8] : memref<2x128xf32, #tpu.memory_space<vmem>>, vector<1x128xf32>
    tpu.vector_store %arg5[%c0_7, %c0_8], %9 {strides = array<i32>} : memref<2x128xf32, #tpu.memory_space<vmem>>, vector<1x128xf32>,
    %c1 = arith.constant 1 : index
    %c0_9 = arith.constant 0 : index
    %11 = vector.load %arg5[%c1, %c0_9] : memref<2x128xf32, #tpu.memory_space<vmem>>, vector<1x128xf32>
    %12 = arith.mulf %2, %2 : vector<128x128xf32>
    %cst_10 = arith.constant dense<0.000000e+00> : vector<128xf32>
    %13 = vector.multi_reduction <add>, %12, %cst_10 [0] : vector<128x128xf32> to vector<128xf32>
    %14 = vector.shape_cast %13 : vector<128xf32> to vector<1x128xf32>
    %15 = arith.addf %11, %14 : vector<1x128xf32>
    %c1_11 = arith.constant 1 : index
    %c0_12 = arith.constant 0 : index
    %16 = vector.load %arg5[%c1_11, %c0_12] : memref<2x128xf32, #tpu.memory_space<vmem>>, vector<1x128xf32>
    tpu.vector_store %arg5[%c1_11, %c0_12], %15 {strides = array<i32>} : memref<2x128xf32, #tpu.memory_space<vmem>>, vector<1x128xf32>,
    %c0_i32_13 = arith.constant 0 : i32
    %17 = arith.cmpi eq, %arg0, %c0_i32_13 : i32
    %18 = arith.extui %17 : i1 to i32
    %c0_i32_14 = arith.constant 0 : i32
    %19 = arith.cmpi ne, %18, %c0_i32_14 : i32
    scf.if %19 {
      %c0_15 = arith.constant 0 : index
      %c0_16 = arith.constant 0 : index
      %20 = vector.load %arg5[%c0_15, %c0_16] : memref<2x128xf32, #tpu.memory_space<vmem>>, vector<1x128xf32>
      %cst_17 = arith.constant 7.812500e-03 : f32
      %21 = vector.broadcast %cst_17 : f32 to vector<1x128xf32>
      %22 = arith.mulf %20, %21 : vector<1x128xf32>
      %c1_18 = arith.constant 1 : index
      %c0_19 = arith.constant 0 : index
      %23 = vector.load %arg5[%c1_18, %c0_19] : memref<2x128xf32, #tpu.memory_space<vmem>>, vector<1x128xf32>
      %cst_20 = arith.constant 7.812500e-03 : f32
      %24 = vector.broadcast %cst_20 : f32 to vector<1x128xf32>
      %25 = arith.mulf %23, %24 : vector<1x128xf32>
      %26 = arith.mulf %22, %22 : vector<1x128xf32>
      %27 = arith.subf %25, %26 : vector<1x128xf32>
      %cst_21 = arith.constant 9.99999974E-6 : f32
      %28 = vector.broadcast %cst_21 : f32 to vector<1x128xf32>
      %29 = arith.addf %27, %28 : vector<1x128xf32>
      %30 = math.rsqrt %29 : vector<1x128xf32>
      %c0_22 = arith.constant 0 : index
      %c0_23 = arith.constant 0 : index
      %31 = vector.load %arg3[%c0_22, %c0_23] : memref<1x128xf32, #tpu.memory_space<vmem>>, vector<1x128xf32>
      %32 = arith.mulf %31, %30 : vector<1x128xf32>
      %c0_24 = arith.constant 0 : index
      %c0_25 = arith.constant 0 : index
      %33 = vector.load %arg4[%c0_24, %c0_25] : memref<1x128xf32, #tpu.memory_space<vmem>>, vector<1x128xf32>
      %34 = arith.mulf %22, %32 : vector<1x128xf32>
      %35 = arith.subf %33, %34 : vector<1x128xf32>
      %c0_26 = arith.constant 0 : index
      %c0_27 = arith.constant 0 : index
      %36 = vector.load %arg5[%c0_26, %c0_27] : memref<2x128xf32, #tpu.memory_space<vmem>>, vector<1x128xf32>
      tpu.vector_store %arg5[%c0_26, %c0_27], %32 {strides = array<i32>} : memref<2x128xf32, #tpu.memory_space<vmem>>, vector<1x128xf32>,
      %c1_28 = arith.constant 1 : index
      %c0_29 = arith.constant 0 : index
      %37 = vector.load %arg5[%c1_28, %c0_29] : memref<2x128xf32, #tpu.memory_space<vmem>>, vector<1x128xf32>
      tpu.vector_store %arg5[%c1_28, %c0_29], %35 {strides = array<i32>} : memref<2x128xf32, #tpu.memory_space<vmem>>, vector<1x128xf32>,
    } else {
    }
    return
  }
  func.func @transform_0(%arg0: i32) -> (i32, i32) {
    %c0_i32 = arith.constant 0 : i32
    %c0_i32_0 = arith.constant 0 : i32
    return %arg0, %c0_i32 : i32, i32
  }
  func.func @transform_1(%arg0: i32) -> (i32, i32) {
    %c0_i32 = arith.constant 0 : i32
    %c0_i32_0 = arith.constant 0 : i32
    %c0_i32_1 = arith.constant 0 : i32
    return %c0_i32, %c0_i32_0 : i32, i32
  }
  func.func @transform_2(%arg0: i32) -> (i32, i32) {
    %c0_i32 = arith.constant 0 : i32
    %c0_i32_0 = arith.constant 0 : i32
    %c0_i32_1 = arith.constant 0 : i32
    return %c0_i32, %c0_i32_0 : i32, i32
  }
  func.func @transform_3(%arg0: i32) -> (i32, i32) {
    %c0_i32 = arith.constant 0 : i32
    %c0_i32_0 = arith.constant 0 : i32
    %c0_i32_1 = arith.constant 0 : i32
    return %c0_i32, %c0_i32_0 : i32, i32
  }
  func.func @transform_4(%arg0: i32) -> (i32, i32) {
    %c0_i32 = arith.constant 0 : i32
    %c0_i32_0 = arith.constant 0 : i32
    %c0_i32_1 = arith.constant 0 : i32
    return %c0_i32, %c0_i32_0 : i32, i32
  }
}

module attributes {stable_mosaic.version = 11 : i64} {
  func.func @kernel(%arg0: i32, %arg1: memref<128x384xbf16, #tpu.memory_space<vmem>>, %arg2: memref<384x128xbf16, #tpu.memory_space<vmem>>, %arg3: memref<2x128xf32, #tpu.memory_space<vmem>>, %arg4: memref<128x128xf32, #tpu.memory_space<vmem>>) attributes {dimension_semantics = [#tpu.dimension_semantics<parallel>], iteration_bounds = array<i64: 1>, scalar_prefetch = 0 : i64, scratch_operands = 0 : i64, tpu.core_type = #tpu.core_type<tc>, window_params = [{transform_indices = @transform_0, window_bounds = array<i64: 128, 384>}, {pipeline_mode = #tpu.pipeline_mode<synchronous>, transform_indices = @transform_1, window_bounds = array<i64: 384, 128>}, {pipeline_mode = #tpu.pipeline_mode<synchronous>, transform_indices = @transform_2, window_bounds = array<i64: 2, 128>}, {transform_indices = @transform_3, window_bounds = array<i64: 128, 128>}]} {
    %c0 = arith.constant 0 : index
    %c0_0 = arith.constant 0 : index
    %0 = vector.load %arg1[%c0, %c0_0] : memref<128x384xbf16, #tpu.memory_space<vmem>>, vector<128x384xbf16>
    %c0_1 = arith.constant 0 : index
    %c0_2 = arith.constant 0 : index
    %1 = vector.load %arg2[%c0_1, %c0_2] : memref<384x128xbf16, #tpu.memory_space<vmem>>, vector<384x128xbf16>
    %cst = arith.constant dense<0.000000e+00> : vector<128x128xf32>
    %2 = tpu.matmul %0, %1, %cst {dimension_numbers = #tpu.dot_dimension_numbers<[1], [0], [0], [1], [0, 0, 1, 1], [], []>} : vector<128x384xbf16>, vector<384x128xbf16>, vector<128x128xf32> -> vector<128x128xf32>
    %c0_3 = arith.constant 0 : index
    %c0_4 = arith.constant 0 : index
    %3 = vector.load %arg3[%c0_3, %c0_4] : memref<2x128xf32, #tpu.memory_space<vmem>>, vector<2x128xf32>
    %4 = vector.extract_strided_slice %3 {offsets = [0, 0], sizes = [1, 128], strides = [1, 1]} : vector<2x128xf32> to vector<1x128xf32>
    %5 = vector.broadcast %4 : vector<1x128xf32> to vector<128x128xf32>
    %6 = arith.mulf %2, %5 : vector<128x128xf32>
    %7 = vector.extract_strided_slice %3 {offsets = [1, 0], sizes = [1, 128], strides = [1, 1]} : vector<2x128xf32> to vector<1x128xf32>
    %8 = vector.broadcast %7 : vector<1x128xf32> to vector<128x128xf32>
    %9 = arith.addf %6, %8 : vector<128x128xf32>
    %cst_5 = arith.constant 0.000000e+00 : f32
    %10 = vector.broadcast %cst_5 : f32 to vector<128x128xf32>
    %11 = arith.maximumf %9, %10 : vector<128x128xf32>
    %c0_6 = arith.constant 0 : index
    %c0_7 = arith.constant 0 : index
    %12 = vector.load %arg4[%c0_6, %c0_7] : memref<128x128xf32, #tpu.memory_space<vmem>>, vector<128x128xf32>
    tpu.vector_store %arg4[%c0_6, %c0_7], %11 {strides = array<i32>} : memref<128x128xf32, #tpu.memory_space<vmem>>, vector<128x128xf32>,
    return
  }
  func.func @transform_0(%arg0: i32) -> (i32, i32) {
    %c0_i32 = arith.constant 0 : i32
    %c0_i32_0 = arith.constant 0 : i32
    return %arg0, %c0_i32 : i32, i32
  }
  func.func @transform_1(%arg0: i32) -> (i32, i32) {
    %c0_i32 = arith.constant 0 : i32
    %c0_i32_0 = arith.constant 0 : i32
    %c0_i32_1 = arith.constant 0 : i32
    return %c0_i32, %c0_i32_0 : i32, i32
  }
  func.func @transform_2(%arg0: i32) -> (i32, i32) {
    %c0_i32 = arith.constant 0 : i32
    %c0_i32_0 = arith.constant 0 : i32
    %c0_i32_1 = arith.constant 0 : i32
    return %c0_i32, %c0_i32_0 : i32, i32
  }
  func.func @transform_3(%arg0: i32) -> (i32, i32) {
    %c0_i32 = arith.constant 0 : i32
    %c0_i32_0 = arith.constant 0 : i32
    return %arg0, %c0_i32 : i32, i32
  }
}

module attributes {stable_mosaic.version = 11 : i64} {
  func.func @kernel(%arg0: i32, %arg1: memref<256x512xbf16, #tpu.memory_space<vmem>>, %arg2: memref<512x128xbf16, #tpu.memory_space<vmem>>, %arg3: memref<256x128xf32, #tpu.memory_space<vmem>>) attributes {dimension_semantics = [#tpu.dimension_semantics<parallel>], iteration_bounds = array<i64: 2>, scalar_prefetch = 0 : i64, scratch_operands = 0 : i64, tpu.core_type = #tpu.core_type<tc>, window_params = [{transform_indices = @transform_0, window_bounds = array<i64: 256, 512>}, {pipeline_mode = #tpu.pipeline_mode<synchronous>, transform_indices = @transform_1, window_bounds = array<i64: 512, 128>}, {transform_indices = @transform_2, window_bounds = array<i64: 256, 128>}]} {
    %c0 = arith.constant 0 : index
    %c0_0 = arith.constant 0 : index
    %0 = vector.load %arg1[%c0, %c0_0] : memref<256x512xbf16, #tpu.memory_space<vmem>>, vector<256x512xbf16>
    %c0_1 = arith.constant 0 : index
    %c0_2 = arith.constant 0 : index
    %1 = vector.load %arg2[%c0_1, %c0_2] : memref<512x128xbf16, #tpu.memory_space<vmem>>, vector<512x128xbf16>
    %cst = arith.constant dense<0.000000e+00> : vector<256x128xf32>
    %2 = tpu.matmul %0, %1, %cst {dimension_numbers = #tpu.dot_dimension_numbers<[1], [0], [0], [1], [0, 0, 1, 1], [], []>} : vector<256x512xbf16>, vector<512x128xbf16>, vector<256x128xf32> -> vector<256x128xf32>
    %3 = arith.negf %2 : vector<256x128xf32>
    %4 = math.exp %3 : vector<256x128xf32>
    %cst_3 = arith.constant 1.000000e+00 : f32
    %5 = vector.broadcast %cst_3 : f32 to vector<256x128xf32>
    %6 = arith.addf %5, %4 : vector<256x128xf32>
    %7 = arith.divf %5, %6 : vector<256x128xf32>
    %c0_4 = arith.constant 0 : index
    %c0_5 = arith.constant 0 : index
    %8 = vector.load %arg3[%c0_4, %c0_5] : memref<256x128xf32, #tpu.memory_space<vmem>>, vector<256x128xf32>
    tpu.vector_store %arg3[%c0_4, %c0_5], %7 {strides = array<i32>} : memref<256x128xf32, #tpu.memory_space<vmem>>, vector<256x128xf32>,
    return
  }
  func.func @transform_0(%arg0: i32) -> (i32, i32) {
    %c0_i32 = arith.constant 0 : i32
    %c0_i32_0 = arith.constant 0 : i32
    return %arg0, %c0_i32 : i32, i32
  }
  func.func @transform_1(%arg0: i32) -> (i32, i32) {
    %c0_i32 = arith.constant 0 : i32
    %c0_i32_0 = arith.constant 0 : i32
    %c0_i32_1 = arith.constant 0 : i32
    return %c0_i32, %c0_i32_0 : i32, i32
  }
  func.func @transform_2(%arg0: i32) -> (i32, i32) {
    %c0_i32 = arith.constant 0 : i32
    %c0_i32_0 = arith.constant 0 : i32
    return %arg0, %c0_i32 : i32, i32
  }
}

</mosaic_0001>

<bundles_post_ra>
// kernel: _lambda_.19
= control target key start
LH: loop header
LB: loop body
LE: loop exit
PB: predicated region body
PF: predicated region fallthrough
CT: control target
= control target key end

     0   :  { %s1172_s15 = smov 0   ;;  %s1473_s0 = inlined_call_operand.vmem [shape: bf16[512,256], index: 0, kind: input, shape index: {}]   ;;  %s1474_s1 = inlined_call_operand.vmem [shape: bf16[256,128], index: 1, kind: input, shape index: {}]   ;;  %s1475_s2 = inlined_call_operand.vmem [shape: f32[1,128], index: 2, kind: input, shape index: {}]   ;;  %s1476_s3 = inlined_call_operand.vmem [shape: f32[1,128], index: 3, kind: input, shape index: {}]   ;;  %s1477_s4 = inlined_call_operand.vmem [shape: f32[2,128], index: 4, kind: output, shape index: {}]  }
   0x1 LB: > { %s1178_s16 = sadd.s32 4294967295, %s1144_s15   ;;  %p862_p0 = scmp.ge.s32.totalorder %s1144_s15, 1  ;;  %s1144_s15 = sphi %s1172_s15, %s14_s15  }
   0x2   : > { %p159_p1 = scmp.lt.s32.totalorder %s1144_s15, 3 }
   0x4   : > { %p160_p2 = pnand %p862_p0, %p159_p1 }
   0x5   : > { %s863_s29 = sshll.u32 (!%p160_p2), %s1178_s16, 5  ;;  %p1058_p4 = scmp.ne.s32.totalorder (!%p160_p2), %s1178_s16, 0 }
   0x6   : > { %163 = sbr.rel (%p160_p2) target bundleno = 416 (0x1a0), region = 36  ;;  %p182_p3 = scmp.lt.s32.totalorder (!%p160_p2), %s863_s29, 63 }
   0xb   : > { %v1102_v0 = vld [vmem:[%s1474_s1 + $0x38] sm:$0xff]  ;;  %v1101_v2 = vld [vmem:[%s1474_s1 + $0x30] sm:$0xff]  ;;  %v1100_v4 = vld [vmem:[%s1474_s1 + $0x28] sm:$0xff]  ;;  %s1479_s29 = smov (!%p182_p3, %s863_s29), 63 }
   0xc   : > { %v1110_v1 = vld [vmem:[%s1474_s1 + $0x78] sm:$0xff]  ;;  %508 = vmatpush.bf16.msra.mxu0 %v1102_v0  ;;  %1111 = vmatpush.bf16.msra.mxu2 %v1102_v0  ;;  %v1109_v3 = vld [vmem:[%s1474_s1 + $0x70] sm:$0xff]  ;;  %v1108_v5 = vld [vmem:[%s1474_s1 + $0x68] sm:$0xff]  ;;  %s1062_s18 = sshll.u32 %s1479_s29, 3 }
   0xd   : > { %597 = vmatpush.bf16.msra.mxu1 %v1110_v1  ;;  %1119 = vmatpush.bf16.msra.mxu3 %v1110_v1  ;;  %v1099_v6 = vld [vmem:[%s1474_s1 + $0x20] sm:$0xff]  ;;  %v1098_v8 = vld [vmem:[%s1474_s1 + $0x18] sm:$0xff]  ;;  %v1097_v10 = vld [vmem:[%s1474_s1 + $0x10] sm:$0xff]  ;;  %s1225_s23 = scalar_lea.vmem %s1473_s0, %s1062_s18 }
   0xe   : > { %v1107_v7 = vld [vmem:[%s1474_s1 + $0x60] sm:$0xff]  ;;  %v1106_v9 = vld [vmem:[%s1474_s1 + $0x58] sm:$0xff]  ;;  %v1105_v11 = vld [vmem:[%s1474_s1 + $0x50] sm:$0xff] }
   0xf   : > { %v1096_v12 = vld [vmem:[%s1474_s1 + $0x8] sm:$0xff]  ;;  %v1095_v14 = vld [vmem:[%s1474_s1] sm:$0xff]  ;;  %v876_v28 = vld [vmem:[%s1225_s23 + $0x10] sm:$0xf] }
  0x10   : > { %509 = vmatpush.bf16.msra.mxu0 %v1101_v2  ;;  %1112 = vmatpush.bf16.msra.mxu2 %v1101_v2  ;;  %v1104_v13 = vld [vmem:[%s1474_s1 + $0x48] sm:$0xff]  ;;  %v1103_v15 = vld [vmem:[%s1474_s1 + $0x40] sm:$0xff]  ;;  %v1066_v29 = vld [vmem:[%s1225_s23 + $0x14] sm:$0xf0] }
  0x11   : > { %598 = vmatpush.bf16.msra.mxu1 %v1109_v3  ;;  %1120 = vmatpush.bf16.msra.mxu3 %v1109_v3  ;;  %v868_v16 = vld [vmem:[%s1225_s23] sm:$0xf]  ;;  %v1064_v17 = vld [vmem:[%s1225_s23 + $0x4] sm:$0xf0]  ;;  %v1063_v20 = vld [vmem:[%s1225_s23 + $0x4] sm:$0xf]  ;;  %v877_v36 = vor.u32 %v1066_v29, %v876_v28 }
  0x12   : > { %v932_v18 = vld [vmem:[%s1225_s23 + $0x80] sm:$0xf]  ;;  %v1080_v19 = vld [vmem:[%s1225_s23 + $0x84] sm:$0xf0]  ;;  %v870_v21 = vld [vmem:[%s1225_s23 + $0x8] sm:$0xf0]  ;;  %v869_v24 = vor.u32 %v1064_v17, %v868_v16 }
  0x13   : > { %v1079_v22 = vld [vmem:[%s1225_s23 + $0x84] sm:$0xf]  ;;  %v934_v23 = vld [vmem:[%s1225_s23 + $0x88] sm:$0xf0]  ;;  %v933_v25 = vor.u32 %v1080_v19, %v932_v18  ;;  %v873_v26 = vor.u32 %v1063_v20, %v870_v21  ;;  %v940_v30 = vld [vmem:[%s1225_s23 + $0x90] sm:$0xf] }
  0x14   : > { %510 = vmatpush.bf16.msra.mxu0 %v1100_v4  ;;  %1113 = vmatpush.bf16.msra.mxu2 %v1100_v4  ;;  %v937_v27 = vor.u32 %v1079_v22, %v934_v23  ;;  %v1082_v31 = vld [vmem:[%s1225_s23 + $0x94] sm:$0xf0]  ;;  %v1065_v32 = vld [vmem:[%s1225_s23 + $0x14] sm:$0xf]  ;;  %v878_v33 = vld [vmem:[%s1225_s23 + $0x18] sm:$0xf0] }
  0x15   : > { %599 = vmatpush.bf16.msra.mxu1 %v1108_v5  ;;  %1121 = vmatpush.bf16.msra.mxu3 %v1108_v5  ;;  %v1081_v34 = vld [vmem:[%s1225_s23 + $0x94] sm:$0xf]  ;;  %v942_v35 = vld [vmem:[%s1225_s23 + $0x98] sm:$0xf0]  ;;  %v941_v37 = vor.u32 %v1082_v31, %v940_v30  ;;  %v881_v38 = vor.u32 %v1065_v32, %v878_v33  ;;  %v884_v40 = vld [vmem:[%s1225_s23 + $0x20] sm:$0xf] }
  0x16   : > { %v945_v39 = vor.u32 %v1081_v34, %v942_v35  ;;  %v1068_v41 = vld [vmem:[%s1225_s23 + $0x24] sm:$0xf0]  ;;  %v948_v42 = vld [vmem:[%s1225_s23 + $0xa0] sm:$0xf]  ;;  %v1067_v44 = vld [vmem:[%s1225_s23 + $0x24] sm:$0xf] }
  0x17   : > { %v1084_v43 = vld [vmem:[%s1225_s23 + $0xa4] sm:$0xf0]  ;;  %v886_v45 = vld [vmem:[%s1225_s23 + $0x28] sm:$0xf0]  ;;  %v1083_v46 = vld [vmem:[%s1225_s23 + $0xa4] sm:$0xf]  ;;  %v885_v48 = vor.u32 %v1068_v41, %v884_v40 }
  0x18   : > { %511 = vmatpush.bf16.msra.mxu0 %v1099_v6  ;;  %1114 = vmatpush.bf16.msra.mxu2 %v1099_v6  ;;  %v950_v47 = vld [vmem:[%s1225_s23 + $0xa8] sm:$0xf0]  ;;  %v949_v49 = vor.u32 %v1084_v43, %v948_v42  ;;  %v889_v50 = vor.u32 %v1067_v44, %v886_v45  ;;  %v892_v52 = vld [vmem:[%s1225_s23 + $0x30] sm:$0xf]  ;;  %v1070_v53 = vld [vmem:[%s1225_s23 + $0x34] sm:$0xf0] }
  0x19   : > { %600 = vmatpush.bf16.msra.mxu1 %v1107_v7  ;;  %1122 = vmatpush.bf16.msra.mxu3 %v1107_v7  ;;  %v953_v51 = vor.u32 %v1083_v46, %v950_v47  ;;  %v956_v54 = vld [vmem:[%s1225_s23 + $0xb0] sm:$0xf]  ;;  %v1086_v55 = vld [vmem:[%s1225_s23 + $0xb4] sm:$0xf0]  ;;  %v1069_v56 = vld [vmem:[%s1225_s23 + $0x34] sm:$0xf]  ;;  %v893_v60 = vor.u32 %v1070_v53, %v892_v52 }
  0x1a   : > { %v894_v57 = vld [vmem:[%s1225_s23 + $0x38] sm:$0xf0]  ;;  %v1085_v58 = vld [vmem:[%s1225_s23 + $0xb4] sm:$0xf]  ;;  %v957_v61 = vor.u32 %v1086_v55, %v956_v54  ;;  %v900_v0 = vld [vmem:[%s1225_s23 + $0x40] sm:$0xf] }
  0x1b   : > { %v958_v59 = vld [vmem:[%s1225_s23 + $0xb8] sm:$0xf0]  ;;  %v897_v62 = vor.u32 %v1069_v56, %v894_v57  ;;  %v1072_v1 = vld [vmem:[%s1225_s23 + $0x44] sm:$0xf0]  ;;  %v964_v2 = vld [vmem:[%s1225_s23 + $0xc0] sm:$0xf] }
  0x1c   : > { %512 = vmatpush.bf16.msra.mxu0 %v1098_v8  ;;  %1115 = vmatpush.bf16.msra.mxu2 %v1098_v8  ;;  %v961_v63 = vor.u32 %v1085_v58, %v958_v59  ;;  %v1088_v3 = vld [vmem:[%s1225_s23 + $0xc4] sm:$0xf0]  ;;  %v1071_v4 = vld [vmem:[%s1225_s23 + $0x44] sm:$0xf]  ;;  %v902_v5 = vld [vmem:[%s1225_s23 + $0x48] sm:$0xf0]  ;;  %v901_v8 = vor.u32 %v1072_v1, %v900_v0 }
  0x1d   : > { %601 = vmatpush.bf16.msra.mxu1 %v1106_v9  ;;  %1123 = vmatpush.bf16.msra.mxu3 %v1106_v9  ;;  %v1087_v6 = vld [vmem:[%s1225_s23 + $0xc4] sm:$0xf]  ;;  %v966_v7 = vld [vmem:[%s1225_s23 + $0xc8] sm:$0xf0]  ;;  %v965_v9 = vor.u32 %v1088_v3, %v964_v2  ;;  %v1073_v16 = vld [vmem:[%s1225_s23 + $0x54] sm:$0xf] }
  0x1e   : > { %v910_v17 = vld [vmem:[%s1225_s23 + $0x58] sm:$0xf0]  ;;  %v1089_v18 = vld [vmem:[%s1225_s23 + $0xd4] sm:$0xf]  ;;  %v1075_v28 = vld [vmem:[%s1225_s23 + $0x64] sm:$0xf] }
  0x1f   : > { %v974_v19 = vld [vmem:[%s1225_s23 + $0xd8] sm:$0xf0]  ;;  %v913_v22 = vor.u32 %v1073_v16, %v910_v17  ;;  %v918_v29 = vld [vmem:[%s1225_s23 + $0x68] sm:$0xf0]  ;;  %v1091_v30 = vld [vmem:[%s1225_s23 + $0xe4] sm:$0xf] }
  0x20   : > { %513 = vmatpush.bf16.msra.mxu0 %v1097_v10  ;;  %1116 = vmatpush.bf16.msra.mxu2 %v1097_v10  ;;  %v905_v10 = vor.u32 %v1071_v4, %v902_v5  ;;  %v977_v23 = vor.u32 %v1089_v18, %v974_v19  ;;  %v982_v31 = vld [vmem:[%s1225_s23 + $0xe8] sm:$0xf0]  ;;  %v921_v34 = vor.u32 %v1075_v28, %v918_v29  ;;  %v1077_v40 = vld [vmem:[%s1225_s23 + $0x74] sm:$0xf]  ;;  %v926_v41 = vld [vmem:[%s1225_s23 + $0x78] sm:$0xf0] }
  0x21   : > { %602 = vmatpush.bf16.msra.mxu1 %v1105_v11  ;;  %1124 = vmatpush.bf16.msra.mxu3 %v1105_v11  ;;  %v969_v11 = vor.u32 %v1087_v6, %v966_v7  ;;  %v985_v35 = vor.u32 %v1091_v30, %v982_v31  ;;  %v1093_v42 = vld [vmem:[%s1225_s23 + $0xf4] sm:$0xf]  ;;  %v990_v43 = vld [vmem:[%s1225_s23 + $0xf8] sm:$0xf0]  ;;  %v929_v46 = vor.u32 %v1077_v40, %v926_v41 }
  0x22   : > { %v993_v47 = vor.u32 %v1093_v42, %v990_v43 }
  0x24   : > { %514 = vmatpush.bf16.msra.mxu0 %v1096_v12  ;;  %1117 = vmatpush.bf16.msra.mxu2 %v1096_v12  ;;  %v908_v12 = vld [vmem:[%s1225_s23 + $0x50] sm:$0xf] }
  0x25   : > { %603 = vmatpush.bf16.msra.mxu1 %v1104_v13  ;;  %1125 = vmatpush.bf16.msra.mxu3 %v1104_v13  ;;  %v1074_v13 = vld [vmem:[%s1225_s23 + $0x54] sm:$0xf0] }
  0x26   : > { %v909_v20 = vor.u32 %v1074_v13, %v908_v12 }
  0x28   : > { %515 = vmatpush.bf16.msra.mxu0 %v1095_v14  ;;  %1118 = vmatpush.bf16.msra.mxu2 %v1095_v14  ;;  %v972_v14 = vld [vmem:[%s1225_s23 + $0xd0] sm:$0xf] }
  0x29   : > { %604 = vmatpush.bf16.msra.mxu1 %v1103_v15  ;;  %1126 = vmatpush.bf16.msra.mxu3 %v1103_v15  ;;  %v1090_v15 = vld [vmem:[%s1225_s23 + $0xd4] sm:$0xf0] }
  0x2a   : > { %v973_v21 = vor.u32 %v1090_v15, %v972_v14 }
  0x2b   : > { %516 = vmatmul.bf16.vlgmr.msra.gmra.mxu0 %v869_v24  ;;  %556 = vmatmul.bf16.vlgmr.msra.gmra.mxu2 %v933_v25  ;;  %v916_v24 = vld [vmem:[%s1225_s23 + $0x60] sm:$0xf]  ;;  %v1076_v25 = vld [vmem:[%s1225_s23 + $0x64] sm:$0xf0] }
  0x2c   : > { %605 = vmatmul.bf16.vlgmr.msra.gmra.mxu1 %v873_v26  ;;  %645 = vmatmul.bf16.vlgmr.msra.gmra.mxu3 %v937_v27  ;;  %v980_v26 = vld [vmem:[%s1225_s23 + $0xe0] sm:$0xf]  ;;  %v1092_v27 = vld [vmem:[%s1225_s23 + $0xe4] sm:$0xf0]  ;;  %v917_v32 = vor.u32 %v1076_v25, %v916_v24 }
  0x2d   : > { %v981_v33 = vor.u32 %v1092_v27, %v980_v26 }
  0x3b   : > { %521 = vmatmul.bf16.gmra.mxu0 %v877_v36  ;;  %561 = vmatmul.bf16.gmra.mxu2 %v941_v37  ;;  %v924_v36 = vld [vmem:[%s1225_s23 + $0x70] sm:$0xf]  ;;  %v1078_v37 = vld [vmem:[%s1225_s23 + $0x74] sm:$0xf0] }
  0x3c   : > { %610 = vmatmul.bf16.gmra.mxu1 %v881_v38  ;;  %650 = vmatmul.bf16.gmra.mxu3 %v945_v39  ;;  %v988_v38 = vld [vmem:[%s1225_s23 + $0xf0] sm:$0xf]  ;;  %v1094_v39 = vld [vmem:[%s1225_s23 + $0xf4] sm:$0xf0]  ;;  %v925_v44 = vor.u32 %v1078_v37, %v924_v36 }
  0x3d   : > { %v989_v45 = vor.u32 %v1094_v39, %v988_v38 }
  0x4b   : > { %526 = vmatmul.bf16.gmra.mxu0 %v885_v48  ;;  %566 = vmatmul.bf16.gmra.mxu2 %v949_v49 }
  0x4c   : > { %615 = vmatmul.bf16.gmra.mxu1 %v889_v50  ;;  %655 = vmatmul.bf16.gmra.mxu3 %v953_v51 }
  0x5b   : > { %531 = vmatmul.bf16.gmra.mxu0 %v893_v60  ;;  %571 = vmatmul.bf16.gmra.mxu2 %v957_v61 }
  0x5c   : > { %620 = vmatmul.bf16.gmra.mxu1 %v897_v62  ;;  %660 = vmatmul.bf16.gmra.mxu3 %v961_v63 }
  0x6b   : > { %536 = vmatmul.bf16.gmra.mxu0 %v901_v8  ;;  %576 = vmatmul.bf16.gmra.mxu2 %v965_v9 }
  0x6c   : > { %625 = vmatmul.bf16.gmra.mxu1 %v905_v10  ;;  %665 = vmatmul.bf16.gmra.mxu3 %v969_v11 }
  0x7b   : > { %541 = vmatmul.bf16.gmra.mxu0 %v909_v20  ;;  %581 = vmatmul.bf16.gmra.mxu2 %v973_v21 }
  0x7c   : > { %630 = vmatmul.bf16.gmra.mxu1 %v913_v22  ;;  %670 = vmatmul.bf16.gmra.mxu3 %v977_v23 }
  0x8b   : > { %546 = vmatmul.bf16.gmra.mxu0 %v917_v32  ;;  %586 = vmatmul.bf16.gmra.mxu2 %v981_v33 }
  0x8c   : > { %635 = vmatmul.bf16.gmra.mxu1 %v921_v34  ;;  %675 = vmatmul.bf16.gmra.mxu3 %v985_v35 }
  0x9b   : > { %551 = vmatmul.bf16.gmra.mxu0 %v925_v44  ;;  %591 = vmatmul.bf16.gmra.mxu2 %v989_v45 }
  0x9c   : > { %640 = vmatmul.bf16.gmra.mxu1 %v929_v46  ;;  %680 = vmatmul.bf16.gmra.mxu3 %v993_v47 }
  0xa8   : > { %v517_v48 = vpop.f32.mrf.mxu0 }
  0xa9   : > { %v606_v49 = vpop.f32.mrf.mxu1 }
  0xaa   : > { %v1300_v50 = vadd.f32 %v606_v49, %v517_v48 }
  0xae   : > { %v557_v51 = vpop.f32.mrf.mxu2 }
  0xaf   : > { %v646_v52 = vpop.f32.mrf.mxu3 }
  0xb0   : > { %v1302_v53 = vadd.f32 %v646_v52, %v557_v51  ;;  %v519_v54 = vpop.f32.mrf.mxu0 }
  0xb1   : > { %v608_v55 = vpop.f32.mrf.mxu1 }
  0xb2   : > { %v1304_v56 = vadd.f32 %v608_v55, %v519_v54 }
  0xb6   : > { %v559_v57 = vpop.f32.mrf.mxu2 }
  0xb7   : > { %v648_v58 = vpop.f32.mrf.mxu3 }
  0xb8   : > { %v1306_v59 = vadd.f32 %v648_v58, %v559_v57  ;;  %v522_v60 = vpop.f32.mrf.mxu0 }
  0xb9   : > { %v611_v61 = vpop.f32.mrf.mxu1 }
  0xba   : > { %v1308_v62 = vadd.f32 %v611_v61, %v522_v60 }
  0xbe   : > { %v562_v63 = vpop.f32.mrf.mxu2 }
  0xbf   : > { %v651_v0 = vpop.f32.mrf.mxu3 }
  0xc0   : > { %v1310_v1 = vadd.f32 %v651_v0, %v562_v63  ;;  %v524_v2 = vpop.f32.mrf.mxu0 }
  0xc1   : > { %v613_v3 = vpop.f32.mrf.mxu1 }
  0xc2   : > { %v1312_v4 = vadd.f32 %v613_v3, %v524_v2 }
  0xc6   : > { %v564_v5 = vpop.f32.mrf.mxu2 }
  0xc7   : > { %v653_v6 = vpop.f32.mrf.mxu3 }
  0xc8   : > { %v1314_v7 = vadd.f32 %v653_v6, %v564_v5  ;;  %v527_v8 = vpop.f32.mrf.mxu0 }
  0xc9   : > { %v616_v9 = vpop.f32.mrf.mxu1 }
  0xca   : > { %v1316_v10 = vadd.f32 %v616_v9, %v527_v8 }
  0xce   : > { %v567_v11 = vpop.f32.mrf.mxu2 }
  0xcf   : > { %v656_v12 = vpop.f32.mrf.mxu3 }
  0xd0   : > { %v1318_v13 = vadd.f32 %v656_v12, %v567_v11  ;;  %v529_v14 = vpop.f32.mrf.mxu0 }
  0xd1   : > { %v618_v15 = vpop.f32.mrf.mxu1 }
  0xd2   : > { %v1320_v16 = vadd.f32 %v618_v15, %v529_v14 }
  0xd6   : > { %v569_v17 = vpop.f32.mrf.mxu2 }
  0xd7   : > { %v658_v18 = vpop.f32.mrf.mxu3 }
  0xd8   : > { %v1322_v19 = vadd.f32 %v658_v18, %v569_v17  ;;  %v532_v20 = vpop.f32.mrf.mxu0 }
  0xd9   : > { %v621_v21 = vpop.f32.mrf.mxu1 }
  0xda   : > { %v1324_v22 = vadd.f32 %v621_v21, %v532_v20 }
  0xde   : > { %v572_v23 = vpop.f32.mrf.mxu2 }
  0xdf   : > { %v661_v24 = vpop.f32.mrf.mxu3 }
  0xe0   : > { %v1326_v25 = vadd.f32 %v661_v24, %v572_v23  ;;  %v534_v26 = vpop.f32.mrf.mxu0 }
  0xe1   : > { %v623_v27 = vpop.f32.mrf.mxu1 }
  0xe2   : > { %v1328_v28 = vadd.f32 %v623_v27, %v534_v26 }
  0xe6   : > { %v574_v29 = vpop.f32.mrf.mxu2 }
  0xe7   : > { %v663_v30 = vpop.f32.mrf.mxu3 }
  0xe8   : > { %v1330_v31 = vadd.f32 %v663_v30, %v574_v29  ;;  %v537_v32 = vpop.f32.mrf.mxu0 }
  0xe9   : > { %v626_v33 = vpop.f32.mrf.mxu1 }
  0xea   : > { %v1332_v34 = vadd.f32 %v626_v33, %v537_v32 }
  0xee   : > { %v577_v35 = vpop.f32.mrf.mxu2 }
  0xef   : > { %v666_v36 = vpop.f32.mrf.mxu3 }
  0xf0   : > { %v1334_v37 = vadd.f32 %v666_v36, %v577_v35  ;;  %v539_v38 = vpop.f32.mrf.mxu0 }
  0xf1   : > { %v628_v39 = vpop.f32.mrf.mxu1 }
  0xf2   : > { %v1336_v40 = vadd.f32 %v628_v39, %v539_v38 }
  0xf6   : > { %v579_v41 = vpop.f32.mrf.mxu2 }
  0xf7   : > { %v668_v42 = vpop.f32.mrf.mxu3 }
  0xf8   : > { %v1338_v43 = vadd.f32 %v668_v42, %v579_v41  ;;  %v542_v44 = vpop.f32.mrf.mxu0 }
  0xf9   : > { %v631_v45 = vpop.f32.mrf.mxu1 }
  0xfa   : > { %v1340_v46 = vadd.f32 %v631_v45, %v542_v44 }
  0xfe   : > { %v582_v47 = vpop.f32.mrf.mxu2 }
  0xff   : > { %v671_v48 = vpop.f32.mrf.mxu3 }
 0x100   : > { %v1342_v49 = vadd.f32 %v671_v48, %v582_v47  ;;  %v544_v51 = vpop.f32.mrf.mxu0 }
 0x101   : > { %v633_v52 = vpop.f32.mrf.mxu1 }
 0x102   : > { %v634_v54 = vadd.f32 %v633_v52, %v544_v51 }
 0x106   : > { %v584_v55 = vpop.f32.mrf.mxu2 }
 0x107   : > { %v673_v57 = vpop.f32.mrf.mxu3 }
 0x108   : > { %v1344_v58 = vadd.f32 %v673_v57, %v584_v55  ;;  %v547_v60 = vpop.f32.mrf.mxu0 }
 0x109   : > { %v636_v61 = vpop.f32.mrf.mxu1 }
 0x10a   : > { %v637_v63 = vadd.f32 %v636_v61, %v547_v60 }
 0x10e   : > { %v587_v0 = vpop.f32.mrf.mxu2 }
 0x10f   : > { %v676_v2 = vpop.f32.mrf.mxu3 }
 0x110   : > { %v1346_v3 = vadd.f32 %v676_v2, %v587_v0  ;;  %v549_v5 = vpop.f32.mrf.mxu0 }
 0x111   : > { %v638_v6 = vpop.f32.mrf.mxu1 }
 0x112   : > { %v639_v8 = vadd.f32 %v638_v6, %v549_v5 }
 0x116   : > { %v589_v9 = vpop.f32.mrf.mxu2 }
 0x117   : > { %v678_v11 = vpop.f32.mrf.mxu3 }
 0x118   : > { %v1348_v12 = vadd.f32 %v678_v11, %v589_v9  ;;  %v552_v14 = vpop.f32.mrf.mxu0 }
 0x119   : > { %v641_v15 = vpop.f32.mrf.mxu1 }
 0x11a   : > { %v642_v17 = vadd.f32 %v641_v15, %v552_v14 }
 0x11e   : > { %v592_v18 = vpop.f32.mrf.mxu2 }
 0x11f   : > { %v681_v20 = vpop.f32.mrf.mxu3 }
 0x120   : > { %v1350_v21 = vadd.f32 %v681_v20, %v592_v18  ;;  %v554_v23 = vpop.f32.mrf.mxu0 }
 0x121   : > { %v643_v24 = vpop.f32.mrf.mxu1 }
 0x122   : > { %v644_v26 = vadd.f32 %v643_v24, %v554_v23 }
 0x124   : > { %689 = sbr.rel (%p1058_p4) target bundleno = 299 (0x12b), region = 40 }
 0x126   : > { %v594_v27 = vpop.f32.mrf.mxu2 }
 0x127   : > { %v683_v29 = vpop.f32.mrf.mxu3 }
 0x128   : > { %v1352_v30 = vadd.f32 %v683_v29, %v594_v27 }
 0x129   : > { %v1146_v32 = vmov 0.0  }
 0x12a   : > { %690 = vst [vmem:[%s1477_s4] sm:$0x3] %v1146_v32 }
 0x12b PF: > { %v692_v33 = vadd.f32 %v1304_v56, %v1300_v50  ;;  %v732_v35 = vmul.f32 %v1300_v50, %v1300_v50  ;;  %v733_v36 = vmul.f32 %v1304_v56, %v1304_v56  ;;  %v734_v39 = vmul.f32 %v1308_v62, %v1308_v62  ;;  %p1059_p5 = scmp.ne.s32.totalorder %s1178_s16, 1 }
 0x12c   : > { %v735_v42 = vmul.f32 %v1312_v4, %v1312_v4  ;;  %v736_v47 = vmul.f32 %v1316_v10, %v1316_v10  ;;  %v737_v56 = vmul.f32 %v1320_v16, %v1320_v16  ;;  %v738_v52 = vmul.f32 %v1324_v22, %v1324_v22 }
 0x12d   : > { %v693_v38 = vadd.f32 %v692_v33, %v1308_v62  ;;  %v764_v44 = vadd.f32 %v733_v36, %v732_v35  ;;  %v739_v57 = vmul.f32 %v1328_v28, %v1328_v28  ;;  %v740_v61 = vmul.f32 %v1332_v34, %v1332_v34 }
 0x12e   : > { %v741_v2 = vmul.f32 %v1336_v40, %v1336_v40  ;;  %v742_v6 = vmul.f32 %v1340_v46, %v1340_v46  ;;  %v743_v11 = vmul.f32 %v634_v54, %v634_v54  ;;  %v744_v18 = vmul.f32 %v637_v63, %v637_v63 }
 0x12f   : > { %v694_v41 = vadd.f32 %v693_v38, %v1312_v4  ;;  %v765_v50 = vadd.f32 %v764_v44, %v734_v39  ;;  %v745_v23 = vmul.f32 %v639_v8, %v639_v8  ;;  %v746_v29 = vmul.f32 %v642_v17, %v642_v17 }
 0x130   : > { %v747_v33 = vmul.f32 %v644_v26, %v644_v26 }
 0x131   : > { %v695_v45 = vadd.f32 %v694_v41, %v1316_v10  ;;  %v766_v51 = vadd.f32 %v765_v50, %v735_v42  ;;  %v751_v42 = vmul.f32 %v1314_v7, %v1314_v7  ;;  %v753_v50 = vmul.f32 %v1322_v19, %v1322_v19 }
 0x133   : > { %v696_v48 = vadd.f32 %v695_v45, %v1320_v16  ;;  %v767_v55 = vadd.f32 %v766_v51, %v736_v47  ;;  %v752_v45 = vmul.f32 %v1318_v13, %v1318_v13 }
 0x135   : > { %v697_v62 = vadd.f32 %v696_v48, %v1324_v22  ;;  %v768_v60 = vadd.f32 %v767_v55, %v737_v56  ;;  %v754_v56 = vmul.f32 %v1326_v25, %v1326_v25  ;;  %v756_v55 = vmul.f32 %v1334_v37, %v1334_v37 }
 0x137   : > { %v698_v4 = vadd.f32 %v697_v62, %v1328_v28  ;;  %v769_v0 = vadd.f32 %v768_v60, %v738_v52  ;;  %v755_v62 = vmul.f32 %v1330_v31, %v1330_v31 }
 0x139   : > { %v699_v10 = vadd.f32 %v698_v4, %v1332_v34  ;;  %v770_v5 = vadd.f32 %v769_v0, %v739_v57  ;;  %v757_v57 = vmul.f32 %v1338_v43, %v1338_v43  ;;  %v759_v0 = vmul.f32 %v1344_v58, %v1344_v58 }
 0x13b   : > { %v700_v16 = vadd.f32 %v699_v10, %v1336_v40  ;;  %v771_v9 = vadd.f32 %v770_v5, %v740_v61  ;;  %v758_v10 = vmul.f32 %v1342_v49, %v1342_v49 }
 0x13d   : > { %v701_v22 = vadd.f32 %v700_v16, %v1340_v46  ;;  %v772_v14 = vadd.f32 %v771_v9, %v741_v2  ;;  %v748_v46 = vmul.f32 %v1302_v53, %v1302_v53  ;;  %v760_v2 = vmul.f32 %v1346_v3, %v1346_v3 }
 0x13e   : > { %v762_v9 = vmul.f32 %v1350_v21, %v1350_v21 }
 0x13f   : > { %v702_v28 = vadd.f32 %v701_v22, %v634_v54  ;;  %v773_v20 = vadd.f32 %v772_v14, %v742_v6  ;;  %v761_v22 = vmul.f32 %v1348_v12, %v1348_v12 }
 0x141   : > { %v703_v15 = vadd.f32 %v702_v28, %v637_v63  ;;  %v774_v24 = vadd.f32 %v773_v20, %v743_v11  ;;  %v749_v63 = vmul.f32 %v1306_v59, %v1306_v59  ;;  %v763_v11 = vmul.f32 %v1352_v30, %v1352_v30 }
 0x143   : > { %v704_v34 = vadd.f32 %v703_v15, %v639_v8  ;;  %v775_v32 = vadd.f32 %v774_v24, %v744_v18 }
 0x145   : > { %v705_v27 = vadd.f32 %v704_v34, %v642_v17  ;;  %v776_v35 = vadd.f32 %v775_v32, %v745_v23  ;;  %v750_v17 = vmul.f32 %v1310_v1, %v1310_v1 }
 0x147   : > { %v706_v40 = vadd.f32 %v705_v27, %v644_v26  ;;  %v777_v38 = vadd.f32 %v776_v35, %v746_v29 }
 0x149   : > { %v707_v36 = vadd.f32 %v706_v40, %v1302_v53  ;;  %v778_v39 = vadd.f32 %v777_v38, %v747_v33 }
 0x14b   : > { %v708_v54 = vadd.f32 %v707_v36, %v1306_v59  ;;  %v779_v41 = vadd.f32 %v778_v39, %v748_v46 }
 0x14d   : > { %v709_v8 = vadd.f32 %v708_v54, %v1310_v1  ;;  %v780_v44 = vadd.f32 %v779_v41, %v749_v63 }
 0x14f   : > { %v710_v26 = vadd.f32 %v709_v8, %v1314_v7  ;;  %v781_v47 = vadd.f32 %v780_v44, %v750_v17 }
 0x151   : > { %v711_v53 = vadd.f32 %v710_v26, %v1318_v13  ;;  %v782_v48 = vadd.f32 %v781_v47, %v751_v42 }
 0x153   : > { %v712_v59 = vadd.f32 %v711_v53, %v1322_v19  ;;  %v783_v51 = vadd.f32 %v782_v48, %v752_v45 }
 0x155   : > { %v713_v1 = vadd.f32 %v712_v59, %v1326_v25  ;;  %v784_v52 = vadd.f32 %v783_v51, %v753_v50 }
 0x157   : > { %v714_v7 = vadd.f32 %v713_v1, %v1330_v31  ;;  %v785_v4 = vadd.f32 %v784_v52, %v754_v56 }
 0x159   : > { %v715_v13 = vadd.f32 %v714_v7, %v1334_v37  ;;  %v786_v60 = vadd.f32 %v785_v4, %v755_v62 }
 0x15b   : > { %v716_v19 = vadd.f32 %v715_v13, %v1338_v43  ;;  %v787_v61 = vadd.f32 %v786_v60, %v756_v55 }
 0x15d   : > { %v717_v25 = vadd.f32 %v716_v19, %v1342_v49  ;;  %v788_v16 = vadd.f32 %v787_v61, %v757_v57 }
 0x15f   : > { %v718_v31 = vadd.f32 %v717_v25, %v1344_v58  ;;  %v789_v5 = vadd.f32 %v788_v16, %v758_v10 }
 0x161   : > { %v719_v37 = vadd.f32 %v718_v31, %v1346_v3  ;;  %v790_v6 = vadd.f32 %v789_v5, %v759_v0 }
 0x163   : > { %v720_v43 = vadd.f32 %v719_v37, %v1348_v12  ;;  %v791_v28 = vadd.f32 %v790_v6, %v760_v2 }
 0x165   : > { %v721_v49 = vadd.f32 %v720_v43, %v1350_v21  ;;  %v792_v14 = vadd.f32 %v791_v28, %v761_v22  ;;  %v691_v21 = vld [vmem:[%s1477_s4] sm:$0x1] }
 0x167   : > { %v722_v58 = vadd.f32 %v721_v49, %v1352_v30  ;;  %v793_v15 = vadd.f32 %v792_v14, %v762_v9  ;;  %v731_v30 = vld [vmem:[%s1477_s4 + $0x1] sm:$0x1] }
 0x169   : > { %v723_v3 = vrot.slane %v722_v58, 4  ;;  %v794_v20 = vadd.f32 %v793_v15, %v763_v11 }
 0x16b   : > { %v724_v18 = vadd.f32 %v723_v3, %v722_v58  ;;  %v795_v23 = vrot.slane %v794_v20, 4 }
 0x16d   : > { %v725_v34 = vrot.slane %v724_v18, 2  ;;  %v796_v24 = vadd.f32 %v795_v23, %v794_v20 }
 0x16f   : > { %v726_v12 = vadd.f32 %v725_v34, %v724_v18  ;;  %v797_v29 = vrot.slane %v796_v24, 2 }
 0x171   : > { %v727_v27 = vrot.slane %v726_v12, 1  ;;  %v798_v40 = vadd.f32 %v797_v29, %v796_v24 }
 0x173   : > { %v728_v32 = vadd.f32 %v727_v27, %v726_v12  ;;  %v799_v35 = vrot.slane %v798_v40, 1 }
 0x175   : > { %v729_v33 = vadd.f32 %v728_v32, %v691_v21  ;;  %v800_v36 = vadd.f32 %v799_v35, %v798_v40  ;;  %806 = sbr.rel (%p1059_p5) target bundleno = 416 (0x1a0), region = 44 }
 0x177   : > { %730 = vst [vmem:[%s1477_s4] sm:$0x1] %v729_v33  ;;  %v801_v46 = vadd.f32 %v800_v36, %v731_v30 }
 0x179   : > { %802 = vst [vmem:[%s1477_s4 + $0x1] sm:$0x1] %v801_v46 }
 0x17a   : > { %v824_v59 = vld [vmem:[%s1475_s2] sm:$0x1] }
 0x17b   : > { %v826_v1 = vld [vmem:[%s1476_s3] sm:$0x1] }
 0x17e   : > { %v807_v38 = vld [vmem:[%s1477_s4] sm:$0x1] }
 0x17f   : > { %v808_v63 = vmul.f32 0.001953125, %v807_v38 }
 0x180   : > { %v809_v54 = vld [vmem:[%s1477_s4 + $0x1] sm:$0x1] }
 0x181   : > { %v810_v39 = vmul.f32 0.001953125, %v809_v54  ;;  %v811_v8 = vmul.f32 %v808_v63, %v808_v63 }
 0x183   : > { %v812_v17 = vsub.f32 %v810_v39, %v811_v8 }
 0x185   : > { %v813_v41 = vadd.f32 1e-05, %v812_v17 }
 0x187   : > { %1136 = vrsqrt.f32 %v813_v41  ;;  %vm820_vm0 = vweird.f32 %v813_v41 }
 0x18d   : > { %v1137_v26 = vpop.eup %1136 }
 0x18e   : > { %v815_v42 = vmul.f32 %v1137_v26, %v813_v41  ;;  %vm821_vm1 = vweird.f32 %v1137_v26 }
 0x18f   : > { %vm822_vm2 = vmor %vm820_vm0, %vm821_vm1 }
 0x190   : > { %v816_v44 = vmul.f32 %v1137_v26, %v815_v42 }
 0x192   : > { %v817_v53 = vmul.f32 0.5, %v816_v44 }
 0x194   : > { %v818_v45 = vsub.f32 1.5, %v817_v53 }
 0x196   : > { %v819_v47 = vmul.f32 %v1137_v26, %v818_v45 }
 0x198   : > { %v823_v50 = vsel %vm822_vm2, %v1137_v26, %v819_v47 }
 0x199   : > { %v825_v48 = vmul.f32 %v824_v59, %v823_v50 }
 0x19b   : > { %829 = vst [vmem:[%s1477_s4] sm:$0x1] %v825_v48  ;;  %v827_v56 = vmul.f32 %v825_v48, %v808_v63 }
 0x19d   : > { %v828_v51 = vsub.f32 %v826_v1, %v827_v56 }
 0x19f   : > { %830 = vst [vmem:[%s1477_s4 + $0x1] sm:$0x1] %v828_v51 }
 0x1a0 PF: > { %s14_s15 = sadd.s32 1, %s1144_s15  }
 0x1a1   : > { %p11_p6 = scmp.ge.s32.totalorder %s14_s15, 4  }
 0x1a3   :  { %13 = sbr.rel (!%p11_p6) target bundleno = 1 (0x1), region = 70 }

// kernel: _lambda_.20
= control target key start
LH: loop header
LB: loop body
LE: loop exit
PB: predicated region body
PF: predicated region fallthrough
CT: control target
= control target key end

     0   :  { %s1167_s12 = smov 0   ;;  %s1410_s0 = inlined_call_operand.vmem [shape: bf16[512,256], index: 0, kind: input, shape index: {}]   ;;  %s1411_s1 = inlined_call_operand.vmem [shape: bf16[256,128], index: 1, kind: input, shape index: {}]   ;;  %s1412_s2 = inlined_call_operand.vmem [shape: f32[2,128], index: 2, kind: input, shape index: {}]   ;;  %s1413_s3 = inlined_call_operand.vmem [shape: f32[512,128], index: 3, kind: output, shape index: {}]  }
   0x1 LB: > { %s862_s13 = sadd.s32 4294967295, %s1145_s12   ;;  %p866_p0 = scmp.ge.s32.totalorder %s1145_s12, 1  ;;  %s1145_s12 = sphi %s1167_s12, %s13_s12  }
   0x2   : > { %p139_p1 = scmp.lt.s32.totalorder %s1145_s12, 3 }
   0x4   : > { %p140_p2 = pnand %p866_p0, %p139_p1 }
   0x5   : > { %s867_s26 = sshll.u32 (!%p140_p2), %s862_s13, 5 }
   0x6   : > { %143 = sbr.rel (%p140_p2) target bundleno = 305 (0x131), region = 32  ;;  %p165_p3 = scmp.lt.s32.totalorder (!%p140_p2), %s867_s26, 63 }
   0xb   : > { %v1106_v0 = vld [vmem:[%s1411_s1 + $0x38] sm:$0xff]  ;;  %v1105_v2 = vld [vmem:[%s1411_s1 + $0x30] sm:$0xff]  ;;  %v1104_v4 = vld [vmem:[%s1411_s1 + $0x28] sm:$0xff]  ;;  %s1415_s26 = smov (!%p165_p3, %s867_s26), 63 }
   0xc   : > { %v1114_v1 = vld [vmem:[%s1411_s1 + $0x78] sm:$0xff]  ;;  %497 = vmatpush.bf16.msra.mxu0 %v1106_v0  ;;  %1115 = vmatpush.bf16.msra.mxu2 %v1106_v0  ;;  %v1113_v3 = vld [vmem:[%s1411_s1 + $0x70] sm:$0xff]  ;;  %v1112_v5 = vld [vmem:[%s1411_s1 + $0x68] sm:$0xff]  ;;  %s1066_s13 = sshll.u32 %s1415_s26, 3 }
   0xd   : > { %586 = vmatpush.bf16.msra.mxu1 %v1114_v1  ;;  %1123 = vmatpush.bf16.msra.mxu3 %v1114_v1  ;;  %v1103_v6 = vld [vmem:[%s1411_s1 + $0x20] sm:$0xff]  ;;  %v1102_v8 = vld [vmem:[%s1411_s1 + $0x18] sm:$0xff]  ;;  %v1101_v10 = vld [vmem:[%s1411_s1 + $0x10] sm:$0xff]  ;;  %s1222_s18 = scalar_lea.vmem %s1410_s0, %s1066_s13  ;;  %s1311_s30 = scalar_lea.vmem %s1413_s3, %s1066_s13 }
   0xe   : > { %v1111_v7 = vld [vmem:[%s1411_s1 + $0x60] sm:$0xff]  ;;  %v1110_v9 = vld [vmem:[%s1411_s1 + $0x58] sm:$0xff]  ;;  %v1109_v11 = vld [vmem:[%s1411_s1 + $0x50] sm:$0xff] }
   0xf   : > { %v1100_v12 = vld [vmem:[%s1411_s1 + $0x8] sm:$0xff]  ;;  %v1099_v14 = vld [vmem:[%s1411_s1] sm:$0xff]  ;;  %v882_v28 = vld [vmem:[%s1222_s18 + $0x10] sm:$0xf] }
  0x10   : > { %498 = vmatpush.bf16.msra.mxu0 %v1105_v2  ;;  %1116 = vmatpush.bf16.msra.mxu2 %v1105_v2  ;;  %v1108_v13 = vld [vmem:[%s1411_s1 + $0x48] sm:$0xff]  ;;  %v1107_v15 = vld [vmem:[%s1411_s1 + $0x40] sm:$0xff]  ;;  %v1070_v29 = vld [vmem:[%s1222_s18 + $0x14] sm:$0xf0] }
  0x11   : > { %587 = vmatpush.bf16.msra.mxu1 %v1113_v3  ;;  %1124 = vmatpush.bf16.msra.mxu3 %v1113_v3  ;;  %v874_v16 = vld [vmem:[%s1222_s18] sm:$0xf]  ;;  %v1068_v17 = vld [vmem:[%s1222_s18 + $0x4] sm:$0xf0]  ;;  %v1067_v20 = vld [vmem:[%s1222_s18 + $0x4] sm:$0xf]  ;;  %v883_v36 = vor.u32 %v1070_v29, %v882_v28 }
  0x12   : > { %v938_v18 = vld [vmem:[%s1222_s18 + $0x80] sm:$0xf]  ;;  %v1084_v19 = vld [vmem:[%s1222_s18 + $0x84] sm:$0xf0]  ;;  %v876_v21 = vld [vmem:[%s1222_s18 + $0x8] sm:$0xf0]  ;;  %v875_v24 = vor.u32 %v1068_v17, %v874_v16 }
  0x13   : > { %v1083_v22 = vld [vmem:[%s1222_s18 + $0x84] sm:$0xf]  ;;  %v940_v23 = vld [vmem:[%s1222_s18 + $0x88] sm:$0xf0]  ;;  %v939_v25 = vor.u32 %v1084_v19, %v938_v18  ;;  %v879_v26 = vor.u32 %v1067_v20, %v876_v21  ;;  %v946_v30 = vld [vmem:[%s1222_s18 + $0x90] sm:$0xf] }
  0x14   : > { %499 = vmatpush.bf16.msra.mxu0 %v1104_v4  ;;  %1117 = vmatpush.bf16.msra.mxu2 %v1104_v4  ;;  %v943_v27 = vor.u32 %v1083_v22, %v940_v23  ;;  %v1086_v31 = vld [vmem:[%s1222_s18 + $0x94] sm:$0xf0]  ;;  %v1069_v32 = vld [vmem:[%s1222_s18 + $0x14] sm:$0xf]  ;;  %v884_v33 = vld [vmem:[%s1222_s18 + $0x18] sm:$0xf0] }
  0x15   : > { %588 = vmatpush.bf16.msra.mxu1 %v1112_v5  ;;  %1125 = vmatpush.bf16.msra.mxu3 %v1112_v5  ;;  %v1085_v34 = vld [vmem:[%s1222_s18 + $0x94] sm:$0xf]  ;;  %v948_v35 = vld [vmem:[%s1222_s18 + $0x98] sm:$0xf0]  ;;  %v947_v37 = vor.u32 %v1086_v31, %v946_v30  ;;  %v887_v38 = vor.u32 %v1069_v32, %v884_v33  ;;  %v890_v40 = vld [vmem:[%s1222_s18 + $0x20] sm:$0xf] }
  0x16   : > { %v951_v39 = vor.u32 %v1085_v34, %v948_v35  ;;  %v1072_v41 = vld [vmem:[%s1222_s18 + $0x24] sm:$0xf0]  ;;  %v954_v42 = vld [vmem:[%s1222_s18 + $0xa0] sm:$0xf]  ;;  %v1071_v44 = vld [vmem:[%s1222_s18 + $0x24] sm:$0xf] }
  0x17   : > { %v1088_v43 = vld [vmem:[%s1222_s18 + $0xa4] sm:$0xf0]  ;;  %v892_v45 = vld [vmem:[%s1222_s18 + $0x28] sm:$0xf0]  ;;  %v1087_v46 = vld [vmem:[%s1222_s18 + $0xa4] sm:$0xf]  ;;  %v891_v48 = vor.u32 %v1072_v41, %v890_v40 }
  0x18   : > { %500 = vmatpush.bf16.msra.mxu0 %v1103_v6  ;;  %1118 = vmatpush.bf16.msra.mxu2 %v1103_v6  ;;  %v956_v47 = vld [vmem:[%s1222_s18 + $0xa8] sm:$0xf0]  ;;  %v955_v49 = vor.u32 %v1088_v43, %v954_v42  ;;  %v895_v50 = vor.u32 %v1071_v44, %v892_v45  ;;  %v898_v52 = vld [vmem:[%s1222_s18 + $0x30] sm:$0xf]  ;;  %v1074_v53 = vld [vmem:[%s1222_s18 + $0x34] sm:$0xf0] }
  0x19   : > { %589 = vmatpush.bf16.msra.mxu1 %v1111_v7  ;;  %1126 = vmatpush.bf16.msra.mxu3 %v1111_v7  ;;  %v959_v51 = vor.u32 %v1087_v46, %v956_v47  ;;  %v962_v54 = vld [vmem:[%s1222_s18 + $0xb0] sm:$0xf]  ;;  %v1090_v55 = vld [vmem:[%s1222_s18 + $0xb4] sm:$0xf0]  ;;  %v1073_v56 = vld [vmem:[%s1222_s18 + $0x34] sm:$0xf]  ;;  %v899_v60 = vor.u32 %v1074_v53, %v898_v52 }
  0x1a   : > { %v900_v57 = vld [vmem:[%s1222_s18 + $0x38] sm:$0xf0]  ;;  %v1089_v58 = vld [vmem:[%s1222_s18 + $0xb4] sm:$0xf]  ;;  %v963_v61 = vor.u32 %v1090_v55, %v962_v54  ;;  %v906_v0 = vld [vmem:[%s1222_s18 + $0x40] sm:$0xf] }
  0x1b   : > { %v964_v59 = vld [vmem:[%s1222_s18 + $0xb8] sm:$0xf0]  ;;  %v903_v62 = vor.u32 %v1073_v56, %v900_v57  ;;  %v1076_v1 = vld [vmem:[%s1222_s18 + $0x44] sm:$0xf0]  ;;  %v970_v2 = vld [vmem:[%s1222_s18 + $0xc0] sm:$0xf] }
  0x1c   : > { %501 = vmatpush.bf16.msra.mxu0 %v1102_v8  ;;  %1119 = vmatpush.bf16.msra.mxu2 %v1102_v8  ;;  %v967_v63 = vor.u32 %v1089_v58, %v964_v59  ;;  %v1092_v3 = vld [vmem:[%s1222_s18 + $0xc4] sm:$0xf0]  ;;  %v1075_v4 = vld [vmem:[%s1222_s18 + $0x44] sm:$0xf]  ;;  %v908_v5 = vld [vmem:[%s1222_s18 + $0x48] sm:$0xf0]  ;;  %v907_v8 = vor.u32 %v1076_v1, %v906_v0 }
  0x1d   : > { %590 = vmatpush.bf16.msra.mxu1 %v1110_v9  ;;  %1127 = vmatpush.bf16.msra.mxu3 %v1110_v9  ;;  %v1091_v6 = vld [vmem:[%s1222_s18 + $0xc4] sm:$0xf]  ;;  %v972_v7 = vld [vmem:[%s1222_s18 + $0xc8] sm:$0xf0]  ;;  %v971_v9 = vor.u32 %v1092_v3, %v970_v2  ;;  %v1077_v16 = vld [vmem:[%s1222_s18 + $0x54] sm:$0xf] }
  0x1e   : > { %v916_v17 = vld [vmem:[%s1222_s18 + $0x58] sm:$0xf0]  ;;  %v1093_v18 = vld [vmem:[%s1222_s18 + $0xd4] sm:$0xf]  ;;  %v1079_v28 = vld [vmem:[%s1222_s18 + $0x64] sm:$0xf] }
  0x1f   : > { %v980_v19 = vld [vmem:[%s1222_s18 + $0xd8] sm:$0xf0]  ;;  %v919_v22 = vor.u32 %v1077_v16, %v916_v17  ;;  %v924_v29 = vld [vmem:[%s1222_s18 + $0x68] sm:$0xf0]  ;;  %v1095_v30 = vld [vmem:[%s1222_s18 + $0xe4] sm:$0xf] }
  0x20   : > { %502 = vmatpush.bf16.msra.mxu0 %v1101_v10  ;;  %1120 = vmatpush.bf16.msra.mxu2 %v1101_v10  ;;  %v911_v10 = vor.u32 %v1075_v4, %v908_v5  ;;  %v983_v23 = vor.u32 %v1093_v18, %v980_v19  ;;  %v988_v31 = vld [vmem:[%s1222_s18 + $0xe8] sm:$0xf0]  ;;  %v927_v34 = vor.u32 %v1079_v28, %v924_v29  ;;  %v1081_v40 = vld [vmem:[%s1222_s18 + $0x74] sm:$0xf]  ;;  %v932_v41 = vld [vmem:[%s1222_s18 + $0x78] sm:$0xf0] }
  0x21   : > { %591 = vmatpush.bf16.msra.mxu1 %v1109_v11  ;;  %1128 = vmatpush.bf16.msra.mxu3 %v1109_v11  ;;  %v975_v11 = vor.u32 %v1091_v6, %v972_v7  ;;  %v991_v35 = vor.u32 %v1095_v30, %v988_v31  ;;  %v1097_v42 = vld [vmem:[%s1222_s18 + $0xf4] sm:$0xf]  ;;  %v996_v43 = vld [vmem:[%s1222_s18 + $0xf8] sm:$0xf0]  ;;  %v935_v46 = vor.u32 %v1081_v40, %v932_v41 }
  0x22   : > { %v999_v47 = vor.u32 %v1097_v42, %v996_v43 }
  0x24   : > { %503 = vmatpush.bf16.msra.mxu0 %v1100_v12  ;;  %1121 = vmatpush.bf16.msra.mxu2 %v1100_v12  ;;  %v914_v12 = vld [vmem:[%s1222_s18 + $0x50] sm:$0xf] }
  0x25   : > { %592 = vmatpush.bf16.msra.mxu1 %v1108_v13  ;;  %1129 = vmatpush.bf16.msra.mxu3 %v1108_v13  ;;  %v1078_v13 = vld [vmem:[%s1222_s18 + $0x54] sm:$0xf0] }
  0x26   : > { %v915_v20 = vor.u32 %v1078_v13, %v914_v12 }
  0x28   : > { %504 = vmatpush.bf16.msra.mxu0 %v1099_v14  ;;  %1122 = vmatpush.bf16.msra.mxu2 %v1099_v14  ;;  %v978_v14 = vld [vmem:[%s1222_s18 + $0xd0] sm:$0xf] }
  0x29   : > { %593 = vmatpush.bf16.msra.mxu1 %v1107_v15  ;;  %1130 = vmatpush.bf16.msra.mxu3 %v1107_v15  ;;  %v1094_v15 = vld [vmem:[%s1222_s18 + $0xd4] sm:$0xf0] }
  0x2a   : > { %v979_v21 = vor.u32 %v1094_v15, %v978_v14 }
  0x2b   : > { %505 = vmatmul.bf16.vlgmr.msra.gmra.mxu0 %v875_v24  ;;  %545 = vmatmul.bf16.vlgmr.msra.gmra.mxu2 %v939_v25  ;;  %v922_v24 = vld [vmem:[%s1222_s18 + $0x60] sm:$0xf]  ;;  %v1080_v25 = vld [vmem:[%s1222_s18 + $0x64] sm:$0xf0] }
  0x2c   : > { %594 = vmatmul.bf16.vlgmr.msra.gmra.mxu1 %v879_v26  ;;  %634 = vmatmul.bf16.vlgmr.msra.gmra.mxu3 %v943_v27  ;;  %v986_v26 = vld [vmem:[%s1222_s18 + $0xe0] sm:$0xf]  ;;  %v1096_v27 = vld [vmem:[%s1222_s18 + $0xe4] sm:$0xf0]  ;;  %v923_v32 = vor.u32 %v1080_v25, %v922_v24 }
  0x2d   : > { %v987_v33 = vor.u32 %v1096_v27, %v986_v26 }
  0x3b   : > { %510 = vmatmul.bf16.gmra.mxu0 %v883_v36  ;;  %550 = vmatmul.bf16.gmra.mxu2 %v947_v37  ;;  %v930_v36 = vld [vmem:[%s1222_s18 + $0x70] sm:$0xf]  ;;  %v1082_v37 = vld [vmem:[%s1222_s18 + $0x74] sm:$0xf0] }
  0x3c   : > { %599 = vmatmul.bf16.gmra.mxu1 %v887_v38  ;;  %639 = vmatmul.bf16.gmra.mxu3 %v951_v39  ;;  %v994_v38 = vld [vmem:[%s1222_s18 + $0xf0] sm:$0xf]  ;;  %v1098_v39 = vld [vmem:[%s1222_s18 + $0xf4] sm:$0xf0]  ;;  %v931_v44 = vor.u32 %v1082_v37, %v930_v36 }
  0x3d   : > { %v995_v45 = vor.u32 %v1098_v39, %v994_v38 }
  0x4b   : > { %515 = vmatmul.bf16.gmra.mxu0 %v891_v48  ;;  %555 = vmatmul.bf16.gmra.mxu2 %v955_v49  ;;  %v675_v48 = vld [vmem:[%s1412_s2] sm:$0x3] }
  0x4c   : > { %604 = vmatmul.bf16.gmra.mxu1 %v895_v50  ;;  %644 = vmatmul.bf16.gmra.mxu3 %v959_v51  ;;  %v1300_v50 = vperm.slane %v675_v48, 0  ;;  %v1302_v53 = vperm.slane %v675_v48, 1 }
  0x5b   : > { %520 = vmatmul.bf16.gmra.mxu0 %v899_v60  ;;  %560 = vmatmul.bf16.gmra.mxu2 %v963_v61 }
  0x5c   : > { %609 = vmatmul.bf16.gmra.mxu1 %v903_v62  ;;  %649 = vmatmul.bf16.gmra.mxu3 %v967_v63 }
  0x6b   : > { %525 = vmatmul.bf16.gmra.mxu0 %v907_v8  ;;  %565 = vmatmul.bf16.gmra.mxu2 %v971_v9 }
  0x6c   : > { %614 = vmatmul.bf16.gmra.mxu1 %v911_v10  ;;  %654 = vmatmul.bf16.gmra.mxu3 %v975_v11 }
  0x7b   : > { %530 = vmatmul.bf16.gmra.mxu0 %v915_v20  ;;  %570 = vmatmul.bf16.gmra.mxu2 %v979_v21 }
  0x7c   : > { %619 = vmatmul.bf16.gmra.mxu1 %v919_v22  ;;  %659 = vmatmul.bf16.gmra.mxu3 %v983_v23 }
  0x8b   : > { %535 = vmatmul.bf16.gmra.mxu0 %v923_v32  ;;  %575 = vmatmul.bf16.gmra.mxu2 %v987_v33 }
  0x8c   : > { %624 = vmatmul.bf16.gmra.mxu1 %v927_v34  ;;  %664 = vmatmul.bf16.gmra.mxu3 %v991_v35 }
  0x9b   : > { %540 = vmatmul.bf16.gmra.mxu0 %v931_v44  ;;  %580 = vmatmul.bf16.gmra.mxu2 %v995_v45 }
  0x9c   : > { %629 = vmatmul.bf16.gmra.mxu1 %v935_v46  ;;  %669 = vmatmul.bf16.gmra.mxu3 %v999_v47 }
  0xa8   : > { %v506_v49 = vpop.f32.mrf.mxu0 }
  0xa9   : > { %v595_v51 = vpop.f32.mrf.mxu1 }
  0xaa   : > { %v596_v52 = vadd.f32 %v595_v51, %v506_v49 }
  0xac   : > { %v677_v54 = vmul.f32 %v1300_v50, %v596_v52 }
  0xae   : > { %v710_v55 = vadd.f32 %v1302_v53, %v677_v54  ;;  %v546_v56 = vpop.f32.mrf.mxu2 }
  0xaf   : > { %v635_v57 = vpop.f32.mrf.mxu3 }
  0xb0   : > { %v742_v58 = vmax.f32 %v710_v55, 0.0  ;;  %v636_v59 = vadd.f32 %v635_v57, %v546_v56  ;;  %v508_v60 = vpop.f32.mrf.mxu0 }
  0xb1   : > { %v597_v61 = vpop.f32.mrf.mxu1 }
  0xb2   : > { %774 = vst [vmem:[%s1311_s30] sm:$0xff] %v742_v58  ;;  %v693_v62 = vmul.f32 %v1300_v50, %v636_v59  ;;  %v598_v63 = vadd.f32 %v597_v61, %v508_v60 }
  0xb4   : > { %v726_v0 = vadd.f32 %v1302_v53, %v693_v62  ;;  %v678_v1 = vmul.f32 %v1300_v50, %v598_v63 }
  0xb6   : > { %v758_v2 = vmax.f32 %v726_v0, 0.0  ;;  %v711_v3 = vadd.f32 %v1302_v53, %v678_v1  ;;  %v548_v4 = vpop.f32.mrf.mxu2 }
  0xb7   : > { %v637_v5 = vpop.f32.mrf.mxu3 }
  0xb8   : > { %790 = vst [vmem:[%s1311_s30 + $0x80] sm:$0xff] %v758_v2  ;;  %v743_v6 = vmax.f32 %v711_v3, 0.0  ;;  %v638_v7 = vadd.f32 %v637_v5, %v548_v4  ;;  %v511_v8 = vpop.f32.mrf.mxu0 }
  0xb9   : > { %v600_v9 = vpop.f32.mrf.mxu1 }
  0xba   : > { %775 = vst [vmem:[%s1311_s30 + $0x8] sm:$0xff] %v743_v6  ;;  %v694_v10 = vmul.f32 %v1300_v50, %v638_v7  ;;  %v601_v11 = vadd.f32 %v600_v9, %v511_v8 }
  0xbc   : > { %v727_v12 = vadd.f32 %v1302_v53, %v694_v10  ;;  %v679_v13 = vmul.f32 %v1300_v50, %v601_v11 }
  0xbe   : > { %v759_v14 = vmax.f32 %v727_v12, 0.0  ;;  %v712_v15 = vadd.f32 %v1302_v53, %v679_v13  ;;  %v551_v16 = vpop.f32.mrf.mxu2 }
  0xbf   : > { %v640_v17 = vpop.f32.mrf.mxu3 }
  0xc0   : > { %791 = vst [vmem:[%s1311_s30 + $0x88] sm:$0xff] %v759_v14  ;;  %v744_v18 = vmax.f32 %v712_v15, 0.0  ;;  %v641_v19 = vadd.f32 %v640_v17, %v551_v16  ;;  %v513_v20 = vpop.f32.mrf.mxu0 }
  0xc1   : > { %v602_v21 = vpop.f32.mrf.mxu1 }
  0xc2   : > { %776 = vst [vmem:[%s1311_s30 + $0x10] sm:$0xff] %v744_v18  ;;  %v695_v22 = vmul.f32 %v1300_v50, %v641_v19  ;;  %v603_v23 = vadd.f32 %v602_v21, %v513_v20 }
  0xc4   : > { %v728_v24 = vadd.f32 %v1302_v53, %v695_v22  ;;  %v680_v25 = vmul.f32 %v1300_v50, %v603_v23 }
  0xc6   : > { %v760_v26 = vmax.f32 %v728_v24, 0.0  ;;  %v713_v27 = vadd.f32 %v1302_v53, %v680_v25  ;;  %v553_v28 = vpop.f32.mrf.mxu2 }
  0xc7   : > { %v642_v29 = vpop.f32.mrf.mxu3 }
  0xc8   : > { %792 = vst [vmem:[%s1311_s30 + $0x90] sm:$0xff] %v760_v26  ;;  %v745_v30 = vmax.f32 %v713_v27, 0.0  ;;  %v643_v31 = vadd.f32 %v642_v29, %v553_v28  ;;  %v516_v32 = vpop.f32.mrf.mxu0 }
  0xc9   : > { %v605_v33 = vpop.f32.mrf.mxu1 }
  0xca   : > { %777 = vst [vmem:[%s1311_s30 + $0x18] sm:$0xff] %v745_v30  ;;  %v696_v34 = vmul.f32 %v1300_v50, %v643_v31  ;;  %v606_v35 = vadd.f32 %v605_v33, %v516_v32 }
  0xcc   : > { %v729_v36 = vadd.f32 %v1302_v53, %v696_v34  ;;  %v681_v37 = vmul.f32 %v1300_v50, %v606_v35 }
  0xce   : > { %v761_v38 = vmax.f32 %v729_v36, 0.0  ;;  %v714_v39 = vadd.f32 %v1302_v53, %v681_v37  ;;  %v556_v40 = vpop.f32.mrf.mxu2 }
  0xcf   : > { %v645_v41 = vpop.f32.mrf.mxu3 }
  0xd0   : > { %793 = vst [vmem:[%s1311_s30 + $0x98] sm:$0xff] %v761_v38  ;;  %v746_v42 = vmax.f32 %v714_v39, 0.0  ;;  %v646_v43 = vadd.f32 %v645_v41, %v556_v40  ;;  %v518_v44 = vpop.f32.mrf.mxu0 }
  0xd1   : > { %v607_v45 = vpop.f32.mrf.mxu1 }
  0xd2   : > { %778 = vst [vmem:[%s1311_s30 + $0x20] sm:$0xff] %v746_v42  ;;  %v697_v46 = vmul.f32 %v1300_v50, %v646_v43  ;;  %v608_v47 = vadd.f32 %v607_v45, %v518_v44 }
  0xd4   : > { %v730_v48 = vadd.f32 %v1302_v53, %v697_v46  ;;  %v682_v49 = vmul.f32 %v1300_v50, %v608_v47 }
  0xd6   : > { %v762_v51 = vmax.f32 %v730_v48, 0.0  ;;  %v715_v52 = vadd.f32 %v1302_v53, %v682_v49  ;;  %v558_v54 = vpop.f32.mrf.mxu2 }
  0xd7   : > { %v647_v55 = vpop.f32.mrf.mxu3 }
  0xd8   : > { %794 = vst [vmem:[%s1311_s30 + $0xa0] sm:$0xff] %v762_v51  ;;  %v747_v56 = vmax.f32 %v715_v52, 0.0  ;;  %v648_v57 = vadd.f32 %v647_v55, %v558_v54  ;;  %v521_v58 = vpop.f32.mrf.mxu0 }
  0xd9   : > { %v610_v59 = vpop.f32.mrf.mxu1 }
  0xda   : > { %779 = vst [vmem:[%s1311_s30 + $0x28] sm:$0xff] %v747_v56  ;;  %v698_v60 = vmul.f32 %v1300_v50, %v648_v57  ;;  %v611_v61 = vadd.f32 %v610_v59, %v521_v58 }
  0xdc   : > { %v731_v62 = vadd.f32 %v1302_v53, %v698_v60  ;;  %v683_v63 = vmul.f32 %v1300_v50, %v611_v61 }
  0xde   : > { %v763_v0 = vmax.f32 %v731_v62, 0.0  ;;  %v716_v1 = vadd.f32 %v1302_v53, %v683_v63  ;;  %v561_v2 = vpop.f32.mrf.mxu2 }
  0xdf   : > { %v650_v3 = vpop.f32.mrf.mxu3 }
  0xe0   : > { %795 = vst [vmem:[%s1311_s30 + $0xa8] sm:$0xff] %v763_v0  ;;  %v748_v4 = vmax.f32 %v716_v1, 0.0  ;;  %v651_v5 = vadd.f32 %v650_v3, %v561_v2  ;;  %v523_v6 = vpop.f32.mrf.mxu0 }
  0xe1   : > { %v612_v7 = vpop.f32.mrf.mxu1 }
  0xe2   : > { %780 = vst [vmem:[%s1311_s30 + $0x30] sm:$0xff] %v748_v4  ;;  %v699_v8 = vmul.f32 %v1300_v50, %v651_v5  ;;  %v613_v9 = vadd.f32 %v612_v7, %v523_v6 }
  0xe4   : > { %v732_v10 = vadd.f32 %v1302_v53, %v699_v8  ;;  %v684_v11 = vmul.f32 %v1300_v50, %v613_v9 }
  0xe6   : > { %v764_v12 = vmax.f32 %v732_v10, 0.0  ;;  %v717_v13 = vadd.f32 %v1302_v53, %v684_v11  ;;  %v563_v14 = vpop.f32.mrf.mxu2 }
  0xe7   : > { %v652_v15 = vpop.f32.mrf.mxu3 }
  0xe8   : > { %796 = vst [vmem:[%s1311_s30 + $0xb0] sm:$0xff] %v764_v12  ;;  %v749_v16 = vmax.f32 %v717_v13, 0.0  ;;  %v653_v17 = vadd.f32 %v652_v15, %v563_v14  ;;  %v526_v18 = vpop.f32.mrf.mxu0 }
  0xe9   : > { %v615_v19 = vpop.f32.mrf.mxu1 }
  0xea   : > { %781 = vst [vmem:[%s1311_s30 + $0x38] sm:$0xff] %v749_v16  ;;  %v700_v20 = vmul.f32 %v1300_v50, %v653_v17  ;;  %v616_v21 = vadd.f32 %v615_v19, %v526_v18 }
  0xec   : > { %v733_v22 = vadd.f32 %v1302_v53, %v700_v20  ;;  %v685_v23 = vmul.f32 %v1300_v50, %v616_v21 }
  0xee   : > { %v765_v24 = vmax.f32 %v733_v22, 0.0  ;;  %v718_v25 = vadd.f32 %v1302_v53, %v685_v23  ;;  %v566_v26 = vpop.f32.mrf.mxu2 }
  0xef   : > { %v655_v27 = vpop.f32.mrf.mxu3 }
  0xf0   : > { %797 = vst [vmem:[%s1311_s30 + $0xb8] sm:$0xff] %v765_v24  ;;  %v750_v28 = vmax.f32 %v718_v25, 0.0  ;;  %v656_v29 = vadd.f32 %v655_v27, %v566_v26  ;;  %v528_v30 = vpop.f32.mrf.mxu0 }
  0xf1   : > { %v617_v31 = vpop.f32.mrf.mxu1 }
  0xf2   : > { %782 = vst [vmem:[%s1311_s30 + $0x40] sm:$0xff] %v750_v28  ;;  %v701_v32 = vmul.f32 %v1300_v50, %v656_v29  ;;  %v618_v33 = vadd.f32 %v617_v31, %v528_v30 }
  0xf4   : > { %v734_v34 = vadd.f32 %v1302_v53, %v701_v32  ;;  %v686_v35 = vmul.f32 %v1300_v50, %v618_v33 }
  0xf6   : > { %v766_v36 = vmax.f32 %v734_v34, 0.0  ;;  %v719_v37 = vadd.f32 %v1302_v53, %v686_v35  ;;  %v568_v38 = vpop.f32.mrf.mxu2 }
  0xf7   : > { %v657_v39 = vpop.f32.mrf.mxu3 }
  0xf8   : > { %798 = vst [vmem:[%s1311_s30 + $0xc0] sm:$0xff] %v766_v36  ;;  %v751_v40 = vmax.f32 %v719_v37, 0.0  ;;  %v658_v41 = vadd.f32 %v657_v39, %v568_v38  ;;  %v531_v42 = vpop.f32.mrf.mxu0 }
  0xf9   : > { %v620_v43 = vpop.f32.mrf.mxu1 }
  0xfa   : > { %783 = vst [vmem:[%s1311_s30 + $0x48] sm:$0xff] %v751_v40  ;;  %v702_v44 = vmul.f32 %v1300_v50, %v658_v41  ;;  %v621_v45 = vadd.f32 %v620_v43, %v531_v42 }
  0xfc   : > { %v735_v46 = vadd.f32 %v1302_v53, %v702_v44  ;;  %v687_v47 = vmul.f32 %v1300_v50, %v621_v45 }
  0xfe   : > { %v767_v48 = vmax.f32 %v735_v46, 0.0  ;;  %v720_v49 = vadd.f32 %v1302_v53, %v687_v47  ;;  %v571_v51 = vpop.f32.mrf.mxu2 }
  0xff   : > { %v660_v52 = vpop.f32.mrf.mxu3 }
 0x100   : > { %799 = vst [vmem:[%s1311_s30 + $0xc8] sm:$0xff] %v767_v48  ;;  %v752_v54 = vmax.f32 %v720_v49, 0.0  ;;  %v661_v55 = vadd.f32 %v660_v52, %v571_v51  ;;  %v533_v56 = vpop.f32.mrf.mxu0 }
 0x101   : > { %v622_v57 = vpop.f32.mrf.mxu1 }
 0x102   : > { %784 = vst [vmem:[%s1311_s30 + $0x50] sm:$0xff] %v752_v54  ;;  %v703_v58 = vmul.f32 %v1300_v50, %v661_v55  ;;  %v623_v59 = vadd.f32 %v622_v57, %v533_v56 }
 0x104   : > { %v736_v60 = vadd.f32 %v1302_v53, %v703_v58  ;;  %v688_v61 = vmul.f32 %v1300_v50, %v623_v59 }
 0x106   : > { %v768_v62 = vmax.f32 %v736_v60, 0.0  ;;  %v721_v63 = vadd.f32 %v1302_v53, %v688_v61  ;;  %v573_v0 = vpop.f32.mrf.mxu2 }
 0x107   : > { %v662_v1 = vpop.f32.mrf.mxu3 }
 0x108   : > { %800 = vst [vmem:[%s1311_s30 + $0xd0] sm:$0xff] %v768_v62  ;;  %v753_v2 = vmax.f32 %v721_v63, 0.0  ;;  %v663_v3 = vadd.f32 %v662_v1, %v573_v0  ;;  %v536_v4 = vpop.f32.mrf.mxu0 }
 0x109   : > { %v625_v5 = vpop.f32.mrf.mxu1 }
 0x10a   : > { %785 = vst [vmem:[%s1311_s30 + $0x58] sm:$0xff] %v753_v2  ;;  %v704_v6 = vmul.f32 %v1300_v50, %v663_v3  ;;  %v626_v7 = vadd.f32 %v625_v5, %v536_v4 }
 0x10c   : > { %v737_v8 = vadd.f32 %v1302_v53, %v704_v6  ;;  %v689_v9 = vmul.f32 %v1300_v50, %v626_v7 }
 0x10e   : > { %v769_v10 = vmax.f32 %v737_v8, 0.0  ;;  %v722_v11 = vadd.f32 %v1302_v53, %v689_v9  ;;  %v576_v12 = vpop.f32.mrf.mxu2 }
 0x10f   : > { %v665_v13 = vpop.f32.mrf.mxu3 }
 0x110   : > { %801 = vst [vmem:[%s1311_s30 + $0xd8] sm:$0xff] %v769_v10  ;;  %v754_v14 = vmax.f32 %v722_v11, 0.0  ;;  %v666_v15 = vadd.f32 %v665_v13, %v576_v12  ;;  %v538_v16 = vpop.f32.mrf.mxu0 }
 0x111   : > { %v627_v17 = vpop.f32.mrf.mxu1 }
 0x112   : > { %786 = vst [vmem:[%s1311_s30 + $0x60] sm:$0xff] %v754_v14  ;;  %v705_v18 = vmul.f32 %v1300_v50, %v666_v15  ;;  %v628_v19 = vadd.f32 %v627_v17, %v538_v16 }
 0x114   : > { %v738_v20 = vadd.f32 %v1302_v53, %v705_v18  ;;  %v690_v21 = vmul.f32 %v1300_v50, %v628_v19 }
 0x116   : > { %v770_v22 = vmax.f32 %v738_v20, 0.0  ;;  %v723_v23 = vadd.f32 %v1302_v53, %v690_v21  ;;  %v578_v24 = vpop.f32.mrf.mxu2 }
 0x117   : > { %v667_v25 = vpop.f32.mrf.mxu3 }
 0x118   : > { %802 = vst [vmem:[%s1311_s30 + $0xe0] sm:$0xff] %v770_v22  ;;  %v755_v26 = vmax.f32 %v723_v23, 0.0  ;;  %v668_v27 = vadd.f32 %v667_v25, %v578_v24  ;;  %v541_v28 = vpop.f32.mrf.mxu0 }
 0x119   : > { %v630_v29 = vpop.f32.mrf.mxu1 }
 0x11a   : > { %787 = vst [vmem:[%s1311_s30 + $0x68] sm:$0xff] %v755_v26  ;;  %v706_v30 = vmul.f32 %v1300_v50, %v668_v27  ;;  %v631_v31 = vadd.f32 %v630_v29, %v541_v28 }
 0x11c   : > { %v739_v32 = vadd.f32 %v1302_v53, %v706_v30  ;;  %v691_v33 = vmul.f32 %v1300_v50, %v631_v31 }
 0x11e   : > { %v771_v34 = vmax.f32 %v739_v32, 0.0  ;;  %v724_v35 = vadd.f32 %v1302_v53, %v691_v33  ;;  %v581_v36 = vpop.f32.mrf.mxu2 }
 0x11f   : > { %v670_v37 = vpop.f32.mrf.mxu3 }
 0x120   : > { %803 = vst [vmem:[%s1311_s30 + $0xe8] sm:$0xff] %v771_v34  ;;  %v756_v38 = vmax.f32 %v724_v35, 0.0  ;;  %v671_v39 = vadd.f32 %v670_v37, %v581_v36  ;;  %v543_v40 = vpop.f32.mrf.mxu0 }
 0x121   : > { %v632_v41 = vpop.f32.mrf.mxu1 }
 0x122   : > { %788 = vst [vmem:[%s1311_s30 + $0x70] sm:$0xff] %v756_v38  ;;  %v707_v42 = vmul.f32 %v1300_v50, %v671_v39  ;;  %v633_v43 = vadd.f32 %v632_v41, %v543_v40 }
 0x124   : > { %v740_v44 = vadd.f32 %v1302_v53, %v707_v42  ;;  %v692_v45 = vmul.f32 %v1300_v50, %v633_v43 }
 0x126   : > { %v772_v46 = vmax.f32 %v740_v44, 0.0  ;;  %v725_v47 = vadd.f32 %v1302_v53, %v692_v45  ;;  %v583_v48 = vpop.f32.mrf.mxu2 }
 0x127   : > { %v672_v49 = vpop.f32.mrf.mxu3 }
 0x128   : > { %804 = vst [vmem:[%s1311_s30 + $0xf0] sm:$0xff] %v772_v46  ;;  %v757_v51 = vmax.f32 %v725_v47, 0.0  ;;  %v673_v52 = vadd.f32 %v672_v49, %v583_v48 }
 0x12a   : > { %789 = vst [vmem:[%s1311_s30 + $0x78] sm:$0xff] %v757_v51  ;;  %v708_v54 = vmul.f32 %v1300_v50, %v673_v52 }
 0x12c   : > { %v741_v55 = vadd.f32 %v1302_v53, %v708_v54 }
 0x12e   : > { %v773_v56 = vmax.f32 %v741_v55, 0.0 }
 0x130   : > { %805 = vst [vmem:[%s1311_s30 + $0xf8] sm:$0xff] %v773_v56 }
 0x131 PF: > { %s13_s12 = sadd.s32 1, %s1145_s12  }
 0x132   : > { %p10_p4 = scmp.ge.s32.totalorder %s13_s12, 4  }
 0x134   :  { %12 = sbr.rel (!%p10_p4) target bundleno = 1 (0x1), region = 62 }

// kernel: _lambda_.21
= control target key start
LH: loop header
LB: loop body
LE: loop exit
PB: predicated region body
PF: predicated region fallthrough
CT: control target
= control target key end

     0   :  { %v409_v29 = vmov 0.0   ;;  %s542_s1 = inlined_call_operand.vmem [shape: bf16[128,128], index: 1, kind: input, shape index: {}]   ;;  %s543_s2 = inlined_call_operand.vmem [shape: f32[1,128], index: 2, kind: input, shape index: {}]   ;;  %s544_s0 = inlined_call_operand.vmem [shape: bf16[128,128], index: 0, kind: input, shape index: {}]   ;;  %s545_s5 = inlined_call_operand.vmem [shape: f32[2,128], index: 5, kind: output, shape index: {}]   ;;  %s546_s3 = inlined_call_operand.vmem [shape: f32[1,128], index: 3, kind: input, shape index: {}]   ;;  %s547_s4 = inlined_call_operand.vmem [shape: f32[1,128], index: 4, kind: input, shape index: {}]  }
   0x1   :  { %v380_v0 = vld [vmem:[%s542_s1 + $0x38] sm:$0xff]  ;;  %v379_v1 = vld [vmem:[%s542_s1 + $0x30] sm:$0xff]  ;;  %v378_v2 = vld [vmem:[%s542_s1 + $0x28] sm:$0xff]  ;;  %205 = vst [vmem:[%s545_s5] sm:$0x3] %v409_v29 }
   0x2   :  { %152 = vmatpush.bf16.msra.mxu0 %v380_v0  ;;  %381 = vmatpush.bf16.msra.mxu1 %v380_v0  ;;  %v377_v3 = vld [vmem:[%s542_s1 + $0x20] sm:$0xff]  ;;  %v376_v4 = vld [vmem:[%s542_s1 + $0x18] sm:$0xff]  ;;  %v375_v5 = vld [vmem:[%s542_s1 + $0x10] sm:$0xff] }
   0x3   :  { %382 = vmatpush.bf16.msra.mxu2 %v380_v0  ;;  %383 = vmatpush.bf16.msra.mxu3 %v380_v0  ;;  %v374_v6 = vld [vmem:[%s542_s1 + $0x8] sm:$0xff]  ;;  %v373_v7 = vld [vmem:[%s542_s1] sm:$0xff]  ;;  %v367_v9 = vld [vmem:[%s544_s0 + $0x10] sm:$0xff] }
   0x4   :  { %v365_v8 = vld [vmem:[%s544_s0] sm:$0xff]  ;;  %v371_v11 = vld [vmem:[%s544_s0 + $0x30] sm:$0xff]  ;;  %v366_v12 = vld [vmem:[%s544_s0 + $0x8] sm:$0xff] }
   0x5   :  { %v369_v10 = vld [vmem:[%s544_s0 + $0x20] sm:$0xff]  ;;  %v368_v13 = vld [vmem:[%s544_s0 + $0x18] sm:$0xff]  ;;  %v370_v14 = vld [vmem:[%s544_s0 + $0x28] sm:$0xff] }
   0x6   :  { %153 = vmatpush.bf16.msra.mxu0 %v379_v1  ;;  %384 = vmatpush.bf16.msra.mxu1 %v379_v1  ;;  %v372_v15 = vld [vmem:[%s544_s0 + $0x38] sm:$0xff]  ;;  %v491_v22 = vld [vmem:[%s543_s2] ss:$0 sm:$0xff] }
   0x7   :  { %385 = vmatpush.bf16.msra.mxu2 %v379_v1  ;;  %386 = vmatpush.bf16.msra.mxu3 %v379_v1 }
   0xa   :  { %154 = vmatpush.bf16.msra.mxu0 %v378_v2  ;;  %387 = vmatpush.bf16.msra.mxu1 %v378_v2 }
   0xb   :  { %388 = vmatpush.bf16.msra.mxu2 %v378_v2  ;;  %389 = vmatpush.bf16.msra.mxu3 %v378_v2 }
   0xe   :  { %155 = vmatpush.bf16.msra.mxu0 %v377_v3  ;;  %390 = vmatpush.bf16.msra.mxu1 %v377_v3 }
   0xf   :  { %391 = vmatpush.bf16.msra.mxu2 %v377_v3  ;;  %392 = vmatpush.bf16.msra.mxu3 %v377_v3 }
  0x12   :  { %156 = vmatpush.bf16.msra.mxu0 %v376_v4  ;;  %393 = vmatpush.bf16.msra.mxu1 %v376_v4 }
  0x13   :  { %394 = vmatpush.bf16.msra.mxu2 %v376_v4  ;;  %395 = vmatpush.bf16.msra.mxu3 %v376_v4 }
  0x16   :  { %157 = vmatpush.bf16.msra.mxu0 %v375_v5  ;;  %396 = vmatpush.bf16.msra.mxu1 %v375_v5 }
  0x17   :  { %397 = vmatpush.bf16.msra.mxu2 %v375_v5  ;;  %398 = vmatpush.bf16.msra.mxu3 %v375_v5 }
  0x1a   :  { %158 = vmatpush.bf16.msra.mxu0 %v374_v6  ;;  %399 = vmatpush.bf16.msra.mxu1 %v374_v6 }
  0x1b   :  { %400 = vmatpush.bf16.msra.mxu2 %v374_v6  ;;  %401 = vmatpush.bf16.msra.mxu3 %v374_v6 }
  0x1e   :  { %159 = vmatpush.bf16.msra.mxu0 %v373_v7  ;;  %402 = vmatpush.bf16.msra.mxu1 %v373_v7 }
  0x1f   :  { %403 = vmatpush.bf16.msra.mxu2 %v373_v7  ;;  %404 = vmatpush.bf16.msra.mxu3 %v373_v7 }
  0x21   :  { %160 = vmatmul.bf16.vlgmr.msra.gmra.mxu0 %v365_v8  ;;  %170 = vmatmul.bf16.vlgmr.msra.gmra.mxu1 %v367_v9 }
  0x22   :  { %180 = vmatmul.bf16.vlgmr.msra.gmra.mxu2 %v369_v10  ;;  %190 = vmatmul.bf16.vlgmr.msra.gmra.mxu3 %v371_v11 }
  0x31   :  { %165 = vmatmul.bf16.gmra.mxu0 %v366_v12  ;;  %175 = vmatmul.bf16.gmra.mxu1 %v368_v13 }
  0x32   :  { %185 = vmatmul.bf16.gmra.mxu2 %v370_v14  ;;  %195 = vmatmul.bf16.gmra.mxu3 %v372_v15 }
  0x9e   :  { %v161_v16 = vpop.f32.mrf.mxu0  ;;  %v171_v17 = vpop.f32.mrf.mxu1 }
  0x9f   :  { %v162_v27 = vadd.f32 %v491_v22, %v161_v16  ;;  %v172_v36 = vadd.f32 %v491_v22, %v171_v17 }
  0xa1   :  { %v231_v31 = vmul.f32 %v162_v27, %v162_v27  ;;  %v235_v46 = vmul.f32 %v172_v36, %v172_v36 }
  0xa5   :  { %v181_v18 = vpop.f32.mrf.mxu2  ;;  %v191_v21 = vpop.f32.mrf.mxu3 }
  0xa6   :  { %v163_v19 = vpop.f32.mrf.mxu0  ;;  %v173_v20 = vpop.f32.mrf.mxu1  ;;  %v182_v54 = vadd.f32 %v491_v22, %v181_v18  ;;  %v192_v8 = vadd.f32 %v491_v22, %v191_v21 }
  0xa7   :  { %v164_v25 = vadd.f32 %v491_v22, %v163_v19  ;;  %v174_v41 = vadd.f32 %v491_v22, %v173_v20 }
  0xa8   :  { %v239_v0 = vmul.f32 %v182_v54, %v182_v54  ;;  %v243_v17 = vmul.f32 %v192_v8, %v192_v8 }
  0xa9   :  { %v232_v30 = vmul.f32 %v164_v25, %v164_v25  ;;  %v207_v32 = vadd.f32 %v164_v25, %v162_v27  ;;  %v236_v50 = vmul.f32 %v174_v41, %v174_v41 }
  0xab   :  { %v247_v37 = vadd.f32 %v232_v30, %v231_v31 }
  0xad   :  { %v183_v24 = vpop.f32.mrf.mxu2  ;;  %v193_v35 = vpop.f32.mrf.mxu3 }
  0xae   :  { %v166_v23 = vpop.f32.mrf.mxu0  ;;  %v176_v26 = vpop.f32.mrf.mxu1  ;;  %v184_v59 = vadd.f32 %v491_v22, %v183_v24  ;;  %v194_v13 = vadd.f32 %v491_v22, %v193_v35 }
  0xaf   :  { %v167_v28 = vadd.f32 %v491_v22, %v166_v23  ;;  %v177_v47 = vadd.f32 %v491_v22, %v176_v26 }
  0xb0   :  { %v240_v4 = vmul.f32 %v184_v59, %v184_v59  ;;  %v244_v23 = vmul.f32 %v194_v13, %v194_v13 }
  0xb1   :  { %v233_v33 = vmul.f32 %v167_v28, %v167_v28  ;;  %v208_v38 = vadd.f32 %v207_v32, %v167_v28  ;;  %v237_v55 = vmul.f32 %v177_v47, %v177_v47 }
  0xb3   :  { %v248_v42 = vadd.f32 %v247_v37, %v233_v33 }
  0xb5   :  { %v186_v40 = vpop.f32.mrf.mxu2  ;;  %v196_v58 = vpop.f32.mrf.mxu3 }
  0xb6   :  { %v168_v34 = vpop.f32.mrf.mxu0  ;;  %v178_v45 = vpop.f32.mrf.mxu1  ;;  %v187_v3 = vadd.f32 %v491_v22, %v186_v40  ;;  %v197_v20 = vadd.f32 %v491_v22, %v196_v58 }
  0xb7   :  { %v169_v39 = vadd.f32 %v491_v22, %v168_v34  ;;  %v179_v52 = vadd.f32 %v491_v22, %v178_v45 }
  0xb8   :  { %v241_v10 = vmul.f32 %v187_v3, %v187_v3  ;;  %v245_v27 = vmul.f32 %v197_v20, %v197_v20 }
  0xb9   :  { %v209_v43 = vadd.f32 %v208_v38, %v169_v39  ;;  %v234_v44 = vmul.f32 %v169_v39, %v169_v39  ;;  %v238_v61 = vmul.f32 %v179_v52, %v179_v52 }
  0xbb   :  { %v210_v48 = vadd.f32 %v209_v43, %v172_v36  ;;  %v249_v49 = vadd.f32 %v248_v42, %v234_v44  ;;  %v230_v44 = vld [vmem:[%s545_s5 + $0x1] sm:$0x1] }
  0xbd   :  { %v250_v51 = vadd.f32 %v249_v49, %v235_v46  ;;  %v211_v53 = vadd.f32 %v210_v48, %v174_v41  ;;  %v188_v63 = vpop.f32.mrf.mxu2  ;;  %v198_v16 = vpop.f32.mrf.mxu3 }
  0xbe   :  { %v189_v7 = vadd.f32 %v491_v22, %v188_v63  ;;  %v199_v26 = vadd.f32 %v491_v22, %v198_v16  ;;  %v206_v22 = vld [vmem:[%s545_s5] sm:$0x1] }
  0xbf   :  { %v212_v56 = vadd.f32 %v211_v53, %v177_v47  ;;  %v251_v57 = vadd.f32 %v250_v51, %v236_v50 }
  0xc0   :  { %v242_v15 = vmul.f32 %v189_v7, %v189_v7  ;;  %v246_v31 = vmul.f32 %v199_v26, %v199_v26 }
  0xc1   :  { %v213_v60 = vadd.f32 %v212_v56, %v179_v52  ;;  %v252_v62 = vadd.f32 %v251_v57, %v237_v55 }
  0xc3   :  { %v214_v1 = vadd.f32 %v213_v60, %v182_v54  ;;  %v253_v2 = vadd.f32 %v252_v62, %v238_v61  ;;  %v290_v61 = vld [vmem:[%s546_s3] sm:$0x1] }
  0xc5   :  { %v254_v5 = vadd.f32 %v253_v2, %v239_v0  ;;  %v215_v6 = vadd.f32 %v214_v1, %v184_v59  ;;  %v292_v0 = vld [vmem:[%s547_s4] sm:$0x1] }
  0xc7   :  { %v216_v9 = vadd.f32 %v215_v6, %v187_v3  ;;  %v255_v11 = vadd.f32 %v254_v5, %v240_v4 }
  0xc9   :  { %v256_v12 = vadd.f32 %v255_v11, %v241_v10  ;;  %v217_v14 = vadd.f32 %v216_v9, %v189_v7 }
  0xcb   :  { %v218_v18 = vadd.f32 %v217_v14, %v192_v8  ;;  %v257_v19 = vadd.f32 %v256_v12, %v242_v15 }
  0xcd   :  { %v258_v24 = vadd.f32 %v257_v19, %v243_v17  ;;  %v219_v25 = vadd.f32 %v218_v18, %v194_v13 }
  0xcf   :  { %v220_v21 = vadd.f32 %v219_v25, %v197_v20  ;;  %v259_v28 = vadd.f32 %v258_v24, %v244_v23 }
  0xd1   :  { %v260_v29 = vadd.f32 %v259_v28, %v245_v27  ;;  %v221_v30 = vadd.f32 %v220_v21, %v199_v26 }
  0xd3   :  { %v222_v32 = vrot.slane %v221_v30, 4  ;;  %v261_v33 = vadd.f32 %v260_v29, %v246_v31 }
  0xd5   :  { %v223_v34 = vadd.f32 %v222_v32, %v221_v30  ;;  %v262_v35 = vrot.slane %v261_v33, 4 }
  0xd7   :  { %v224_v36 = vrot.slane %v223_v34, 2  ;;  %v263_v37 = vadd.f32 %v262_v35, %v261_v33 }
  0xd9   :  { %v225_v38 = vadd.f32 %v224_v36, %v223_v34  ;;  %v264_v39 = vrot.slane %v263_v37, 2 }
  0xdb   :  { %v226_v40 = vrot.slane %v225_v38, 1  ;;  %v265_v41 = vadd.f32 %v264_v39, %v263_v37 }
  0xdd   :  { %v227_v42 = vadd.f32 %v226_v40, %v225_v38  ;;  %v266_v43 = vrot.slane %v265_v41, 1 }
  0xdf   :  { %v228_v45 = vadd.f32 %v227_v42, %v206_v22  ;;  %v267_v46 = vadd.f32 %v266_v43, %v265_v41 }
  0xe1   :  { %229 = vst [vmem:[%s545_s5] sm:$0x1] %v228_v45  ;;  %v268_v47 = vadd.f32 %v267_v46, %v230_v44 }
  0xe3   :  { %269 = vst [vmem:[%s545_s5 + $0x1] sm:$0x1] %v268_v47 }
  0xe8   :  { %v273_v48 = vld [vmem:[%s545_s5] sm:$0x1] }
  0xe9   :  { %v274_v49 = vmul.f32 0.0078125, %v273_v48 }
  0xea   :  { %v275_v50 = vld [vmem:[%s545_s5 + $0x1] sm:$0x1] }
  0xeb   :  { %v276_v51 = vmul.f32 0.0078125, %v275_v50  ;;  %v277_v52 = vmul.f32 %v274_v49, %v274_v49 }
  0xed   :  { %v278_v53 = vsub.f32 %v276_v51, %v277_v52 }
  0xef   :  { %v279_v54 = vadd.f32 1e-05, %v278_v53 }
  0xf1   :  { %407 = vrsqrt.f32 %v279_v54  ;;  %vm286_vm1 = vweird.f32 %v279_v54 }
  0xf7   :  { %v408_v55 = vpop.eup %407 }
  0xf8   :  { %v281_v56 = vmul.f32 %v408_v55, %v279_v54  ;;  %vm287_vm0 = vweird.f32 %v408_v55 }
  0xf9   :  { %vm288_vm2 = vmor %vm286_vm1, %vm287_vm0 }
  0xfa   :  { %v282_v57 = vmul.f32 %v408_v55, %v281_v56 }
  0xfc   :  { %v283_v58 = vmul.f32 0.5, %v282_v57 }
  0xfe   :  { %v284_v59 = vsub.f32 1.5, %v283_v58 }
 0x100   :  { %v285_v60 = vmul.f32 %v408_v55, %v284_v59 }
 0x102   :  { %v289_v62 = vsel %vm288_vm2, %v408_v55, %v285_v60 }
 0x103   :  { %v291_v63 = vmul.f32 %v290_v61, %v289_v62 }
 0x105   :  { %v293_v1 = vmul.f32 %v291_v63, %v274_v49  ;;  %295 = vst [vmem:[%s545_s5] sm:$0x1] %v291_v63 }
 0x107   :  { %v294_v2 = vsub.f32 %v292_v0, %v293_v1 }
 0x109   :  { %296 = vst [vmem:[%s545_s5 + $0x1] sm:$0x1] %v294_v2 }

// kernel: _lambda_.22
= control target key start
LH: loop header
LB: loop body
LE: loop exit
PB: predicated region body
PF: predicated region fallthrough
CT: control target
= control target key end

     0   :  { %s555_s1 = inlined_call_operand.vmem [shape: bf16[128,128], index: 1, kind: input, shape index: {}]   ;;  %s556_s2 = inlined_call_operand.vmem [shape: f32[1,128], index: 2, kind: input, shape index: {}]   ;;  %s557_s0 = inlined_call_operand.vmem [shape: bf16[128,128], index: 0, kind: input, shape index: {}]   ;;  %s558_s3 = inlined_call_operand.vmem [shape: f32[2,128], index: 3, kind: input, shape index: {}]   ;;  %s559_s4 = inlined_call_operand.vmem [shape: f32[128,128], index: 4, kind: output, shape index: {}]  }
   0x1   :  { %v348_v0 = vld [vmem:[%s555_s1 + $0x38] sm:$0xff]  ;;  %v347_v1 = vld [vmem:[%s555_s1 + $0x30] sm:$0xff]  ;;  %v346_v2 = vld [vmem:[%s555_s1 + $0x28] sm:$0xff] }
   0x2   :  { %149 = vmatpush.bf16.msra.mxu0 %v348_v0  ;;  %349 = vmatpush.bf16.msra.mxu1 %v348_v0  ;;  %v345_v3 = vld [vmem:[%s555_s1 + $0x20] sm:$0xff]  ;;  %v344_v4 = vld [vmem:[%s555_s1 + $0x18] sm:$0xff]  ;;  %v343_v5 = vld [vmem:[%s555_s1 + $0x10] sm:$0xff] }
   0x3   :  { %350 = vmatpush.bf16.msra.mxu2 %v348_v0  ;;  %351 = vmatpush.bf16.msra.mxu3 %v348_v0  ;;  %v342_v6 = vld [vmem:[%s555_s1 + $0x8] sm:$0xff]  ;;  %v341_v7 = vld [vmem:[%s555_s1] sm:$0xff]  ;;  %v335_v9 = vld [vmem:[%s557_s0 + $0x10] sm:$0xff] }
   0x4   :  { %v333_v8 = vld [vmem:[%s557_s0] sm:$0xff]  ;;  %v339_v11 = vld [vmem:[%s557_s0 + $0x30] sm:$0xff]  ;;  %v334_v12 = vld [vmem:[%s557_s0 + $0x8] sm:$0xff] }
   0x5   :  { %v337_v10 = vld [vmem:[%s557_s0 + $0x20] sm:$0xff]  ;;  %v336_v13 = vld [vmem:[%s557_s0 + $0x18] sm:$0xff]  ;;  %v338_v14 = vld [vmem:[%s557_s0 + $0x28] sm:$0xff] }
   0x6   :  { %150 = vmatpush.bf16.msra.mxu0 %v347_v1  ;;  %352 = vmatpush.bf16.msra.mxu1 %v347_v1  ;;  %v340_v15 = vld [vmem:[%s557_s0 + $0x38] sm:$0xff]  ;;  %v198_v16 = vld [vmem:[%s558_s3] sm:$0x3] }
   0x7   :  { %353 = vmatpush.bf16.msra.mxu2 %v347_v1  ;;  %354 = vmatpush.bf16.msra.mxu3 %v347_v1  ;;  %v453_v17 = vld [vmem:[%s556_s2] ss:$0 sm:$0xff]  ;;  %v455_v18 = vperm.slane %v198_v16, 0  ;;  %v458_v22 = vperm.slane %v198_v16, 1 }
   0xa   :  { %151 = vmatpush.bf16.msra.mxu0 %v346_v2  ;;  %355 = vmatpush.bf16.msra.mxu1 %v346_v2 }
   0xb   :  { %356 = vmatpush.bf16.msra.mxu2 %v346_v2  ;;  %357 = vmatpush.bf16.msra.mxu3 %v346_v2 }
   0xe   :  { %152 = vmatpush.bf16.msra.mxu0 %v345_v3  ;;  %358 = vmatpush.bf16.msra.mxu1 %v345_v3 }
   0xf   :  { %359 = vmatpush.bf16.msra.mxu2 %v345_v3  ;;  %360 = vmatpush.bf16.msra.mxu3 %v345_v3 }
  0x12   :  { %153 = vmatpush.bf16.msra.mxu0 %v344_v4  ;;  %361 = vmatpush.bf16.msra.mxu1 %v344_v4 }
  0x13   :  { %362 = vmatpush.bf16.msra.mxu2 %v344_v4  ;;  %363 = vmatpush.bf16.msra.mxu3 %v344_v4 }
  0x16   :  { %154 = vmatpush.bf16.msra.mxu0 %v343_v5  ;;  %364 = vmatpush.bf16.msra.mxu1 %v343_v5 }
  0x17   :  { %365 = vmatpush.bf16.msra.mxu2 %v343_v5  ;;  %366 = vmatpush.bf16.msra.mxu3 %v343_v5 }
  0x1a   :  { %155 = vmatpush.bf16.msra.mxu0 %v342_v6  ;;  %367 = vmatpush.bf16.msra.mxu1 %v342_v6 }
  0x1b   :  { %368 = vmatpush.bf16.msra.mxu2 %v342_v6  ;;  %369 = vmatpush.bf16.msra.mxu3 %v342_v6 }
  0x1e   :  { %156 = vmatpush.bf16.msra.mxu0 %v341_v7  ;;  %370 = vmatpush.bf16.msra.mxu1 %v341_v7 }
  0x1f   :  { %371 = vmatpush.bf16.msra.mxu2 %v341_v7  ;;  %372 = vmatpush.bf16.msra.mxu3 %v341_v7 }
  0x21   :  { %157 = vmatmul.bf16.vlgmr.msra.gmra.mxu0 %v333_v8  ;;  %167 = vmatmul.bf16.vlgmr.msra.gmra.mxu1 %v335_v9 }
  0x22   :  { %177 = vmatmul.bf16.vlgmr.msra.gmra.mxu2 %v337_v10  ;;  %187 = vmatmul.bf16.vlgmr.msra.gmra.mxu3 %v339_v11 }
  0x31   :  { %162 = vmatmul.bf16.gmra.mxu0 %v334_v12  ;;  %172 = vmatmul.bf16.gmra.mxu1 %v336_v13 }
  0x32   :  { %182 = vmatmul.bf16.gmra.mxu2 %v338_v14  ;;  %192 = vmatmul.bf16.gmra.mxu3 %v340_v15 }
  0x9e   :  { %v158_v19 = vpop.f32.mrf.mxu0  ;;  %v168_v20 = vpop.f32.mrf.mxu1 }
  0x9f   :  { %v159_v21 = vadd.f32 %v453_v17, %v158_v19  ;;  %v169_v23 = vadd.f32 %v453_v17, %v168_v20 }
  0xa1   :  { %v200_v24 = vmul.f32 %v455_v18, %v159_v21  ;;  %v204_v25 = vmul.f32 %v455_v18, %v169_v23 }
  0xa3   :  { %v217_v26 = vadd.f32 %v458_v22, %v200_v24  ;;  %v221_v27 = vadd.f32 %v458_v22, %v204_v25 }
  0xa5   :  { %v233_v28 = vmax.f32 %v217_v26, 0.0  ;;  %v237_v29 = vmax.f32 %v221_v27, 0.0  ;;  %v178_v30 = vpop.f32.mrf.mxu2  ;;  %v188_v31 = vpop.f32.mrf.mxu3 }
  0xa6   :  { %v179_v32 = vadd.f32 %v453_v17, %v178_v30  ;;  %v189_v33 = vadd.f32 %v453_v17, %v188_v31  ;;  %v160_v34 = vpop.f32.mrf.mxu0  ;;  %v170_v35 = vpop.f32.mrf.mxu1 }
  0xa7   :  { %249 = vst [vmem:[%s559_s4] sm:$0xff] %v233_v28  ;;  %v161_v36 = vadd.f32 %v453_v17, %v160_v34  ;;  %v171_v37 = vadd.f32 %v453_v17, %v170_v35 }
  0xa8   :  { %253 = vst [vmem:[%s559_s4 + $0x20] sm:$0xff] %v237_v29  ;;  %v208_v38 = vmul.f32 %v455_v18, %v179_v32  ;;  %v212_v39 = vmul.f32 %v455_v18, %v189_v33 }
  0xa9   :  { %v201_v40 = vmul.f32 %v455_v18, %v161_v36  ;;  %v205_v41 = vmul.f32 %v455_v18, %v171_v37 }
  0xaa   :  { %v225_v42 = vadd.f32 %v458_v22, %v208_v38  ;;  %v229_v43 = vadd.f32 %v458_v22, %v212_v39 }
  0xab   :  { %v218_v44 = vadd.f32 %v458_v22, %v201_v40  ;;  %v222_v45 = vadd.f32 %v458_v22, %v205_v41 }
  0xac   :  { %v241_v46 = vmax.f32 %v225_v42, 0.0  ;;  %v245_v47 = vmax.f32 %v229_v43, 0.0 }
  0xad   :  { %v234_v48 = vmax.f32 %v218_v44, 0.0  ;;  %v238_v49 = vmax.f32 %v222_v45, 0.0  ;;  %v180_v50 = vpop.f32.mrf.mxu2  ;;  %v190_v51 = vpop.f32.mrf.mxu3 }
  0xae   :  { %257 = vst [vmem:[%s559_s4 + $0x40] sm:$0xff] %v241_v46  ;;  %v181_v52 = vadd.f32 %v453_v17, %v180_v50  ;;  %v191_v53 = vadd.f32 %v453_v17, %v190_v51  ;;  %v163_v54 = vpop.f32.mrf.mxu0  ;;  %v173_v55 = vpop.f32.mrf.mxu1 }
  0xaf   :  { %261 = vst [vmem:[%s559_s4 + $0x60] sm:$0xff] %v245_v47  ;;  %v164_v56 = vadd.f32 %v453_v17, %v163_v54  ;;  %v174_v57 = vadd.f32 %v453_v17, %v173_v55 }
  0xb0   :  { %250 = vst [vmem:[%s559_s4 + $0x8] sm:$0xff] %v234_v48  ;;  %v209_v58 = vmul.f32 %v455_v18, %v181_v52  ;;  %v213_v59 = vmul.f32 %v455_v18, %v191_v53 }
  0xb1   :  { %254 = vst [vmem:[%s559_s4 + $0x28] sm:$0xff] %v238_v49  ;;  %v202_v60 = vmul.f32 %v455_v18, %v164_v56  ;;  %v206_v61 = vmul.f32 %v455_v18, %v174_v57 }
  0xb2   :  { %v226_v62 = vadd.f32 %v458_v22, %v209_v58  ;;  %v230_v63 = vadd.f32 %v458_v22, %v213_v59 }
  0xb3   :  { %v219_v0 = vadd.f32 %v458_v22, %v202_v60  ;;  %v223_v1 = vadd.f32 %v458_v22, %v206_v61 }
  0xb4   :  { %v242_v2 = vmax.f32 %v226_v62, 0.0  ;;  %v246_v3 = vmax.f32 %v230_v63, 0.0 }
  0xb5   :  { %v235_v4 = vmax.f32 %v219_v0, 0.0  ;;  %v239_v5 = vmax.f32 %v223_v1, 0.0  ;;  %v183_v6 = vpop.f32.mrf.mxu2  ;;  %v193_v7 = vpop.f32.mrf.mxu3 }
  0xb6   :  { %258 = vst [vmem:[%s559_s4 + $0x48] sm:$0xff] %v242_v2  ;;  %v184_v8 = vadd.f32 %v453_v17, %v183_v6  ;;  %v194_v9 = vadd.f32 %v453_v17, %v193_v7  ;;  %v165_v10 = vpop.f32.mrf.mxu0  ;;  %v175_v11 = vpop.f32.mrf.mxu1 }
  0xb7   :  { %262 = vst [vmem:[%s559_s4 + $0x68] sm:$0xff] %v246_v3  ;;  %v166_v12 = vadd.f32 %v453_v17, %v165_v10  ;;  %v176_v13 = vadd.f32 %v453_v17, %v175_v11 }
  0xb8   :  { %251 = vst [vmem:[%s559_s4 + $0x10] sm:$0xff] %v235_v4  ;;  %v210_v14 = vmul.f32 %v455_v18, %v184_v8  ;;  %v214_v15 = vmul.f32 %v455_v18, %v194_v9 }
  0xb9   :  { %255 = vst [vmem:[%s559_s4 + $0x30] sm:$0xff] %v239_v5  ;;  %v203_v16 = vmul.f32 %v455_v18, %v166_v12  ;;  %v207_v19 = vmul.f32 %v455_v18, %v176_v13 }
  0xba   :  { %v227_v20 = vadd.f32 %v458_v22, %v210_v14  ;;  %v231_v21 = vadd.f32 %v458_v22, %v214_v15 }
  0xbb   :  { %v220_v23 = vadd.f32 %v458_v22, %v203_v16  ;;  %v224_v24 = vadd.f32 %v458_v22, %v207_v19 }
  0xbc   :  { %v243_v25 = vmax.f32 %v227_v20, 0.0  ;;  %v247_v26 = vmax.f32 %v231_v21, 0.0 }
  0xbd   :  { %v236_v27 = vmax.f32 %v220_v23, 0.0  ;;  %v240_v28 = vmax.f32 %v224_v24, 0.0  ;;  %v185_v29 = vpop.f32.mrf.mxu2  ;;  %v195_v30 = vpop.f32.mrf.mxu3 }
  0xbe   :  { %259 = vst [vmem:[%s559_s4 + $0x50] sm:$0xff] %v243_v25  ;;  %v186_v31 = vadd.f32 %v453_v17, %v185_v29  ;;  %v196_v32 = vadd.f32 %v453_v17, %v195_v30 }
  0xbf   :  { %263 = vst [vmem:[%s559_s4 + $0x70] sm:$0xff] %v247_v26 }
  0xc0   :  { %252 = vst [vmem:[%s559_s4 + $0x18] sm:$0xff] %v236_v27  ;;  %v211_v33 = vmul.f32 %v455_v18, %v186_v31  ;;  %v215_v34 = vmul.f32 %v455_v18, %v196_v32 }
  0xc1   :  { %256 = vst [vmem:[%s559_s4 + $0x38] sm:$0xff] %v240_v28 }
  0xc2   :  { %v228_v35 = vadd.f32 %v458_v22, %v211_v33  ;;  %v232_v17 = vadd.f32 %v458_v22, %v215_v34 }
  0xc4   :  { %v244_v36 = vmax.f32 %v228_v35, 0.0  ;;  %v248_v37 = vmax.f32 %v232_v17, 0.0 }
  0xc6   :  { %260 = vst [vmem:[%s559_s4 + $0x58] sm:$0xff] %v244_v36 }
  0xc7   :  { %264 = vst [vmem:[%s559_s4 + $0x78] sm:$0xff] %v248_v37 }

// kernel: _lambda_.23
= control target key start
LH: loop header
LB: loop body
LE: loop exit
PB: predicated region body
PF: predicated region fallthrough
CT: control target
= control target key end

     0   :  { %v398_v28 = vmov 0.0   ;;  %s537_s1 = inlined_call_operand.vmem [shape: bf16[256,128], index: 1, kind: input, shape index: {}]   ;;  %s538_s2 = inlined_call_operand.vmem [shape: f32[1,128], index: 2, kind: input, shape index: {}]   ;;  %s539_s0 = inlined_call_operand.vmem [shape: bf16[32,256], index: 0, kind: input, shape index: {}]   ;;  %s540_s5 = inlined_call_operand.vmem [shape: f32[2,128], index: 5, kind: output, shape index: {}]   ;;  %s541_s3 = inlined_call_operand.vmem [shape: f32[1,128], index: 3, kind: input, shape index: {}]   ;;  %s542_s4 = inlined_call_operand.vmem [shape: f32[1,128], index: 4, kind: input, shape index: {}]  }
   0x1   :  { %v369_v0 = vld [vmem:[%s537_s1 + $0x38] sm:$0xff]  ;;  %v368_v2 = vld [vmem:[%s537_s1 + $0x30] sm:$0xff]  ;;  %v367_v4 = vld [vmem:[%s537_s1 + $0x28] sm:$0xff]  ;;  %218 = vst [vmem:[%s540_s5] sm:$0x3] %v398_v28 }
   0x2   :  { %v377_v1 = vld [vmem:[%s537_s1 + $0x78] sm:$0xff]  ;;  %176 = vmatpush.bf16.msra.mxu0 %v369_v0  ;;  %378 = vmatpush.bf16.msra.mxu2 %v369_v0  ;;  %v376_v3 = vld [vmem:[%s537_s1 + $0x70] sm:$0xff]  ;;  %v375_v5 = vld [vmem:[%s537_s1 + $0x68] sm:$0xff] }
   0x3   :  { %195 = vmatpush.bf16.msra.mxu1 %v377_v1  ;;  %386 = vmatpush.bf16.msra.mxu3 %v377_v1  ;;  %v366_v6 = vld [vmem:[%s537_s1 + $0x20] sm:$0xff]  ;;  %v365_v8 = vld [vmem:[%s537_s1 + $0x18] sm:$0xff]  ;;  %v364_v10 = vld [vmem:[%s537_s1 + $0x10] sm:$0xff] }
   0x4   :  { %v374_v7 = vld [vmem:[%s537_s1 + $0x60] sm:$0xff]  ;;  %v373_v9 = vld [vmem:[%s537_s1 + $0x58] sm:$0xff]  ;;  %v372_v11 = vld [vmem:[%s537_s1 + $0x50] sm:$0xff] }
   0x5   :  { %v363_v12 = vld [vmem:[%s537_s1 + $0x8] sm:$0xff]  ;;  %v362_v14 = vld [vmem:[%s537_s1] sm:$0xff]  ;;  %v288_v18 = vld [vmem:[%s539_s0 + $0x10] sm:$0xf] }
   0x6   :  { %177 = vmatpush.bf16.msra.mxu0 %v368_v2  ;;  %379 = vmatpush.bf16.msra.mxu2 %v368_v2  ;;  %v371_v13 = vld [vmem:[%s537_s1 + $0x48] sm:$0xff]  ;;  %v370_v15 = vld [vmem:[%s537_s1 + $0x40] sm:$0xff]  ;;  %v361_v19 = vld [vmem:[%s539_s0 + $0x14] sm:$0xf0] }
   0x7   :  { %196 = vmatpush.bf16.msra.mxu1 %v376_v3  ;;  %387 = vmatpush.bf16.msra.mxu3 %v376_v3  ;;  %v280_v16 = vld [vmem:[%s539_s0] sm:$0xf]  ;;  %v359_v17 = vld [vmem:[%s539_s0 + $0x4] sm:$0xf0]  ;;  %v358_v20 = vld [vmem:[%s539_s0 + $0x4] sm:$0xf]  ;;  %v289_v25 = vor.u32 %v361_v19, %v288_v18 }
   0x8   :  { %v282_v21 = vld [vmem:[%s539_s0 + $0x8] sm:$0xf0]  ;;  %v360_v22 = vld [vmem:[%s539_s0 + $0x14] sm:$0xf]  ;;  %v290_v23 = vld [vmem:[%s539_s0 + $0x18] sm:$0xf0]  ;;  %v281_v24 = vor.u32 %v359_v17, %v280_v16 }
   0x9   :  { %v285_v26 = vor.u32 %v358_v20, %v282_v21  ;;  %v293_v27 = vor.u32 %v360_v22, %v290_v23  ;;  %v395_v30 = vld [vmem:[%s538_s2] ss:$0 sm:$0xff] }
   0xa   :  { %178 = vmatpush.bf16.msra.mxu0 %v367_v4  ;;  %380 = vmatpush.bf16.msra.mxu2 %v367_v4  ;;  %v219_v1 = vld [vmem:[%s540_s5] sm:$0x1]  ;;  %v231_v4 = vld [vmem:[%s540_s5 + $0x1] sm:$0x1] }
   0xb   :  { %197 = vmatpush.bf16.msra.mxu1 %v375_v5  ;;  %388 = vmatpush.bf16.msra.mxu3 %v375_v5  ;;  %v267_v21 = vld [vmem:[%s541_s3] sm:$0x1] }
   0xe   :  { %179 = vmatpush.bf16.msra.mxu0 %v366_v6  ;;  %381 = vmatpush.bf16.msra.mxu2 %v366_v6 }
   0xf   :  { %198 = vmatpush.bf16.msra.mxu1 %v374_v7  ;;  %389 = vmatpush.bf16.msra.mxu3 %v374_v7 }
  0x12   :  { %180 = vmatpush.bf16.msra.mxu0 %v365_v8  ;;  %382 = vmatpush.bf16.msra.mxu2 %v365_v8 }
  0x13   :  { %199 = vmatpush.bf16.msra.mxu1 %v373_v9  ;;  %390 = vmatpush.bf16.msra.mxu3 %v373_v9 }
  0x16   :  { %181 = vmatpush.bf16.msra.mxu0 %v364_v10  ;;  %383 = vmatpush.bf16.msra.mxu2 %v364_v10 }
  0x17   :  { %200 = vmatpush.bf16.msra.mxu1 %v372_v11  ;;  %391 = vmatpush.bf16.msra.mxu3 %v372_v11 }
  0x1a   :  { %182 = vmatpush.bf16.msra.mxu0 %v363_v12  ;;  %384 = vmatpush.bf16.msra.mxu2 %v363_v12 }
  0x1b   :  { %201 = vmatpush.bf16.msra.mxu1 %v371_v13  ;;  %392 = vmatpush.bf16.msra.mxu3 %v371_v13 }
  0x1e   :  { %183 = vmatpush.bf16.msra.mxu0 %v362_v14  ;;  %385 = vmatpush.bf16.msra.mxu2 %v362_v14 }
  0x1f   :  { %202 = vmatpush.bf16.msra.mxu1 %v370_v15  ;;  %393 = vmatpush.bf16.msra.mxu3 %v370_v15 }
  0x21   :  { %184 = vmatmul.bf16.vlgmr.msra.gmra.mxu0 %v281_v24  ;;  %189 = vmatmul.bf16.vlgmr.msra.gmra.mxu2 %v289_v25  ;;  %v269_v24 = vld [vmem:[%s542_s4] sm:$0x1] }
  0x22   :  { %203 = vmatmul.bf16.vlgmr.msra.gmra.mxu1 %v285_v26  ;;  %208 = vmatmul.bf16.vlgmr.msra.gmra.mxu3 %v293_v27 }
  0x9e   :  { %v185_v29 = vpop.f32.mrf.mxu0 }
  0x9f   :  { %v204_v31 = vpop.f32.mrf.mxu1  ;;  %v186_v32 = vadd.f32 %v395_v30, %v185_v29 }
  0xa1   :  { %v205_v36 = vadd.f32 %v204_v31, %v186_v32 }
  0xa3   :  { %v232_v41 = vmul.f32 %v205_v36, %v205_v36 }
  0xa4   :  { %v190_v33 = vpop.f32.mrf.mxu2 }
  0xa5   :  { %v209_v34 = vpop.f32.mrf.mxu3  ;;  %v191_v37 = vadd.f32 %v395_v30, %v190_v33 }
  0xa6   :  { %v187_v35 = vpop.f32.mrf.mxu0 }
  0xa7   :  { %v188_v38 = vadd.f32 %v395_v30, %v187_v35  ;;  %v206_v39 = vpop.f32.mrf.mxu1  ;;  %v210_v42 = vadd.f32 %v209_v34, %v191_v37 }
  0xa9   :  { %v207_v40 = vadd.f32 %v206_v39, %v188_v38  ;;  %v234_v49 = vmul.f32 %v210_v42, %v210_v42 }
  0xab   :  { %v220_v43 = vadd.f32 %v207_v40, %v205_v36  ;;  %v233_v44 = vmul.f32 %v207_v40, %v207_v40 }
  0xac   :  { %v192_v45 = vpop.f32.mrf.mxu2 }
  0xad   :  { %v236_v46 = vadd.f32 %v233_v44, %v232_v41  ;;  %v193_v47 = vadd.f32 %v395_v30, %v192_v45  ;;  %v211_v48 = vpop.f32.mrf.mxu3  ;;  %v221_v51 = vadd.f32 %v220_v43, %v210_v42 }
  0xaf   :  { %v212_v50 = vadd.f32 %v211_v48, %v193_v47  ;;  %v237_v54 = vadd.f32 %v236_v46, %v234_v49 }
  0xb1   :  { %v222_v52 = vadd.f32 %v221_v51, %v212_v50  ;;  %v235_v53 = vmul.f32 %v212_v50, %v212_v50 }
  0xb3   :  { %v223_v55 = vrot.slane %v222_v52, 4  ;;  %v238_v56 = vadd.f32 %v237_v54, %v235_v53 }
  0xb5   :  { %v224_v57 = vadd.f32 %v223_v55, %v222_v52  ;;  %v239_v58 = vrot.slane %v238_v56, 4 }
  0xb7   :  { %v225_v59 = vrot.slane %v224_v57, 2  ;;  %v240_v60 = vadd.f32 %v239_v58, %v238_v56 }
  0xb9   :  { %v226_v61 = vadd.f32 %v225_v59, %v224_v57  ;;  %v241_v62 = vrot.slane %v240_v60, 2 }
  0xbb   :  { %v227_v63 = vrot.slane %v226_v61, 1  ;;  %v242_v0 = vadd.f32 %v241_v62, %v240_v60 }
  0xbd   :  { %v228_v2 = vadd.f32 %v227_v63, %v226_v61  ;;  %v243_v3 = vrot.slane %v242_v0, 1 }
  0xbf   :  { %v229_v5 = vadd.f32 %v228_v2, %v219_v1  ;;  %v244_v6 = vadd.f32 %v243_v3, %v242_v0 }
  0xc1   :  { %230 = vst [vmem:[%s540_s5] sm:$0x1] %v229_v5  ;;  %v245_v7 = vadd.f32 %v244_v6, %v231_v4 }
  0xc3   :  { %246 = vst [vmem:[%s540_s5 + $0x1] sm:$0x1] %v245_v7 }
  0xc8   :  { %v250_v8 = vld [vmem:[%s540_s5] sm:$0x1] }
  0xc9   :  { %v251_v9 = vmul.f32 0.03125, %v250_v8 }
  0xca   :  { %v252_v10 = vld [vmem:[%s540_s5 + $0x1] sm:$0x1] }
  0xcb   :  { %v253_v11 = vmul.f32 0.03125, %v252_v10  ;;  %v254_v12 = vmul.f32 %v251_v9, %v251_v9 }
  0xcd   :  { %v255_v13 = vsub.f32 %v253_v11, %v254_v12 }
  0xcf   :  { %v256_v14 = vadd.f32 1e-05, %v255_v13 }
  0xd1   :  { %396 = vrsqrt.f32 %v256_v14  ;;  %vm263_vm1 = vweird.f32 %v256_v14 }
  0xd7   :  { %v397_v15 = vpop.eup %396 }
  0xd8   :  { %v258_v16 = vmul.f32 %v397_v15, %v256_v14  ;;  %vm264_vm0 = vweird.f32 %v397_v15 }
  0xd9   :  { %vm265_vm2 = vmor %vm263_vm1, %vm264_vm0 }
  0xda   :  { %v259_v17 = vmul.f32 %v397_v15, %v258_v16 }
  0xdc   :  { %v260_v18 = vmul.f32 0.5, %v259_v17 }
  0xde   :  { %v261_v19 = vsub.f32 1.5, %v260_v18 }
  0xe0   :  { %v262_v20 = vmul.f32 %v397_v15, %v261_v19 }
  0xe2   :  { %v266_v22 = vsel %vm265_vm2, %v397_v15, %v262_v20 }
  0xe3   :  { %v268_v23 = vmul.f32 %v267_v21, %v266_v22 }
  0xe5   :  { %v270_v25 = vmul.f32 %v268_v23, %v251_v9  ;;  %272 = vst [vmem:[%s540_s5] sm:$0x1] %v268_v23 }
  0xe7   :  { %v271_v26 = vsub.f32 %v269_v24, %v270_v25 }
  0xe9   :  { %273 = vst [vmem:[%s540_s5 + $0x1] sm:$0x1] %v271_v26 }

// kernel: _lambda_.24
= control target key start
LH: loop header
LB: loop body
LE: loop exit
PB: predicated region body
PF: predicated region fallthrough
CT: control target
= control target key end

     0   :  { %s466_s1 = inlined_call_operand.vmem [shape: bf16[256,128], index: 1, kind: input, shape index: {}]   ;;  %s467_s2 = inlined_call_operand.vmem [shape: f32[1,128], index: 2, kind: input, shape index: {}]   ;;  %s468_s0 = inlined_call_operand.vmem [shape: bf16[32,256], index: 0, kind: input, shape index: {}]   ;;  %s469_s3 = inlined_call_operand.vmem [shape: f32[2,128], index: 3, kind: input, shape index: {}]   ;;  %s470_s4 = inlined_call_operand.vmem [shape: f32[32,128], index: 4, kind: output, shape index: {}]  }
   0x1   :  { %v325_v0 = vld [vmem:[%s466_s1 + $0x38] sm:$0xff]  ;;  %v324_v2 = vld [vmem:[%s466_s1 + $0x30] sm:$0xff]  ;;  %v323_v4 = vld [vmem:[%s466_s1 + $0x28] sm:$0xff] }
   0x2   :  { %v333_v1 = vld [vmem:[%s466_s1 + $0x78] sm:$0xff]  ;;  %173 = vmatpush.bf16.msra.mxu0 %v325_v0  ;;  %334 = vmatpush.bf16.msra.mxu2 %v325_v0  ;;  %v332_v3 = vld [vmem:[%s466_s1 + $0x70] sm:$0xff]  ;;  %v331_v5 = vld [vmem:[%s466_s1 + $0x68] sm:$0xff] }
   0x3   :  { %192 = vmatpush.bf16.msra.mxu1 %v333_v1  ;;  %342 = vmatpush.bf16.msra.mxu3 %v333_v1  ;;  %v322_v6 = vld [vmem:[%s466_s1 + $0x20] sm:$0xff]  ;;  %v321_v8 = vld [vmem:[%s466_s1 + $0x18] sm:$0xff]  ;;  %v320_v10 = vld [vmem:[%s466_s1 + $0x10] sm:$0xff] }
   0x4   :  { %v330_v7 = vld [vmem:[%s466_s1 + $0x60] sm:$0xff]  ;;  %v329_v9 = vld [vmem:[%s466_s1 + $0x58] sm:$0xff]  ;;  %v328_v11 = vld [vmem:[%s466_s1 + $0x50] sm:$0xff] }
   0x5   :  { %v319_v12 = vld [vmem:[%s466_s1 + $0x8] sm:$0xff]  ;;  %v318_v14 = vld [vmem:[%s466_s1] sm:$0xff]  ;;  %v244_v18 = vld [vmem:[%s468_s0 + $0x10] sm:$0xf] }
   0x6   :  { %174 = vmatpush.bf16.msra.mxu0 %v324_v2  ;;  %335 = vmatpush.bf16.msra.mxu2 %v324_v2  ;;  %v327_v13 = vld [vmem:[%s466_s1 + $0x48] sm:$0xff]  ;;  %v326_v15 = vld [vmem:[%s466_s1 + $0x40] sm:$0xff]  ;;  %v317_v19 = vld [vmem:[%s468_s0 + $0x14] sm:$0xf0] }
   0x7   :  { %193 = vmatpush.bf16.msra.mxu1 %v332_v3  ;;  %343 = vmatpush.bf16.msra.mxu3 %v332_v3  ;;  %v236_v16 = vld [vmem:[%s468_s0] sm:$0xf]  ;;  %v315_v17 = vld [vmem:[%s468_s0 + $0x4] sm:$0xf0]  ;;  %v314_v20 = vld [vmem:[%s468_s0 + $0x4] sm:$0xf]  ;;  %v245_v25 = vor.u32 %v317_v19, %v244_v18 }
   0x8   :  { %v238_v21 = vld [vmem:[%s468_s0 + $0x8] sm:$0xf0]  ;;  %v316_v22 = vld [vmem:[%s468_s0 + $0x14] sm:$0xf]  ;;  %v246_v23 = vld [vmem:[%s468_s0 + $0x18] sm:$0xf0]  ;;  %v237_v24 = vor.u32 %v315_v17, %v236_v16 }
   0x9   :  { %v241_v26 = vor.u32 %v314_v20, %v238_v21  ;;  %v249_v27 = vor.u32 %v316_v22, %v246_v23  ;;  %v350_v28 = vld [vmem:[%s467_s2] ss:$0 sm:$0xff] }
   0xa   :  { %175 = vmatpush.bf16.msra.mxu0 %v323_v4  ;;  %336 = vmatpush.bf16.msra.mxu2 %v323_v4  ;;  %v211_v29 = vld [vmem:[%s469_s3] sm:$0x3] }
   0xb   :  { %194 = vmatpush.bf16.msra.mxu1 %v331_v5  ;;  %344 = vmatpush.bf16.msra.mxu3 %v331_v5  ;;  %v212_v33 = vperm.slane %v211_v29, 0  ;;  %v217_v35 = vperm.slane %v211_v29, 1 }
   0xe   :  { %176 = vmatpush.bf16.msra.mxu0 %v322_v6  ;;  %337 = vmatpush.bf16.msra.mxu2 %v322_v6 }
   0xf   :  { %195 = vmatpush.bf16.msra.mxu1 %v330_v7  ;;  %345 = vmatpush.bf16.msra.mxu3 %v330_v7 }
  0x12   :  { %177 = vmatpush.bf16.msra.mxu0 %v321_v8  ;;  %338 = vmatpush.bf16.msra.mxu2 %v321_v8 }
  0x13   :  { %196 = vmatpush.bf16.msra.mxu1 %v329_v9  ;;  %346 = vmatpush.bf16.msra.mxu3 %v329_v9 }
  0x16   :  { %178 = vmatpush.bf16.msra.mxu0 %v320_v10  ;;  %339 = vmatpush.bf16.msra.mxu2 %v320_v10 }
  0x17   :  { %197 = vmatpush.bf16.msra.mxu1 %v328_v11  ;;  %347 = vmatpush.bf16.msra.mxu3 %v328_v11 }
  0x1a   :  { %179 = vmatpush.bf16.msra.mxu0 %v319_v12  ;;  %340 = vmatpush.bf16.msra.mxu2 %v319_v12 }
  0x1b   :  { %198 = vmatpush.bf16.msra.mxu1 %v327_v13  ;;  %348 = vmatpush.bf16.msra.mxu3 %v327_v13 }
  0x1e   :  { %180 = vmatpush.bf16.msra.mxu0 %v318_v14  ;;  %341 = vmatpush.bf16.msra.mxu2 %v318_v14 }
  0x1f   :  { %199 = vmatpush.bf16.msra.mxu1 %v326_v15  ;;  %349 = vmatpush.bf16.msra.mxu3 %v326_v15 }
  0x21   :  { %181 = vmatmul.bf16.vlgmr.msra.gmra.mxu0 %v237_v24  ;;  %186 = vmatmul.bf16.vlgmr.msra.gmra.mxu2 %v245_v25 }
  0x22   :  { %200 = vmatmul.bf16.vlgmr.msra.gmra.mxu1 %v241_v26  ;;  %205 = vmatmul.bf16.vlgmr.msra.gmra.mxu3 %v249_v27 }
  0x9e   :  { %v182_v30 = vpop.f32.mrf.mxu0 }
  0x9f   :  { %v183_v31 = vadd.f32 %v350_v28, %v182_v30  ;;  %v201_v32 = vpop.f32.mrf.mxu1 }
  0xa1   :  { %v202_v34 = vadd.f32 %v201_v32, %v183_v31 }
  0xa3   :  { %v213_v36 = vmul.f32 %v212_v33, %v202_v34 }
  0xa4   :  { %v187_v37 = vpop.f32.mrf.mxu2 }
  0xa5   :  { %v218_v38 = vadd.f32 %v217_v35, %v213_v36  ;;  %v188_v39 = vadd.f32 %v350_v28, %v187_v37  ;;  %v206_v40 = vpop.f32.mrf.mxu3 }
  0xa6   :  { %v184_v41 = vpop.f32.mrf.mxu0 }
  0xa7   :  { %v222_v42 = vmax.f32 %v218_v38, 0.0  ;;  %v207_v43 = vadd.f32 %v206_v40, %v188_v39  ;;  %v185_v44 = vadd.f32 %v350_v28, %v184_v41  ;;  %v203_v45 = vpop.f32.mrf.mxu1 }
  0xa9   :  { %226 = vst [vmem:[%s470_s4] sm:$0xff] %v222_v42  ;;  %v215_v46 = vmul.f32 %v212_v33, %v207_v43  ;;  %v204_v47 = vadd.f32 %v203_v45, %v185_v44 }
  0xab   :  { %v220_v48 = vadd.f32 %v217_v35, %v215_v46  ;;  %v214_v49 = vmul.f32 %v212_v33, %v204_v47 }
  0xac   :  { %v189_v50 = vpop.f32.mrf.mxu2 }
  0xad   :  { %v224_v51 = vmax.f32 %v220_v48, 0.0  ;;  %v219_v52 = vadd.f32 %v217_v35, %v214_v49  ;;  %v190_v53 = vadd.f32 %v350_v28, %v189_v50  ;;  %v208_v54 = vpop.f32.mrf.mxu3 }
  0xaf   :  { %228 = vst [vmem:[%s470_s4 + $0x10] sm:$0xff] %v224_v51  ;;  %v223_v55 = vmax.f32 %v219_v52, 0.0  ;;  %v209_v56 = vadd.f32 %v208_v54, %v190_v53 }
  0xb1   :  { %227 = vst [vmem:[%s470_s4 + $0x8] sm:$0xff] %v223_v55  ;;  %v216_v57 = vmul.f32 %v212_v33, %v209_v56 }
  0xb3   :  { %v221_v58 = vadd.f32 %v217_v35, %v216_v57 }
  0xb5   :  { %v225_v59 = vmax.f32 %v221_v58, 0.0 }
  0xb7   :  { %229 = vst [vmem:[%s470_s4 + $0x18] sm:$0xff] %v225_v59 }

// kernel: _lambda_.26
= control target key start
LH: loop header
LB: loop body
LE: loop exit
PB: predicated region body
PF: predicated region fallthrough
CT: control target
= control target key end

     0   :  { %s627_s1 = inlined_call_operand.vmem [shape: bf16[384,128], index: 1, kind: input, shape index: {}]   ;;  %s628_s0 = inlined_call_operand.vmem [shape: bf16[32,384], index: 0, kind: input, shape index: {}]   ;;  %s629_s2 = inlined_call_operand.vmem [shape: f32[2,128], index: 2, kind: input, shape index: {}]   ;;  %s630_s3 = inlined_call_operand.vmem [shape: f32[32,128], index: 3, kind: output, shape index: {}]  }
   0x1   :  { %v459_v0 = vld [vmem:[%s627_s1 + $0x38] sm:$0xff]  ;;  %v458_v3 = vld [vmem:[%s627_s1 + $0x30] sm:$0xff]  ;;  %v457_v6 = vld [vmem:[%s627_s1 + $0x28] sm:$0xff] }
   0x2   :  { %v467_v1 = vld [vmem:[%s627_s1 + $0x78] sm:$0xff]  ;;  %246 = vmatpush.bf16.msra.mxu0 %v459_v0  ;;  %v466_v4 = vld [vmem:[%s627_s1 + $0x70] sm:$0xff]  ;;  %476 = vmatpush.bf16.msra.mxu3 %v459_v0  ;;  %v465_v7 = vld [vmem:[%s627_s1 + $0x68] sm:$0xff] }
   0x3   :  { %v475_v2 = vld [vmem:[%s627_s1 + $0xb8] sm:$0xff]  ;;  %265 = vmatpush.bf16.msra.mxu1 %v467_v1  ;;  %v474_v5 = vld [vmem:[%s627_s1 + $0xb0] sm:$0xff]  ;;  %v473_v8 = vld [vmem:[%s627_s1 + $0xa8] sm:$0xff] }
   0x4   :  { %284 = vmatpush.bf16.msra.mxu2 %v475_v2  ;;  %v456_v9 = vld [vmem:[%s627_s1 + $0x20] sm:$0xff]  ;;  %v455_v12 = vld [vmem:[%s627_s1 + $0x18] sm:$0xff]  ;;  %v454_v15 = vld [vmem:[%s627_s1 + $0x10] sm:$0xff] }
   0x5   :  { %v464_v10 = vld [vmem:[%s627_s1 + $0x60] sm:$0xff]  ;;  %v463_v13 = vld [vmem:[%s627_s1 + $0x58] sm:$0xff]  ;;  %v462_v16 = vld [vmem:[%s627_s1 + $0x50] sm:$0xff] }
   0x6   :  { %247 = vmatpush.bf16.msra.mxu0 %v458_v3  ;;  %477 = vmatpush.bf16.msra.mxu3 %v458_v3  ;;  %v472_v11 = vld [vmem:[%s627_s1 + $0xa0] sm:$0xff]  ;;  %v471_v14 = vld [vmem:[%s627_s1 + $0x98] sm:$0xff]  ;;  %v470_v17 = vld [vmem:[%s627_s1 + $0x90] sm:$0xff] }
   0x7   :  { %266 = vmatpush.bf16.msra.mxu1 %v466_v4  ;;  %v453_v18 = vld [vmem:[%s627_s1 + $0x8] sm:$0xff]  ;;  %v452_v21 = vld [vmem:[%s627_s1] sm:$0xff]  ;;  %v330_v27 = vld [vmem:[%s628_s0 + $0xc] sm:$0xf0] }
   0x8   :  { %285 = vmatpush.bf16.msra.mxu2 %v474_v5  ;;  %v461_v19 = vld [vmem:[%s627_s1 + $0x48] sm:$0xff]  ;;  %v460_v22 = vld [vmem:[%s627_s1 + $0x40] sm:$0xff]  ;;  %v448_v29 = vld [vmem:[%s628_s0 + $0x10] sm:$0xf0] }
   0x9   :  { %v469_v20 = vld [vmem:[%s627_s1 + $0x88] sm:$0xff]  ;;  %v468_v23 = vld [vmem:[%s627_s1 + $0x80] sm:$0xff]  ;;  %v340_v30 = vld [vmem:[%s628_s0 + $0x18] sm:$0xf] }
   0xa   :  { %248 = vmatpush.bf16.msra.mxu0 %v457_v6  ;;  %478 = vmatpush.bf16.msra.mxu3 %v457_v6  ;;  %v328_v24 = vld [vmem:[%s628_s0] sm:$0xf]  ;;  %v447_v25 = vld [vmem:[%s628_s0 + $0x8] sm:$0xf0]  ;;  %v446_v26 = vld [vmem:[%s628_s0 + $0x4] sm:$0xf] }
   0xb   :  { %267 = vmatpush.bf16.msra.mxu1 %v465_v7  ;;  %v336_v28 = vld [vmem:[%s628_s0 + $0x8] sm:$0xf]  ;;  %v450_v31 = vld [vmem:[%s628_s0 + $0x20] sm:$0xf0]  ;;  %v329_v32 = vor.u32 %v447_v25, %v328_v24  ;;  %v333_v33 = vor.u32 %v446_v26, %v330_v27  ;;  %v449_v36 = vld [vmem:[%s628_s0 + $0x1c] sm:$0xf] }
   0xc   :  { %286 = vmatpush.bf16.msra.mxu2 %v473_v8  ;;  %v337_v34 = vor.u32 %v448_v29, %v336_v28  ;;  %v341_v35 = vor.u32 %v450_v31, %v340_v30  ;;  %v342_v37 = vld [vmem:[%s628_s0 + $0x24] sm:$0xf0]  ;;  %v348_v38 = vld [vmem:[%s628_s0 + $0x20] sm:$0xf]  ;;  %v451_v39 = vld [vmem:[%s628_s0 + $0x28] sm:$0xf0] }
   0xd   :  { %v345_v40 = vor.u32 %v449_v36, %v342_v37  ;;  %v349_v41 = vor.u32 %v451_v39, %v348_v38  ;;  %v303_v44 = vld [vmem:[%s629_s2] sm:$0x3] }
   0xe   :  { %249 = vmatpush.bf16.msra.mxu0 %v456_v9  ;;  %479 = vmatpush.bf16.msra.mxu3 %v456_v9  ;;  %v304_v46 = vperm.slane %v303_v44, 0  ;;  %v309_v49 = vperm.slane %v303_v44, 1 }
   0xf   :  { %268 = vmatpush.bf16.msra.mxu1 %v464_v10 }
  0x10   :  { %287 = vmatpush.bf16.msra.mxu2 %v472_v11 }
  0x12   :  { %250 = vmatpush.bf16.msra.mxu0 %v455_v12  ;;  %480 = vmatpush.bf16.msra.mxu3 %v455_v12 }
  0x13   :  { %269 = vmatpush.bf16.msra.mxu1 %v463_v13 }
  0x14   :  { %288 = vmatpush.bf16.msra.mxu2 %v471_v14 }
  0x16   :  { %251 = vmatpush.bf16.msra.mxu0 %v454_v15  ;;  %481 = vmatpush.bf16.msra.mxu3 %v454_v15 }
  0x17   :  { %270 = vmatpush.bf16.msra.mxu1 %v462_v16 }
  0x18   :  { %289 = vmatpush.bf16.msra.mxu2 %v470_v17 }
  0x1a   :  { %252 = vmatpush.bf16.msra.mxu0 %v453_v18  ;;  %482 = vmatpush.bf16.msra.mxu3 %v453_v18 }
  0x1b   :  { %271 = vmatpush.bf16.msra.mxu1 %v461_v19 }
  0x1c   :  { %290 = vmatpush.bf16.msra.mxu2 %v469_v20 }
  0x1e   :  { %253 = vmatpush.bf16.msra.mxu0 %v452_v21  ;;  %483 = vmatpush.bf16.msra.mxu3 %v452_v21 }
  0x1f   :  { %272 = vmatpush.bf16.msra.mxu1 %v460_v22 }
  0x20   :  { %291 = vmatpush.bf16.msra.mxu2 %v468_v23 }
  0x21   :  { %254 = vmatmul.bf16.vlgmr.msra.gmra.mxu0 %v329_v32  ;;  %259 = vmatmul.bf16.vlgmr.msra.gmra.mxu3 %v341_v35 }
  0x22   :  { %273 = vmatmul.bf16.vlgmr.msra.gmra.mxu1 %v333_v33 }
  0x23   :  { %292 = vmatmul.bf16.vlgmr.msra.gmra.mxu2 %v337_v34 }
  0x32   :  { %278 = vmatmul.bf16.gmra.mxu1 %v345_v40 }
  0x33   :  { %297 = vmatmul.bf16.gmra.mxu2 %v349_v41 }
  0x9e   :  { %v255_v43 = vpop.f32.mrf.mxu0 }
  0x9f   :  { %v274_v42 = vpop.f32.mrf.mxu1 }
  0xa0   :  { %v275_v45 = vadd.f32 %v274_v42, %v255_v43 }
  0xa4   :  { %v260_v60 = vpop.f32.mrf.mxu3 }
  0xa6   :  { %v293_v47 = vpop.f32.mrf.mxu2  ;;  %v257_v52 = vpop.f32.mrf.mxu0 }
  0xa7   :  { %v294_v48 = vadd.f32 %v293_v47, %v275_v45  ;;  %v276_v50 = vpop.f32.mrf.mxu1 }
  0xa8   :  { %v277_v55 = vadd.f32 %v276_v50, %v257_v52 }
  0xa9   :  { %v305_v51 = vmul.f32 %v304_v46, %v294_v48 }
  0xab   :  { %v310_v53 = vadd.f32 %v309_v49, %v305_v51 }
  0xac   :  { %v262_v5 = vpop.f32.mrf.mxu3 }
  0xad   :  { %v314_v54 = vmax.f32 %v310_v53, 0.0 }
  0xae   :  { %v295_v56 = vpop.f32.mrf.mxu2 }
  0xaf   :  { %318 = vst [vmem:[%s630_s3] sm:$0xff] %v314_v54  ;;  %v296_v57 = vadd.f32 %v295_v56, %v277_v55  ;;  %v279_v58 = vpop.f32.mrf.mxu1 }
  0xb0   :  { %v280_v62 = vadd.f32 %v279_v58, %v260_v60 }
  0xb1   :  { %v306_v59 = vmul.f32 %v304_v46, %v296_v57 }
  0xb3   :  { %v311_v61 = vadd.f32 %v309_v49, %v306_v59 }
  0xb5   :  { %v315_v63 = vmax.f32 %v311_v61, 0.0 }
  0xb6   :  { %v298_v0 = vpop.f32.mrf.mxu2 }
  0xb7   :  { %319 = vst [vmem:[%s630_s3 + $0x8] sm:$0xff] %v315_v63  ;;  %v299_v1 = vadd.f32 %v298_v0, %v280_v62  ;;  %v281_v3 = vpop.f32.mrf.mxu1 }
  0xb8   :  { %v282_v7 = vadd.f32 %v281_v3, %v262_v5 }
  0xb9   :  { %v307_v2 = vmul.f32 %v304_v46, %v299_v1 }
  0xbb   :  { %v312_v4 = vadd.f32 %v309_v49, %v307_v2 }
  0xbd   :  { %v316_v6 = vmax.f32 %v312_v4, 0.0 }
  0xbe   :  { %v300_v8 = vpop.f32.mrf.mxu2 }
  0xbf   :  { %320 = vst [vmem:[%s630_s3 + $0x10] sm:$0xff] %v316_v6  ;;  %v301_v9 = vadd.f32 %v300_v8, %v282_v7 }
  0xc1   :  { %v308_v10 = vmul.f32 %v304_v46, %v301_v9 }
  0xc3   :  { %v313_v11 = vadd.f32 %v309_v49, %v308_v10 }
  0xc5   :  { %v317_v12 = vmax.f32 %v313_v11, 0.0 }
  0xc7   :  { %321 = vst [vmem:[%s630_s3 + $0x18] sm:$0xff] %v317_v12 }

// kernel: _lambda_.25
= control target key start
LH: loop header
LB: loop body
LE: loop exit
PB: predicated region body
PF: predicated region fallthrough
CT: control target
= control target key end

     0   :  { %v531_v43 = vmov 0.0   ;;  %s698_s1 = inlined_call_operand.vmem [shape: bf16[384,128], index: 1, kind: input, shape index: {}]   ;;  %s699_s0 = inlined_call_operand.vmem [shape: bf16[32,384], index: 0, kind: input, shape index: {}]   ;;  %s700_s4 = inlined_call_operand.vmem [shape: f32[2,128], index: 4, kind: output, shape index: {}]   ;;  %s701_s2 = inlined_call_operand.vmem [shape: f32[1,128], index: 2, kind: input, shape index: {}]   ;;  %s702_s3 = inlined_call_operand.vmem [shape: f32[1,128], index: 3, kind: input, shape index: {}]  }
   0x1   :  { %v503_v0 = vld [vmem:[%s698_s1 + $0x38] sm:$0xff]  ;;  %v502_v3 = vld [vmem:[%s698_s1 + $0x30] sm:$0xff]  ;;  %v501_v6 = vld [vmem:[%s698_s1 + $0x28] sm:$0xff]  ;;  %310 = vst [vmem:[%s700_s4] sm:$0x3] %v531_v43 }
   0x2   :  { %v511_v1 = vld [vmem:[%s698_s1 + $0x78] sm:$0xff]  ;;  %249 = vmatpush.bf16.msra.mxu0 %v503_v0  ;;  %v510_v4 = vld [vmem:[%s698_s1 + $0x70] sm:$0xff]  ;;  %520 = vmatpush.bf16.msra.mxu3 %v503_v0  ;;  %v509_v7 = vld [vmem:[%s698_s1 + $0x68] sm:$0xff] }
   0x3   :  { %v519_v2 = vld [vmem:[%s698_s1 + $0xb8] sm:$0xff]  ;;  %268 = vmatpush.bf16.msra.mxu1 %v511_v1  ;;  %v518_v5 = vld [vmem:[%s698_s1 + $0xb0] sm:$0xff]  ;;  %v517_v8 = vld [vmem:[%s698_s1 + $0xa8] sm:$0xff] }
   0x4   :  { %287 = vmatpush.bf16.msra.mxu2 %v519_v2  ;;  %v500_v9 = vld [vmem:[%s698_s1 + $0x20] sm:$0xff]  ;;  %v499_v12 = vld [vmem:[%s698_s1 + $0x18] sm:$0xff]  ;;  %v498_v15 = vld [vmem:[%s698_s1 + $0x10] sm:$0xff] }
   0x5   :  { %v508_v10 = vld [vmem:[%s698_s1 + $0x60] sm:$0xff]  ;;  %v507_v13 = vld [vmem:[%s698_s1 + $0x58] sm:$0xff]  ;;  %v506_v16 = vld [vmem:[%s698_s1 + $0x50] sm:$0xff] }
   0x6   :  { %250 = vmatpush.bf16.msra.mxu0 %v502_v3  ;;  %521 = vmatpush.bf16.msra.mxu3 %v502_v3  ;;  %v516_v11 = vld [vmem:[%s698_s1 + $0xa0] sm:$0xff]  ;;  %v515_v14 = vld [vmem:[%s698_s1 + $0x98] sm:$0xff]  ;;  %v514_v17 = vld [vmem:[%s698_s1 + $0x90] sm:$0xff] }
   0x7   :  { %269 = vmatpush.bf16.msra.mxu1 %v510_v4  ;;  %v497_v18 = vld [vmem:[%s698_s1 + $0x8] sm:$0xff]  ;;  %v496_v21 = vld [vmem:[%s698_s1] sm:$0xff]  ;;  %v374_v27 = vld [vmem:[%s699_s0 + $0xc] sm:$0xf0] }
   0x8   :  { %288 = vmatpush.bf16.msra.mxu2 %v518_v5  ;;  %v505_v19 = vld [vmem:[%s698_s1 + $0x48] sm:$0xff]  ;;  %v504_v22 = vld [vmem:[%s698_s1 + $0x40] sm:$0xff]  ;;  %v492_v29 = vld [vmem:[%s699_s0 + $0x10] sm:$0xf0] }
   0x9   :  { %v513_v20 = vld [vmem:[%s698_s1 + $0x88] sm:$0xff]  ;;  %v512_v23 = vld [vmem:[%s698_s1 + $0x80] sm:$0xff]  ;;  %v384_v30 = vld [vmem:[%s699_s0 + $0x18] sm:$0xf] }
   0xa   :  { %251 = vmatpush.bf16.msra.mxu0 %v501_v6  ;;  %522 = vmatpush.bf16.msra.mxu3 %v501_v6  ;;  %v372_v24 = vld [vmem:[%s699_s0] sm:$0xf]  ;;  %v491_v25 = vld [vmem:[%s699_s0 + $0x8] sm:$0xf0]  ;;  %v490_v26 = vld [vmem:[%s699_s0 + $0x4] sm:$0xf] }
   0xb   :  { %270 = vmatpush.bf16.msra.mxu1 %v509_v7  ;;  %v380_v28 = vld [vmem:[%s699_s0 + $0x8] sm:$0xf]  ;;  %v494_v31 = vld [vmem:[%s699_s0 + $0x20] sm:$0xf0]  ;;  %v373_v32 = vor.u32 %v491_v25, %v372_v24  ;;  %v377_v33 = vor.u32 %v490_v26, %v374_v27  ;;  %v493_v36 = vld [vmem:[%s699_s0 + $0x1c] sm:$0xf] }
   0xc   :  { %289 = vmatpush.bf16.msra.mxu2 %v517_v8  ;;  %v381_v34 = vor.u32 %v492_v29, %v380_v28  ;;  %v385_v35 = vor.u32 %v494_v31, %v384_v30  ;;  %v386_v37 = vld [vmem:[%s699_s0 + $0x24] sm:$0xf0]  ;;  %v392_v38 = vld [vmem:[%s699_s0 + $0x20] sm:$0xf]  ;;  %v495_v39 = vld [vmem:[%s699_s0 + $0x28] sm:$0xf0] }
   0xd   :  { %v389_v40 = vor.u32 %v493_v36, %v386_v37  ;;  %v393_v41 = vor.u32 %v495_v39, %v392_v38  ;;  %v359_v38 = vld [vmem:[%s701_s2] sm:$0x1] }
   0xe   :  { %252 = vmatpush.bf16.msra.mxu0 %v500_v9  ;;  %523 = vmatpush.bf16.msra.mxu3 %v500_v9 }
   0xf   :  { %271 = vmatpush.bf16.msra.mxu1 %v508_v10 }
  0x10   :  { %290 = vmatpush.bf16.msra.mxu2 %v516_v11 }
  0x12   :  { %253 = vmatpush.bf16.msra.mxu0 %v499_v12  ;;  %524 = vmatpush.bf16.msra.mxu3 %v499_v12 }
  0x13   :  { %272 = vmatpush.bf16.msra.mxu1 %v507_v13 }
  0x14   :  { %291 = vmatpush.bf16.msra.mxu2 %v515_v14 }
  0x16   :  { %254 = vmatpush.bf16.msra.mxu0 %v498_v15  ;;  %525 = vmatpush.bf16.msra.mxu3 %v498_v15 }
  0x17   :  { %273 = vmatpush.bf16.msra.mxu1 %v506_v16 }
  0x18   :  { %292 = vmatpush.bf16.msra.mxu2 %v514_v17 }
  0x1a   :  { %255 = vmatpush.bf16.msra.mxu0 %v497_v18  ;;  %526 = vmatpush.bf16.msra.mxu3 %v497_v18  ;;  %v311_v18 = vld [vmem:[%s700_s4] sm:$0x1] }
  0x1b   :  { %274 = vmatpush.bf16.msra.mxu1 %v505_v19 }
  0x1c   :  { %293 = vmatpush.bf16.msra.mxu2 %v513_v20 }
  0x1e   :  { %256 = vmatpush.bf16.msra.mxu0 %v496_v21  ;;  %527 = vmatpush.bf16.msra.mxu3 %v496_v21  ;;  %v323_v21 = vld [vmem:[%s700_s4 + $0x1] sm:$0x1] }
  0x1f   :  { %275 = vmatpush.bf16.msra.mxu1 %v504_v22 }
  0x20   :  { %294 = vmatpush.bf16.msra.mxu2 %v512_v23 }
  0x21   :  { %257 = vmatmul.bf16.vlgmr.msra.gmra.mxu0 %v373_v32  ;;  %262 = vmatmul.bf16.vlgmr.msra.gmra.mxu3 %v385_v35 }
  0x22   :  { %276 = vmatmul.bf16.vlgmr.msra.gmra.mxu1 %v377_v33 }
  0x23   :  { %295 = vmatmul.bf16.vlgmr.msra.gmra.mxu2 %v381_v34 }
  0x32   :  { %281 = vmatmul.bf16.gmra.mxu1 %v389_v40 }
  0x33   :  { %300 = vmatmul.bf16.gmra.mxu2 %v393_v41  ;;  %v361_v41 = vld [vmem:[%s702_s3] sm:$0x1] }
  0x9e   :  { %v258_v46 = vpop.f32.mrf.mxu0 }
  0x9f   :  { %v277_v42 = vpop.f32.mrf.mxu1 }
  0xa0   :  { %v278_v51 = vadd.f32 %v277_v42, %v258_v46 }
  0xa4   :  { %v263_v50 = vpop.f32.mrf.mxu3 }
  0xa6   :  { %v296_v44 = vpop.f32.mrf.mxu2  ;;  %v260_v49 = vpop.f32.mrf.mxu0 }
  0xa7   :  { %v279_v45 = vpop.f32.mrf.mxu1  ;;  %v297_v56 = vadd.f32 %v296_v44, %v278_v51 }
  0xa8   :  { %v280_v52 = vadd.f32 %v279_v45, %v260_v49 }
  0xa9   :  { %v324_v61 = vmul.f32 %v297_v56, %v297_v56 }
  0xac   :  { %v265_v60 = vpop.f32.mrf.mxu3 }
  0xae   :  { %v298_v47 = vpop.f32.mrf.mxu2 }
  0xaf   :  { %v282_v48 = vpop.f32.mrf.mxu1  ;;  %v299_v55 = vadd.f32 %v298_v47, %v280_v52 }
  0xb0   :  { %v283_v53 = vadd.f32 %v282_v48, %v263_v50 }
  0xb1   :  { %v325_v59 = vmul.f32 %v299_v55, %v299_v55  ;;  %v312_v62 = vadd.f32 %v299_v55, %v297_v56 }
  0xb3   :  { %v328_v2 = vadd.f32 %v325_v59, %v324_v61 }
  0xb6   :  { %v301_v54 = vpop.f32.mrf.mxu2 }
  0xb7   :  { %v302_v57 = vadd.f32 %v301_v54, %v283_v53  ;;  %v284_v58 = vpop.f32.mrf.mxu1 }
  0xb8   :  { %v285_v0 = vadd.f32 %v284_v58, %v265_v60 }
  0xb9   :  { %v326_v63 = vmul.f32 %v302_v57, %v302_v57  ;;  %v313_v3 = vadd.f32 %v312_v62, %v302_v57 }
  0xbb   :  { %v329_v5 = vadd.f32 %v328_v2, %v326_v63 }
  0xbe   :  { %v303_v1 = vpop.f32.mrf.mxu2 }
  0xbf   :  { %v304_v4 = vadd.f32 %v303_v1, %v285_v0 }
  0xc1   :  { %v314_v6 = vadd.f32 %v313_v3, %v304_v4  ;;  %v327_v7 = vmul.f32 %v304_v4, %v304_v4 }
  0xc3   :  { %v315_v8 = vrot.slane %v314_v6, 4  ;;  %v330_v9 = vadd.f32 %v329_v5, %v327_v7 }
  0xc5   :  { %v316_v10 = vadd.f32 %v315_v8, %v314_v6  ;;  %v331_v11 = vrot.slane %v330_v9, 4 }
  0xc7   :  { %v317_v12 = vrot.slane %v316_v10, 2  ;;  %v332_v13 = vadd.f32 %v331_v11, %v330_v9 }
  0xc9   :  { %v318_v14 = vadd.f32 %v317_v12, %v316_v10  ;;  %v333_v15 = vrot.slane %v332_v13, 2 }
  0xcb   :  { %v319_v16 = vrot.slane %v318_v14, 1  ;;  %v334_v17 = vadd.f32 %v333_v15, %v332_v13 }
  0xcd   :  { %v320_v19 = vadd.f32 %v319_v16, %v318_v14  ;;  %v335_v20 = vrot.slane %v334_v17, 1 }
  0xcf   :  { %v321_v22 = vadd.f32 %v320_v19, %v311_v18  ;;  %v336_v23 = vadd.f32 %v335_v20, %v334_v17 }
  0xd1   :  { %322 = vst [vmem:[%s700_s4] sm:$0x1] %v321_v22  ;;  %v337_v24 = vadd.f32 %v336_v23, %v323_v21 }
  0xd3   :  { %338 = vst [vmem:[%s700_s4 + $0x1] sm:$0x1] %v337_v24 }
  0xd8   :  { %v342_v25 = vld [vmem:[%s700_s4] sm:$0x1] }
  0xd9   :  { %v343_v26 = vmul.f32 0.03125, %v342_v25 }
  0xda   :  { %v344_v27 = vld [vmem:[%s700_s4 + $0x1] sm:$0x1] }
  0xdb   :  { %v345_v28 = vmul.f32 0.03125, %v344_v27  ;;  %v346_v29 = vmul.f32 %v343_v26, %v343_v26 }
  0xdd   :  { %v347_v30 = vsub.f32 %v345_v28, %v346_v29 }
  0xdf   :  { %v348_v31 = vadd.f32 1e-05, %v347_v30 }
  0xe1   :  { %529 = vrsqrt.f32 %v348_v31  ;;  %vm355_vm1 = vweird.f32 %v348_v31 }
  0xe7   :  { %v530_v32 = vpop.eup %529 }
  0xe8   :  { %v350_v33 = vmul.f32 %v530_v32, %v348_v31  ;;  %vm356_vm0 = vweird.f32 %v530_v32 }
  0xe9   :  { %vm357_vm2 = vmor %vm355_vm1, %vm356_vm0 }
  0xea   :  { %v351_v34 = vmul.f32 %v530_v32, %v350_v33 }
  0xec   :  { %v352_v35 = vmul.f32 0.5, %v351_v34 }
  0xee   :  { %v353_v36 = vsub.f32 1.5, %v352_v35 }
  0xf0   :  { %v354_v37 = vmul.f32 %v530_v32, %v353_v36 }
  0xf2   :  { %v358_v39 = vsel %vm357_vm2, %v530_v32, %v354_v37 }
  0xf3   :  { %v360_v40 = vmul.f32 %v359_v38, %v358_v39 }
  0xf5   :  { %v362_v42 = vmul.f32 %v360_v40, %v343_v26  ;;  %364 = vst [vmem:[%s700_s4] sm:$0x1] %v360_v40 }
  0xf7   :  { %v363_v43 = vsub.f32 %v361_v41, %v362_v42 }
  0xf9   :  { %365 = vst [vmem:[%s700_s4 + $0x1] sm:$0x1] %v363_v43 }

// kernel: _lambda_.28
= control target key start
LH: loop header
LB: loop body
LE: loop exit
PB: predicated region body
PF: predicated region fallthrough
CT: control target
= control target key end

     0   :  { %s655_s1 = inlined_call_operand.vmem [shape: bf16[384,128], index: 1, kind: input, shape index: {}]   ;;  %s656_s0 = inlined_call_operand.vmem [shape: bf16[32,384], index: 0, kind: input, shape index: {}]   ;;  %s657_s2 = inlined_call_operand.vmem [shape: f32[2,128], index: 2, kind: input, shape index: {}]   ;;  %s658_s3 = inlined_call_operand.vmem [shape: f32[32,128], index: 3, kind: input, shape index: {}]   ;;  %s659_s4 = inlined_call_operand.vmem [shape: f32[32,128], index: 4, kind: output, shape index: {}]  }
   0x1   :  { %v470_v0 = vld [vmem:[%s655_s1 + $0x38] sm:$0xff]  ;;  %v469_v3 = vld [vmem:[%s655_s1 + $0x30] sm:$0xff]  ;;  %v468_v6 = vld [vmem:[%s655_s1 + $0x28] sm:$0xff] }
   0x2   :  { %v478_v1 = vld [vmem:[%s655_s1 + $0x78] sm:$0xff]  ;;  %249 = vmatpush.bf16.msra.mxu0 %v470_v0  ;;  %v477_v4 = vld [vmem:[%s655_s1 + $0x70] sm:$0xff]  ;;  %487 = vmatpush.bf16.msra.mxu3 %v470_v0  ;;  %v476_v7 = vld [vmem:[%s655_s1 + $0x68] sm:$0xff] }
   0x3   :  { %v486_v2 = vld [vmem:[%s655_s1 + $0xb8] sm:$0xff]  ;;  %268 = vmatpush.bf16.msra.mxu1 %v478_v1  ;;  %v485_v5 = vld [vmem:[%s655_s1 + $0xb0] sm:$0xff]  ;;  %v484_v8 = vld [vmem:[%s655_s1 + $0xa8] sm:$0xff] }
   0x4   :  { %287 = vmatpush.bf16.msra.mxu2 %v486_v2  ;;  %v467_v9 = vld [vmem:[%s655_s1 + $0x20] sm:$0xff]  ;;  %v466_v12 = vld [vmem:[%s655_s1 + $0x18] sm:$0xff]  ;;  %v465_v15 = vld [vmem:[%s655_s1 + $0x10] sm:$0xff] }
   0x5   :  { %v475_v10 = vld [vmem:[%s655_s1 + $0x60] sm:$0xff]  ;;  %v474_v13 = vld [vmem:[%s655_s1 + $0x58] sm:$0xff]  ;;  %v473_v16 = vld [vmem:[%s655_s1 + $0x50] sm:$0xff] }
   0x6   :  { %250 = vmatpush.bf16.msra.mxu0 %v469_v3  ;;  %488 = vmatpush.bf16.msra.mxu3 %v469_v3  ;;  %v483_v11 = vld [vmem:[%s655_s1 + $0xa0] sm:$0xff]  ;;  %v482_v14 = vld [vmem:[%s655_s1 + $0x98] sm:$0xff]  ;;  %v481_v17 = vld [vmem:[%s655_s1 + $0x90] sm:$0xff] }
   0x7   :  { %269 = vmatpush.bf16.msra.mxu1 %v477_v4  ;;  %v464_v18 = vld [vmem:[%s655_s1 + $0x8] sm:$0xff]  ;;  %v463_v21 = vld [vmem:[%s655_s1] sm:$0xff]  ;;  %v341_v27 = vld [vmem:[%s656_s0 + $0xc] sm:$0xf0] }
   0x8   :  { %288 = vmatpush.bf16.msra.mxu2 %v485_v5  ;;  %v472_v19 = vld [vmem:[%s655_s1 + $0x48] sm:$0xff]  ;;  %v471_v22 = vld [vmem:[%s655_s1 + $0x40] sm:$0xff]  ;;  %v459_v29 = vld [vmem:[%s656_s0 + $0x10] sm:$0xf0] }
   0x9   :  { %v480_v20 = vld [vmem:[%s655_s1 + $0x88] sm:$0xff]  ;;  %v479_v23 = vld [vmem:[%s655_s1 + $0x80] sm:$0xff]  ;;  %v351_v30 = vld [vmem:[%s656_s0 + $0x18] sm:$0xf] }
   0xa   :  { %251 = vmatpush.bf16.msra.mxu0 %v468_v6  ;;  %489 = vmatpush.bf16.msra.mxu3 %v468_v6  ;;  %v339_v24 = vld [vmem:[%s656_s0] sm:$0xf]  ;;  %v458_v25 = vld [vmem:[%s656_s0 + $0x8] sm:$0xf0]  ;;  %v457_v26 = vld [vmem:[%s656_s0 + $0x4] sm:$0xf] }
   0xb   :  { %270 = vmatpush.bf16.msra.mxu1 %v476_v7  ;;  %v347_v28 = vld [vmem:[%s656_s0 + $0x8] sm:$0xf]  ;;  %v461_v31 = vld [vmem:[%s656_s0 + $0x20] sm:$0xf0]  ;;  %v340_v32 = vor.u32 %v458_v25, %v339_v24  ;;  %v344_v33 = vor.u32 %v457_v26, %v341_v27  ;;  %v460_v36 = vld [vmem:[%s656_s0 + $0x1c] sm:$0xf] }
   0xc   :  { %289 = vmatpush.bf16.msra.mxu2 %v484_v8  ;;  %v348_v34 = vor.u32 %v459_v29, %v347_v28  ;;  %v352_v35 = vor.u32 %v461_v31, %v351_v30  ;;  %v353_v37 = vld [vmem:[%s656_s0 + $0x24] sm:$0xf0]  ;;  %v359_v38 = vld [vmem:[%s656_s0 + $0x20] sm:$0xf]  ;;  %v462_v39 = vld [vmem:[%s656_s0 + $0x28] sm:$0xf0] }
   0xd   :  { %v356_v40 = vor.u32 %v460_v36, %v353_v37  ;;  %v360_v41 = vor.u32 %v462_v39, %v359_v38  ;;  %v306_v44 = vld [vmem:[%s657_s2] sm:$0x3]  ;;  %v318_v63 = vld [vmem:[%s658_s3 + $0x8] sm:$0xff]  ;;  %v319_v7 = vld [vmem:[%s658_s3 + $0x10] sm:$0xff] }
   0xe   :  { %252 = vmatpush.bf16.msra.mxu0 %v467_v9  ;;  %490 = vmatpush.bf16.msra.mxu3 %v467_v9  ;;  %v307_v46 = vperm.slane %v306_v44, 0  ;;  %v312_v49 = vperm.slane %v306_v44, 1  ;;  %v317_v52 = vld [vmem:[%s658_s3] sm:$0xff] }
   0xf   :  { %271 = vmatpush.bf16.msra.mxu1 %v475_v10 }
  0x10   :  { %290 = vmatpush.bf16.msra.mxu2 %v483_v11 }
  0x12   :  { %253 = vmatpush.bf16.msra.mxu0 %v466_v12  ;;  %491 = vmatpush.bf16.msra.mxu3 %v466_v12 }
  0x13   :  { %272 = vmatpush.bf16.msra.mxu1 %v474_v13 }
  0x14   :  { %291 = vmatpush.bf16.msra.mxu2 %v482_v14 }
  0x16   :  { %254 = vmatpush.bf16.msra.mxu0 %v465_v15  ;;  %492 = vmatpush.bf16.msra.mxu3 %v465_v15 }
  0x17   :  { %273 = vmatpush.bf16.msra.mxu1 %v473_v16 }
  0x18   :  { %292 = vmatpush.bf16.msra.mxu2 %v481_v17  ;;  %v320_v17 = vld [vmem:[%s658_s3 + $0x18] sm:$0xff] }
  0x1a   :  { %255 = vmatpush.bf16.msra.mxu0 %v464_v18  ;;  %493 = vmatpush.bf16.msra.mxu3 %v464_v18 }
  0x1b   :  { %274 = vmatpush.bf16.msra.mxu1 %v472_v19 }
  0x1c   :  { %293 = vmatpush.bf16.msra.mxu2 %v480_v20 }
  0x1e   :  { %256 = vmatpush.bf16.msra.mxu0 %v463_v21  ;;  %494 = vmatpush.bf16.msra.mxu3 %v463_v21 }
  0x1f   :  { %275 = vmatpush.bf16.msra.mxu1 %v471_v22 }
  0x20   :  { %294 = vmatpush.bf16.msra.mxu2 %v479_v23 }
  0x21   :  { %257 = vmatmul.bf16.vlgmr.msra.gmra.mxu0 %v340_v32  ;;  %262 = vmatmul.bf16.vlgmr.msra.gmra.mxu3 %v352_v35 }
  0x22   :  { %276 = vmatmul.bf16.vlgmr.msra.gmra.mxu1 %v344_v33 }
  0x23   :  { %295 = vmatmul.bf16.vlgmr.msra.gmra.mxu2 %v348_v34 }
  0x32   :  { %281 = vmatmul.bf16.gmra.mxu1 %v356_v40 }
  0x33   :  { %300 = vmatmul.bf16.gmra.mxu2 %v360_v41 }
  0x9e   :  { %v258_v43 = vpop.f32.mrf.mxu0 }
  0x9f   :  { %v277_v42 = vpop.f32.mrf.mxu1 }
  0xa0   :  { %v278_v45 = vadd.f32 %v277_v42, %v258_v43 }
  0xa4   :  { %v263_v62 = vpop.f32.mrf.mxu3 }
  0xa6   :  { %v296_v47 = vpop.f32.mrf.mxu2  ;;  %v260_v53 = vpop.f32.mrf.mxu0 }
  0xa7   :  { %v297_v48 = vadd.f32 %v296_v47, %v278_v45  ;;  %v279_v50 = vpop.f32.mrf.mxu1 }
  0xa8   :  { %v280_v56 = vadd.f32 %v279_v50, %v260_v53 }
  0xa9   :  { %v308_v51 = vmul.f32 %v307_v46, %v297_v48 }
  0xab   :  { %v313_v54 = vadd.f32 %v312_v49, %v308_v51 }
  0xac   :  { %v265_v10 = vpop.f32.mrf.mxu3 }
  0xad   :  { %v321_v55 = vadd.f32 %v317_v52, %v313_v54 }
  0xae   :  { %v298_v57 = vpop.f32.mrf.mxu2 }
  0xaf   :  { %v325_v58 = vmax.f32 %v321_v55, 0.0  ;;  %v299_v59 = vadd.f32 %v298_v57, %v280_v56  ;;  %v282_v60 = vpop.f32.mrf.mxu1 }
  0xb0   :  { %v283_v1 = vadd.f32 %v282_v60, %v263_v62 }
  0xb1   :  { %329 = vst [vmem:[%s659_s4] sm:$0xff] %v325_v58  ;;  %v309_v61 = vmul.f32 %v307_v46, %v299_v59 }
  0xb3   :  { %v314_v0 = vadd.f32 %v312_v49, %v309_v61 }
  0xb5   :  { %v322_v2 = vadd.f32 %v318_v63, %v314_v0 }
  0xb6   :  { %v301_v3 = vpop.f32.mrf.mxu2 }
  0xb7   :  { %v326_v4 = vmax.f32 %v322_v2, 0.0  ;;  %v302_v5 = vadd.f32 %v301_v3, %v283_v1  ;;  %v284_v8 = vpop.f32.mrf.mxu1 }
  0xb8   :  { %v285_v12 = vadd.f32 %v284_v8, %v265_v10 }
  0xb9   :  { %330 = vst [vmem:[%s659_s4 + $0x8] sm:$0xff] %v326_v4  ;;  %v310_v6 = vmul.f32 %v307_v46, %v302_v5 }
  0xbb   :  { %v315_v9 = vadd.f32 %v312_v49, %v310_v6 }
  0xbd   :  { %v323_v11 = vadd.f32 %v319_v7, %v315_v9 }
  0xbe   :  { %v303_v13 = vpop.f32.mrf.mxu2 }
  0xbf   :  { %v327_v14 = vmax.f32 %v323_v11, 0.0  ;;  %v304_v15 = vadd.f32 %v303_v13, %v285_v12 }
  0xc1   :  { %331 = vst [vmem:[%s659_s4 + $0x10] sm:$0xff] %v327_v14  ;;  %v311_v16 = vmul.f32 %v307_v46, %v304_v15 }
  0xc3   :  { %v316_v18 = vadd.f32 %v312_v49, %v311_v16 }
  0xc5   :  { %v324_v19 = vadd.f32 %v320_v17, %v316_v18 }
  0xc7   :  { %v328_v20 = vmax.f32 %v324_v19, 0.0 }
  0xc9   :  { %332 = vst [vmem:[%s659_s4 + $0x18] sm:$0xff] %v328_v20 }

// kernel: _lambda_.33
= control target key start
LH: loop header
LB: loop body
LE: loop exit
PB: predicated region body
PF: predicated region fallthrough
CT: control target
= control target key end

     0   :  { %s1225_s1 = inlined_call_operand.vmem [shape: bf16[384,128], index: 1, kind: input, shape index: {}]   ;;  %s1226_s0 = inlined_call_operand.vmem [shape: bf16[128,384], index: 0, kind: input, shape index: {}]   ;;  %s1227_s4 = inlined_call_operand.vmem [shape: f32[2,128], index: 4, kind: output, shape index: {}]   ;;  %s1228_s2 = inlined_call_operand.vmem [shape: f32[1,128], index: 2, kind: input, shape index: {}]   ;;  %s1229_s3 = inlined_call_operand.vmem [shape: f32[1,128], index: 3, kind: input, shape index: {}]  }
   0x1   :  { %v839_v0 = vld [vmem:[%s1225_s1 + $0x38] sm:$0xff]  ;;  %v838_v3 = vld [vmem:[%s1225_s1 + $0x30] sm:$0xff]  ;;  %v837_v6 = vld [vmem:[%s1225_s1 + $0x28] sm:$0xff] }
   0x2   :  { %v915_v1 = vld [vmem:[%s1225_s1 + $0x78] sm:$0xff]  ;;  %369 = vmatpush.bf16.msra.mxu0 %v839_v0  ;;  %856 = vmatpush.bf16.msra.mxu3 %v839_v0  ;;  %v930_v4 = vld [vmem:[%s1225_s1 + $0x70] sm:$0xff]  ;;  %v845_v7 = vld [vmem:[%s1225_s1 + $0x68] sm:$0xff] }
   0x3   :  { %v920_v2 = vld [vmem:[%s1225_s1 + $0xb8] sm:$0xff]  ;;  %418 = vmatpush.bf16.msra.mxu1 %v915_v1  ;;  %v935_v5 = vld [vmem:[%s1225_s1 + $0xb0] sm:$0xff]  ;;  %v948_v8 = vld [vmem:[%s1225_s1 + $0xa8] sm:$0xff] }
   0x4   :  { %467 = vmatpush.bf16.msra.mxu2 %v920_v2  ;;  %v836_v9 = vld [vmem:[%s1225_s1 + $0x20] sm:$0xff]  ;;  %v835_v12 = vld [vmem:[%s1225_s1 + $0x18] sm:$0xff]  ;;  %v834_v15 = vld [vmem:[%s1225_s1 + $0x10] sm:$0xff] }
   0x5   :  { %v844_v10 = vld [vmem:[%s1225_s1 + $0x60] sm:$0xff]  ;;  %v843_v13 = vld [vmem:[%s1225_s1 + $0x58] sm:$0xff]  ;;  %v842_v16 = vld [vmem:[%s1225_s1 + $0x50] sm:$0xff] }
   0x6   :  { %370 = vmatpush.bf16.msra.mxu0 %v838_v3  ;;  %857 = vmatpush.bf16.msra.mxu3 %v838_v3  ;;  %v960_v11 = vld [vmem:[%s1225_s1 + $0xa0] sm:$0xff]  ;;  %v972_v14 = vld [vmem:[%s1225_s1 + $0x98] sm:$0xff]  ;;  %v984_v17 = vld [vmem:[%s1225_s1 + $0x90] sm:$0xff] }
   0x7   :  { %419 = vmatpush.bf16.msra.mxu1 %v930_v4  ;;  %v833_v18 = vld [vmem:[%s1225_s1 + $0x8] sm:$0xff]  ;;  %v832_v21 = vld [vmem:[%s1225_s1] sm:$0xff]  ;;  %v690_v26 = vld [vmem:[%s1226_s0 + $0x90] sm:$0xf] }
   0x8   :  { %468 = vmatpush.bf16.msra.mxu2 %v935_v5  ;;  %v841_v19 = vld [vmem:[%s1225_s1 + $0x48] sm:$0xff]  ;;  %v840_v22 = vld [vmem:[%s1225_s1 + $0x40] sm:$0xff]  ;;  %v827_v27 = vld [vmem:[%s1226_s0 + $0x98] sm:$0xf0] }
   0x9   :  { %v996_v20 = vld [vmem:[%s1225_s1 + $0x88] sm:$0xff]  ;;  %v1007_v23 = vld [vmem:[%s1225_s1 + $0x80] sm:$0xff]  ;;  %v620_v29 = vld [vmem:[%s1226_s0 + $0xc] sm:$0xf0]  ;;  %v691_v33 = vor.u32 %v827_v27, %v690_v26 }
   0xa   :  { %371 = vmatpush.bf16.msra.mxu0 %v837_v6  ;;  %858 = vmatpush.bf16.msra.mxu3 %v837_v6  ;;  %v618_v24 = vld [vmem:[%s1226_s0] sm:$0xf]  ;;  %v809_v25 = vld [vmem:[%s1226_s0 + $0x8] sm:$0xf0]  ;;  %v808_v28 = vld [vmem:[%s1226_s0 + $0x4] sm:$0xf] }
   0xb   :  { %420 = vmatpush.bf16.msra.mxu1 %v845_v7  ;;  %v626_v30 = vld [vmem:[%s1226_s0 + $0x8] sm:$0xf]  ;;  %v810_v31 = vld [vmem:[%s1226_s0 + $0x10] sm:$0xf0]  ;;  %v619_v32 = vor.u32 %v809_v25, %v618_v24  ;;  %v623_v34 = vor.u32 %v808_v28, %v620_v29  ;;  %v630_v36 = vld [vmem:[%s1226_s0 + $0x18] sm:$0xf] }
   0xc   :  { %469 = vmatpush.bf16.msra.mxu2 %v948_v8  ;;  %v627_v35 = vor.u32 %v810_v31, %v626_v30  ;;  %v812_v37 = vld [vmem:[%s1226_s0 + $0x20] sm:$0xf0]  ;;  %v702_v38 = vld [vmem:[%s1226_s0 + $0xa8] sm:$0xf]  ;;  %v830_v39 = vld [vmem:[%s1226_s0 + $0xb0] sm:$0xf0] }
   0xd   :  { %v811_v40 = vld [vmem:[%s1226_s0 + $0x1c] sm:$0xf]  ;;  %v632_v41 = vld [vmem:[%s1226_s0 + $0x24] sm:$0xf0]  ;;  %v638_v42 = vld [vmem:[%s1226_s0 + $0x20] sm:$0xf]  ;;  %v631_v44 = vor.u32 %v812_v37, %v630_v36  ;;  %v703_v45 = vor.u32 %v830_v39, %v702_v38 }
   0xe   :  { %372 = vmatpush.bf16.msra.mxu0 %v836_v9  ;;  %859 = vmatpush.bf16.msra.mxu3 %v836_v9  ;;  %v813_v43 = vld [vmem:[%s1226_s0 + $0x28] sm:$0xf0]  ;;  %v635_v46 = vor.u32 %v811_v40, %v632_v41  ;;  %v642_v48 = vld [vmem:[%s1226_s0 + $0x30] sm:$0xf]  ;;  %v815_v49 = vld [vmem:[%s1226_s0 + $0x38] sm:$0xf0] }
   0xf   :  { %421 = vmatpush.bf16.msra.mxu1 %v844_v10  ;;  %v639_v47 = vor.u32 %v813_v43, %v638_v42  ;;  %v814_v50 = vld [vmem:[%s1226_s0 + $0x34] sm:$0xf]  ;;  %v692_v52 = vld [vmem:[%s1226_s0 + $0x9c] sm:$0xf0]  ;;  %v650_v54 = vld [vmem:[%s1226_s0 + $0x38] sm:$0xf]  ;;  %v643_v56 = vor.u32 %v815_v49, %v642_v48 }
  0x10   :  { %470 = vmatpush.bf16.msra.mxu2 %v960_v11  ;;  %v826_v51 = vld [vmem:[%s1226_s0 + $0x94] sm:$0xf]  ;;  %v644_v53 = vld [vmem:[%s1226_s0 + $0x3c] sm:$0xf0]  ;;  %v816_v55 = vld [vmem:[%s1226_s0 + $0x40] sm:$0xf0] }
  0x11   :  { %v695_v57 = vor.u32 %v826_v51, %v692_v52  ;;  %v647_v58 = vor.u32 %v814_v50, %v644_v53  ;;  %v651_v59 = vor.u32 %v816_v55, %v650_v54  ;;  %v654_v60 = vld [vmem:[%s1226_s0 + $0x48] sm:$0xf]  ;;  %v818_v61 = vld [vmem:[%s1226_s0 + $0x50] sm:$0xf0]  ;;  %v817_v62 = vld [vmem:[%s1226_s0 + $0x4c] sm:$0xf] }
  0x12   :  { %373 = vmatpush.bf16.msra.mxu0 %v835_v12  ;;  %860 = vmatpush.bf16.msra.mxu3 %v835_v12  ;;  %v829_v63 = vld [vmem:[%s1226_s0 + $0xac] sm:$0xf]  ;;  %v704_v0 = vld [vmem:[%s1226_s0 + $0xb4] sm:$0xf0]  ;;  %v819_v3 = vld [vmem:[%s1226_s0 + $0x58] sm:$0xf0] }
  0x13   :  { %422 = vmatpush.bf16.msra.mxu1 %v843_v13  ;;  %v821_v9 = vld [vmem:[%s1226_s0 + $0x68] sm:$0xf0]  ;;  %v828_v12 = vld [vmem:[%s1226_s0 + $0xa0] sm:$0xf0]  ;;  %v831_v24 = vld [vmem:[%s1226_s0 + $0xb8] sm:$0xf0] }
  0x14   :  { %471 = vmatpush.bf16.msra.mxu2 %v972_v14  ;;  %v680_v25 = vld [vmem:[%s1226_s0 + $0x84] sm:$0xf0]  ;;  %v686_v26 = vld [vmem:[%s1226_s0 + $0x80] sm:$0xf]  ;;  %v825_v27 = vld [vmem:[%s1226_s0 + $0x88] sm:$0xf0] }
  0x15   :  { %v687_v31 = vor.u32 %v825_v27, %v686_v26 }
  0x16   :  { %374 = vmatpush.bf16.msra.mxu0 %v834_v15  ;;  %861 = vmatpush.bf16.msra.mxu3 %v834_v15  ;;  %v822_v15 = vld [vmem:[%s1226_s0 + $0x70] sm:$0xf0] }
  0x17   :  { %423 = vmatpush.bf16.msra.mxu1 %v842_v16 }
  0x18   :  { %472 = vmatpush.bf16.msra.mxu2 %v984_v17 }
  0x1a   :  { %375 = vmatpush.bf16.msra.mxu0 %v833_v18  ;;  %862 = vmatpush.bf16.msra.mxu3 %v833_v18 }
  0x1b   :  { %424 = vmatpush.bf16.msra.mxu1 %v841_v19 }
  0x1c   :  { %473 = vmatpush.bf16.msra.mxu2 %v996_v20 }
  0x1e   :  { %376 = vmatpush.bf16.msra.mxu0 %v832_v21  ;;  %863 = vmatpush.bf16.msra.mxu3 %v832_v21  ;;  %v824_v21 = vld [vmem:[%s1226_s0 + $0x80] sm:$0xf0] }
  0x1f   :  { %425 = vmatpush.bf16.msra.mxu1 %v840_v22 }
  0x20   :  { %474 = vmatpush.bf16.msra.mxu2 %v1007_v23 }
  0x21   :  { %377 = vmatmul.bf16.vlgmr.msra.gmra.mxu0 %v619_v32  ;;  %407 = vmatmul.bf16.vlgmr.msra.gmra.mxu3 %v691_v33 }
  0x22   :  { %864 = vmatpush.bf16.msrb.mxu3 %v915_v1  ;;  %426 = vmatmul.bf16.vlgmr.msra.gmra.mxu1 %v623_v34  ;;  %v656_v1 = vld [vmem:[%s1226_s0 + $0x54] sm:$0xf0] }
  0x23   :  { %475 = vmatmul.bf16.vlgmr.msra.gmra.mxu2 %v627_v35  ;;  %v659_v6 = vor.u32 %v817_v62, %v656_v1 }
  0x26   :  { %865 = vmatpush.bf16.msrb.mxu3 %v930_v4  ;;  %v655_v4 = vor.u32 %v818_v61, %v654_v60 }
  0x2a   :  { %866 = vmatpush.bf16.msrb.mxu3 %v845_v7 }
  0x2e   :  { %867 = vmatpush.bf16.msrb.mxu3 %v844_v10  ;;  %v820_v10 = vld [vmem:[%s1226_s0 + $0x64] sm:$0xf] }
  0x31   :  { %382 = vmatmul.bf16.gmra.mxu0 %v631_v44  ;;  %412 = vmatmul.bf16.gmra.mxu3 %v703_v45 }
  0x32   :  { %868 = vmatpush.bf16.msrb.mxu3 %v843_v13  ;;  %431 = vmatmul.bf16.gmra.mxu1 %v635_v46  ;;  %v668_v13 = vld [vmem:[%s1226_s0 + $0x6c] sm:$0xf0] }
  0x33   :  { %480 = vmatmul.bf16.gmra.mxu2 %v639_v47  ;;  %v671_v18 = vor.u32 %v820_v10, %v668_v13 }
  0x36   :  { %869 = vmatpush.bf16.msrb.mxu3 %v842_v16 }
  0x3a   :  { %870 = vmatpush.bf16.msrb.mxu3 %v841_v19 }
  0x3e   :  { %871 = vmatpush.bf16.msrb.mxu3 %v840_v22  ;;  %v823_v22 = vld [vmem:[%s1226_s0 + $0x7c] sm:$0xf] }
  0x3f   :  { %v683_v30 = vor.u32 %v823_v22, %v680_v25 }
  0x41   :  { %387 = vmatmul.bf16.gmra.mxu0 %v643_v56  ;;  %456 = vmatmul.bf16.vlgmr.msrb.gmra.mxu3 %v695_v57 }
  0x42   :  { %872 = vmatpush.bf16.msra.mxu3 %v920_v2  ;;  %436 = vmatmul.bf16.gmra.mxu1 %v647_v58  ;;  %v662_v2 = vld [vmem:[%s1226_s0 + $0x50] sm:$0xf] }
  0x43   :  { %485 = vmatmul.bf16.gmra.mxu2 %v651_v59  ;;  %v663_v7 = vor.u32 %v819_v3, %v662_v2 }
  0x46   :  { %873 = vmatpush.bf16.msra.mxu3 %v935_v5  ;;  %v707_v5 = vor.u32 %v829_v63, %v704_v0 }
  0x4a   :  { %874 = vmatpush.bf16.msra.mxu3 %v948_v8  ;;  %v666_v8 = vld [vmem:[%s1226_s0 + $0x60] sm:$0xf] }
  0x4b   :  { %v667_v16 = vor.u32 %v821_v9, %v666_v8  ;;  %v883_v9 = vmov 0.0  }
  0x4c   :  { %520 = vst [vmem:[%s1227_s4] sm:$0x3] %v883_v9 }
  0x4e   :  { %875 = vmatpush.bf16.msra.mxu3 %v960_v11  ;;  %v698_v11 = vld [vmem:[%s1226_s0 + $0x98] sm:$0xf] }
  0x51   :  { %392 = vmatmul.bf16.gmra.mxu0 %v655_v4  ;;  %461 = vmatmul.bf16.gmra.mxu3 %v707_v5 }
  0x52   :  { %876 = vmatpush.bf16.msra.mxu3 %v972_v14  ;;  %441 = vmatmul.bf16.gmra.mxu1 %v659_v6  ;;  %v674_v14 = vld [vmem:[%s1226_s0 + $0x68] sm:$0xf] }
  0x53   :  { %490 = vmatmul.bf16.gmra.mxu2 %v663_v7  ;;  %v675_v19 = vor.u32 %v822_v15, %v674_v14 }
  0x56   :  { %877 = vmatpush.bf16.msra.mxu3 %v984_v17  ;;  %v699_v17 = vor.u32 %v828_v12, %v698_v11 }
  0x5a   :  { %878 = vmatpush.bf16.msra.mxu3 %v996_v20  ;;  %v678_v20 = vld [vmem:[%s1226_s0 + $0x78] sm:$0xf] }
  0x5b   :  { %v679_v28 = vor.u32 %v824_v21, %v678_v20 }
  0x5e   :  { %879 = vmatpush.bf16.msra.mxu3 %v1007_v23  ;;  %v710_v23 = vld [vmem:[%s1226_s0 + $0xb0] sm:$0xf] }
  0x5f   :  { %v711_v29 = vor.u32 %v831_v24, %v710_v23 }
  0x61   :  { %397 = vmatmul.bf16.gmra.mxu0 %v667_v16  ;;  %505 = vmatmul.bf16.vlgmr.msra.gmra.mxu3 %v699_v17 }
  0x62   :  { %446 = vmatmul.bf16.gmra.mxu1 %v671_v18 }
  0x63   :  { %495 = vmatmul.bf16.gmra.mxu2 %v675_v19 }
  0x71   :  { %402 = vmatmul.bf16.gmra.mxu0 %v679_v28  ;;  %510 = vmatmul.bf16.gmra.mxu3 %v711_v29 }
  0x72   :  { %451 = vmatmul.bf16.gmra.mxu1 %v683_v30 }
  0x73   :  { %500 = vmatmul.bf16.gmra.mxu2 %v687_v31 }
  0x9e   :  { %v378_v32 = vpop.f32.mrf.mxu0 }
  0x9f   :  { %v427_v33 = vpop.f32.mrf.mxu1 }
  0xa0   :  { %v428_v34 = vadd.f32 %v427_v33, %v378_v32 }
  0xa4   :  { %v1165_v35 = vpop.f32.mrf.mxu3 }
  0xa6   :  { %v476_v36 = vpop.f32.mrf.mxu2  ;;  %v380_v38 = vpop.f32.mrf.mxu0 }
  0xa7   :  { %v477_v37 = vadd.f32 %v476_v36, %v428_v34  ;;  %v429_v39 = vpop.f32.mrf.mxu1 }
  0xa8   :  { %v430_v4 = vadd.f32 %v429_v39, %v380_v38 }
  0xa9   :  { %v546_v17 = vmul.f32 %v477_v37, %v477_v37 }
  0xac   :  { %v1167_v40 = vpop.f32.mrf.mxu3 }
  0xae   :  { %v478_v41 = vpop.f32.mrf.mxu2  ;;  %v383_v42 = vpop.f32.mrf.mxu0 }
  0xaf   :  { %v432_v43 = vpop.f32.mrf.mxu1  ;;  %v479_v7 = vadd.f32 %v478_v41, %v430_v4 }
  0xb0   :  { %v433_v5 = vadd.f32 %v432_v43, %v383_v42 }
  0xb1   :  { %v547_v15 = vmul.f32 %v479_v7, %v479_v7  ;;  %v522_v18 = vadd.f32 %v479_v7, %v477_v37 }
  0xb3   :  { %v562_v23 = vadd.f32 %v547_v15, %v546_v17 }
  0xb4   :  { %v1169_v44 = vpop.f32.mrf.mxu3 }
  0xb6   :  { %v481_v45 = vpop.f32.mrf.mxu2  ;;  %v385_v46 = vpop.f32.mrf.mxu0 }
  0xb7   :  { %v434_v47 = vpop.f32.mrf.mxu1  ;;  %v482_v11 = vadd.f32 %v481_v45, %v433_v5 }
  0xb8   :  { %v435_v12 = vadd.f32 %v434_v47, %v385_v46 }
  0xb9   :  { %v548_v19 = vmul.f32 %v482_v11, %v482_v11  ;;  %v523_v24 = vadd.f32 %v522_v18, %v482_v11 }
  0xbb   :  { %v563_v29 = vadd.f32 %v562_v23, %v548_v19 }
  0xbc   :  { %v1171_v48 = vpop.f32.mrf.mxu3 }
  0xbe   :  { %v483_v49 = vpop.f32.mrf.mxu2  ;;  %v388_v50 = vpop.f32.mrf.mxu0 }
  0xbf   :  { %v437_v51 = vpop.f32.mrf.mxu1  ;;  %v484_v16 = vadd.f32 %v483_v49, %v435_v12 }
  0xc0   :  { %v438_v13 = vadd.f32 %v437_v51, %v388_v50 }
  0xc1   :  { %v549_v25 = vmul.f32 %v484_v16, %v484_v16  ;;  %v524_v30 = vadd.f32 %v523_v24, %v484_v16 }
  0xc3   :  { %v564_v39 = vadd.f32 %v563_v29, %v549_v25 }
  0xc4   :  { %v1173_v52 = vpop.f32.mrf.mxu3 }
  0xc5   :  { %v458_v7 = vadd.f32 %v1173_v52, %v1165_v35 }
  0xc6   :  { %v486_v53 = vpop.f32.mrf.mxu2  ;;  %v390_v54 = vpop.f32.mrf.mxu0 }
  0xc7   :  { %v439_v55 = vpop.f32.mrf.mxu1  ;;  %v487_v20 = vadd.f32 %v486_v53, %v438_v13 }
  0xc8   :  { %v440_v21 = vadd.f32 %v439_v55, %v390_v54 }
  0xc9   :  { %v550_v31 = vmul.f32 %v487_v20, %v487_v20  ;;  %v525_v37 = vadd.f32 %v524_v30, %v487_v20 }
  0xcb   :  { %v565_v43 = vadd.f32 %v564_v39, %v550_v31 }
  0xcc   :  { %v1175_v56 = vpop.f32.mrf.mxu3 }
  0xcd   :  { %v460_v12 = vadd.f32 %v1175_v56, %v1167_v40 }
  0xce   :  { %v488_v57 = vpop.f32.mrf.mxu2  ;;  %v393_v58 = vpop.f32.mrf.mxu0 }
  0xcf   :  { %v442_v59 = vpop.f32.mrf.mxu1  ;;  %v489_v28 = vadd.f32 %v488_v57, %v440_v21 }
  0xd0   :  { %v443_v22 = vadd.f32 %v442_v59, %v393_v58 }
  0xd1   :  { %v551_v41 = vmul.f32 %v489_v28, %v489_v28  ;;  %v526_v45 = vadd.f32 %v525_v37, %v489_v28 }
  0xd3   :  { %v566_v53 = vadd.f32 %v565_v43, %v551_v41 }
  0xd4   :  { %v1177_v60 = vpop.f32.mrf.mxu3 }
  0xd5   :  { %v463_v18 = vadd.f32 %v1177_v60, %v1169_v44 }
  0xd6   :  { %v491_v61 = vpop.f32.mrf.mxu2  ;;  %v395_v62 = vpop.f32.mrf.mxu0 }
  0xd7   :  { %v444_v63 = vpop.f32.mrf.mxu1  ;;  %v492_v34 = vadd.f32 %v491_v61, %v443_v22 }
  0xd8   :  { %v445_v36 = vadd.f32 %v444_v63, %v395_v62 }
  0xd9   :  { %v552_v46 = vmul.f32 %v492_v34, %v492_v34  ;;  %v527_v54 = vadd.f32 %v526_v45, %v492_v34 }
  0xdb   :  { %v567_v59 = vadd.f32 %v566_v53, %v552_v46  ;;  %v545_v46 = vld [vmem:[%s1227_s4 + $0x1] sm:$0x1] }
  0xdc   :  { %v1179_v0 = vpop.f32.mrf.mxu3 }
  0xdd   :  { %v465_v52 = vadd.f32 %v1179_v0, %v1171_v48 }
  0xde   :  { %v493_v1 = vpop.f32.mrf.mxu2  ;;  %v398_v2 = vpop.f32.mrf.mxu0 }
  0xdf   :  { %v447_v3 = vpop.f32.mrf.mxu1  ;;  %v494_v42 = vadd.f32 %v493_v1, %v445_v36 }
  0xe0   :  { %v448_v38 = vadd.f32 %v447_v3, %v398_v2 }
  0xe1   :  { %v553_v55 = vmul.f32 %v494_v42, %v494_v42  ;;  %v528_v61 = vadd.f32 %v527_v54, %v494_v42  ;;  %v521_v42 = vld [vmem:[%s1227_s4] sm:$0x1] }
  0xe3   :  { %v568_v4 = vadd.f32 %v567_v59, %v553_v55 }
  0xe4   :  { %v1181_v6 = vpop.f32.mrf.mxu3 }
  0xe6   :  { %v496_v8 = vpop.f32.mrf.mxu2  ;;  %v400_v10 = vpop.f32.mrf.mxu0 }
  0xe7   :  { %v449_v14 = vpop.f32.mrf.mxu1  ;;  %v497_v47 = vadd.f32 %v496_v8, %v448_v38 }
  0xe8   :  { %v450_v49 = vadd.f32 %v449_v14, %v400_v10  ;;  %v507_v14 = vadd.f32 %v1181_v6, %v458_v7 }
  0xe9   :  { %v554_v62 = vmul.f32 %v497_v47, %v497_v47  ;;  %v529_v1 = vadd.f32 %v528_v61, %v497_v47 }
  0xea   :  { %v558_v23 = vmul.f32 %v507_v14, %v507_v14 }
  0xeb   :  { %v569_v8 = vadd.f32 %v568_v4, %v554_v62 }
  0xec   :  { %v508_v27 = vpop.f32.mrf.mxu3 }
  0xed   :  { %v509_v19 = vadd.f32 %v508_v27, %v460_v12 }
  0xee   :  { %v498_v26 = vpop.f32.mrf.mxu2  ;;  %v403_v32 = vpop.f32.mrf.mxu0 }
  0xef   :  { %v452_v33 = vpop.f32.mrf.mxu1  ;;  %v499_v57 = vadd.f32 %v498_v26, %v450_v49  ;;  %v559_v25 = vmul.f32 %v509_v19, %v509_v19 }
  0xf0   :  { %v453_v50 = vadd.f32 %v452_v33, %v403_v32 }
  0xf1   :  { %v555_v5 = vmul.f32 %v499_v57, %v499_v57  ;;  %v530_v9 = vadd.f32 %v529_v1, %v499_v57  ;;  %v605_v1 = vld [vmem:[%s1228_s2] sm:$0x1] }
  0xf3   :  { %v570_v15 = vadd.f32 %v569_v8, %v555_v5  ;;  %v607_v8 = vld [vmem:[%s1229_s3] sm:$0x1] }
  0xf4   :  { %v511_v58 = vpop.f32.mrf.mxu3 }
  0xf5   :  { %v512_v24 = vadd.f32 %v511_v58, %v463_v18 }
  0xf6   :  { %v501_v51 = vpop.f32.mrf.mxu2  ;;  %v405_v2 = vpop.f32.mrf.mxu0 }
  0xf7   :  { %v502_v63 = vadd.f32 %v501_v51, %v453_v50  ;;  %v454_v3 = vpop.f32.mrf.mxu1  ;;  %v560_v29 = vmul.f32 %v512_v24, %v512_v24 }
  0xf8   :  { %v455_v11 = vadd.f32 %v454_v3, %v405_v2 }
  0xf9   :  { %v556_v10 = vmul.f32 %v502_v63, %v502_v63  ;;  %v531_v16 = vadd.f32 %v530_v9, %v502_v63 }
  0xfb   :  { %v571_v20 = vadd.f32 %v570_v15, %v556_v10 }
  0xfc   :  { %v513_v22 = vpop.f32.mrf.mxu3 }
  0xfd   :  { %v514_v26 = vadd.f32 %v513_v22, %v465_v52 }
  0xfe   :  { %v503_v13 = vpop.f32.mrf.mxu2 }
  0xff   :  { %v504_v17 = vadd.f32 %v503_v13, %v455_v11  ;;  %v561_v60 = vmul.f32 %v514_v26, %v514_v26 }
 0x101   :  { %v532_v21 = vadd.f32 %v531_v16, %v504_v17  ;;  %v557_v35 = vmul.f32 %v504_v17, %v504_v17 }
 0x103   :  { %v533_v40 = vadd.f32 %v532_v21, %v507_v14  ;;  %v572_v56 = vadd.f32 %v571_v20, %v557_v35 }
 0x105   :  { %v573_v6 = vadd.f32 %v572_v56, %v558_v23  ;;  %v534_v28 = vadd.f32 %v533_v40, %v509_v19 }
 0x107   :  { %v535_v30 = vadd.f32 %v534_v28, %v512_v24  ;;  %v574_v31 = vadd.f32 %v573_v6, %v559_v25 }
 0x109   :  { %v536_v44 = vadd.f32 %v535_v30, %v514_v26  ;;  %v575_v27 = vadd.f32 %v574_v31, %v560_v29 }
 0x10b   :  { %v537_v32 = vrot.slane %v536_v44, 4  ;;  %v576_v33 = vadd.f32 %v575_v27, %v561_v60 }
 0x10d   :  { %v538_v34 = vadd.f32 %v537_v32, %v536_v44  ;;  %v577_v36 = vrot.slane %v576_v33, 4 }
 0x10f   :  { %v539_v48 = vrot.slane %v538_v34, 2  ;;  %v578_v0 = vadd.f32 %v577_v36, %v576_v33 }
 0x111   :  { %v540_v38 = vadd.f32 %v539_v48, %v538_v34  ;;  %v579_v39 = vrot.slane %v578_v0, 2 }
 0x113   :  { %v541_v37 = vrot.slane %v540_v38, 1  ;;  %v580_v41 = vadd.f32 %v579_v39, %v578_v0 }
 0x115   :  { %v542_v43 = vadd.f32 %v541_v37, %v540_v38  ;;  %v581_v45 = vrot.slane %v580_v41, 1 }
 0x117   :  { %v543_v47 = vadd.f32 %v542_v43, %v521_v42  ;;  %v582_v49 = vadd.f32 %v581_v45, %v580_v41 }
 0x119   :  { %544 = vst [vmem:[%s1227_s4] sm:$0x1] %v543_v47  ;;  %v583_v50 = vadd.f32 %v582_v49, %v545_v46 }
 0x11b   :  { %584 = vst [vmem:[%s1227_s4 + $0x1] sm:$0x1] %v583_v50 }
 0x120   :  { %v588_v51 = vld [vmem:[%s1227_s4] sm:$0x1] }
 0x121   :  { %v589_v53 = vmul.f32 0.0078125, %v588_v51 }
 0x122   :  { %v590_v54 = vld [vmem:[%s1227_s4 + $0x1] sm:$0x1] }
 0x123   :  { %v591_v55 = vmul.f32 0.0078125, %v590_v54  ;;  %v592_v57 = vmul.f32 %v589_v53, %v589_v53 }
 0x125   :  { %v593_v58 = vsub.f32 %v591_v55, %v592_v57 }
 0x127   :  { %v594_v59 = vadd.f32 1e-05, %v593_v58 }
 0x129   :  { %881 = vrsqrt.f32 %v594_v59  ;;  %vm601_vm1 = vweird.f32 %v594_v59 }
 0x12f   :  { %v882_v61 = vpop.eup %881 }
 0x130   :  { %v596_v62 = vmul.f32 %v882_v61, %v594_v59  ;;  %vm602_vm0 = vweird.f32 %v882_v61 }
 0x131   :  { %vm603_vm2 = vmor %vm601_vm1, %vm602_vm0 }
 0x132   :  { %v597_v63 = vmul.f32 %v882_v61, %v596_v62 }
 0x134   :  { %v598_v2 = vmul.f32 0.5, %v597_v63 }
 0x136   :  { %v599_v3 = vsub.f32 1.5, %v598_v2 }
 0x138   :  { %v600_v4 = vmul.f32 %v882_v61, %v599_v3 }
 0x13a   :  { %v604_v5 = vsel %vm603_vm2, %v882_v61, %v600_v4 }
 0x13b   :  { %v606_v7 = vmul.f32 %v605_v1, %v604_v5 }
 0x13d   :  { %v608_v9 = vmul.f32 %v606_v7, %v589_v53  ;;  %610 = vst [vmem:[%s1227_s4] sm:$0x1] %v606_v7 }
 0x13f   :  { %v609_v10 = vsub.f32 %v607_v8, %v608_v9 }
 0x141   :  { %611 = vst [vmem:[%s1227_s4 + $0x1] sm:$0x1] %v609_v10 }

// kernel: _lambda_.34
= control target key start
LH: loop header
LB: loop body
LE: loop exit
PB: predicated region body
PF: predicated region fallthrough
CT: control target
= control target key end

     0   :  { %s1223_s1 = inlined_call_operand.vmem [shape: bf16[384,128], index: 1, kind: input, shape index: {}]   ;;  %s1224_s0 = inlined_call_operand.vmem [shape: bf16[128,384], index: 0, kind: input, shape index: {}]   ;;  %s1225_s2 = inlined_call_operand.vmem [shape: f32[2,128], index: 2, kind: input, shape index: {}]   ;;  %s1226_s3 = inlined_call_operand.vmem [shape: f32[128,128], index: 3, kind: output, shape index: {}]  }
   0x1   :  { %v807_v0 = vld [vmem:[%s1223_s1 + $0x38] sm:$0xff]  ;;  %v806_v3 = vld [vmem:[%s1223_s1 + $0x30] sm:$0xff]  ;;  %v805_v6 = vld [vmem:[%s1223_s1 + $0x28] sm:$0xff] }
   0x2   :  { %v874_v1 = vld [vmem:[%s1223_s1 + $0x78] sm:$0xff]  ;;  %366 = vmatpush.bf16.msra.mxu0 %v807_v0  ;;  %824 = vmatpush.bf16.msra.mxu3 %v807_v0  ;;  %v889_v4 = vld [vmem:[%s1223_s1 + $0x70] sm:$0xff]  ;;  %v813_v7 = vld [vmem:[%s1223_s1 + $0x68] sm:$0xff] }
   0x3   :  { %v879_v2 = vld [vmem:[%s1223_s1 + $0xb8] sm:$0xff]  ;;  %415 = vmatpush.bf16.msra.mxu1 %v874_v1  ;;  %v894_v5 = vld [vmem:[%s1223_s1 + $0xb0] sm:$0xff]  ;;  %v907_v8 = vld [vmem:[%s1223_s1 + $0xa8] sm:$0xff] }
   0x4   :  { %464 = vmatpush.bf16.msra.mxu2 %v879_v2  ;;  %v804_v9 = vld [vmem:[%s1223_s1 + $0x20] sm:$0xff]  ;;  %v803_v12 = vld [vmem:[%s1223_s1 + $0x18] sm:$0xff]  ;;  %v802_v15 = vld [vmem:[%s1223_s1 + $0x10] sm:$0xff] }
   0x5   :  { %v812_v10 = vld [vmem:[%s1223_s1 + $0x60] sm:$0xff]  ;;  %v811_v13 = vld [vmem:[%s1223_s1 + $0x58] sm:$0xff]  ;;  %v810_v16 = vld [vmem:[%s1223_s1 + $0x50] sm:$0xff] }
   0x6   :  { %367 = vmatpush.bf16.msra.mxu0 %v806_v3  ;;  %825 = vmatpush.bf16.msra.mxu3 %v806_v3  ;;  %v919_v11 = vld [vmem:[%s1223_s1 + $0xa0] sm:$0xff]  ;;  %v931_v14 = vld [vmem:[%s1223_s1 + $0x98] sm:$0xff]  ;;  %v943_v17 = vld [vmem:[%s1223_s1 + $0x90] sm:$0xff] }
   0x7   :  { %416 = vmatpush.bf16.msra.mxu1 %v889_v4  ;;  %v801_v18 = vld [vmem:[%s1223_s1 + $0x8] sm:$0xff]  ;;  %v800_v21 = vld [vmem:[%s1223_s1] sm:$0xff]  ;;  %v658_v26 = vld [vmem:[%s1224_s0 + $0x90] sm:$0xf] }
   0x8   :  { %465 = vmatpush.bf16.msra.mxu2 %v894_v5  ;;  %v809_v19 = vld [vmem:[%s1223_s1 + $0x48] sm:$0xff]  ;;  %v808_v22 = vld [vmem:[%s1223_s1 + $0x40] sm:$0xff]  ;;  %v795_v27 = vld [vmem:[%s1224_s0 + $0x98] sm:$0xf0] }
   0x9   :  { %v955_v20 = vld [vmem:[%s1223_s1 + $0x88] sm:$0xff]  ;;  %v966_v23 = vld [vmem:[%s1223_s1 + $0x80] sm:$0xff]  ;;  %v588_v29 = vld [vmem:[%s1224_s0 + $0xc] sm:$0xf0]  ;;  %v659_v33 = vor.u32 %v795_v27, %v658_v26 }
   0xa   :  { %368 = vmatpush.bf16.msra.mxu0 %v805_v6  ;;  %826 = vmatpush.bf16.msra.mxu3 %v805_v6  ;;  %v586_v24 = vld [vmem:[%s1224_s0] sm:$0xf]  ;;  %v777_v25 = vld [vmem:[%s1224_s0 + $0x8] sm:$0xf0]  ;;  %v776_v28 = vld [vmem:[%s1224_s0 + $0x4] sm:$0xf] }
   0xb   :  { %417 = vmatpush.bf16.msra.mxu1 %v813_v7  ;;  %v594_v30 = vld [vmem:[%s1224_s0 + $0x8] sm:$0xf]  ;;  %v778_v31 = vld [vmem:[%s1224_s0 + $0x10] sm:$0xf0]  ;;  %v587_v32 = vor.u32 %v777_v25, %v586_v24  ;;  %v591_v34 = vor.u32 %v776_v28, %v588_v29  ;;  %v598_v36 = vld [vmem:[%s1224_s0 + $0x18] sm:$0xf] }
   0xc   :  { %466 = vmatpush.bf16.msra.mxu2 %v907_v8  ;;  %v595_v35 = vor.u32 %v778_v31, %v594_v30  ;;  %v780_v37 = vld [vmem:[%s1224_s0 + $0x20] sm:$0xf0]  ;;  %v670_v38 = vld [vmem:[%s1224_s0 + $0xa8] sm:$0xf]  ;;  %v798_v39 = vld [vmem:[%s1224_s0 + $0xb0] sm:$0xf0] }
   0xd   :  { %v779_v40 = vld [vmem:[%s1224_s0 + $0x1c] sm:$0xf]  ;;  %v600_v41 = vld [vmem:[%s1224_s0 + $0x24] sm:$0xf0]  ;;  %v606_v42 = vld [vmem:[%s1224_s0 + $0x20] sm:$0xf]  ;;  %v599_v44 = vor.u32 %v780_v37, %v598_v36  ;;  %v671_v45 = vor.u32 %v798_v39, %v670_v38 }
   0xe   :  { %369 = vmatpush.bf16.msra.mxu0 %v804_v9  ;;  %827 = vmatpush.bf16.msra.mxu3 %v804_v9  ;;  %v781_v43 = vld [vmem:[%s1224_s0 + $0x28] sm:$0xf0]  ;;  %v603_v46 = vor.u32 %v779_v40, %v600_v41  ;;  %v610_v48 = vld [vmem:[%s1224_s0 + $0x30] sm:$0xf]  ;;  %v783_v49 = vld [vmem:[%s1224_s0 + $0x38] sm:$0xf0] }
   0xf   :  { %418 = vmatpush.bf16.msra.mxu1 %v812_v10  ;;  %v607_v47 = vor.u32 %v781_v43, %v606_v42  ;;  %v782_v50 = vld [vmem:[%s1224_s0 + $0x34] sm:$0xf]  ;;  %v660_v52 = vld [vmem:[%s1224_s0 + $0x9c] sm:$0xf0]  ;;  %v618_v54 = vld [vmem:[%s1224_s0 + $0x38] sm:$0xf]  ;;  %v611_v56 = vor.u32 %v783_v49, %v610_v48 }
  0x10   :  { %467 = vmatpush.bf16.msra.mxu2 %v919_v11  ;;  %v794_v51 = vld [vmem:[%s1224_s0 + $0x94] sm:$0xf]  ;;  %v612_v53 = vld [vmem:[%s1224_s0 + $0x3c] sm:$0xf0]  ;;  %v784_v55 = vld [vmem:[%s1224_s0 + $0x40] sm:$0xf0] }
  0x11   :  { %v663_v57 = vor.u32 %v794_v51, %v660_v52  ;;  %v615_v58 = vor.u32 %v782_v50, %v612_v53  ;;  %v619_v59 = vor.u32 %v784_v55, %v618_v54  ;;  %v622_v60 = vld [vmem:[%s1224_s0 + $0x48] sm:$0xf]  ;;  %v786_v61 = vld [vmem:[%s1224_s0 + $0x50] sm:$0xf0]  ;;  %v785_v62 = vld [vmem:[%s1224_s0 + $0x4c] sm:$0xf] }
  0x12   :  { %370 = vmatpush.bf16.msra.mxu0 %v803_v12  ;;  %828 = vmatpush.bf16.msra.mxu3 %v803_v12  ;;  %v797_v63 = vld [vmem:[%s1224_s0 + $0xac] sm:$0xf]  ;;  %v672_v0 = vld [vmem:[%s1224_s0 + $0xb4] sm:$0xf0]  ;;  %v787_v3 = vld [vmem:[%s1224_s0 + $0x58] sm:$0xf0] }
  0x13   :  { %419 = vmatpush.bf16.msra.mxu1 %v811_v13  ;;  %v789_v9 = vld [vmem:[%s1224_s0 + $0x68] sm:$0xf0]  ;;  %v796_v12 = vld [vmem:[%s1224_s0 + $0xa0] sm:$0xf0]  ;;  %v799_v24 = vld [vmem:[%s1224_s0 + $0xb8] sm:$0xf0] }
  0x14   :  { %468 = vmatpush.bf16.msra.mxu2 %v931_v14  ;;  %v648_v25 = vld [vmem:[%s1224_s0 + $0x84] sm:$0xf0]  ;;  %v654_v26 = vld [vmem:[%s1224_s0 + $0x80] sm:$0xf]  ;;  %v793_v27 = vld [vmem:[%s1224_s0 + $0x88] sm:$0xf0] }
  0x15   :  { %v655_v31 = vor.u32 %v793_v27, %v654_v26 }
  0x16   :  { %371 = vmatpush.bf16.msra.mxu0 %v802_v15  ;;  %829 = vmatpush.bf16.msra.mxu3 %v802_v15  ;;  %v790_v15 = vld [vmem:[%s1224_s0 + $0x70] sm:$0xf0] }
  0x17   :  { %420 = vmatpush.bf16.msra.mxu1 %v810_v16 }
  0x18   :  { %469 = vmatpush.bf16.msra.mxu2 %v943_v17 }
  0x1a   :  { %372 = vmatpush.bf16.msra.mxu0 %v801_v18  ;;  %830 = vmatpush.bf16.msra.mxu3 %v801_v18 }
  0x1b   :  { %421 = vmatpush.bf16.msra.mxu1 %v809_v19 }
  0x1c   :  { %470 = vmatpush.bf16.msra.mxu2 %v955_v20 }
  0x1e   :  { %373 = vmatpush.bf16.msra.mxu0 %v800_v21  ;;  %831 = vmatpush.bf16.msra.mxu3 %v800_v21  ;;  %v792_v21 = vld [vmem:[%s1224_s0 + $0x80] sm:$0xf0] }
  0x1f   :  { %422 = vmatpush.bf16.msra.mxu1 %v808_v22 }
  0x20   :  { %471 = vmatpush.bf16.msra.mxu2 %v966_v23 }
  0x21   :  { %374 = vmatmul.bf16.vlgmr.msra.gmra.mxu0 %v587_v32  ;;  %404 = vmatmul.bf16.vlgmr.msra.gmra.mxu3 %v659_v33 }
  0x22   :  { %832 = vmatpush.bf16.msrb.mxu3 %v874_v1  ;;  %423 = vmatmul.bf16.vlgmr.msra.gmra.mxu1 %v591_v34  ;;  %v624_v1 = vld [vmem:[%s1224_s0 + $0x54] sm:$0xf0]  ;;  %v513_v34 = vld [vmem:[%s1225_s2] sm:$0x3] }
  0x23   :  { %472 = vmatmul.bf16.vlgmr.msra.gmra.mxu2 %v595_v35  ;;  %v627_v6 = vor.u32 %v785_v62, %v624_v1  ;;  %v1129_v37 = vperm.slane %v513_v34, 0  ;;  %v1131_v40 = vperm.slane %v513_v34, 1 }
  0x26   :  { %833 = vmatpush.bf16.msrb.mxu3 %v889_v4  ;;  %v623_v4 = vor.u32 %v786_v61, %v622_v60 }
  0x2a   :  { %834 = vmatpush.bf16.msrb.mxu3 %v813_v7 }
  0x2e   :  { %835 = vmatpush.bf16.msrb.mxu3 %v812_v10  ;;  %v788_v10 = vld [vmem:[%s1224_s0 + $0x64] sm:$0xf] }
  0x31   :  { %379 = vmatmul.bf16.gmra.mxu0 %v599_v44  ;;  %409 = vmatmul.bf16.gmra.mxu3 %v671_v45 }
  0x32   :  { %836 = vmatpush.bf16.msrb.mxu3 %v811_v13  ;;  %428 = vmatmul.bf16.gmra.mxu1 %v603_v46  ;;  %v636_v13 = vld [vmem:[%s1224_s0 + $0x6c] sm:$0xf0] }
  0x33   :  { %477 = vmatmul.bf16.gmra.mxu2 %v607_v47  ;;  %v639_v18 = vor.u32 %v788_v10, %v636_v13 }
  0x36   :  { %837 = vmatpush.bf16.msrb.mxu3 %v810_v16 }
  0x3a   :  { %838 = vmatpush.bf16.msrb.mxu3 %v809_v19 }
  0x3e   :  { %839 = vmatpush.bf16.msrb.mxu3 %v808_v22  ;;  %v791_v22 = vld [vmem:[%s1224_s0 + $0x7c] sm:$0xf] }
  0x3f   :  { %v651_v30 = vor.u32 %v791_v22, %v648_v25 }
  0x41   :  { %384 = vmatmul.bf16.gmra.mxu0 %v611_v56  ;;  %453 = vmatmul.bf16.vlgmr.msrb.gmra.mxu3 %v663_v57 }
  0x42   :  { %840 = vmatpush.bf16.msra.mxu3 %v879_v2  ;;  %433 = vmatmul.bf16.gmra.mxu1 %v615_v58  ;;  %v630_v2 = vld [vmem:[%s1224_s0 + $0x50] sm:$0xf] }
  0x43   :  { %482 = vmatmul.bf16.gmra.mxu2 %v619_v59  ;;  %v631_v7 = vor.u32 %v787_v3, %v630_v2 }
  0x46   :  { %841 = vmatpush.bf16.msra.mxu3 %v894_v5  ;;  %v675_v5 = vor.u32 %v797_v63, %v672_v0 }
  0x4a   :  { %842 = vmatpush.bf16.msra.mxu3 %v907_v8  ;;  %v634_v8 = vld [vmem:[%s1224_s0 + $0x60] sm:$0xf] }
  0x4b   :  { %v635_v16 = vor.u32 %v789_v9, %v634_v8 }
  0x4e   :  { %843 = vmatpush.bf16.msra.mxu3 %v919_v11  ;;  %v666_v11 = vld [vmem:[%s1224_s0 + $0x98] sm:$0xf] }
  0x51   :  { %389 = vmatmul.bf16.gmra.mxu0 %v623_v4  ;;  %458 = vmatmul.bf16.gmra.mxu3 %v675_v5 }
  0x52   :  { %844 = vmatpush.bf16.msra.mxu3 %v931_v14  ;;  %438 = vmatmul.bf16.gmra.mxu1 %v627_v6  ;;  %v642_v14 = vld [vmem:[%s1224_s0 + $0x68] sm:$0xf] }
  0x53   :  { %487 = vmatmul.bf16.gmra.mxu2 %v631_v7  ;;  %v643_v19 = vor.u32 %v790_v15, %v642_v14 }
  0x56   :  { %845 = vmatpush.bf16.msra.mxu3 %v943_v17  ;;  %v667_v17 = vor.u32 %v796_v12, %v666_v11 }
  0x5a   :  { %846 = vmatpush.bf16.msra.mxu3 %v955_v20  ;;  %v646_v20 = vld [vmem:[%s1224_s0 + $0x78] sm:$0xf] }
  0x5b   :  { %v647_v28 = vor.u32 %v792_v21, %v646_v20 }
  0x5e   :  { %847 = vmatpush.bf16.msra.mxu3 %v966_v23  ;;  %v678_v23 = vld [vmem:[%s1224_s0 + $0xb0] sm:$0xf] }
  0x5f   :  { %v679_v29 = vor.u32 %v799_v24, %v678_v23 }
  0x61   :  { %394 = vmatmul.bf16.gmra.mxu0 %v635_v16  ;;  %502 = vmatmul.bf16.vlgmr.msra.gmra.mxu3 %v667_v17 }
  0x62   :  { %443 = vmatmul.bf16.gmra.mxu1 %v639_v18 }
  0x63   :  { %492 = vmatmul.bf16.gmra.mxu2 %v643_v19 }
  0x71   :  { %399 = vmatmul.bf16.gmra.mxu0 %v647_v28  ;;  %507 = vmatmul.bf16.gmra.mxu3 %v679_v29 }
  0x72   :  { %448 = vmatmul.bf16.gmra.mxu1 %v651_v30 }
  0x73   :  { %497 = vmatmul.bf16.gmra.mxu2 %v655_v31 }
  0x9e   :  { %v375_v32 = vpop.f32.mrf.mxu0 }
  0x9f   :  { %v424_v33 = vpop.f32.mrf.mxu1 }
  0xa0   :  { %v425_v35 = vadd.f32 %v424_v33, %v375_v32 }
  0xa4   :  { %v1127_v36 = vpop.f32.mrf.mxu3 }
  0xa6   :  { %v473_v38 = vpop.f32.mrf.mxu2  ;;  %v377_v41 = vpop.f32.mrf.mxu0 }
  0xa7   :  { %v474_v39 = vadd.f32 %v473_v38, %v425_v35  ;;  %v426_v42 = vpop.f32.mrf.mxu1 }
  0xa8   :  { %v427_v46 = vadd.f32 %v426_v42, %v377_v41 }
  0xa9   :  { %v515_v43 = vmul.f32 %v1129_v37, %v474_v39 }
  0xab   :  { %v532_v44 = vadd.f32 %v1131_v40, %v515_v43 }
  0xac   :  { %v1135_v47 = vpop.f32.mrf.mxu3 }
  0xad   :  { %v548_v45 = vmax.f32 %v532_v44, 0.0 }
  0xae   :  { %v475_v48 = vpop.f32.mrf.mxu2  ;;  %v380_v50 = vpop.f32.mrf.mxu0 }
  0xaf   :  { %564 = vst [vmem:[%s1226_s3] sm:$0xff] %v548_v45  ;;  %v476_v49 = vadd.f32 %v475_v48, %v427_v46  ;;  %v429_v51 = vpop.f32.mrf.mxu1 }
  0xb0   :  { %v430_v54 = vadd.f32 %v429_v51, %v380_v50 }
  0xb1   :  { %v516_v52 = vmul.f32 %v1129_v37, %v476_v49 }
  0xb3   :  { %v533_v53 = vadd.f32 %v1131_v40, %v516_v52 }
  0xb4   :  { %v1142_v56 = vpop.f32.mrf.mxu3 }
  0xb5   :  { %v549_v55 = vmax.f32 %v533_v53, 0.0 }
  0xb6   :  { %v478_v57 = vpop.f32.mrf.mxu2  ;;  %v382_v59 = vpop.f32.mrf.mxu0 }
  0xb7   :  { %565 = vst [vmem:[%s1226_s3 + $0x8] sm:$0xff] %v549_v55  ;;  %v479_v58 = vadd.f32 %v478_v57, %v430_v54  ;;  %v431_v60 = vpop.f32.mrf.mxu1 }
  0xb8   :  { %v432_v0 = vadd.f32 %v431_v60, %v382_v59 }
  0xb9   :  { %v517_v61 = vmul.f32 %v1129_v37, %v479_v58 }
  0xbb   :  { %v534_v62 = vadd.f32 %v1131_v40, %v517_v61 }
  0xbc   :  { %v1149_v1 = vpop.f32.mrf.mxu3 }
  0xbd   :  { %v550_v63 = vmax.f32 %v534_v62, 0.0 }
  0xbe   :  { %v480_v2 = vpop.f32.mrf.mxu2  ;;  %v385_v4 = vpop.f32.mrf.mxu0 }
  0xbf   :  { %566 = vst [vmem:[%s1226_s3 + $0x10] sm:$0xff] %v550_v63  ;;  %v481_v3 = vadd.f32 %v480_v2, %v432_v0  ;;  %v434_v5 = vpop.f32.mrf.mxu1 }
  0xc0   :  { %v435_v8 = vadd.f32 %v434_v5, %v385_v4 }
  0xc1   :  { %v518_v6 = vmul.f32 %v1129_v37, %v481_v3 }
  0xc3   :  { %v535_v7 = vadd.f32 %v1131_v40, %v518_v6 }
  0xc4   :  { %v454_v10 = vpop.f32.mrf.mxu3 }
  0xc5   :  { %v551_v9 = vmax.f32 %v535_v7, 0.0  ;;  %v455_v49 = vadd.f32 %v454_v10, %v1127_v36 }
  0xc6   :  { %v483_v11 = vpop.f32.mrf.mxu2  ;;  %v387_v13 = vpop.f32.mrf.mxu0 }
  0xc7   :  { %567 = vst [vmem:[%s1226_s3 + $0x18] sm:$0xff] %v551_v9  ;;  %v484_v12 = vadd.f32 %v483_v11, %v435_v8  ;;  %v436_v14 = vpop.f32.mrf.mxu1 }
  0xc8   :  { %v437_v18 = vadd.f32 %v436_v14, %v387_v13 }
  0xc9   :  { %v519_v15 = vmul.f32 %v1129_v37, %v484_v12 }
  0xcb   :  { %v536_v16 = vadd.f32 %v1131_v40, %v519_v15 }
  0xcc   :  { %v456_v19 = vpop.f32.mrf.mxu3 }
  0xcd   :  { %v552_v17 = vmax.f32 %v536_v16, 0.0  ;;  %v457_v36 = vadd.f32 %v456_v19, %v1135_v47 }
  0xce   :  { %v485_v20 = vpop.f32.mrf.mxu2  ;;  %v390_v22 = vpop.f32.mrf.mxu0 }
  0xcf   :  { %568 = vst [vmem:[%s1226_s3 + $0x20] sm:$0xff] %v552_v17  ;;  %v486_v21 = vadd.f32 %v485_v20, %v437_v18  ;;  %v439_v23 = vpop.f32.mrf.mxu1 }
  0xd0   :  { %v440_v26 = vadd.f32 %v439_v23, %v390_v22 }
  0xd1   :  { %v520_v24 = vmul.f32 %v1129_v37, %v486_v21 }
  0xd3   :  { %v537_v25 = vadd.f32 %v1131_v40, %v520_v24 }
  0xd4   :  { %v459_v28 = vpop.f32.mrf.mxu3 }
  0xd5   :  { %v553_v27 = vmax.f32 %v537_v25, 0.0  ;;  %v460_v12 = vadd.f32 %v459_v28, %v1142_v56 }
  0xd6   :  { %v488_v29 = vpop.f32.mrf.mxu2  ;;  %v392_v31 = vpop.f32.mrf.mxu0 }
  0xd7   :  { %569 = vst [vmem:[%s1226_s3 + $0x28] sm:$0xff] %v553_v27  ;;  %v489_v30 = vadd.f32 %v488_v29, %v440_v26  ;;  %v441_v32 = vpop.f32.mrf.mxu1 }
  0xd8   :  { %v442_v38 = vadd.f32 %v441_v32, %v392_v31 }
  0xd9   :  { %v521_v33 = vmul.f32 %v1129_v37, %v489_v30 }
  0xdb   :  { %v538_v34 = vadd.f32 %v1131_v40, %v521_v33 }
  0xdc   :  { %v461_v39 = vpop.f32.mrf.mxu3 }
  0xdd   :  { %v554_v35 = vmax.f32 %v538_v34, 0.0  ;;  %v462_v24 = vadd.f32 %v461_v39, %v1149_v1 }
  0xde   :  { %v490_v41 = vpop.f32.mrf.mxu2  ;;  %v395_v43 = vpop.f32.mrf.mxu0 }
  0xdf   :  { %570 = vst [vmem:[%s1226_s3 + $0x30] sm:$0xff] %v554_v35  ;;  %v491_v42 = vadd.f32 %v490_v41, %v442_v38  ;;  %v444_v44 = vpop.f32.mrf.mxu1 }
  0xe0   :  { %v445_v48 = vadd.f32 %v444_v44, %v395_v43 }
  0xe1   :  { %v522_v45 = vmul.f32 %v1129_v37, %v491_v42 }
  0xe3   :  { %v539_v46 = vadd.f32 %v1131_v40, %v522_v45 }
  0xe4   :  { %v503_v51 = vpop.f32.mrf.mxu3 }
  0xe5   :  { %v555_v50 = vmax.f32 %v539_v46, 0.0  ;;  %v504_v53 = vadd.f32 %v503_v51, %v455_v49 }
  0xe6   :  { %v493_v52 = vpop.f32.mrf.mxu2  ;;  %v397_v55 = vpop.f32.mrf.mxu0 }
  0xe7   :  { %571 = vst [vmem:[%s1226_s3 + $0x38] sm:$0xff] %v555_v50  ;;  %v494_v54 = vadd.f32 %v493_v52, %v445_v48  ;;  %v527_v57 = vmul.f32 %v1129_v37, %v504_v53  ;;  %v446_v58 = vpop.f32.mrf.mxu1 }
  0xe8   :  { %v447_v0 = vadd.f32 %v446_v58, %v397_v55 }
  0xe9   :  { %v523_v59 = vmul.f32 %v1129_v37, %v494_v54  ;;  %v544_v60 = vadd.f32 %v1131_v40, %v527_v57 }
  0xeb   :  { %v540_v61 = vadd.f32 %v1131_v40, %v523_v59  ;;  %v560_v62 = vmax.f32 %v544_v60, 0.0 }
  0xec   :  { %v505_v2 = vpop.f32.mrf.mxu3 }
  0xed   :  { %v556_v63 = vmax.f32 %v540_v61, 0.0  ;;  %576 = vst [vmem:[%s1226_s3 + $0x60] sm:$0xff] %v560_v62  ;;  %v506_v4 = vadd.f32 %v505_v2, %v457_v36 }
  0xee   :  { %v495_v3 = vpop.f32.mrf.mxu2  ;;  %v400_v7 = vpop.f32.mrf.mxu0 }
  0xef   :  { %572 = vst [vmem:[%s1226_s3 + $0x40] sm:$0xff] %v556_v63  ;;  %v496_v5 = vadd.f32 %v495_v3, %v447_v0  ;;  %v528_v6 = vmul.f32 %v1129_v37, %v506_v4  ;;  %v449_v8 = vpop.f32.mrf.mxu1 }
  0xf0   :  { %v450_v11 = vadd.f32 %v449_v8, %v400_v7 }
  0xf1   :  { %v524_v47 = vmul.f32 %v1129_v37, %v496_v5  ;;  %v545_v9 = vadd.f32 %v1131_v40, %v528_v6 }
  0xf3   :  { %v541_v10 = vadd.f32 %v1131_v40, %v524_v47  ;;  %v561_v13 = vmax.f32 %v545_v9, 0.0 }
  0xf4   :  { %v508_v15 = vpop.f32.mrf.mxu3 }
  0xf5   :  { %v557_v14 = vmax.f32 %v541_v10, 0.0  ;;  %577 = vst [vmem:[%s1226_s3 + $0x68] sm:$0xff] %v561_v13  ;;  %v509_v17 = vadd.f32 %v508_v15, %v460_v12 }
  0xf6   :  { %v498_v16 = vpop.f32.mrf.mxu2  ;;  %v402_v21 = vpop.f32.mrf.mxu0 }
  0xf7   :  { %573 = vst [vmem:[%s1226_s3 + $0x48] sm:$0xff] %v557_v14  ;;  %v499_v18 = vadd.f32 %v498_v16, %v450_v11  ;;  %v529_v19 = vmul.f32 %v1129_v37, %v509_v17  ;;  %v451_v22 = vpop.f32.mrf.mxu1 }
  0xf8   :  { %v452_v27 = vadd.f32 %v451_v22, %v402_v21 }
  0xf9   :  { %v525_v20 = vmul.f32 %v1129_v37, %v499_v18  ;;  %v546_v56 = vadd.f32 %v1131_v40, %v529_v19 }
  0xfb   :  { %v542_v23 = vadd.f32 %v1131_v40, %v525_v20  ;;  %v562_v25 = vmax.f32 %v546_v56, 0.0 }
  0xfc   :  { %v510_v28 = vpop.f32.mrf.mxu3 }
  0xfd   :  { %v558_v26 = vmax.f32 %v542_v23, 0.0  ;;  %578 = vst [vmem:[%s1226_s3 + $0x70] sm:$0xff] %v562_v25  ;;  %v511_v30 = vadd.f32 %v510_v28, %v462_v24 }
  0xfe   :  { %v500_v29 = vpop.f32.mrf.mxu2 }
  0xff   :  { %574 = vst [vmem:[%s1226_s3 + $0x50] sm:$0xff] %v558_v26  ;;  %v501_v31 = vadd.f32 %v500_v29, %v452_v27  ;;  %v530_v32 = vmul.f32 %v1129_v37, %v511_v30 }
 0x101   :  { %v526_v33 = vmul.f32 %v1129_v37, %v501_v31  ;;  %v547_v1 = vadd.f32 %v1131_v40, %v530_v32 }
 0x103   :  { %v543_v34 = vadd.f32 %v1131_v40, %v526_v33  ;;  %v563_v35 = vmax.f32 %v547_v1, 0.0 }
 0x105   :  { %v559_v38 = vmax.f32 %v543_v34, 0.0  ;;  %579 = vst [vmem:[%s1226_s3 + $0x78] sm:$0xff] %v563_v35 }
 0x107   :  { %575 = vst [vmem:[%s1226_s3 + $0x58] sm:$0xff] %v559_v38 }

// kernel: _lambda_.37
= control target key start
LH: loop header
LB: loop body
LE: loop exit
PB: predicated region body
PF: predicated region fallthrough
CT: control target
= control target key end

     0   :  { %s2526_s9 = smov 0   ;;  %s2877_s0 = inlined_call_operand.vmem [shape: bf16[512,512], index: 0, kind: input, shape index: {}]   ;;  %s2878_s1 = inlined_call_operand.vmem [shape: bf16[512,128], index: 1, kind: input, shape index: {}]   ;;  %s2879_s2 = inlined_call_operand.vmem [shape: f32[512,128], index: 2, kind: output, shape index: {}]  }
   0x1 LB: > { %s1842_s10 = sadd.s32 4294967295, %s2509_s9   ;;  %p1846_p0 = scmp.ge.s32.totalorder %s2509_s9, 1  ;;  %s2509_s9 = sphi %s2526_s9, %s12_s9  }
   0x2   : > { %p114_p1 = scmp.lt.s32.totalorder %s2509_s9, 3 }
   0x4   : > { %p115_p2 = pnand %p1846_p0, %p114_p1 }
   0x5   : > { %s1847_s7 = sshll.u32 (!%p115_p2), %s1842_s10, 5 }
   0x6   : > { %118 = sbr.rel (%p115_p2) target bundleno = 458 (0x1ca), region = 28  ;;  %p138_p3 = scmp.lt.s32.totalorder (!%p115_p2), %s1847_s7, 63 }
   0xb   : > { %v2342_v0 = vld [vmem:[%s2878_s1 + $0x38] sm:$0xff]  ;;  %v2341_v4 = vld [vmem:[%s2878_s1 + $0x30] sm:$0xff]  ;;  %v2340_v8 = vld [vmem:[%s2878_s1 + $0x28] sm:$0xff]  ;;  %s2881_s7 = smov (!%p138_p3, %s1847_s7), 63 }
   0xc   : > { %v2350_v1 = vld [vmem:[%s2878_s1 + $0x78] sm:$0xff]  ;;  %790 = vmatpush.bf16.msra.mxu0 %v2342_v0  ;;  %v2349_v5 = vld [vmem:[%s2878_s1 + $0x70] sm:$0xff]  ;;  %v2348_v9 = vld [vmem:[%s2878_s1 + $0x68] sm:$0xff]  ;;  %s2270_s5 = sshll.u32 %s2881_s7, 4  ;;  %s1851_s27 = sshll.u32 %s2881_s7, 3 }
   0xd   : > { %v2358_v2 = vld [vmem:[%s2878_s1 + $0xb8] sm:$0xff]  ;;  %879 = vmatpush.bf16.msra.mxu1 %v2350_v1  ;;  %v2357_v6 = vld [vmem:[%s2878_s1 + $0xb0] sm:$0xff]  ;;  %v2356_v10 = vld [vmem:[%s2878_s1 + $0xa8] sm:$0xff]  ;;  %s2618_s15 = scalar_lea.vmem %s2877_s0, %s2270_s5  ;;  %s2733_s30 = scalar_lea.vmem %s2879_s2, %s1851_s27 }
   0xe   : > { %v2366_v3 = vld [vmem:[%s2878_s1 + $0xf8] sm:$0xff]  ;;  %968 = vmatpush.bf16.msra.mxu2 %v2358_v2  ;;  %v2365_v7 = vld [vmem:[%s2878_s1 + $0xf0] sm:$0xff]  ;;  %v2364_v11 = vld [vmem:[%s2878_s1 + $0xe8] sm:$0xff] }
   0xf   : > { %1057 = vmatpush.bf16.msra.mxu3 %v2366_v3  ;;  %v2339_v12 = vld [vmem:[%s2878_s1 + $0x20] sm:$0xff]  ;;  %v2338_v16 = vld [vmem:[%s2878_s1 + $0x18] sm:$0xff]  ;;  %v2337_v20 = vld [vmem:[%s2878_s1 + $0x10] sm:$0xff] }
  0x10   : > { %791 = vmatpush.bf16.msra.mxu0 %v2341_v4  ;;  %v2347_v13 = vld [vmem:[%s2878_s1 + $0x60] sm:$0xff]  ;;  %v2346_v17 = vld [vmem:[%s2878_s1 + $0x58] sm:$0xff]  ;;  %v2345_v21 = vld [vmem:[%s2878_s1 + $0x50] sm:$0xff] }
  0x11   : > { %880 = vmatpush.bf16.msra.mxu1 %v2349_v5  ;;  %v2355_v14 = vld [vmem:[%s2878_s1 + $0xa0] sm:$0xff]  ;;  %v2354_v18 = vld [vmem:[%s2878_s1 + $0x98] sm:$0xff]  ;;  %v2353_v22 = vld [vmem:[%s2878_s1 + $0x90] sm:$0xff] }
  0x12   : > { %969 = vmatpush.bf16.msra.mxu2 %v2357_v6  ;;  %v2363_v15 = vld [vmem:[%s2878_s1 + $0xe0] sm:$0xff]  ;;  %v2362_v19 = vld [vmem:[%s2878_s1 + $0xd8] sm:$0xff]  ;;  %v2361_v23 = vld [vmem:[%s2878_s1 + $0xd0] sm:$0xff] }
  0x13   : > { %1058 = vmatpush.bf16.msra.mxu3 %v2365_v7  ;;  %v2336_v24 = vld [vmem:[%s2878_s1 + $0x8] sm:$0xff]  ;;  %v2335_v28 = vld [vmem:[%s2878_s1] sm:$0xff]  ;;  %v2273_v33 = vld [vmem:[%s2618_s15 + $0xc] sm:$0xf0] }
  0x14   : > { %792 = vmatpush.bf16.msra.mxu0 %v2340_v8  ;;  %v2344_v25 = vld [vmem:[%s2878_s1 + $0x48] sm:$0xff]  ;;  %v2343_v29 = vld [vmem:[%s2878_s1 + $0x40] sm:$0xff]  ;;  %v1856_v35 = vld [vmem:[%s2618_s15 + $0x10] sm:$0xf0] }
  0x15   : > { %881 = vmatpush.bf16.msra.mxu1 %v2348_v9  ;;  %v2352_v26 = vld [vmem:[%s2878_s1 + $0x88] sm:$0xff]  ;;  %v2351_v30 = vld [vmem:[%s2878_s1 + $0x80] sm:$0xff]  ;;  %v2274_v37 = vld [vmem:[%s2618_s15 + $0x14] sm:$0xf0] }
  0x16   : > { %970 = vmatpush.bf16.msra.mxu2 %v2356_v10  ;;  %v2360_v27 = vld [vmem:[%s2878_s1 + $0xc8] sm:$0xff]  ;;  %v2359_v31 = vld [vmem:[%s2878_s1 + $0xc0] sm:$0xff]  ;;  %v1864_v39 = vld [vmem:[%s2618_s15 + $0x18] sm:$0xf0] }
  0x17   : > { %1059 = vmatpush.bf16.msra.mxu3 %v2364_v11  ;;  %v1854_v32 = vld [vmem:[%s2618_s15] sm:$0xf]  ;;  %v2271_v34 = vld [vmem:[%s2618_s15 + $0x4] sm:$0xf]  ;;  %v1862_v36 = vld [vmem:[%s2618_s15 + $0x8] sm:$0xf] }
  0x18   : > { %793 = vmatpush.bf16.msra.mxu0 %v2339_v12  ;;  %v2272_v38 = vld [vmem:[%s2618_s15 + $0xc] sm:$0xf]  ;;  %v1855_v40 = vor.u32 %v2273_v33, %v1854_v32  ;;  %v1859_v41 = vor.u32 %v2271_v34, %v1856_v35  ;;  %v1863_v42 = vor.u32 %v2274_v37, %v1862_v36  ;;  %v1870_v44 = vld [vmem:[%s2618_s15 + $0x20] sm:$0xf]  ;;  %v2277_v45 = vld [vmem:[%s2618_s15 + $0x2c] sm:$0xf0] }
  0x19   : > { %882 = vmatpush.bf16.msra.mxu1 %v2347_v13  ;;  %v1867_v43 = vor.u32 %v2272_v38, %v1864_v39  ;;  %v2275_v46 = vld [vmem:[%s2618_s15 + $0x24] sm:$0xf]  ;;  %v1872_v47 = vld [vmem:[%s2618_s15 + $0x30] sm:$0xf0]  ;;  %v1878_v48 = vld [vmem:[%s2618_s15 + $0x28] sm:$0xf]  ;;  %v1871_v52 = vor.u32 %v2277_v45, %v1870_v44 }
  0x1a   : > { %971 = vmatpush.bf16.msra.mxu2 %v2355_v14  ;;  %v2278_v49 = vld [vmem:[%s2618_s15 + $0x34] sm:$0xf0]  ;;  %v2276_v50 = vld [vmem:[%s2618_s15 + $0x2c] sm:$0xf]  ;;  %v1880_v51 = vld [vmem:[%s2618_s15 + $0x38] sm:$0xf0]  ;;  %v1875_v53 = vor.u32 %v2275_v46, %v1872_v47 }
  0x1b   : > { %1060 = vmatpush.bf16.msra.mxu3 %v2363_v15  ;;  %v1879_v54 = vor.u32 %v2278_v49, %v1878_v48  ;;  %v1883_v55 = vor.u32 %v2276_v50, %v1880_v51  ;;  %v1886_v56 = vld [vmem:[%s2618_s15 + $0x40] sm:$0xf]  ;;  %v2281_v57 = vld [vmem:[%s2618_s15 + $0x4c] sm:$0xf0]  ;;  %v2279_v58 = vld [vmem:[%s2618_s15 + $0x44] sm:$0xf] }
  0x1c   : > { %794 = vmatpush.bf16.msra.mxu0 %v2338_v16  ;;  %v1888_v59 = vld [vmem:[%s2618_s15 + $0x50] sm:$0xf0]  ;;  %v1894_v60 = vld [vmem:[%s2618_s15 + $0x48] sm:$0xf]  ;;  %v2282_v61 = vld [vmem:[%s2618_s15 + $0x54] sm:$0xf0]  ;;  %v1887_v0 = vor.u32 %v2281_v57, %v1886_v56 }
  0x1d   : > { %883 = vmatpush.bf16.msra.mxu1 %v2346_v17  ;;  %v2280_v62 = vld [vmem:[%s2618_s15 + $0x4c] sm:$0xf]  ;;  %v1896_v63 = vld [vmem:[%s2618_s15 + $0x58] sm:$0xf0]  ;;  %v1891_v1 = vor.u32 %v2279_v58, %v1888_v59  ;;  %v1895_v2 = vor.u32 %v2282_v61, %v1894_v60  ;;  %v1902_v4 = vld [vmem:[%s2618_s15 + $0x60] sm:$0xf] }
  0x1e   : > { %972 = vmatpush.bf16.msra.mxu2 %v2354_v18  ;;  %v1899_v3 = vor.u32 %v2280_v62, %v1896_v63  ;;  %v2285_v5 = vld [vmem:[%s2618_s15 + $0x6c] sm:$0xf0]  ;;  %v2283_v6 = vld [vmem:[%s2618_s15 + $0x64] sm:$0xf]  ;;  %v1904_v7 = vld [vmem:[%s2618_s15 + $0x70] sm:$0xf0] }
  0x1f   : > { %1061 = vmatpush.bf16.msra.mxu3 %v2362_v19  ;;  %v1910_v8 = vld [vmem:[%s2618_s15 + $0x68] sm:$0xf]  ;;  %v2286_v9 = vld [vmem:[%s2618_s15 + $0x74] sm:$0xf0]  ;;  %v2284_v10 = vld [vmem:[%s2618_s15 + $0x6c] sm:$0xf]  ;;  %v1903_v12 = vor.u32 %v2285_v5, %v1902_v4  ;;  %v1907_v13 = vor.u32 %v2283_v6, %v1904_v7 }
  0x20   : > { %795 = vmatpush.bf16.msra.mxu0 %v2337_v20  ;;  %v1912_v11 = vld [vmem:[%s2618_s15 + $0x78] sm:$0xf0]  ;;  %v1911_v14 = vor.u32 %v2286_v9, %v1910_v8  ;;  %v1918_v16 = vld [vmem:[%s2618_s15 + $0x80] sm:$0xf]  ;;  %v2289_v17 = vld [vmem:[%s2618_s15 + $0x8c] sm:$0xf0] }
  0x21   : > { %884 = vmatpush.bf16.msra.mxu1 %v2345_v21  ;;  %v1915_v15 = vor.u32 %v2284_v10, %v1912_v11  ;;  %v2287_v18 = vld [vmem:[%s2618_s15 + $0x84] sm:$0xf]  ;;  %v1920_v19 = vld [vmem:[%s2618_s15 + $0x90] sm:$0xf0]  ;;  %v1926_v20 = vld [vmem:[%s2618_s15 + $0x88] sm:$0xf] }
  0x22   : > { %973 = vmatpush.bf16.msra.mxu2 %v2353_v22  ;;  %v2290_v21 = vld [vmem:[%s2618_s15 + $0x94] sm:$0xf0]  ;;  %v2288_v22 = vld [vmem:[%s2618_s15 + $0x8c] sm:$0xf]  ;;  %v1942_v32 = vld [vmem:[%s2618_s15 + $0xa8] sm:$0xf] }
  0x23   : > { %1062 = vmatpush.bf16.msra.mxu3 %v2361_v23  ;;  %v1928_v23 = vld [vmem:[%s2618_s15 + $0x98] sm:$0xf0]  ;;  %v2294_v33 = vld [vmem:[%s2618_s15 + $0xb4] sm:$0xf0]  ;;  %v2292_v34 = vld [vmem:[%s2618_s15 + $0xac] sm:$0xf] }
  0x24   : > { %796 = vmatpush.bf16.msra.mxu0 %v2336_v24  ;;  %v1919_v24 = vor.u32 %v2289_v17, %v1918_v16  ;;  %v1944_v35 = vld [vmem:[%s2618_s15 + $0xb8] sm:$0xf0]  ;;  %v1943_v38 = vor.u32 %v2294_v33, %v1942_v32  ;;  %v1958_v44 = vld [vmem:[%s2618_s15 + $0xc8] sm:$0xf]  ;;  %v2298_v45 = vld [vmem:[%s2618_s15 + $0xd4] sm:$0xf0] }
  0x25   : > { %885 = vmatpush.bf16.msra.mxu1 %v2344_v25  ;;  %v1923_v25 = vor.u32 %v2287_v18, %v1920_v19  ;;  %v1947_v39 = vor.u32 %v2292_v34, %v1944_v35  ;;  %v2296_v46 = vld [vmem:[%s2618_s15 + $0xcc] sm:$0xf]  ;;  %v1960_v47 = vld [vmem:[%s2618_s15 + $0xd8] sm:$0xf0]  ;;  %v1959_v50 = vor.u32 %v2298_v45, %v1958_v44  ;;  %v1974_v56 = vld [vmem:[%s2618_s15 + $0xe8] sm:$0xf] }
  0x26   : > { %974 = vmatpush.bf16.msra.mxu2 %v2352_v26  ;;  %v1927_v26 = vor.u32 %v2290_v21, %v1926_v20  ;;  %v1963_v51 = vor.u32 %v2296_v46, %v1960_v47  ;;  %v2302_v57 = vld [vmem:[%s2618_s15 + $0xf4] sm:$0xf0]  ;;  %v2300_v58 = vld [vmem:[%s2618_s15 + $0xec] sm:$0xf]  ;;  %v1976_v59 = vld [vmem:[%s2618_s15 + $0xf8] sm:$0xf0] }
  0x27   : > { %1063 = vmatpush.bf16.msra.mxu3 %v2360_v27  ;;  %v1931_v27 = vor.u32 %v2288_v22, %v1928_v23  ;;  %v1975_v62 = vor.u32 %v2302_v57, %v1974_v56  ;;  %v1979_v63 = vor.u32 %v2300_v58, %v1976_v59  ;;  %v1990_v4 = vld [vmem:[%s2618_s15 + $0x108] sm:$0xf]  ;;  %v2306_v5 = vld [vmem:[%s2618_s15 + $0x114] sm:$0xf0]  ;;  %v2304_v6 = vld [vmem:[%s2618_s15 + $0x10c] sm:$0xf] }
  0x28   : > { %797 = vmatpush.bf16.msra.mxu0 %v2335_v28  ;;  %v1934_v28 = vld [vmem:[%s2618_s15 + $0xa0] sm:$0xf]  ;;  %v1992_v7 = vld [vmem:[%s2618_s15 + $0x118] sm:$0xf0]  ;;  %v2309_v22 = vld [vmem:[%s2618_s15 + $0x12c] sm:$0xf0] }
  0x29   : > { %886 = vmatpush.bf16.msra.mxu1 %v2343_v29  ;;  %v2293_v29 = vld [vmem:[%s2618_s15 + $0xac] sm:$0xf0]  ;;  %v1998_v21 = vld [vmem:[%s2618_s15 + $0x120] sm:$0xf]  ;;  %v2307_v23 = vld [vmem:[%s2618_s15 + $0x124] sm:$0xf] }
  0x2a   : > { %975 = vmatpush.bf16.msra.mxu2 %v2351_v30  ;;  %v2291_v30 = vld [vmem:[%s2618_s15 + $0xa4] sm:$0xf]  ;;  %v1935_v36 = vor.u32 %v2293_v29, %v1934_v28  ;;  %v2308_v28 = vld [vmem:[%s2618_s15 + $0x12c] sm:$0xf]  ;;  %v2008_v29 = vld [vmem:[%s2618_s15 + $0x138] sm:$0xf0]  ;;  %v1999_v33 = vor.u32 %v2309_v22, %v1998_v21 }
  0x2b   : > { %1064 = vmatpush.bf16.msra.mxu3 %v2359_v31  ;;  %798 = vmatmul.bf16.vlgmr.msra.gmra.mxu0 %v1855_v40  ;;  %v1936_v31 = vld [vmem:[%s2618_s15 + $0xb0] sm:$0xf0]  ;;  %v1950_v40 = vld [vmem:[%s2618_s15 + $0xc0] sm:$0xf]  ;;  %v2022_v57 = vld [vmem:[%s2618_s15 + $0x148] sm:$0xf] }
  0x2c   : > { %887 = vmatmul.bf16.vlgmr.msra.gmra.mxu1 %v1859_v41  ;;  %v1939_v37 = vor.u32 %v2291_v30, %v1936_v31  ;;  %v2297_v41 = vld [vmem:[%s2618_s15 + $0xcc] sm:$0xf0]  ;;  %v2314_v58 = vld [vmem:[%s2618_s15 + $0x154] sm:$0xf0] }
  0x2d   : > { %976 = vmatmul.bf16.vlgmr.msra.gmra.mxu2 %v1863_v42  ;;  %v2295_v42 = vld [vmem:[%s2618_s15 + $0xc4] sm:$0xf]  ;;  %v1951_v48 = vor.u32 %v2297_v41, %v1950_v40 }
  0x2e   : > { %1065 = vmatmul.bf16.vlgmr.msra.gmra.mxu3 %v1867_v43  ;;  %v1952_v43 = vld [vmem:[%s2618_s15 + $0xd0] sm:$0xf0] }
  0x2f   : > { %v1955_v49 = vor.u32 %v2295_v42, %v1952_v43 }
  0x3b   : > { %803 = vmatmul.bf16.gmra.mxu0 %v1871_v52  ;;  %v1966_v52 = vld [vmem:[%s2618_s15 + $0xe0] sm:$0xf] }
  0x3c   : > { %892 = vmatmul.bf16.gmra.mxu1 %v1875_v53  ;;  %v2301_v53 = vld [vmem:[%s2618_s15 + $0xec] sm:$0xf0] }
  0x3d   : > { %981 = vmatmul.bf16.gmra.mxu2 %v1879_v54  ;;  %v2299_v54 = vld [vmem:[%s2618_s15 + $0xe4] sm:$0xf]  ;;  %v1967_v60 = vor.u32 %v2301_v53, %v1966_v52  ;;  %v2313_v52 = vld [vmem:[%s2618_s15 + $0x14c] sm:$0xf0] }
  0x3e   : > { %1070 = vmatmul.bf16.gmra.mxu3 %v1883_v55  ;;  %v1968_v55 = vld [vmem:[%s2618_s15 + $0xf0] sm:$0xf0]  ;;  %v2311_v53 = vld [vmem:[%s2618_s15 + $0x144] sm:$0xf] }
  0x3f   : > { %v1971_v61 = vor.u32 %v2299_v54, %v1968_v55  ;;  %v2016_v54 = vld [vmem:[%s2618_s15 + $0x150] sm:$0xf0] }
  0x4b   : > { %808 = vmatmul.bf16.gmra.mxu0 %v1887_v0  ;;  %v1982_v0 = vld [vmem:[%s2618_s15 + $0x100] sm:$0xf] }
  0x4c   : > { %897 = vmatmul.bf16.gmra.mxu1 %v1891_v1  ;;  %v2305_v1 = vld [vmem:[%s2618_s15 + $0x10c] sm:$0xf0] }
  0x4d   : > { %986 = vmatmul.bf16.gmra.mxu2 %v1895_v2  ;;  %v2303_v2 = vld [vmem:[%s2618_s15 + $0x104] sm:$0xf]  ;;  %v1983_v8 = vor.u32 %v2305_v1, %v1982_v0 }
  0x4e   : > { %1075 = vmatmul.bf16.gmra.mxu3 %v1899_v3  ;;  %v1984_v3 = vld [vmem:[%s2618_s15 + $0x110] sm:$0xf0] }
  0x4f   : > { %v1987_v9 = vor.u32 %v2303_v2, %v1984_v3 }
  0x5b   : > { %813 = vmatmul.bf16.gmra.mxu0 %v1903_v12  ;;  %v1991_v12 = vor.u32 %v2306_v5, %v1990_v4  ;;  %v2019_v4 = vor.u32 %v2311_v53, %v2016_v54 }
  0x5c   : > { %902 = vmatmul.bf16.gmra.mxu1 %v1907_v13  ;;  %v1995_v13 = vor.u32 %v2304_v6, %v1992_v7 }
  0x5d   : > { %991 = vmatmul.bf16.gmra.mxu2 %v1911_v14 }
  0x5e   : > { %1080 = vmatmul.bf16.gmra.mxu3 %v1915_v15 }
  0x6b   : > { %818 = vmatmul.bf16.gmra.mxu0 %v1919_v24 }
  0x6c   : > { %907 = vmatmul.bf16.gmra.mxu1 %v1923_v25  ;;  %v2000_v25 = vld [vmem:[%s2618_s15 + $0x130] sm:$0xf0] }
  0x6d   : > { %996 = vmatmul.bf16.gmra.mxu2 %v1927_v26  ;;  %v2006_v26 = vld [vmem:[%s2618_s15 + $0x128] sm:$0xf]  ;;  %v2003_v34 = vor.u32 %v2307_v23, %v2000_v25 }
  0x6e   : > { %1085 = vmatmul.bf16.gmra.mxu3 %v1931_v27  ;;  %v2310_v27 = vld [vmem:[%s2618_s15 + $0x134] sm:$0xf0] }
  0x7b   : > { %823 = vmatmul.bf16.gmra.mxu0 %v1935_v36 }
  0x7c   : > { %912 = vmatmul.bf16.gmra.mxu1 %v1939_v37 }
  0x7d   : > { %1001 = vmatmul.bf16.gmra.mxu2 %v1943_v38  ;;  %v2007_v38 = vor.u32 %v2310_v27, %v2006_v26 }
  0x7e   : > { %1090 = vmatmul.bf16.gmra.mxu3 %v1947_v39  ;;  %v2011_v39 = vor.u32 %v2308_v28, %v2008_v29 }
  0x8b   : > { %828 = vmatmul.bf16.gmra.mxu0 %v1951_v48 }
  0x8c   : > { %917 = vmatmul.bf16.gmra.mxu1 %v1955_v49 }
  0x8d   : > { %1006 = vmatmul.bf16.gmra.mxu2 %v1959_v50 }
  0x8e   : > { %1095 = vmatmul.bf16.gmra.mxu3 %v1963_v51  ;;  %v2014_v51 = vld [vmem:[%s2618_s15 + $0x140] sm:$0xf] }
  0x8f   : > { %v2015_v3 = vor.u32 %v2313_v52, %v2014_v51 }
  0x9b   : > { %833 = vmatmul.bf16.gmra.mxu0 %v1967_v60 }
  0x9c   : > { %922 = vmatmul.bf16.gmra.mxu1 %v1971_v61  ;;  %v2312_v61 = vld [vmem:[%s2618_s15 + $0x14c] sm:$0xf] }
  0x9d   : > { %1011 = vmatmul.bf16.gmra.mxu2 %v1975_v62  ;;  %v2024_v62 = vld [vmem:[%s2618_s15 + $0x158] sm:$0xf0] }
  0x9e   : > { %1100 = vmatmul.bf16.gmra.mxu3 %v1979_v63 }
  0xa8   : > { %v799_v10 = vpop.f32.mrf.mxu0 }
  0xa9   : > { %v888_v11 = vpop.f32.mrf.mxu1 }
  0xaa   : > { %v889_v14 = vadd.f32 %v888_v11, %v799_v10  ;;  %v2027_v10 = vor.u32 %v2312_v61, %v2024_v62 }
  0xab   : > { %838 = vmatmul.bf16.gmra.mxu0 %v1983_v8 }
  0xac   : > { %927 = vmatmul.bf16.gmra.mxu1 %v1987_v9  ;;  %v2023_v9 = vor.u32 %v2314_v58, %v2022_v57 }
  0xad   : > { %1016 = vmatmul.bf16.gmra.mxu2 %v1991_v12 }
  0xae   : > { %1105 = vmatmul.bf16.gmra.mxu3 %v1995_v13 }
  0xb0   : > { %v977_v15 = vpop.f32.mrf.mxu2  ;;  %v801_v18 = vpop.f32.mrf.mxu0 }
  0xb1   : > { %v1066_v16 = vpop.f32.mrf.mxu3  ;;  %v978_v17 = vadd.f32 %v977_v15, %v889_v14  ;;  %v890_v19 = vpop.f32.mrf.mxu1 }
  0xb2   : > { %v891_v30 = vadd.f32 %v890_v19, %v801_v18 }
  0xb3   : > { %v1067_v20 = vadd.f32 %v1066_v16, %v978_v17 }
  0xb5   : > { %v2236_v24 = vmul.f32 -1.442695, %v1067_v20 }
  0xb7   : > { %2375 = vpow2.f32 %v2236_v24 }
  0xb8   : > { %v979_v31 = vpop.f32.mrf.mxu2  ;;  %v804_v36 = vpop.f32.mrf.mxu0 }
  0xb9   : > { %v1068_v32 = vpop.f32.mrf.mxu3  ;;  %v980_v35 = vadd.f32 %v979_v31, %v891_v30  ;;  %v893_v37 = vpop.f32.mrf.mxu1 }
  0xba   : > { %v894_v43 = vadd.f32 %v893_v37, %v804_v36  ;;  %v2317_v36 = vld [vmem:[%s2618_s15 + $0x16c] sm:$0xf0]  ;;  %v2315_v37 = vld [vmem:[%s2618_s15 + $0x164] sm:$0xf] }
  0xbb   : > { %v1069_v40 = vadd.f32 %v1068_v32, %v980_v35  ;;  %843 = vmatmul.bf16.gmra.mxu0 %v1999_v33  ;;  %v2030_v35 = vld [vmem:[%s2618_s15 + $0x160] sm:$0xf] }
  0xbc   : > { %932 = vmatmul.bf16.gmra.mxu1 %v2003_v34 }
  0xbd   : > { %v2376_v41 = vpop.eup %2375  ;;  %v2237_v42 = vmul.f32 -1.442695, %v1069_v40  ;;  %1021 = vmatmul.bf16.gmra.mxu2 %v2007_v38  ;;  %v2032_v38 = vld [vmem:[%s2618_s15 + $0x170] sm:$0xf0] }
  0xbe   : > { %1110 = vmatmul.bf16.gmra.mxu3 %v2011_v39  ;;  %v1242_v44 = vadd.f32 1.0, %v2376_v41  ;;  %v2038_v39 = vld [vmem:[%s2618_s15 + $0x168] sm:$0xf] }
  0xbf   : > { %2377 = vpow2.f32 %v2237_v42 }
  0xc0   : > { %2379 = vrcp.f32 %v1242_v44  ;;  %v982_v45 = vpop.f32.mrf.mxu2  ;;  %v806_v48 = vpop.f32.mrf.mxu0  ;;  %v1285_v11 = vand.u32 2147483648, %v1242_v44  ;;  %v1283_v13 = vand.u32 2147483647, %v1242_v44  ;;  %vm1279_vm1 = vweird.f32 %v1242_v44 }
  0xc1   : > { %v1071_v46 = vpop.f32.mrf.mxu3  ;;  %v983_v47 = vadd.f32 %v982_v45, %v894_v43  ;;  %v895_v49 = vpop.f32.mrf.mxu1  ;;  %v2318_v43 = vld [vmem:[%s2618_s15 + $0x174] sm:$0xf0] }
  0xc2   : > { %v896_v0 = vadd.f32 %v895_v49, %v806_v48  ;;  %v1286_v20 = vor.u32 1.1754944e-38, %v1285_v11  ;;  %vm1284_vm3 = vcmp.eq.f32.partialorder %v1283_v13, 8.507059e+37  ;;  %v2040_v48 = vld [vmem:[%s2618_s15 + $0x178] sm:$0xf0]  ;;  %v2039_v61 = vor.u32 %v2318_v43, %v2038_v39 }
  0xc3   : > { %v1072_v50 = vadd.f32 %v1071_v46, %v983_v47 }
  0xc5   : > { %v2378_v55 = vpop.eup %2377  ;;  %v2238_v56 = vmul.f32 -1.442695, %v1072_v50 }
  0xc6   : > { %v2380_v59 = vpop.eup %2379  ;;  %v2724_v60 = vadd.f32 1.0, %v2378_v55  ;;  %v2031_v55 = vor.u32 %v2317_v36, %v2030_v35  ;;  %v2056_v36 = vld [vmem:[%s2618_s15 + $0x198] sm:$0xf0] }
  0xc7   : > { %v1275_v63 = vmul.f32 %v2380_v59, %v1242_v44  ;;  %2381 = vpow2.f32 %v2238_v56  ;;  %vm1280_vm0 = vweird.f32 %v2380_v59  ;;  %v2316_v44 = vld [vmem:[%s2618_s15 + $0x16c] sm:$0xf]  ;;  %v2035_v56 = vor.u32 %v2315_v37, %v2032_v38 }
  0xc8   : > { %2383 = vrcp.f32 %v2724_v60  ;;  %v984_v1 = vpop.f32.mrf.mxu2  ;;  %v809_v7 = vpop.f32.mrf.mxu0  ;;  %vm1281_vm2 = vmor %vm1279_vm1, %vm1280_vm0  ;;  %v1298_v31 = vand.u32 2147483647, %v2724_v60  ;;  %v1300_v32 = vand.u32 2147483648, %v2724_v60  ;;  %vm1294_vm5 = vweird.f32 %v2724_v60 }
  0xc9   : > { %v1073_v2 = vpop.f32.mrf.mxu3  ;;  %v1276_v5 = vsub.f32 1.0, %v1275_v63  ;;  %v985_v6 = vadd.f32 %v984_v1, %v896_v0  ;;  %v898_v8 = vpop.f32.mrf.mxu1  ;;  %v2043_v62 = vor.u32 %v2316_v44, %v2040_v48 }
  0xca   : > { %v899_v18 = vadd.f32 %v898_v8, %v809_v7  ;;  %vm1299_vm7 = vcmp.eq.f32.partialorder %v1298_v31, 8.507059e+37  ;;  %v1301_v46 = vor.u32 1.1754944e-38, %v1300_v32  ;;  %v2322_v31 = vld [vmem:[%s2618_s15 + $0x194] sm:$0xf0]  ;;  %v2320_v32 = vld [vmem:[%s2618_s15 + $0x18c] sm:$0xf] }
  0xcb   : > { %v1277_v12 = vmul.f32 %v2380_v59, %v1276_v5  ;;  %v1074_v14 = vadd.f32 %v1073_v2, %v985_v6  ;;  %848 = vmatmul.bf16.gmra.mxu0 %v2015_v3 }
  0xcc   : > { %937 = vmatmul.bf16.gmra.mxu1 %v2019_v4 }
  0xcd   : > { %v2382_v15 = vpop.eup %2381  ;;  %v1278_v16 = vadd.f32 %v2380_v59, %v1277_v12  ;;  %v2239_v17 = vmul.f32 -1.442695, %v1074_v14  ;;  %1026 = vmatmul.bf16.gmra.mxu2 %v2023_v9 }
  0xce   : > { %1115 = vmatmul.bf16.gmra.mxu3 %v2027_v10  ;;  %v2384_v19 = vpop.eup %2383  ;;  %v2735_v21 = vadd.f32 1.0, %v2382_v15 }
  0xcf   : > { %v1282_v22 = vsel %vm1281_vm2, %v2380_v59, %v1278_v16  ;;  %v1290_v23 = vmul.f32 %v2384_v19, %v2724_v60  ;;  %2385 = vpow2.f32 %v2239_v17  ;;  %vm1295_vm4 = vweird.f32 %v2384_v19 }
  0xd0   : > { %v1287_v24 = vsel %vm1284_vm3, %v1286_v20, %v1282_v22  ;;  %2387 = vrcp.f32 %v2735_v21  ;;  %v987_v25 = vpop.f32.mrf.mxu2  ;;  %v811_v29 = vpop.f32.mrf.mxu0  ;;  %vm1296_vm6 = vmor %vm1294_vm5, %vm1295_vm4  ;;  %v1315_v63 = vand.u32 2147483648, %v2735_v21  ;;  %v1313_v1 = vand.u32 2147483647, %v2735_v21 }
  0xd1   : > { %v1076_v26 = vpop.f32.mrf.mxu3  ;;  %1754 = vst [vmem:[%s2733_s30] sm:$0xff] %v1287_v24  ;;  %v1291_v27 = vsub.f32 1.0, %v1290_v23  ;;  %v988_v28 = vadd.f32 %v987_v25, %v899_v18  ;;  %v900_v30 = vpop.f32.mrf.mxu1  ;;  %vm1309_vm9 = vweird.f32 %v2735_v21  ;;  %v2046_v23 = vld [vmem:[%s2618_s15 + $0x180] sm:$0xf]  ;;  %v2321_v24 = vld [vmem:[%s2618_s15 + $0x18c] sm:$0xf0] }
  0xd2   : > { %v901_v51 = vadd.f32 %v900_v30, %v811_v29  ;;  %v1316_v8 = vor.u32 1.1754944e-38, %v1315_v63  ;;  %vm1314_vm11 = vcmp.eq.f32.partialorder %v1313_v1, 8.507059e+37  ;;  %v2319_v25 = vld [vmem:[%s2618_s15 + $0x184] sm:$0xf]  ;;  %v2047_v43 = vor.u32 %v2321_v24, %v2046_v23  ;;  %v2072_v24 = vld [vmem:[%s2618_s15 + $0x1b8] sm:$0xf0] }
  0xd3   : > { %v1292_v33 = vmul.f32 %v2384_v19, %v1291_v27  ;;  %v1077_v34 = vadd.f32 %v1076_v26, %v988_v28  ;;  %v2048_v26 = vld [vmem:[%s2618_s15 + $0x190] sm:$0xf0]  ;;  %v2054_v27 = vld [vmem:[%s2618_s15 + $0x188] sm:$0xf] }
  0xd4   : > { %v2051_v44 = vor.u32 %v2319_v25, %v2048_v26 }
  0xd5   : > { %v2386_v40 = vpop.eup %2385  ;;  %v1293_v41 = vadd.f32 %v2384_v19, %v1292_v33  ;;  %v2240_v42 = vmul.f32 -1.442695, %v1077_v34 }
  0xd6   : > { %v2388_v45 = vpop.eup %2387  ;;  %v2750_v47 = vadd.f32 1.0, %v2386_v40 }
  0xd7   : > { %v1297_v49 = vsel %vm1296_vm6, %v2384_v19, %v1293_v41  ;;  %v1305_v50 = vmul.f32 %v2388_v45, %v2735_v21  ;;  %2389 = vpow2.f32 %v2240_v42  ;;  %vm1310_vm8 = vweird.f32 %v2388_v45 }
  0xd8   : > { %v1302_v52 = vsel %vm1299_vm7, %v1301_v46, %v1297_v49  ;;  %2391 = vrcp.f32 %v2750_v47  ;;  %v989_v53 = vpop.f32.mrf.mxu2  ;;  %v814_v59 = vpop.f32.mrf.mxu0  ;;  %vm1311_vm10 = vmor %vm1309_vm9, %vm1310_vm8  ;;  %v1328_v19 = vand.u32 2147483647, %v2750_v47  ;;  %v1330_v20 = vand.u32 2147483648, %v2750_v47 }
  0xd9   : > { %v1078_v54 = vpop.f32.mrf.mxu3  ;;  %1755 = vst [vmem:[%s2733_s30 + $0x8] sm:$0xff] %v1302_v52  ;;  %v1306_v57 = vsub.f32 1.0, %v1305_v50  ;;  %v990_v58 = vadd.f32 %v989_v53, %v901_v51  ;;  %v903_v60 = vpop.f32.mrf.mxu1  ;;  %vm1324_vm13 = vweird.f32 %v2750_v47  ;;  %v2055_v49 = vor.u32 %v2322_v31, %v2054_v27 }
  0xda   : > { %v904_v6 = vadd.f32 %v903_v60, %v814_v59  ;;  %vm1329_vm15 = vcmp.eq.f32.partialorder %v1328_v19, 8.507059e+37  ;;  %v1331_v34 = vor.u32 1.1754944e-38, %v1330_v20  ;;  %v2059_v50 = vor.u32 %v2320_v32, %v2056_v36  ;;  %v2326_v19 = vld [vmem:[%s2618_s15 + $0x1b4] sm:$0xf0]  ;;  %v2324_v20 = vld [vmem:[%s2618_s15 + $0x1ac] sm:$0xf] }
  0xdb   : > { %v1307_v0 = vmul.f32 %v2388_v45, %v1306_v57  ;;  %v1079_v2 = vadd.f32 %v1078_v54, %v990_v58  ;;  %853 = vmatmul.bf16.gmra.mxu0 %v2031_v55 }
  0xdc   : > { %942 = vmatmul.bf16.gmra.mxu1 %v2035_v56 }
  0xdd   : > { %v2390_v3 = vpop.eup %2389  ;;  %v1308_v4 = vadd.f32 %v2388_v45, %v1307_v0  ;;  %v2241_v5 = vmul.f32 -1.442695, %v1079_v2  ;;  %1031 = vmatmul.bf16.gmra.mxu2 %v2039_v61 }
  0xde   : > { %1120 = vmatmul.bf16.gmra.mxu3 %v2043_v62  ;;  %v2392_v7 = vpop.eup %2391  ;;  %v2759_v9 = vadd.f32 1.0, %v2390_v3 }
  0xdf   : > { %v1312_v10 = vsel %vm1311_vm10, %v2388_v45, %v1308_v4  ;;  %v1320_v11 = vmul.f32 %v2392_v7, %v2750_v47  ;;  %2393 = vpow2.f32 %v2241_v5  ;;  %vm1325_vm12 = vweird.f32 %v2392_v7 }
  0xe0   : > { %v1317_v12 = vsel %vm1314_vm11, %v1316_v8, %v1312_v10  ;;  %2395 = vrcp.f32 %v2759_v9  ;;  %v992_v13 = vpop.f32.mrf.mxu2  ;;  %v816_v17 = vpop.f32.mrf.mxu0  ;;  %vm1326_vm14 = vmor %vm1324_vm13, %vm1325_vm12  ;;  %v1345_v51 = vand.u32 2147483648, %v2759_v9  ;;  %v1343_v53 = vand.u32 2147483647, %v2759_v9 }
  0xe1   : > { %v1081_v14 = vpop.f32.mrf.mxu3  ;;  %1756 = vst [vmem:[%s2733_s30 + $0x10] sm:$0xff] %v1317_v12  ;;  %v1321_v15 = vsub.f32 1.0, %v1320_v11  ;;  %v993_v16 = vadd.f32 %v992_v13, %v904_v6  ;;  %v905_v18 = vpop.f32.mrf.mxu1  ;;  %vm1339_vm1 = vweird.f32 %v2759_v9  ;;  %v2062_v11 = vld [vmem:[%s2618_s15 + $0x1a0] sm:$0xf]  ;;  %v2325_v12 = vld [vmem:[%s2618_s15 + $0x1ac] sm:$0xf0] }
  0xe2   : > { %v906_v39 = vadd.f32 %v905_v18, %v816_v17  ;;  %v1346_v60 = vor.u32 1.1754944e-38, %v1345_v51  ;;  %vm1344_vm3 = vcmp.eq.f32.partialorder %v1343_v53, 8.507059e+37  ;;  %v2323_v13 = vld [vmem:[%s2618_s15 + $0x1a4] sm:$0xf]  ;;  %v2063_v31 = vor.u32 %v2325_v12, %v2062_v11  ;;  %v2088_v12 = vld [vmem:[%s2618_s15 + $0x1d8] sm:$0xf0] }
  0xe3   : > { %v1322_v21 = vmul.f32 %v2392_v7, %v1321_v15  ;;  %v1082_v22 = vadd.f32 %v1081_v14, %v993_v16  ;;  %v2064_v14 = vld [vmem:[%s2618_s15 + $0x1b0] sm:$0xf0]  ;;  %v2070_v15 = vld [vmem:[%s2618_s15 + $0x1a8] sm:$0xf] }
  0xe4   : > { %v2067_v32 = vor.u32 %v2323_v13, %v2064_v14 }
  0xe5   : > { %v2394_v28 = vpop.eup %2393  ;;  %v1323_v29 = vadd.f32 %v2392_v7, %v1322_v21  ;;  %v2242_v30 = vmul.f32 -1.442695, %v1082_v22 }
  0xe6   : > { %v2396_v33 = vpop.eup %2395  ;;  %v2774_v35 = vadd.f32 1.0, %v2394_v28 }
  0xe7   : > { %v1327_v37 = vsel %vm1326_vm14, %v2392_v7, %v1323_v29  ;;  %v1335_v38 = vmul.f32 %v2396_v33, %v2759_v9  ;;  %2397 = vpow2.f32 %v2242_v30  ;;  %vm1340_vm0 = vweird.f32 %v2396_v33 }
  0xe8   : > { %v1332_v40 = vsel %vm1329_vm15, %v1331_v34, %v1327_v37  ;;  %2399 = vrcp.f32 %v2774_v35  ;;  %v994_v41 = vpop.f32.mrf.mxu2  ;;  %v819_v47 = vpop.f32.mrf.mxu0  ;;  %vm1341_vm2 = vmor %vm1339_vm1, %vm1340_vm0  ;;  %v1358_v7 = vand.u32 2147483647, %v2774_v35  ;;  %v1360_v8 = vand.u32 2147483648, %v2774_v35 }
  0xe9   : > { %v1083_v42 = vpop.f32.mrf.mxu3  ;;  %1757 = vst [vmem:[%s2733_s30 + $0x18] sm:$0xff] %v1332_v40  ;;  %v1336_v45 = vsub.f32 1.0, %v1335_v38  ;;  %v995_v46 = vadd.f32 %v994_v41, %v906_v39  ;;  %v908_v48 = vpop.f32.mrf.mxu1  ;;  %vm1354_vm5 = vweird.f32 %v2774_v35  ;;  %v2071_v37 = vor.u32 %v2326_v19, %v2070_v15 }
  0xea   : > { %v909_v58 = vadd.f32 %v908_v48, %v819_v47  ;;  %vm1359_vm7 = vcmp.eq.f32.partialorder %v1358_v7, 8.507059e+37  ;;  %v1361_v22 = vor.u32 1.1754944e-38, %v1360_v8  ;;  %v2075_v38 = vor.u32 %v2324_v20, %v2072_v24  ;;  %v2330_v7 = vld [vmem:[%s2618_s15 + $0x1d4] sm:$0xf0]  ;;  %v2328_v8 = vld [vmem:[%s2618_s15 + $0x1cc] sm:$0xf] }
  0xeb   : > { %v1337_v52 = vmul.f32 %v2396_v33, %v1336_v45  ;;  %v1084_v54 = vadd.f32 %v1083_v42, %v995_v46  ;;  %858 = vmatmul.bf16.gmra.mxu0 %v2047_v43 }
  0xec   : > { %947 = vmatmul.bf16.gmra.mxu1 %v2051_v44 }
  0xed   : > { %v2398_v55 = vpop.eup %2397  ;;  %v1338_v56 = vadd.f32 %v2396_v33, %v1337_v52  ;;  %v2243_v57 = vmul.f32 -1.442695, %v1084_v54  ;;  %1036 = vmatmul.bf16.gmra.mxu2 %v2055_v49 }
  0xee   : > { %1125 = vmatmul.bf16.gmra.mxu3 %v2059_v50  ;;  %v2400_v59 = vpop.eup %2399  ;;  %v2783_v61 = vadd.f32 1.0, %v2398_v55 }
  0xef   : > { %v1342_v62 = vsel %vm1341_vm2, %v2396_v33, %v1338_v56  ;;  %v1350_v63 = vmul.f32 %v2400_v59, %v2774_v35  ;;  %2401 = vpow2.f32 %v2243_v57  ;;  %vm1355_vm4 = vweird.f32 %v2400_v59 }
  0xf0   : > { %v1347_v0 = vsel %vm1344_vm3, %v1346_v60, %v1342_v62  ;;  %2403 = vrcp.f32 %v2783_v61  ;;  %v997_v1 = vpop.f32.mrf.mxu2  ;;  %v821_v5 = vpop.f32.mrf.mxu0  ;;  %vm1356_vm6 = vmor %vm1354_vm5, %vm1355_vm4  ;;  %v1375_v39 = vand.u32 2147483648, %v2783_v61  ;;  %v1373_v41 = vand.u32 2147483647, %v2783_v61 }
  0xf1   : > { %v1086_v2 = vpop.f32.mrf.mxu3  ;;  %1758 = vst [vmem:[%s2733_s30 + $0x20] sm:$0xff] %v1347_v0  ;;  %v1351_v3 = vsub.f32 1.0, %v1350_v63  ;;  %v998_v4 = vadd.f32 %v997_v1, %v909_v58  ;;  %v910_v6 = vpop.f32.mrf.mxu1  ;;  %vm1369_vm9 = vweird.f32 %v2783_v61  ;;  %v2078_v63 = vld [vmem:[%s2618_s15 + $0x1c0] sm:$0xf]  ;;  %v2329_v0 = vld [vmem:[%s2618_s15 + $0x1cc] sm:$0xf0] }
  0xf2   : > { %v911_v27 = vadd.f32 %v910_v6, %v821_v5  ;;  %v1376_v48 = vor.u32 1.1754944e-38, %v1375_v39  ;;  %vm1374_vm11 = vcmp.eq.f32.partialorder %v1373_v41, 8.507059e+37  ;;  %v2327_v1 = vld [vmem:[%s2618_s15 + $0x1c4] sm:$0xf]  ;;  %v2079_v19 = vor.u32 %v2329_v0, %v2078_v63  ;;  %v2104_v0 = vld [vmem:[%s2618_s15 + $0x1f8] sm:$0xf0] }
  0xf3   : > { %v1352_v9 = vmul.f32 %v2400_v59, %v1351_v3  ;;  %v1087_v10 = vadd.f32 %v1086_v2, %v998_v4  ;;  %v2080_v2 = vld [vmem:[%s2618_s15 + $0x1d0] sm:$0xf0]  ;;  %v2086_v3 = vld [vmem:[%s2618_s15 + $0x1c8] sm:$0xf] }
  0xf4   : > { %v2083_v20 = vor.u32 %v2327_v1, %v2080_v2 }
  0xf5   : > { %v2402_v16 = vpop.eup %2401  ;;  %v1353_v17 = vadd.f32 %v2400_v59, %v1352_v9  ;;  %v2244_v18 = vmul.f32 -1.442695, %v1087_v10 }
  0xf6   : > { %v2404_v21 = vpop.eup %2403  ;;  %v2798_v23 = vadd.f32 1.0, %v2402_v16 }
  0xf7   : > { %v1357_v25 = vsel %vm1356_vm6, %v2400_v59, %v1353_v17  ;;  %v1365_v26 = vmul.f32 %v2404_v21, %v2783_v61  ;;  %2405 = vpow2.f32 %v2244_v18  ;;  %vm1370_vm8 = vweird.f32 %v2404_v21 }
  0xf8   : > { %v1362_v28 = vsel %vm1359_vm7, %v1361_v22, %v1357_v25  ;;  %2407 = vrcp.f32 %v2798_v23  ;;  %v999_v29 = vpop.f32.mrf.mxu2  ;;  %v824_v35 = vpop.f32.mrf.mxu0  ;;  %vm1371_vm10 = vmor %vm1369_vm9, %vm1370_vm8  ;;  %v1388_v59 = vand.u32 2147483647, %v2798_v23  ;;  %v1390_v60 = vand.u32 2147483648, %v2798_v23 }
  0xf9   : > { %v1088_v30 = vpop.f32.mrf.mxu3  ;;  %1759 = vst [vmem:[%s2733_s30 + $0x28] sm:$0xff] %v1362_v28  ;;  %v1366_v33 = vsub.f32 1.0, %v1365_v26  ;;  %v1000_v34 = vadd.f32 %v999_v29, %v911_v27  ;;  %v913_v36 = vpop.f32.mrf.mxu1  ;;  %vm1384_vm13 = vweird.f32 %v2798_v23  ;;  %v2087_v25 = vor.u32 %v2330_v7, %v2086_v3 }
  0xfa   : > { %v914_v46 = vadd.f32 %v913_v36, %v824_v35  ;;  %vm1389_vm15 = vcmp.eq.f32.partialorder %v1388_v59, 8.507059e+37  ;;  %v1391_v10 = vor.u32 1.1754944e-38, %v1390_v60  ;;  %v2091_v26 = vor.u32 %v2328_v8, %v2088_v12  ;;  %v2334_v59 = vld [vmem:[%s2618_s15 + $0x1f4] sm:$0xf0]  ;;  %v2332_v60 = vld [vmem:[%s2618_s15 + $0x1ec] sm:$0xf] }
  0xfb   : > { %v1367_v40 = vmul.f32 %v2404_v21, %v1366_v33  ;;  %v1089_v42 = vadd.f32 %v1088_v30, %v1000_v34  ;;  %863 = vmatmul.bf16.gmra.mxu0 %v2063_v31 }
  0xfc   : > { %952 = vmatmul.bf16.gmra.mxu1 %v2067_v32 }
  0xfd   : > { %v2406_v43 = vpop.eup %2405  ;;  %v1368_v44 = vadd.f32 %v2404_v21, %v1367_v40  ;;  %v2245_v45 = vmul.f32 -1.442695, %v1089_v42  ;;  %1041 = vmatmul.bf16.gmra.mxu2 %v2071_v37 }
  0xfe   : > { %1130 = vmatmul.bf16.gmra.mxu3 %v2075_v38  ;;  %v2408_v47 = vpop.eup %2407  ;;  %v2807_v49 = vadd.f32 1.0, %v2406_v43 }
  0xff   : > { %v1372_v50 = vsel %vm1371_vm10, %v2404_v21, %v1368_v44  ;;  %v1380_v51 = vmul.f32 %v2408_v47, %v2798_v23  ;;  %2409 = vpow2.f32 %v2245_v45  ;;  %vm1385_vm12 = vweird.f32 %v2408_v47 }
 0x100   : > { %v1377_v52 = vsel %vm1374_vm11, %v1376_v48, %v1372_v50  ;;  %2411 = vrcp.f32 %v2807_v49  ;;  %v1002_v53 = vpop.f32.mrf.mxu2  ;;  %v826_v57 = vpop.f32.mrf.mxu0  ;;  %vm1386_vm14 = vmor %vm1384_vm13, %vm1385_vm12  ;;  %v1405_v27 = vand.u32 2147483648, %v2807_v49  ;;  %v1403_v29 = vand.u32 2147483647, %v2807_v49 }
 0x101   : > { %v1091_v54 = vpop.f32.mrf.mxu3  ;;  %1760 = vst [vmem:[%s2733_s30 + $0x30] sm:$0xff] %v1377_v52  ;;  %v1381_v55 = vsub.f32 1.0, %v1380_v51  ;;  %v1003_v56 = vadd.f32 %v1002_v53, %v914_v46  ;;  %v915_v58 = vpop.f32.mrf.mxu1  ;;  %vm1399_vm1 = vweird.f32 %v2807_v49  ;;  %v2094_v51 = vld [vmem:[%s2618_s15 + $0x1e0] sm:$0xf]  ;;  %v2333_v52 = vld [vmem:[%s2618_s15 + $0x1ec] sm:$0xf0] }
 0x102   : > { %v916_v15 = vadd.f32 %v915_v58, %v826_v57  ;;  %v1406_v36 = vor.u32 1.1754944e-38, %v1405_v27  ;;  %vm1404_vm3 = vcmp.eq.f32.partialorder %v1403_v29, 8.507059e+37  ;;  %v2331_v53 = vld [vmem:[%s2618_s15 + $0x1e4] sm:$0xf]  ;;  %v2095_v7 = vor.u32 %v2333_v52, %v2094_v51 }
 0x103   : > { %v1382_v61 = vmul.f32 %v2408_v47, %v1381_v55  ;;  %v1092_v62 = vadd.f32 %v1091_v54, %v1003_v56  ;;  %v2096_v54 = vld [vmem:[%s2618_s15 + $0x1f0] sm:$0xf0]  ;;  %v2102_v55 = vld [vmem:[%s2618_s15 + $0x1e8] sm:$0xf] }
 0x104   : > { %v2099_v8 = vor.u32 %v2331_v53, %v2096_v54 }
 0x105   : > { %v2410_v4 = vpop.eup %2409  ;;  %v1383_v5 = vadd.f32 %v2408_v47, %v1382_v61  ;;  %v2246_v6 = vmul.f32 -1.442695, %v1092_v62 }
 0x106   : > { %v2412_v9 = vpop.eup %2411  ;;  %v2822_v11 = vadd.f32 1.0, %v2410_v4 }
 0x107   : > { %v1387_v13 = vsel %vm1386_vm14, %v2408_v47, %v1383_v5  ;;  %v1395_v14 = vmul.f32 %v2412_v9, %v2807_v49  ;;  %2413 = vpow2.f32 %v2246_v6  ;;  %vm1400_vm0 = vweird.f32 %v2412_v9 }
 0x108   : > { %v1392_v16 = vsel %vm1389_vm15, %v1391_v10, %v1387_v13  ;;  %2415 = vrcp.f32 %v2822_v11  ;;  %v1004_v17 = vpop.f32.mrf.mxu2  ;;  %v829_v23 = vpop.f32.mrf.mxu0  ;;  %vm1401_vm2 = vmor %vm1399_vm1, %vm1400_vm0  ;;  %v1418_v47 = vand.u32 2147483647, %v2822_v11  ;;  %v1420_v48 = vand.u32 2147483648, %v2822_v11 }
 0x109   : > { %v1093_v18 = vpop.f32.mrf.mxu3  ;;  %1761 = vst [vmem:[%s2733_s30 + $0x38] sm:$0xff] %v1392_v16  ;;  %v1396_v21 = vsub.f32 1.0, %v1395_v14  ;;  %v1005_v22 = vadd.f32 %v1004_v17, %v916_v15  ;;  %v918_v24 = vpop.f32.mrf.mxu1  ;;  %vm1414_vm5 = vweird.f32 %v2822_v11  ;;  %v2103_v13 = vor.u32 %v2334_v59, %v2102_v55 }
 0x10a   : > { %v919_v34 = vadd.f32 %v918_v24, %v829_v23  ;;  %vm1419_vm7 = vcmp.eq.f32.partialorder %v1418_v47, 8.507059e+37  ;;  %v1421_v62 = vor.u32 1.1754944e-38, %v1420_v48  ;;  %v2107_v14 = vor.u32 %v2332_v60, %v2104_v0 }
 0x10b   : > { %v1397_v28 = vmul.f32 %v2412_v9, %v1396_v21  ;;  %v1094_v30 = vadd.f32 %v1093_v18, %v1005_v22  ;;  %868 = vmatmul.bf16.gmra.mxu0 %v2079_v19 }
 0x10c   : > { %957 = vmatmul.bf16.gmra.mxu1 %v2083_v20 }
 0x10d   : > { %v2414_v31 = vpop.eup %2413  ;;  %v1398_v32 = vadd.f32 %v2412_v9, %v1397_v28  ;;  %v2247_v33 = vmul.f32 -1.442695, %v1094_v30  ;;  %1046 = vmatmul.bf16.gmra.mxu2 %v2087_v25 }
 0x10e   : > { %1135 = vmatmul.bf16.gmra.mxu3 %v2091_v26  ;;  %v2416_v35 = vpop.eup %2415  ;;  %v2831_v37 = vadd.f32 1.0, %v2414_v31 }
 0x10f   : > { %v1402_v38 = vsel %vm1401_vm2, %v2412_v9, %v1398_v32  ;;  %v1410_v39 = vmul.f32 %v2416_v35, %v2822_v11  ;;  %2417 = vpow2.f32 %v2247_v33  ;;  %vm1415_vm4 = vweird.f32 %v2416_v35 }
 0x110   : > { %v1407_v40 = vsel %vm1404_vm3, %v1406_v36, %v1402_v38  ;;  %2419 = vrcp.f32 %v2831_v37  ;;  %v1007_v41 = vpop.f32.mrf.mxu2  ;;  %v831_v45 = vpop.f32.mrf.mxu0  ;;  %vm1416_vm6 = vmor %vm1414_vm5, %vm1415_vm4  ;;  %v1435_v15 = vand.u32 2147483648, %v2831_v37  ;;  %v1433_v17 = vand.u32 2147483647, %v2831_v37 }
 0x111   : > { %v1096_v42 = vpop.f32.mrf.mxu3  ;;  %1762 = vst [vmem:[%s2733_s30 + $0x40] sm:$0xff] %v1407_v40  ;;  %v1411_v43 = vsub.f32 1.0, %v1410_v39  ;;  %v1008_v44 = vadd.f32 %v1007_v41, %v919_v34  ;;  %v920_v46 = vpop.f32.mrf.mxu1  ;;  %vm1429_vm9 = vweird.f32 %v2831_v37 }
 0x112   : > { %v921_v3 = vadd.f32 %v920_v46, %v831_v45  ;;  %v1436_v24 = vor.u32 1.1754944e-38, %v1435_v15  ;;  %vm1434_vm11 = vcmp.eq.f32.partialorder %v1433_v17, 8.507059e+37 }
 0x113   : > { %v1412_v49 = vmul.f32 %v2416_v35, %v1411_v43  ;;  %v1097_v50 = vadd.f32 %v1096_v42, %v1008_v44 }
 0x115   : > { %v2418_v56 = vpop.eup %2417  ;;  %v1413_v57 = vadd.f32 %v2416_v35, %v1412_v49  ;;  %v2248_v58 = vmul.f32 -1.442695, %v1097_v50 }
 0x116   : > { %v2420_v61 = vpop.eup %2419  ;;  %v1253_v63 = vadd.f32 1.0, %v2418_v56 }
 0x117   : > { %v1417_v1 = vsel %vm1416_vm6, %v2416_v35, %v1413_v57  ;;  %v1425_v2 = vmul.f32 %v2420_v61, %v2831_v37  ;;  %2421 = vpow2.f32 %v2248_v58  ;;  %vm1430_vm8 = vweird.f32 %v2420_v61 }
 0x118   : > { %v1422_v4 = vsel %vm1419_vm7, %v1421_v62, %v1417_v1  ;;  %2423 = vrcp.f32 %v1253_v63  ;;  %v1009_v5 = vpop.f32.mrf.mxu2  ;;  %v834_v11 = vpop.f32.mrf.mxu0  ;;  %vm1431_vm10 = vmor %vm1429_vm9, %vm1430_vm8  ;;  %v1448_v35 = vand.u32 2147483647, %v1253_v63  ;;  %v1450_v36 = vand.u32 2147483648, %v1253_v63 }
 0x119   : > { %v1098_v6 = vpop.f32.mrf.mxu3  ;;  %1763 = vst [vmem:[%s2733_s30 + $0x48] sm:$0xff] %v1422_v4  ;;  %v1426_v9 = vsub.f32 1.0, %v1425_v2  ;;  %v1010_v10 = vadd.f32 %v1009_v5, %v921_v3  ;;  %v923_v12 = vpop.f32.mrf.mxu1  ;;  %vm1444_vm13 = vweird.f32 %v1253_v63 }
 0x11a   : > { %v924_v22 = vadd.f32 %v923_v12, %v834_v11  ;;  %vm1449_vm15 = vcmp.eq.f32.partialorder %v1448_v35, 8.507059e+37  ;;  %v1451_v43 = vor.u32 1.1754944e-38, %v1450_v36 }
 0x11b   : > { %v1427_v16 = vmul.f32 %v2420_v61, %v1426_v9  ;;  %v1099_v18 = vadd.f32 %v1098_v6, %v1010_v10  ;;  %873 = vmatmul.bf16.gmra.mxu0 %v2095_v7 }
 0x11c   : > { %962 = vmatmul.bf16.gmra.mxu1 %v2099_v8 }
 0x11d   : > { %v2422_v19 = vpop.eup %2421  ;;  %v1428_v20 = vadd.f32 %v2420_v61, %v1427_v16  ;;  %v2249_v21 = vmul.f32 -1.442695, %v1099_v18  ;;  %1051 = vmatmul.bf16.gmra.mxu2 %v2103_v13 }
 0x11e   : > { %1140 = vmatmul.bf16.gmra.mxu3 %v2107_v14  ;;  %v2424_v23 = vpop.eup %2423  ;;  %v1254_v25 = vadd.f32 1.0, %v2422_v19 }
 0x11f   : > { %v1432_v26 = vsel %vm1431_vm10, %v2420_v61, %v1428_v20  ;;  %v1440_v27 = vmul.f32 %v2424_v23, %v1253_v63  ;;  %2425 = vpow2.f32 %v2249_v21  ;;  %vm1445_vm12 = vweird.f32 %v2424_v23 }
 0x120   : > { %v1437_v28 = vsel %vm1434_vm11, %v1436_v24, %v1432_v26  ;;  %2427 = vrcp.f32 %v1254_v25  ;;  %v1012_v29 = vpop.f32.mrf.mxu2  ;;  %v836_v33 = vpop.f32.mrf.mxu0  ;;  %vm1446_vm14 = vmor %vm1444_vm13, %vm1445_vm12  ;;  %v1465_v55 = vand.u32 2147483648, %v1254_v25  ;;  %v1463_v57 = vand.u32 2147483647, %v1254_v25 }
 0x121   : > { %v1101_v30 = vpop.f32.mrf.mxu3  ;;  %1764 = vst [vmem:[%s2733_s30 + $0x50] sm:$0xff] %v1437_v28  ;;  %v1441_v31 = vsub.f32 1.0, %v1440_v27  ;;  %v1013_v32 = vadd.f32 %v1012_v29, %v924_v22  ;;  %v925_v34 = vpop.f32.mrf.mxu1  ;;  %vm1459_vm1 = vweird.f32 %v1254_v25 }
 0x122   : > { %v926_v47 = vadd.f32 %v925_v34, %v836_v33  ;;  %v1466_v0 = vor.u32 1.1754944e-38, %v1465_v55  ;;  %vm1464_vm3 = vcmp.eq.f32.partialorder %v1463_v57, 8.507059e+37 }
 0x123   : > { %v1442_v37 = vmul.f32 %v2424_v23, %v1441_v31  ;;  %v1102_v38 = vadd.f32 %v1101_v30, %v1013_v32 }
 0x125   : > { %v2426_v39 = vpop.eup %2425  ;;  %v1443_v40 = vadd.f32 %v2424_v23, %v1442_v37  ;;  %v2250_v41 = vmul.f32 -1.442695, %v1102_v38 }
 0x126   : > { %v2428_v42 = vpop.eup %2427  ;;  %v1255_v44 = vadd.f32 1.0, %v2426_v39 }
 0x127   : > { %v1447_v45 = vsel %vm1446_vm14, %v2424_v23, %v1443_v40  ;;  %v1455_v46 = vmul.f32 %v2428_v42, %v1254_v25  ;;  %2429 = vpow2.f32 %v2250_v41  ;;  %vm1460_vm0 = vweird.f32 %v2428_v42 }
 0x128   : > { %v1452_v48 = vsel %vm1449_vm15, %v1451_v43, %v1447_v45  ;;  %2431 = vrcp.f32 %v1255_v44  ;;  %v1014_v49 = vpop.f32.mrf.mxu2  ;;  %v839_v53 = vpop.f32.mrf.mxu0  ;;  %vm1461_vm2 = vmor %vm1459_vm1, %vm1460_vm0  ;;  %v1478_v11 = vand.u32 2147483647, %v1255_v44  ;;  %v1480_v12 = vand.u32 2147483648, %v1255_v44 }
 0x129   : > { %v1103_v50 = vpop.f32.mrf.mxu3  ;;  %1765 = vst [vmem:[%s2733_s30 + $0x58] sm:$0xff] %v1452_v48  ;;  %v1456_v51 = vsub.f32 1.0, %v1455_v46  ;;  %v1015_v52 = vadd.f32 %v1014_v49, %v926_v47  ;;  %v928_v54 = vpop.f32.mrf.mxu1  ;;  %vm1474_vm5 = vweird.f32 %v1255_v44 }
 0x12a   : > { %v929_v62 = vadd.f32 %v928_v54, %v839_v53  ;;  %vm1479_vm7 = vcmp.eq.f32.partialorder %v1478_v11, 8.507059e+37  ;;  %v1481_v19 = vor.u32 1.1754944e-38, %v1480_v12 }
 0x12b   : > { %v1457_v56 = vmul.f32 %v2428_v42, %v1456_v51  ;;  %v1104_v58 = vadd.f32 %v1103_v50, %v1015_v52 }
 0x12d   : > { %v2430_v59 = vpop.eup %2429  ;;  %v1458_v60 = vadd.f32 %v2428_v42, %v1457_v56  ;;  %v2251_v61 = vmul.f32 -1.442695, %v1104_v58 }
 0x12e   : > { %v2432_v63 = vpop.eup %2431  ;;  %v1256_v1 = vadd.f32 1.0, %v2430_v59 }
 0x12f   : > { %v1462_v2 = vsel %vm1461_vm2, %v2428_v42, %v1458_v60  ;;  %v1470_v3 = vmul.f32 %v2432_v63, %v1255_v44  ;;  %2433 = vpow2.f32 %v2251_v61  ;;  %vm1475_vm4 = vweird.f32 %v2432_v63 }
 0x130   : > { %v1467_v4 = vsel %vm1464_vm3, %v1466_v0, %v1462_v2  ;;  %2435 = vrcp.f32 %v1256_v1  ;;  %v1017_v5 = vpop.f32.mrf.mxu2  ;;  %v841_v9 = vpop.f32.mrf.mxu0  ;;  %vm1476_vm6 = vmor %vm1474_vm5, %vm1475_vm4  ;;  %v1495_v31 = vand.u32 2147483648, %v1256_v1  ;;  %v1493_v33 = vand.u32 2147483647, %v1256_v1 }
 0x131   : > { %v1106_v6 = vpop.f32.mrf.mxu3  ;;  %1766 = vst [vmem:[%s2733_s30 + $0x60] sm:$0xff] %v1467_v4  ;;  %v1471_v7 = vsub.f32 1.0, %v1470_v3  ;;  %v1018_v8 = vadd.f32 %v1017_v5, %v929_v62  ;;  %v930_v10 = vpop.f32.mrf.mxu1  ;;  %vm1489_vm9 = vweird.f32 %v1256_v1 }
 0x132   : > { %v931_v23 = vadd.f32 %v930_v10, %v841_v9  ;;  %v1496_v40 = vor.u32 1.1754944e-38, %v1495_v31  ;;  %vm1494_vm11 = vcmp.eq.f32.partialorder %v1493_v33, 8.507059e+37 }
 0x133   : > { %v1472_v13 = vmul.f32 %v2432_v63, %v1471_v7  ;;  %v1107_v14 = vadd.f32 %v1106_v6, %v1018_v8 }
 0x135   : > { %v2434_v15 = vpop.eup %2433  ;;  %v1473_v16 = vadd.f32 %v2432_v63, %v1472_v13  ;;  %v2252_v17 = vmul.f32 -1.442695, %v1107_v14 }
 0x136   : > { %v2436_v18 = vpop.eup %2435  ;;  %v1257_v20 = vadd.f32 1.0, %v2434_v15 }
 0x137   : > { %v1477_v21 = vsel %vm1476_vm6, %v2432_v63, %v1473_v16  ;;  %v1485_v22 = vmul.f32 %v2436_v18, %v1256_v1  ;;  %2437 = vpow2.f32 %v2252_v17  ;;  %vm1490_vm8 = vweird.f32 %v2436_v18 }
 0x138   : > { %v1482_v24 = vsel %vm1479_vm7, %v1481_v19, %v1477_v21  ;;  %2439 = vrcp.f32 %v1257_v20  ;;  %v1019_v25 = vpop.f32.mrf.mxu2  ;;  %v844_v29 = vpop.f32.mrf.mxu0  ;;  %vm1491_vm10 = vmor %vm1489_vm9, %vm1490_vm8  ;;  %v1508_v51 = vand.u32 2147483647, %v1257_v20  ;;  %v1510_v52 = vand.u32 2147483648, %v1257_v20 }
 0x139   : > { %v1108_v26 = vpop.f32.mrf.mxu3  ;;  %1767 = vst [vmem:[%s2733_s30 + $0x68] sm:$0xff] %v1482_v24  ;;  %v1486_v27 = vsub.f32 1.0, %v1485_v22  ;;  %v1020_v28 = vadd.f32 %v1019_v25, %v931_v23  ;;  %v933_v30 = vpop.f32.mrf.mxu1  ;;  %vm1504_vm13 = vweird.f32 %v1257_v20 }
 0x13a   : > { %v934_v38 = vadd.f32 %v933_v30, %v844_v29  ;;  %vm1509_vm15 = vcmp.eq.f32.partialorder %v1508_v51, 8.507059e+37  ;;  %v1511_v59 = vor.u32 1.1754944e-38, %v1510_v52 }
 0x13b   : > { %v1487_v32 = vmul.f32 %v2436_v18, %v1486_v27  ;;  %v1109_v34 = vadd.f32 %v1108_v26, %v1020_v28 }
 0x13d   : > { %v2438_v35 = vpop.eup %2437  ;;  %v1488_v36 = vadd.f32 %v2436_v18, %v1487_v32  ;;  %v2253_v37 = vmul.f32 -1.442695, %v1109_v34 }
 0x13e   : > { %v2440_v39 = vpop.eup %2439  ;;  %v1258_v41 = vadd.f32 1.0, %v2438_v35 }
 0x13f   : > { %v1492_v42 = vsel %vm1491_vm10, %v2436_v18, %v1488_v36  ;;  %v1500_v43 = vmul.f32 %v2440_v39, %v1257_v20  ;;  %2441 = vpow2.f32 %v2253_v37  ;;  %vm1505_vm12 = vweird.f32 %v2440_v39 }
 0x140   : > { %v1497_v44 = vsel %vm1494_vm11, %v1496_v40, %v1492_v42  ;;  %2443 = vrcp.f32 %v1258_v41  ;;  %v1022_v45 = vpop.f32.mrf.mxu2  ;;  %v846_v49 = vpop.f32.mrf.mxu0  ;;  %vm1506_vm14 = vmor %vm1504_vm13, %vm1505_vm12  ;;  %v1525_v7 = vand.u32 2147483648, %v1258_v41  ;;  %v1523_v9 = vand.u32 2147483647, %v1258_v41 }
 0x141   : > { %v1111_v46 = vpop.f32.mrf.mxu3  ;;  %1768 = vst [vmem:[%s2733_s30 + $0x70] sm:$0xff] %v1497_v44  ;;  %v1501_v47 = vsub.f32 1.0, %v1500_v43  ;;  %v1023_v48 = vadd.f32 %v1022_v45, %v934_v38  ;;  %v935_v50 = vpop.f32.mrf.mxu1  ;;  %vm1519_vm1 = vweird.f32 %v1258_v41 }
 0x142   : > { %v936_v63 = vadd.f32 %v935_v50, %v846_v49  ;;  %v1526_v16 = vor.u32 1.1754944e-38, %v1525_v7  ;;  %vm1524_vm3 = vcmp.eq.f32.partialorder %v1523_v9, 8.507059e+37 }
 0x143   : > { %v1502_v53 = vmul.f32 %v2440_v39, %v1501_v47  ;;  %v1112_v54 = vadd.f32 %v1111_v46, %v1023_v48 }
 0x145   : > { %v2442_v55 = vpop.eup %2441  ;;  %v1503_v56 = vadd.f32 %v2440_v39, %v1502_v53  ;;  %v2254_v57 = vmul.f32 -1.442695, %v1112_v54 }
 0x146   : > { %v2444_v58 = vpop.eup %2443  ;;  %v1259_v60 = vadd.f32 1.0, %v2442_v55 }
 0x147   : > { %v1507_v61 = vsel %vm1506_vm14, %v2440_v39, %v1503_v56  ;;  %v1515_v62 = vmul.f32 %v2444_v58, %v1258_v41  ;;  %2445 = vpow2.f32 %v2254_v57  ;;  %vm1520_vm0 = vweird.f32 %v2444_v58 }
 0x148   : > { %v1512_v0 = vsel %vm1509_vm15, %v1511_v59, %v1507_v61  ;;  %2447 = vrcp.f32 %v1259_v60  ;;  %v1024_v1 = vpop.f32.mrf.mxu2  ;;  %v849_v5 = vpop.f32.mrf.mxu0  ;;  %vm1521_vm2 = vmor %vm1519_vm1, %vm1520_vm0  ;;  %v1538_v27 = vand.u32 2147483647, %v1259_v60  ;;  %v1540_v28 = vand.u32 2147483648, %v1259_v60 }
 0x149   : > { %v1113_v2 = vpop.f32.mrf.mxu3  ;;  %1769 = vst [vmem:[%s2733_s30 + $0x78] sm:$0xff] %v1512_v0  ;;  %v1516_v3 = vsub.f32 1.0, %v1515_v62  ;;  %v1025_v4 = vadd.f32 %v1024_v1, %v936_v63  ;;  %v938_v6 = vpop.f32.mrf.mxu1  ;;  %vm1534_vm5 = vweird.f32 %v1259_v60 }
 0x14a   : > { %v939_v14 = vadd.f32 %v938_v6, %v849_v5  ;;  %vm1539_vm7 = vcmp.eq.f32.partialorder %v1538_v27, 8.507059e+37  ;;  %v1541_v35 = vor.u32 1.1754944e-38, %v1540_v28 }
 0x14b   : > { %v1517_v8 = vmul.f32 %v2444_v58, %v1516_v3  ;;  %v1114_v10 = vadd.f32 %v1113_v2, %v1025_v4 }
 0x14d   : > { %v2446_v11 = vpop.eup %2445  ;;  %v1518_v12 = vadd.f32 %v2444_v58, %v1517_v8  ;;  %v2255_v13 = vmul.f32 -1.442695, %v1114_v10 }
 0x14e   : > { %v2448_v15 = vpop.eup %2447  ;;  %v1260_v17 = vadd.f32 1.0, %v2446_v11 }
 0x14f   : > { %v1522_v18 = vsel %vm1521_vm2, %v2444_v58, %v1518_v12  ;;  %v1530_v19 = vmul.f32 %v2448_v15, %v1259_v60  ;;  %2449 = vpow2.f32 %v2255_v13  ;;  %vm1535_vm4 = vweird.f32 %v2448_v15 }
 0x150   : > { %v1527_v20 = vsel %vm1524_vm3, %v1526_v16, %v1522_v18  ;;  %2451 = vrcp.f32 %v1260_v17  ;;  %v1027_v21 = vpop.f32.mrf.mxu2  ;;  %v851_v25 = vpop.f32.mrf.mxu0  ;;  %vm1536_vm6 = vmor %vm1534_vm5, %vm1535_vm4  ;;  %v1555_v47 = vand.u32 2147483648, %v1260_v17  ;;  %v1553_v49 = vand.u32 2147483647, %v1260_v17 }
 0x151   : > { %v1116_v22 = vpop.f32.mrf.mxu3  ;;  %1770 = vst [vmem:[%s2733_s30 + $0x80] sm:$0xff] %v1527_v20  ;;  %v1531_v23 = vsub.f32 1.0, %v1530_v19  ;;  %v1028_v24 = vadd.f32 %v1027_v21, %v939_v14  ;;  %v940_v26 = vpop.f32.mrf.mxu1  ;;  %vm1549_vm9 = vweird.f32 %v1260_v17 }
 0x152   : > { %v941_v39 = vadd.f32 %v940_v26, %v851_v25  ;;  %v1556_v56 = vor.u32 1.1754944e-38, %v1555_v47  ;;  %vm1554_vm11 = vcmp.eq.f32.partialorder %v1553_v49, 8.507059e+37 }
 0x153   : > { %v1532_v29 = vmul.f32 %v2448_v15, %v1531_v23  ;;  %v1117_v30 = vadd.f32 %v1116_v22, %v1028_v24 }
 0x155   : > { %v2450_v31 = vpop.eup %2449  ;;  %v1533_v32 = vadd.f32 %v2448_v15, %v1532_v29  ;;  %v2256_v33 = vmul.f32 -1.442695, %v1117_v30 }
 0x156   : > { %v2452_v34 = vpop.eup %2451  ;;  %v1261_v36 = vadd.f32 1.0, %v2450_v31 }
 0x157   : > { %v1537_v37 = vsel %vm1536_vm6, %v2448_v15, %v1533_v32  ;;  %v1545_v38 = vmul.f32 %v2452_v34, %v1260_v17  ;;  %2453 = vpow2.f32 %v2256_v33  ;;  %vm1550_vm8 = vweird.f32 %v2452_v34 }
 0x158   : > { %v1542_v40 = vsel %vm1539_vm7, %v1541_v35, %v1537_v37  ;;  %2455 = vrcp.f32 %v1261_v36  ;;  %v1029_v41 = vpop.f32.mrf.mxu2  ;;  %v854_v45 = vpop.f32.mrf.mxu0  ;;  %vm1551_vm10 = vmor %vm1549_vm9, %vm1550_vm8  ;;  %v1568_v3 = vand.u32 2147483647, %v1261_v36  ;;  %v1570_v4 = vand.u32 2147483648, %v1261_v36 }
 0x159   : > { %v1118_v42 = vpop.f32.mrf.mxu3  ;;  %1771 = vst [vmem:[%s2733_s30 + $0x88] sm:$0xff] %v1542_v40  ;;  %v1546_v43 = vsub.f32 1.0, %v1545_v38  ;;  %v1030_v44 = vadd.f32 %v1029_v41, %v941_v39  ;;  %v943_v46 = vpop.f32.mrf.mxu1  ;;  %vm1564_vm13 = vweird.f32 %v1261_v36 }
 0x15a   : > { %v944_v54 = vadd.f32 %v943_v46, %v854_v45  ;;  %vm1569_vm15 = vcmp.eq.f32.partialorder %v1568_v3, 8.507059e+37  ;;  %v1571_v11 = vor.u32 1.1754944e-38, %v1570_v4 }
 0x15b   : > { %v1547_v48 = vmul.f32 %v2452_v34, %v1546_v43  ;;  %v1119_v50 = vadd.f32 %v1118_v42, %v1030_v44 }
 0x15d   : > { %v2454_v51 = vpop.eup %2453  ;;  %v1548_v52 = vadd.f32 %v2452_v34, %v1547_v48  ;;  %v2257_v53 = vmul.f32 -1.442695, %v1119_v50 }
 0x15e   : > { %v2456_v55 = vpop.eup %2455  ;;  %v1262_v57 = vadd.f32 1.0, %v2454_v51 }
 0x15f   : > { %v1552_v58 = vsel %vm1551_vm10, %v2452_v34, %v1548_v52  ;;  %v1560_v59 = vmul.f32 %v2456_v55, %v1261_v36  ;;  %2457 = vpow2.f32 %v2257_v53  ;;  %vm1565_vm12 = vweird.f32 %v2456_v55 }
 0x160   : > { %v1557_v60 = vsel %vm1554_vm11, %v1556_v56, %v1552_v58  ;;  %2459 = vrcp.f32 %v1262_v57  ;;  %v1032_v61 = vpop.f32.mrf.mxu2  ;;  %v856_v1 = vpop.f32.mrf.mxu0  ;;  %vm1566_vm14 = vmor %vm1564_vm13, %vm1565_vm12  ;;  %v1585_v23 = vand.u32 2147483648, %v1262_v57  ;;  %v1583_v25 = vand.u32 2147483647, %v1262_v57 }
 0x161   : > { %v1121_v62 = vpop.f32.mrf.mxu3  ;;  %1772 = vst [vmem:[%s2733_s30 + $0x90] sm:$0xff] %v1557_v60  ;;  %v1561_v63 = vsub.f32 1.0, %v1560_v59  ;;  %v1033_v0 = vadd.f32 %v1032_v61, %v944_v54  ;;  %v945_v2 = vpop.f32.mrf.mxu1  ;;  %vm1579_vm1 = vweird.f32 %v1262_v57 }
 0x162   : > { %v946_v15 = vadd.f32 %v945_v2, %v856_v1  ;;  %v1586_v32 = vor.u32 1.1754944e-38, %v1585_v23  ;;  %vm1584_vm3 = vcmp.eq.f32.partialorder %v1583_v25, 8.507059e+37 }
 0x163   : > { %v1562_v5 = vmul.f32 %v2456_v55, %v1561_v63  ;;  %v1122_v6 = vadd.f32 %v1121_v62, %v1033_v0 }
 0x165   : > { %v2458_v7 = vpop.eup %2457  ;;  %v1563_v8 = vadd.f32 %v2456_v55, %v1562_v5  ;;  %v2258_v9 = vmul.f32 -1.442695, %v1122_v6 }
 0x166   : > { %v2460_v10 = vpop.eup %2459  ;;  %v1263_v12 = vadd.f32 1.0, %v2458_v7 }
 0x167   : > { %v1567_v13 = vsel %vm1566_vm14, %v2456_v55, %v1563_v8  ;;  %v1575_v14 = vmul.f32 %v2460_v10, %v1262_v57  ;;  %2461 = vpow2.f32 %v2258_v9  ;;  %vm1580_vm0 = vweird.f32 %v2460_v10 }
 0x168   : > { %v1572_v16 = vsel %vm1569_vm15, %v1571_v11, %v1567_v13  ;;  %2463 = vrcp.f32 %v1263_v12  ;;  %v1034_v17 = vpop.f32.mrf.mxu2  ;;  %v859_v21 = vpop.f32.mrf.mxu0  ;;  %vm1581_vm2 = vmor %vm1579_vm1, %vm1580_vm0  ;;  %v1598_v43 = vand.u32 2147483647, %v1263_v12  ;;  %v1600_v44 = vand.u32 2147483648, %v1263_v12 }
 0x169   : > { %v1123_v18 = vpop.f32.mrf.mxu3  ;;  %1773 = vst [vmem:[%s2733_s30 + $0x98] sm:$0xff] %v1572_v16  ;;  %v1576_v19 = vsub.f32 1.0, %v1575_v14  ;;  %v1035_v20 = vadd.f32 %v1034_v17, %v946_v15  ;;  %v948_v22 = vpop.f32.mrf.mxu1  ;;  %vm1594_vm5 = vweird.f32 %v1263_v12 }
 0x16a   : > { %v949_v30 = vadd.f32 %v948_v22, %v859_v21  ;;  %vm1599_vm7 = vcmp.eq.f32.partialorder %v1598_v43, 8.507059e+37  ;;  %v1601_v51 = vor.u32 1.1754944e-38, %v1600_v44 }
 0x16b   : > { %v1577_v24 = vmul.f32 %v2460_v10, %v1576_v19  ;;  %v1124_v26 = vadd.f32 %v1123_v18, %v1035_v20 }
 0x16d   : > { %v2462_v27 = vpop.eup %2461  ;;  %v1578_v28 = vadd.f32 %v2460_v10, %v1577_v24  ;;  %v2259_v29 = vmul.f32 -1.442695, %v1124_v26 }
 0x16e   : > { %v2464_v31 = vpop.eup %2463  ;;  %v1264_v33 = vadd.f32 1.0, %v2462_v27 }
 0x16f   : > { %v1582_v34 = vsel %vm1581_vm2, %v2460_v10, %v1578_v28  ;;  %v1590_v35 = vmul.f32 %v2464_v31, %v1263_v12  ;;  %2465 = vpow2.f32 %v2259_v29  ;;  %vm1595_vm4 = vweird.f32 %v2464_v31 }
 0x170   : > { %v1587_v36 = vsel %vm1584_vm3, %v1586_v32, %v1582_v34  ;;  %2467 = vrcp.f32 %v1264_v33  ;;  %v1037_v37 = vpop.f32.mrf.mxu2  ;;  %v861_v41 = vpop.f32.mrf.mxu0  ;;  %vm1596_vm6 = vmor %vm1594_vm5, %vm1595_vm4  ;;  %v1615_v63 = vand.u32 2147483648, %v1264_v33  ;;  %v1613_v1 = vand.u32 2147483647, %v1264_v33 }
 0x171   : > { %v1126_v38 = vpop.f32.mrf.mxu3  ;;  %1774 = vst [vmem:[%s2733_s30 + $0xa0] sm:$0xff] %v1587_v36  ;;  %v1591_v39 = vsub.f32 1.0, %v1590_v35  ;;  %v1038_v40 = vadd.f32 %v1037_v37, %v949_v30  ;;  %v950_v42 = vpop.f32.mrf.mxu1  ;;  %vm1609_vm9 = vweird.f32 %v1264_v33 }
 0x172   : > { %v951_v55 = vadd.f32 %v950_v42, %v861_v41  ;;  %v1616_v8 = vor.u32 1.1754944e-38, %v1615_v63  ;;  %vm1614_vm11 = vcmp.eq.f32.partialorder %v1613_v1, 8.507059e+37 }
 0x173   : > { %v1592_v45 = vmul.f32 %v2464_v31, %v1591_v39  ;;  %v1127_v46 = vadd.f32 %v1126_v38, %v1038_v40 }
 0x175   : > { %v2466_v47 = vpop.eup %2465  ;;  %v1593_v48 = vadd.f32 %v2464_v31, %v1592_v45  ;;  %v2260_v49 = vmul.f32 -1.442695, %v1127_v46 }
 0x176   : > { %v2468_v50 = vpop.eup %2467  ;;  %v1265_v52 = vadd.f32 1.0, %v2466_v47 }
 0x177   : > { %v1597_v53 = vsel %vm1596_vm6, %v2464_v31, %v1593_v48  ;;  %v1605_v54 = vmul.f32 %v2468_v50, %v1264_v33  ;;  %2469 = vpow2.f32 %v2260_v49  ;;  %vm1610_vm8 = vweird.f32 %v2468_v50 }
 0x178   : > { %v1602_v56 = vsel %vm1599_vm7, %v1601_v51, %v1597_v53  ;;  %2471 = vrcp.f32 %v1265_v52  ;;  %v1039_v57 = vpop.f32.mrf.mxu2  ;;  %v864_v61 = vpop.f32.mrf.mxu0  ;;  %vm1611_vm10 = vmor %vm1609_vm9, %vm1610_vm8  ;;  %v1628_v19 = vand.u32 2147483647, %v1265_v52  ;;  %v1630_v20 = vand.u32 2147483648, %v1265_v52 }
 0x179   : > { %v1128_v58 = vpop.f32.mrf.mxu3  ;;  %1775 = vst [vmem:[%s2733_s30 + $0xa8] sm:$0xff] %v1602_v56  ;;  %v1606_v59 = vsub.f32 1.0, %v1605_v54  ;;  %v1040_v60 = vadd.f32 %v1039_v57, %v951_v55  ;;  %v953_v62 = vpop.f32.mrf.mxu1  ;;  %vm1624_vm13 = vweird.f32 %v1265_v52 }
 0x17a   : > { %v954_v6 = vadd.f32 %v953_v62, %v864_v61  ;;  %vm1629_vm15 = vcmp.eq.f32.partialorder %v1628_v19, 8.507059e+37  ;;  %v1631_v27 = vor.u32 1.1754944e-38, %v1630_v20 }
 0x17b   : > { %v1607_v0 = vmul.f32 %v2468_v50, %v1606_v59  ;;  %v1129_v2 = vadd.f32 %v1128_v58, %v1040_v60 }
 0x17d   : > { %v2470_v3 = vpop.eup %2469  ;;  %v1608_v4 = vadd.f32 %v2468_v50, %v1607_v0  ;;  %v2261_v5 = vmul.f32 -1.442695, %v1129_v2 }
 0x17e   : > { %v2472_v7 = vpop.eup %2471  ;;  %v1266_v9 = vadd.f32 1.0, %v2470_v3 }
 0x17f   : > { %v1612_v10 = vsel %vm1611_vm10, %v2468_v50, %v1608_v4  ;;  %v1620_v11 = vmul.f32 %v2472_v7, %v1265_v52  ;;  %2473 = vpow2.f32 %v2261_v5  ;;  %vm1625_vm12 = vweird.f32 %v2472_v7 }
 0x180   : > { %v1617_v12 = vsel %vm1614_vm11, %v1616_v8, %v1612_v10  ;;  %2475 = vrcp.f32 %v1266_v9  ;;  %v1042_v13 = vpop.f32.mrf.mxu2  ;;  %v866_v17 = vpop.f32.mrf.mxu0  ;;  %vm1626_vm14 = vmor %vm1624_vm13, %vm1625_vm12  ;;  %v1645_v39 = vand.u32 2147483648, %v1266_v9  ;;  %v1643_v41 = vand.u32 2147483647, %v1266_v9 }
 0x181   : > { %v1131_v14 = vpop.f32.mrf.mxu3  ;;  %1776 = vst [vmem:[%s2733_s30 + $0xb0] sm:$0xff] %v1617_v12  ;;  %v1621_v15 = vsub.f32 1.0, %v1620_v11  ;;  %v1043_v16 = vadd.f32 %v1042_v13, %v954_v6  ;;  %v955_v18 = vpop.f32.mrf.mxu1  ;;  %vm1639_vm1 = vweird.f32 %v1266_v9 }
 0x182   : > { %v956_v31 = vadd.f32 %v955_v18, %v866_v17  ;;  %v1646_v48 = vor.u32 1.1754944e-38, %v1645_v39  ;;  %vm1644_vm3 = vcmp.eq.f32.partialorder %v1643_v41, 8.507059e+37 }
 0x183   : > { %v1622_v21 = vmul.f32 %v2472_v7, %v1621_v15  ;;  %v1132_v22 = vadd.f32 %v1131_v14, %v1043_v16 }
 0x185   : > { %v2474_v23 = vpop.eup %2473  ;;  %v1623_v24 = vadd.f32 %v2472_v7, %v1622_v21  ;;  %v2262_v25 = vmul.f32 -1.442695, %v1132_v22 }
 0x186   : > { %v2476_v26 = vpop.eup %2475  ;;  %v1267_v28 = vadd.f32 1.0, %v2474_v23 }
 0x187   : > { %v1627_v29 = vsel %vm1626_vm14, %v2472_v7, %v1623_v24  ;;  %v1635_v30 = vmul.f32 %v2476_v26, %v1266_v9  ;;  %2477 = vpow2.f32 %v2262_v25  ;;  %vm1640_vm0 = vweird.f32 %v2476_v26 }
 0x188   : > { %v1632_v32 = vsel %vm1629_vm15, %v1631_v27, %v1627_v29  ;;  %2479 = vrcp.f32 %v1267_v28  ;;  %v1044_v33 = vpop.f32.mrf.mxu2  ;;  %v869_v37 = vpop.f32.mrf.mxu0  ;;  %vm1641_vm2 = vmor %vm1639_vm1, %vm1640_vm0  ;;  %v1658_v59 = vand.u32 2147483647, %v1267_v28  ;;  %v1660_v60 = vand.u32 2147483648, %v1267_v28 }
 0x189   : > { %v1133_v34 = vpop.f32.mrf.mxu3  ;;  %1777 = vst [vmem:[%s2733_s30 + $0xb8] sm:$0xff] %v1632_v32  ;;  %v1636_v35 = vsub.f32 1.0, %v1635_v30  ;;  %v1045_v36 = vadd.f32 %v1044_v33, %v956_v31  ;;  %v958_v38 = vpop.f32.mrf.mxu1  ;;  %vm1654_vm5 = vweird.f32 %v1267_v28 }
 0x18a   : > { %v959_v46 = vadd.f32 %v958_v38, %v869_v37  ;;  %vm1659_vm7 = vcmp.eq.f32.partialorder %v1658_v59, 8.507059e+37  ;;  %v1661_v3 = vor.u32 1.1754944e-38, %v1660_v60 }
 0x18b   : > { %v1637_v40 = vmul.f32 %v2476_v26, %v1636_v35  ;;  %v1134_v42 = vadd.f32 %v1133_v34, %v1045_v36 }
 0x18d   : > { %v2478_v43 = vpop.eup %2477  ;;  %v1638_v44 = vadd.f32 %v2476_v26, %v1637_v40  ;;  %v2263_v45 = vmul.f32 -1.442695, %v1134_v42 }
 0x18e   : > { %v2480_v47 = vpop.eup %2479  ;;  %v1268_v49 = vadd.f32 1.0, %v2478_v43 }
 0x18f   : > { %v1642_v50 = vsel %vm1641_vm2, %v2476_v26, %v1638_v44  ;;  %v1650_v51 = vmul.f32 %v2480_v47, %v1267_v28  ;;  %2481 = vpow2.f32 %v2263_v45  ;;  %vm1655_vm4 = vweird.f32 %v2480_v47 }
 0x190   : > { %v1647_v52 = vsel %vm1644_vm3, %v1646_v48, %v1642_v50  ;;  %2483 = vrcp.f32 %v1268_v49  ;;  %v1047_v53 = vpop.f32.mrf.mxu2  ;;  %v871_v57 = vpop.f32.mrf.mxu0  ;;  %vm1656_vm6 = vmor %vm1654_vm5, %vm1655_vm4  ;;  %v1675_v13 = vand.u32 2147483648, %v1268_v49  ;;  %v1673_v17 = vand.u32 2147483647, %v1268_v49 }
 0x191   : > { %v1136_v54 = vpop.f32.mrf.mxu3  ;;  %1778 = vst [vmem:[%s2733_s30 + $0xc0] sm:$0xff] %v1647_v52  ;;  %v1651_v55 = vsub.f32 1.0, %v1650_v51  ;;  %v1048_v56 = vadd.f32 %v1047_v53, %v959_v46  ;;  %v960_v58 = vpop.f32.mrf.mxu1  ;;  %vm1669_vm9 = vweird.f32 %v1268_v49 }
 0x192   : > { %v961_v7 = vadd.f32 %v960_v58, %v871_v57  ;;  %v1676_v24 = vor.u32 1.1754944e-38, %v1675_v13  ;;  %vm1674_vm11 = vcmp.eq.f32.partialorder %v1673_v17, 8.507059e+37 }
 0x193   : > { %v1652_v61 = vmul.f32 %v2480_v47, %v1651_v55  ;;  %v1137_v62 = vadd.f32 %v1136_v54, %v1048_v56 }
 0x195   : > { %v2482_v63 = vpop.eup %2481  ;;  %v1653_v0 = vadd.f32 %v2480_v47, %v1652_v61  ;;  %v2264_v1 = vmul.f32 -1.442695, %v1137_v62 }
 0x196   : > { %v2484_v2 = vpop.eup %2483  ;;  %v1269_v4 = vadd.f32 1.0, %v2482_v63 }
 0x197   : > { %v1657_v5 = vsel %vm1656_vm6, %v2480_v47, %v1653_v0  ;;  %v1665_v6 = vmul.f32 %v2484_v2, %v1268_v49  ;;  %2485 = vpow2.f32 %v2264_v1  ;;  %vm1670_vm8 = vweird.f32 %v2484_v2 }
 0x198   : > { %v1662_v8 = vsel %vm1659_vm7, %v1661_v3, %v1657_v5  ;;  %2487 = vrcp.f32 %v1269_v4  ;;  %v1049_v9 = vpop.f32.mrf.mxu2  ;;  %v874_v14 = vpop.f32.mrf.mxu0  ;;  %vm1671_vm10 = vmor %vm1669_vm9, %vm1670_vm8  ;;  %v1688_v33 = vand.u32 2147483647, %v1269_v4  ;;  %v1690_v34 = vand.u32 2147483648, %v1269_v4 }
 0x199   : > { %v1138_v10 = vpop.f32.mrf.mxu3  ;;  %1779 = vst [vmem:[%s2733_s30 + $0xc8] sm:$0xff] %v1662_v8  ;;  %v1666_v11 = vsub.f32 1.0, %v1665_v6  ;;  %v1050_v12 = vadd.f32 %v1049_v9, %v961_v7  ;;  %v963_v15 = vpop.f32.mrf.mxu1  ;;  %vm1684_vm13 = vweird.f32 %v1269_v4 }
 0x19a   : > { %v964_v22 = vadd.f32 %v963_v15, %v874_v14  ;;  %vm1689_vm15 = vcmp.eq.f32.partialorder %v1688_v33, 8.507059e+37  ;;  %v1691_v43 = vor.u32 1.1754944e-38, %v1690_v34 }
 0x19b   : > { %v1667_v16 = vmul.f32 %v2484_v2, %v1666_v11  ;;  %v1139_v18 = vadd.f32 %v1138_v10, %v1050_v12 }
 0x19d   : > { %v2486_v19 = vpop.eup %2485  ;;  %v1668_v20 = vadd.f32 %v2484_v2, %v1667_v16  ;;  %v2265_v21 = vmul.f32 -1.442695, %v1139_v18 }
 0x19e   : > { %v2488_v23 = vpop.eup %2487  ;;  %v1270_v25 = vadd.f32 1.0, %v2486_v19 }
 0x19f   : > { %v1672_v26 = vsel %vm1671_vm10, %v2484_v2, %v1668_v20  ;;  %v1680_v27 = vmul.f32 %v2488_v23, %v1269_v4  ;;  %2489 = vpow2.f32 %v2265_v21  ;;  %vm1685_vm12 = vweird.f32 %v2488_v23 }
 0x1a0   : > { %v1677_v28 = vsel %vm1674_vm11, %v1676_v24, %v1672_v26  ;;  %2491 = vrcp.f32 %v1270_v25  ;;  %v1052_v29 = vpop.f32.mrf.mxu2  ;;  %v876_v37 = vpop.f32.mrf.mxu0  ;;  %vm1686_vm14 = vmor %vm1684_vm13, %vm1685_vm12  ;;  %v1705_v52 = vand.u32 2147483648, %v1270_v25  ;;  %v1703_v55 = vand.u32 2147483647, %v1270_v25 }
 0x1a1   : > { %v1141_v30 = vpop.f32.mrf.mxu3  ;;  %1780 = vst [vmem:[%s2733_s30 + $0xd0] sm:$0xff] %v1677_v28  ;;  %v1681_v31 = vsub.f32 1.0, %v1680_v27  ;;  %v1053_v32 = vadd.f32 %v1052_v29, %v964_v22  ;;  %v965_v38 = vpop.f32.mrf.mxu1  ;;  %vm1699_vm1 = vweird.f32 %v1270_v25 }
 0x1a2   : > { %v966_v47 = vadd.f32 %v965_v38, %v876_v37  ;;  %v1706_v61 = vor.u32 1.1754944e-38, %v1705_v52  ;;  %vm1704_vm3 = vcmp.eq.f32.partialorder %v1703_v55, 8.507059e+37 }
 0x1a3   : > { %v1682_v35 = vmul.f32 %v2488_v23, %v1681_v31  ;;  %v1142_v36 = vadd.f32 %v1141_v30, %v1053_v32 }
 0x1a5   : > { %v2490_v39 = vpop.eup %2489  ;;  %v1683_v40 = vadd.f32 %v2488_v23, %v1682_v35  ;;  %v2266_v41 = vmul.f32 -1.442695, %v1142_v36 }
 0x1a6   : > { %v2492_v42 = vpop.eup %2491  ;;  %v1271_v44 = vadd.f32 1.0, %v2490_v39 }
 0x1a7   : > { %v1687_v45 = vsel %vm1686_vm14, %v2488_v23, %v1683_v40  ;;  %v1695_v46 = vmul.f32 %v2492_v42, %v1270_v25  ;;  %2493 = vpow2.f32 %v2266_v41  ;;  %vm1700_vm0 = vweird.f32 %v2492_v42 }
 0x1a8   : > { %v1692_v48 = vsel %vm1689_vm15, %v1691_v43, %v1687_v45  ;;  %2495 = vrcp.f32 %v1271_v44  ;;  %v1054_v49 = vpop.f32.mrf.mxu2  ;;  %vm1701_vm2 = vmor %vm1699_vm1, %vm1700_vm0  ;;  %v1720_v3 = vand.u32 2147483648, %v1271_v44  ;;  %v1718_v5 = vand.u32 2147483647, %v1271_v44 }
 0x1a9   : > { %1781 = vst [vmem:[%s2733_s30 + $0xd8] sm:$0xff] %v1692_v48  ;;  %v1696_v50 = vsub.f32 1.0, %v1695_v46  ;;  %v1055_v51 = vadd.f32 %v1054_v49, %v966_v47  ;;  %v1143_v53 = vpop.f32.mrf.mxu3  ;;  %vm1714_vm5 = vweird.f32 %v1271_v44 }
 0x1aa   : > { %v1721_v9 = vor.u32 1.1754944e-38, %v1720_v3  ;;  %vm1719_vm7 = vcmp.eq.f32.partialorder %v1718_v5, 8.507059e+37 }
 0x1ab   : > { %v1697_v54 = vmul.f32 %v2492_v42, %v1696_v50  ;;  %v1144_v56 = vadd.f32 %v1143_v53, %v1055_v51 }
 0x1ad   : > { %v2494_v57 = vpop.eup %2493  ;;  %v1698_v58 = vadd.f32 %v2492_v42, %v1697_v54  ;;  %v2267_v59 = vmul.f32 -1.442695, %v1144_v56 }
 0x1ae   : > { %v2496_v60 = vpop.eup %2495  ;;  %v1272_v62 = vadd.f32 1.0, %v2494_v57 }
 0x1af   : > { %v1702_v63 = vsel %vm1701_vm2, %v2492_v42, %v1698_v58  ;;  %v1710_v0 = vmul.f32 %v2496_v60, %v1271_v44  ;;  %2497 = vpow2.f32 %v2267_v59  ;;  %vm1715_vm4 = vweird.f32 %v2496_v60 }
 0x1b0   : > { %v1707_v1 = vsel %vm1704_vm3, %v1706_v61, %v1702_v63  ;;  %2499 = vrcp.f32 %v1272_v62  ;;  %vm1716_vm6 = vmor %vm1714_vm5, %vm1715_vm4  ;;  %v1735_v15 = vand.u32 2147483648, %v1272_v62  ;;  %v1733_v17 = vand.u32 2147483647, %v1272_v62 }
 0x1b1   : > { %1782 = vst [vmem:[%s2733_s30 + $0xe0] sm:$0xff] %v1707_v1  ;;  %v1711_v2 = vsub.f32 1.0, %v1710_v0  ;;  %vm1729_vm9 = vweird.f32 %v1272_v62 }
 0x1b2   : > { %v1736_v20 = vor.u32 1.1754944e-38, %v1735_v15  ;;  %vm1734_vm11 = vcmp.eq.f32.partialorder %v1733_v17, 8.507059e+37 }
 0x1b3   : > { %v1712_v4 = vmul.f32 %v2496_v60, %v1711_v2 }
 0x1b5   : > { %v2498_v6 = vpop.eup %2497  ;;  %v1713_v7 = vadd.f32 %v2496_v60, %v1712_v4 }
 0x1b6   : > { %v2500_v8 = vpop.eup %2499  ;;  %v1273_v10 = vadd.f32 1.0, %v2498_v6 }
 0x1b7   : > { %v1717_v11 = vsel %vm1716_vm6, %v2496_v60, %v1713_v7  ;;  %v1725_v12 = vmul.f32 %v2500_v8, %v1272_v62  ;;  %vm1730_vm8 = vweird.f32 %v2500_v8 }
 0x1b8   : > { %v1722_v13 = vsel %vm1719_vm7, %v1721_v9, %v1717_v11  ;;  %2501 = vrcp.f32 %v1273_v10  ;;  %vm1731_vm10 = vmor %vm1729_vm9, %vm1730_vm8  ;;  %v1750_v25 = vand.u32 2147483648, %v1273_v10  ;;  %v1748_v27 = vand.u32 2147483647, %v1273_v10 }
 0x1b9   : > { %1783 = vst [vmem:[%s2733_s30 + $0xe8] sm:$0xff] %v1722_v13  ;;  %v1726_v14 = vsub.f32 1.0, %v1725_v12  ;;  %vm1744_vm13 = vweird.f32 %v1273_v10 }
 0x1ba   : > { %v1751_v29 = vor.u32 1.1754944e-38, %v1750_v25  ;;  %vm1749_vm15 = vcmp.eq.f32.partialorder %v1748_v27, 8.507059e+37 }
 0x1bb   : > { %v1727_v16 = vmul.f32 %v2500_v8, %v1726_v14 }
 0x1bd   : > { %v1728_v18 = vadd.f32 %v2500_v8, %v1727_v16 }
 0x1be   : > { %v2502_v19 = vpop.eup %2501 }
 0x1bf   : > { %v1732_v21 = vsel %vm1731_vm10, %v2500_v8, %v1728_v18  ;;  %v1740_v22 = vmul.f32 %v2502_v19, %v1273_v10  ;;  %vm1745_vm12 = vweird.f32 %v2502_v19 }
 0x1c0   : > { %v1737_v23 = vsel %vm1734_vm11, %v1736_v20, %v1732_v21  ;;  %vm1746_vm14 = vmor %vm1744_vm13, %vm1745_vm12 }
 0x1c1   : > { %1784 = vst [vmem:[%s2733_s30 + $0xf0] sm:$0xff] %v1737_v23  ;;  %v1741_v24 = vsub.f32 1.0, %v1740_v22 }
 0x1c3   : > { %v1742_v26 = vmul.f32 %v2502_v19, %v1741_v24 }
 0x1c5   : > { %v1743_v28 = vadd.f32 %v2502_v19, %v1742_v26 }
 0x1c7   : > { %v1747_v30 = vsel %vm1746_vm14, %v2502_v19, %v1743_v28 }
 0x1c8   : > { %v1752_v31 = vsel %vm1749_vm15, %v1751_v29, %v1747_v30 }
 0x1c9   : > { %1785 = vst [vmem:[%s2733_s30 + $0xf8] sm:$0xff] %v1752_v31 }
 0x1ca PF: > { %s12_s9 = sadd.s32 1, %s2509_s9  }
 0x1cb   : > { %p9_p4 = scmp.ge.s32.totalorder %s12_s9, 4  }
 0x1cd   :  { %11 = sbr.rel (!%p9_p4) target bundleno = 1 (0x1), region = 58 }

</bundles_post_ra>
